<compile_context>
chip_gen: v7x
topology: tpu7x:2x2x1
jax: 0.10.0
libtpu: 0.0.40
codegen_flags: <defaults>
</compile_context>

<pallas_src>
import numpy as np
import jax
import jax.numpy as jnp
from jax.experimental import pallas as pl
from jax.experimental.pallas import tpu as pltpu


_LN_EPS = 1e-5          # torch.nn.LayerNorm default
_NEG_SLOPE = 0.2        # LeakyReLU(0.2)

# Static geometry implied by the LayerNorm shapes -> input must be (N, nc, 128, 16).
#            (Hi, Wi)    (kh, kw)  (sh, sw)  (ph, pw)  (OH, OW)
_GEOM = (((128, 16), (4, 4), (2, 2), (1, 1), (64, 8)),     # layer 0
         ((64, 8),   (4, 3), (2, 1), (1, 0), (32, 6)),     # layer 1
         ((32, 6),   (4, 3), (2, 1), (2, 0), (17, 4)),     # layer 2
         ((17, 4),   (8, 4), (2, 1), (1, 1), (6, 3)))      # layer 3


def _build_sel(geom):
    """0/1 gather matrices S[t] (HiWi, OH*OW): column (oh,ow) of S[i*kw+j] selects
    x[h, w] with h=oh*sh+i-ph, w=ow*sw+j-pw (all-zero column == zero padding)."""
    (hi, wi), (kh, kw), (sh, sw), (ph, pw), (oh, ow) = geom
    s = np.zeros((kh * kw, hi * wi, oh * ow), np.float32)
    for i in range(kh):
        for j in range(kw):
            t = i * kw + j
            for r in range(oh):
                h = r * sh + i - ph
                if h < 0 or h >= hi:
                    continue
                for c in range(ow):
                    w = c * sw + j - pw
                    if w < 0 or w >= wi:
                        continue
                    s[t, h * wi + w, r * ow + c] = 1.0
    return s


# Gather matrices depend only on the fixed architecture geometry (not on params).
_SEL = tuple(_build_sel(_GEOM[l]) for l in (1, 2, 3))


# ----------------------------- Pallas kernel --------------------------------

def _full_sum(y):
    """Sum over the whole 2-D block, kept as a (1, 1) array (staged reductions)."""
    s = jnp.sum(y, axis=1, keepdims=True)
    return jnp.sum(s, axis=0, keepdims=True)


def _ln_lrelu(y, g, b):
    """Per-sample LayerNorm over all of (C, OH*OW) + LeakyReLU(0.2), one-pass stats."""
    inv_n = 1.0 / (y.shape[0] * y.shape[1])
    s1 = _full_sum(y)              # independent reduction trees -> overlap on XLU
    s2 = _full_sum(y * y)
    mean = s1 * inv_n
    var = jnp.maximum(s2 * inv_n - mean * mean, 0.0)   # biased var, matches torch
    yn = (y - mean) * jax.lax.rsqrt(var + _LN_EPS)
    z = yn * g + b
    return jnp.where(z >= 0.0, z, _NEG_SLOPE * z)


def _conv_gather(x, s_ref, w_ref):
    """In-VMEM conv: y(OC, OHOW) = sum_t W_t(OC, C) @ (x(C, HiWi) @ S_t(HiWi, OHOW))."""
    khkw, _, ohow = s_ref.shape
    oc = w_ref.shape[1]
    xb = x.astype(jnp.bfloat16)
    acc = jnp.zeros((oc, ohow), jnp.float32)
    for t in range(khkw):                              # static unroll (<=32)
        g = jnp.dot(xb, s_ref[t], preferred_element_type=jnp.float32)       # gather
        acc = acc + jnp.dot(w_ref[t], g, preferred_element_type=jnp.float32)
    return acc


def _netd_kernel(p0_ref, w0_ref, g0_ref, b0_ref,
                 s1_ref, w1_ref, g1_ref, b1_ref,
                 s2_ref, w2_ref, g2_ref, b2_ref,
                 s3_ref, w3_ref, g3_ref, b3_ref,
                 w4_ref, o_ref):
    # Layer 0: conv as one matmul on the prebuilt per-sample patches (K0=16, P0=512).
    y = jnp.dot(w0_ref[...], p0_ref[0], preferred_element_type=jnp.float32)
    a = _ln_lrelu(y, g0_ref[...], b0_ref[...])
    # Layers 1-3: conv via in-kernel gather matmuls; activations stay resident.
    a = _ln_lrelu(_conv_gather(a, s1_ref, w1_ref), g1_ref[...], b1_ref[...])
    a = _ln_lrelu(_conv_gather(a, s2_ref, w2_ref), g2_ref[...], b2_ref[...])
    a = _ln_lrelu(_conv_gather(a, s3_ref, w3_ref), g3_ref[...], b3_ref[...])
    # Head: the (6,3) conv spans the whole feature map -> plain dot product + sigmoid.
    logit = _full_sum(a * w4_ref[...])                 # (1, 1)
    o_ref[0] = jax.nn.sigmoid(logit)


# ------------------------------- JAX glue -----------------------------------

def _im2col(x, kh, kw, sh, sw, ph, pw):
    """NCHW -> (N, C*kh*kw, OH*OW) patches; column order (c, i, j) matches OIHW flatten."""
    n, c, h, w = x.shape
    xp = jnp.pad(x, ((0, 0), (0, 0), (ph, ph), (pw, pw)))
    oh = (h + 2 * ph - kh) // sh + 1
    ow = (w + 2 * pw - kw) // sw + 1
    cols = []
    for i in range(kh):
        for j in range(kw):
            cols.append(xp[:, :, i:i + sh * oh:sh, j:j + sw * ow:sw])   # (N,C,OH,OW)
    p = jnp.stack(cols, axis=2)                        # (N, C, kh*kw, OH, OW)
    return p.reshape(n, c * kh * kw, oh * ow)


def _const_spec(a):
    """Grid-invariant operand: full-array block, constant index -> DMA'd once."""
    return pl.BlockSpec(a.shape, lambda i, _nd=a.ndim: (0,) * _nd)


def netd_forward(x, params):
    n = x.shape[0]
    convs, lns = params["conv"], params["ln"]

    # ---- layer 0 operands (patches built by XLA; ~32 KB/sample) ----
    (_, _), (kh, kw), (sh, sw), (ph, pw), (oh, ow) = _GEOM[0]
    oc0, c0 = convs[0].shape[0], convs[0].shape[1]
    k0, p0 = c0 * kh * kw, oh * ow
    patches0 = _im2col(x, kh, kw, sh, sw, ph, pw).astype(jnp.bfloat16)   # (N, 16, 512)
    w0 = convs[0].reshape(oc0, k0).astype(jnp.bfloat16)
    g0 = lns[0][0].reshape(oc0, p0).astype(jnp.float32)
    b0 = lns[0][1].reshape(oc0, p0).astype(jnp.float32)

    args = [patches0, w0, g0, b0]
    in_specs = [pl.BlockSpec((1, k0, p0), lambda i: (i, 0, 0)),
                _const_spec(w0), _const_spec(g0), _const_spec(b0)]

    # ---- layers 1-3 operands (gather matrices + per-offset weights + LN affine) ----
    for l in (1, 2, 3):
        (_, _), (kh, kw), (_, _), (_, _), (oh, ow) = _GEOM[l]
        w = convs[l]
        oc, ci = w.shape[0], w.shape[1]
        s_l = jnp.asarray(_SEL[l - 1], jnp.bfloat16)           # (kh*kw, HiWi, OH*OW)
        wt_l = w.transpose(2, 3, 0, 1).reshape(kh * kw, oc, ci).astype(jnp.float32)
        g_l = lns[l][0].reshape(oc, oh * ow).astype(jnp.float32)
        b_l = lns[l][1].reshape(oc, oh * ow).astype(jnp.float32)
        args += [s_l, wt_l, g_l, b_l]
        in_specs += [_const_spec(s_l), _const_spec(wt_l),
                     _const_spec(g_l), _const_spec(b_l)]

    # ---- head conv (spans whole 6x3 map, bias=False) ----
    oc3 = convs[3].shape[0]
    oh3, ow3 = _GEOM[3][4]
    w4 = convs[4].reshape(oc3, oh3 * ow3).astype(jnp.float32)
    args += [w4]
    in_specs += [_const_spec(w4)]

    out = pl.pallas_call(
        _netd_kernel,
        out_shape=jax.ShapeDtypeStruct((n, 1, 1), jnp.float32),
        grid=(n,),
        in_specs=in_specs,
        out_specs=pl.BlockSpec((1, 1, 1), lambda i: (i, 0, 0)),
        compiler_params=pltpu.CompilerParams(
            dimension_semantics=("parallel",),          # >=2 steps -> both TCs on v7x
            vmem_limit_bytes=32 * 1024 * 1024),
    )(*args)
    return out.reshape(n, 1)


netd_forward_jit = jax.jit(netd_forward)


# ------------------------------- the model ----------------------------------

def init_netd_params(key, ndf, nc):
    conv_shapes = [
        (ndf,     nc,      4, 4),
        (ndf * 2, ndf,     4, 3),
        (ndf * 4, ndf * 2, 4, 3),
        (ndf * 8, ndf * 4, 8, 4),
        (1,       ndf * 8, 6, 3),
    ]
    ln_shapes = [(ndf, 64, 8), (ndf * 2, 32, 6), (ndf * 4, 17, 4), (ndf * 8, 6, 3)]
    keys = jax.random.split(key, len(conv_shapes))
    convs = [jax.random.normal(k, s, jnp.float32) * 0.02
             for k, s in zip(keys, conv_shapes)]
    lns = [(jnp.ones(s, jnp.float32), jnp.zeros(s, jnp.float32)) for s in ln_shapes]
    return {"conv": convs, "ln": lns}


def _ref_forward(x, params):
    """Pure-JAX/XLA reference matching the PyTorch module (f32)."""
    a = x
    for l in range(4):
        (_, _), (kh, kw), (sh, sw), (ph, pw), _ = _GEOM[l]
        a = jax.lax.conv_general_dilated(
            a, params["conv"][l], window_strides=(sh, sw),
            padding=((ph, ph), (pw, pw)),
            dimension_numbers=("NCHW", "OIHW", "NCHW"))
        g, b = params["ln"][l]
        mean = jnp.mean(a, axis=(1, 2, 3), keepdims=True)
        var = jnp.mean((a - mean) ** 2, axis=(1, 2, 3), keepdims=True)
        a = (a - mean) * jax.lax.rsqrt(var + _LN_EPS) * g[None] + b[None]
        a = jnp.where(a >= 0.0, a, _NEG_SLOPE * a)
    logit = jax.lax.conv_general_dilated(
        a, params["conv"][4], window_strides=(1, 1), padding=((0, 0), (0, 0)),
        dimension_numbers=("NCHW", "OIHW", "NCHW"))
    return jax.nn.sigmoid(logit).reshape(-1, 1)


# --------------------------------- main --------------------------------------

if __name__ == "__main__":
    # The LayerNorm shapes hard-code the spatial size: input must be (N, nc, 128, 16).
    ndf, nc, batch = 4, 1, 2
    key = jax.random.PRNGKey(0)
    k_x, k_p = jax.random.split(key)
    x = jax.random.normal(k_x, (batch, nc, 128, 16), jnp.float32)
    params = init_netd_params(k_p, ndf, nc)

    out = jax.block_until_ready(netd_forward_jit(x, params))
    assert out.shape == (batch, 1), out.shape
    assert bool(jnp.all(jnp.isfinite(out)))
    assert bool(jnp.all((out >= 0.0) & (out <= 1.0)))

    # Cross-check against the pure-XLA f32 reference (bf16 conv inputs -> loose tol).
    ref = jax.block_until_ready(jax.jit(_ref_forward)(x, params))
    max_err = float(jnp.max(jnp.abs(out - ref)))
    assert max_err < 5e-2, max_err

    print("KERNEL_OK")
</pallas_src>

<mosaic_0001>
module attributes {stable_mosaic.version = 11 : i64} {
  func.func @_netd_kernel(%arg0: i32, %arg1: memref<1x16x512xbf16, #tpu.memory_space<vmem>>, %arg2: memref<4x16xbf16, #tpu.memory_space<vmem>>, %arg3: memref<4x512xf32, #tpu.memory_space<vmem>>, %arg4: memref<4x512xf32, #tpu.memory_space<vmem>>, %arg5: memref<12x512x192xbf16, #tpu.memory_space<vmem>>, %arg6: memref<12x8x4xf32, #tpu.memory_space<vmem>>, %arg7: memref<8x192xf32, #tpu.memory_space<vmem>>, %arg8: memref<8x192xf32, #tpu.memory_space<vmem>>, %arg9: memref<12x192x68xbf16, #tpu.memory_space<vmem>>, %arg10: memref<12x16x8xf32, #tpu.memory_space<vmem>>, %arg11: memref<16x68xf32, #tpu.memory_space<vmem>>, %arg12: memref<16x68xf32, #tpu.memory_space<vmem>>, %arg13: memref<32x68x18xbf16, #tpu.memory_space<vmem>>, %arg14: memref<32x32x16xf32, #tpu.memory_space<vmem>>, %arg15: memref<32x18xf32, #tpu.memory_space<vmem>>, %arg16: memref<32x18xf32, #tpu.memory_space<vmem>>, %arg17: memref<32x18xf32, #tpu.memory_space<vmem>>, %arg18: memref<1x1x1xf32, #tpu.memory_space<vmem>>) attributes {dimension_semantics = [#tpu.dimension_semantics<parallel>], iteration_bounds = array<i64: 2>, scalar_prefetch = 0 : i64, scratch_operands = 0 : i64, tpu.core_type = #tpu.core_type<tc>, window_params = [{transform_indices = @transform_0, window_bounds = array<i64: 1, 16, 512>}, {pipeline_mode = #tpu.pipeline_mode<synchronous>, transform_indices = @transform_1, window_bounds = array<i64: 4, 16>}, {pipeline_mode = #tpu.pipeline_mode<synchronous>, transform_indices = @transform_2, window_bounds = array<i64: 4, 512>}, {pipeline_mode = #tpu.pipeline_mode<synchronous>, transform_indices = @transform_3, window_bounds = array<i64: 4, 512>}, {pipeline_mode = #tpu.pipeline_mode<synchronous>, transform_indices = @transform_4, window_bounds = array<i64: 12, 512, 192>}, {pipeline_mode = #tpu.pipeline_mode<synchronous>, transform_indices = @transform_5, window_bounds = array<i64: 12, 8, 4>}, {pipeline_mode = #tpu.pipeline_mode<synchronous>, transform_indices = @transform_6, window_bounds = array<i64: 8, 192>}, {pipeline_mode = #tpu.pipeline_mode<synchronous>, transform_indices = @transform_7, window_bounds = array<i64: 8, 192>}, {pipeline_mode = #tpu.pipeline_mode<synchronous>, transform_indices = @transform_8, window_bounds = array<i64: 12, 192, 68>}, {pipeline_mode = #tpu.pipeline_mode<synchronous>, transform_indices = @transform_9, window_bounds = array<i64: 12, 16, 8>}, {pipeline_mode = #tpu.pipeline_mode<synchronous>, transform_indices = @transform_10, window_bounds = array<i64: 16, 68>}, {pipeline_mode = #tpu.pipeline_mode<synchronous>, transform_indices = @transform_11, window_bounds = array<i64: 16, 68>}, {pipeline_mode = #tpu.pipeline_mode<synchronous>, transform_indices = @transform_12, window_bounds = array<i64: 32, 68, 18>}, {pipeline_mode = #tpu.pipeline_mode<synchronous>, transform_indices = @transform_13, window_bounds = array<i64: 32, 32, 16>}, {pipeline_mode = #tpu.pipeline_mode<synchronous>, transform_indices = @transform_14, window_bounds = array<i64: 32, 18>}, {pipeline_mode = #tpu.pipeline_mode<synchronous>, transform_indices = @transform_15, window_bounds = array<i64: 32, 18>}, {pipeline_mode = #tpu.pipeline_mode<synchronous>, transform_indices = @transform_16, window_bounds = array<i64: 32, 18>}, {transform_indices = @transform_17, window_bounds = array<i64: 1, 1, 1>}]} {
    %c0 = arith.constant 0 : index
    %c0_0 = arith.constant 0 : index
    %0 = vector.load %arg2[%c0, %c0_0] : memref<4x16xbf16, #tpu.memory_space<vmem>>, vector<4x16xbf16>
    %c0_1 = arith.constant 0 : index
    %c0_2 = arith.constant 0 : index
    %c0_3 = arith.constant 0 : index
    %1 = vector.load %arg1[%c0_1, %c0_2, %c0_3] : memref<1x16x512xbf16, #tpu.memory_space<vmem>>, vector<1x16x512xbf16>
    %2 = vector.shape_cast %1 : vector<1x16x512xbf16> to vector<16x512xbf16>
    %cst = arith.constant dense<0.000000e+00> : vector<4x512xf32>
    %3 = tpu.matmul %0, %2, %cst {dimension_numbers = #tpu.dot_dimension_numbers<[1], [0], [0], [1], [0, 0, 1, 1], [], []>} : vector<4x16xbf16>, vector<16x512xbf16>, vector<4x512xf32> -> vector<4x512xf32>
    %c0_4 = arith.constant 0 : index
    %c0_5 = arith.constant 0 : index
    %4 = vector.load %arg3[%c0_4, %c0_5] : memref<4x512xf32, #tpu.memory_space<vmem>>, vector<4x512xf32>
    %c0_6 = arith.constant 0 : index
    %c0_7 = arith.constant 0 : index
    %5 = vector.load %arg4[%c0_6, %c0_7] : memref<4x512xf32, #tpu.memory_space<vmem>>, vector<4x512xf32>
    %cst_8 = arith.constant dense<0.000000e+00> : vector<4xf32>
    %6 = vector.multi_reduction <add>, %3, %cst_8 [1] : vector<4x512xf32> to vector<4xf32>
    %7 = vector.shape_cast %6 : vector<4xf32> to vector<4x1xf32>
    %cst_9 = arith.constant dense<0.000000e+00> : vector<1xf32>
    %8 = vector.multi_reduction <add>, %7, %cst_9 [0] : vector<4x1xf32> to vector<1xf32>
    %9 = vector.shape_cast %8 : vector<1xf32> to vector<1x1xf32>
    %10 = arith.mulf %3, %3 : vector<4x512xf32>
    %cst_10 = arith.constant dense<0.000000e+00> : vector<4xf32>
    %11 = vector.multi_reduction <add>, %10, %cst_10 [1] : vector<4x512xf32> to vector<4xf32>
    %12 = vector.shape_cast %11 : vector<4xf32> to vector<4x1xf32>
    %cst_11 = arith.constant dense<0.000000e+00> : vector<1xf32>
    %13 = vector.multi_reduction <add>, %12, %cst_11 [0] : vector<4x1xf32> to vector<1xf32>
    %14 = vector.shape_cast %13 : vector<1xf32> to vector<1x1xf32>
    %cst_12 = arith.constant 4.8828125E-4 : f32
    %15 = vector.broadcast %cst_12 : f32 to vector<1x1xf32>
    %16 = arith.mulf %9, %15 : vector<1x1xf32>
    %cst_13 = arith.constant 4.8828125E-4 : f32
    %17 = vector.broadcast %cst_13 : f32 to vector<1x1xf32>
    %18 = arith.mulf %14, %17 : vector<1x1xf32>
    %19 = arith.mulf %16, %16 : vector<1x1xf32>
    %20 = arith.subf %18, %19 : vector<1x1xf32>
    %cst_14 = arith.constant 0.000000e+00 : f32
    %21 = vector.broadcast %cst_14 : f32 to vector<1x1xf32>
    %22 = arith.maximumf %20, %21 : vector<1x1xf32>
    %23 = vector.broadcast %16 : vector<1x1xf32> to vector<4x512xf32>
    %24 = arith.subf %3, %23 : vector<4x512xf32>
    %cst_15 = arith.constant 9.99999974E-6 : f32
    %25 = vector.broadcast %cst_15 : f32 to vector<1x1xf32>
    %26 = arith.addf %22, %25 : vector<1x1xf32>
    %27 = math.rsqrt %26 : vector<1x1xf32>
    %28 = vector.broadcast %27 : vector<1x1xf32> to vector<4x512xf32>
    %29 = arith.mulf %24, %28 : vector<4x512xf32>
    %30 = arith.mulf %29, %4 : vector<4x512xf32>
    %31 = arith.addf %30, %5 : vector<4x512xf32>
    %cst_16 = arith.constant 0.000000e+00 : f32
    %32 = vector.broadcast %cst_16 : f32 to vector<4x512xf32>
    %33 = arith.cmpf oge, %31, %32 : vector<4x512xf32>
    %cst_17 = arith.constant 2.000000e-01 : f32
    %34 = vector.broadcast %cst_17 : f32 to vector<4x512xf32>
    %35 = arith.mulf %34, %31 : vector<4x512xf32>
    %36 = arith.select %33, %31, %35 : vector<4x512xi1>, vector<4x512xf32>
    %37 = arith.truncf %36 : vector<4x512xf32> to vector<4x512xbf16>
    %cst_18 = arith.constant 0.000000e+00 : f32
    %38 = vector.broadcast %cst_18 : f32 to vector<8x192xf32>
    %c0_19 = arith.constant 0 : index
    %c0_20 = arith.constant 0 : index
    %c0_21 = arith.constant 0 : index
    %39 = vector.load %arg5[%c0_19, %c0_20, %c0_21] : memref<12x512x192xbf16, #tpu.memory_space<vmem>>, vector<1x512x192xbf16>
    %40 = vector.shape_cast %39 : vector<1x512x192xbf16> to vector<512x192xbf16>
    %cst_22 = arith.constant dense<0.000000e+00> : vector<4x192xf32>
    %41 = tpu.matmul %37, %40, %cst_22 {dimension_numbers = #tpu.dot_dimension_numbers<[1], [0], [0], [1], [0, 0, 1, 1], [], []>} : vector<4x512xbf16>, vector<512x192xbf16>, vector<4x192xf32> -> vector<4x192xf32>
    %c0_23 = arith.constant 0 : index
    %c0_24 = arith.constant 0 : index
    %c0_25 = arith.constant 0 : index
    %42 = vector.load %arg6[%c0_23, %c0_24, %c0_25] : memref<12x8x4xf32, #tpu.memory_space<vmem>>, vector<1x8x4xf32>
    %43 = vector.shape_cast %42 : vector<1x8x4xf32> to vector<8x4xf32>
    %cst_26 = arith.constant dense<0.000000e+00> : vector<8x192xf32>
    %44 = tpu.matmul %43, %41, %cst_26 {dimension_numbers = #tpu.dot_dimension_numbers<[1], [0], [0], [1], [0, 0, 1, 1], [], []>} : vector<8x4xf32>, vector<4x192xf32>, vector<8x192xf32> -> vector<8x192xf32>
    %45 = arith.addf %38, %44 : vector<8x192xf32>
    %c1 = arith.constant 1 : index
    %c0_27 = arith.constant 0 : index
    %c0_28 = arith.constant 0 : index
    %46 = vector.load %arg5[%c1, %c0_27, %c0_28] : memref<12x512x192xbf16, #tpu.memory_space<vmem>>, vector<1x512x192xbf16>
    %47 = vector.shape_cast %46 : vector<1x512x192xbf16> to vector<512x192xbf16>
    %cst_29 = arith.constant dense<0.000000e+00> : vector<4x192xf32>
    %48 = tpu.matmul %37, %47, %cst_29 {dimension_numbers = #tpu.dot_dimension_numbers<[1], [0], [0], [1], [0, 0, 1, 1], [], []>} : vector<4x512xbf16>, vector<512x192xbf16>, vector<4x192xf32> -> vector<4x192xf32>
    %c1_30 = arith.constant 1 : index
    %c0_31 = arith.constant 0 : index
    %c0_32 = arith.constant 0 : index
    %49 = vector.load %arg6[%c1_30, %c0_31, %c0_32] : memref<12x8x4xf32, #tpu.memory_space<vmem>>, vector<1x8x4xf32>
    %50 = vector.shape_cast %49 : vector<1x8x4xf32> to vector<8x4xf32>
    %cst_33 = arith.constant dense<0.000000e+00> : vector<8x192xf32>
    %51 = tpu.matmul %50, %48, %cst_33 {dimension_numbers = #tpu.dot_dimension_numbers<[1], [0], [0], [1], [0, 0, 1, 1], [], []>} : vector<8x4xf32>, vector<4x192xf32>, vector<8x192xf32> -> vector<8x192xf32>
    %52 = arith.addf %45, %51 : vector<8x192xf32>
    %c2 = arith.constant 2 : index
    %c0_34 = arith.constant 0 : index
    %c0_35 = arith.constant 0 : index
    %53 = vector.load %arg5[%c2, %c0_34, %c0_35] : memref<12x512x192xbf16, #tpu.memory_space<vmem>>, vector<1x512x192xbf16>
    %54 = vector.shape_cast %53 : vector<1x512x192xbf16> to vector<512x192xbf16>
    %cst_36 = arith.constant dense<0.000000e+00> : vector<4x192xf32>
    %55 = tpu.matmul %37, %54, %cst_36 {dimension_numbers = #tpu.dot_dimension_numbers<[1], [0], [0], [1], [0, 0, 1, 1], [], []>} : vector<4x512xbf16>, vector<512x192xbf16>, vector<4x192xf32> -> vector<4x192xf32>
    %c2_37 = arith.constant 2 : index
    %c0_38 = arith.constant 0 : index
    %c0_39 = arith.constant 0 : index
    %56 = vector.load %arg6[%c2_37, %c0_38, %c0_39] : memref<12x8x4xf32, #tpu.memory_space<vmem>>, vector<1x8x4xf32>
    %57 = vector.shape_cast %56 : vector<1x8x4xf32> to vector<8x4xf32>
    %cst_40 = arith.constant dense<0.000000e+00> : vector<8x192xf32>
    %58 = tpu.matmul %57, %55, %cst_40 {dimension_numbers = #tpu.dot_dimension_numbers<[1], [0], [0], [1], [0, 0, 1, 1], [], []>} : vector<8x4xf32>, vector<4x192xf32>, vector<8x192xf32> -> vector<8x192xf32>
    %59 = arith.addf %52, %58 : vector<8x192xf32>
    %c3 = arith.constant 3 : index
    %c0_41 = arith.constant 0 : index
    %c0_42 = arith.constant 0 : index
    %60 = vector.load %arg5[%c3, %c0_41, %c0_42] : memref<12x512x192xbf16, #tpu.memory_space<vmem>>, vector<1x512x192xbf16>
    %61 = vector.shape_cast %60 : vector<1x512x192xbf16> to vector<512x192xbf16>
    %cst_43 = arith.constant dense<0.000000e+00> : vector<4x192xf32>
    %62 = tpu.matmul %37, %61, %cst_43 {dimension_numbers = #tpu.dot_dimension_numbers<[1], [0], [0], [1], [0, 0, 1, 1], [], []>} : vector<4x512xbf16>, vector<512x192xbf16>, vector<4x192xf32> -> vector<4x192xf32>
    %c3_44 = arith.constant 3 : index
    %c0_45 = arith.constant 0 : index
    %c0_46 = arith.constant 0 : index
    %63 = vector.load %arg6[%c3_44, %c0_45, %c0_46] : memref<12x8x4xf32, #tpu.memory_space<vmem>>, vector<1x8x4xf32>
    %64 = vector.shape_cast %63 : vector<1x8x4xf32> to vector<8x4xf32>
    %cst_47 = arith.constant dense<0.000000e+00> : vector<8x192xf32>
    %65 = tpu.matmul %64, %62, %cst_47 {dimension_numbers = #tpu.dot_dimension_numbers<[1], [0], [0], [1], [0, 0, 1, 1], [], []>} : vector<8x4xf32>, vector<4x192xf32>, vector<8x192xf32> -> vector<8x192xf32>
    %66 = arith.addf %59, %65 : vector<8x192xf32>
    %c4 = arith.constant 4 : index
    %c0_48 = arith.constant 0 : index
    %c0_49 = arith.constant 0 : index
    %67 = vector.load %arg5[%c4, %c0_48, %c0_49] : memref<12x512x192xbf16, #tpu.memory_space<vmem>>, vector<1x512x192xbf16>
    %68 = vector.shape_cast %67 : vector<1x512x192xbf16> to vector<512x192xbf16>
    %cst_50 = arith.constant dense<0.000000e+00> : vector<4x192xf32>
    %69 = tpu.matmul %37, %68, %cst_50 {dimension_numbers = #tpu.dot_dimension_numbers<[1], [0], [0], [1], [0, 0, 1, 1], [], []>} : vector<4x512xbf16>, vector<512x192xbf16>, vector<4x192xf32> -> vector<4x192xf32>
    %c4_51 = arith.constant 4 : index
    %c0_52 = arith.constant 0 : index
    %c0_53 = arith.constant 0 : index
    %70 = vector.load %arg6[%c4_51, %c0_52, %c0_53] : memref<12x8x4xf32, #tpu.memory_space<vmem>>, vector<1x8x4xf32>
    %71 = vector.shape_cast %70 : vector<1x8x4xf32> to vector<8x4xf32>
    %cst_54 = arith.constant dense<0.000000e+00> : vector<8x192xf32>
    %72 = tpu.matmul %71, %69, %cst_54 {dimension_numbers = #tpu.dot_dimension_numbers<[1], [0], [0], [1], [0, 0, 1, 1], [], []>} : vector<8x4xf32>, vector<4x192xf32>, vector<8x192xf32> -> vector<8x192xf32>
    %73 = arith.addf %66, %72 : vector<8x192xf32>
    %c5 = arith.constant 5 : index
    %c0_55 = arith.constant 0 : index
    %c0_56 = arith.constant 0 : index
    %74 = vector.load %arg5[%c5, %c0_55, %c0_56] : memref<12x512x192xbf16, #tpu.memory_space<vmem>>, vector<1x512x192xbf16>
    %75 = vector.shape_cast %74 : vector<1x512x192xbf16> to vector<512x192xbf16>
    %cst_57 = arith.constant dense<0.000000e+00> : vector<4x192xf32>
    %76 = tpu.matmul %37, %75, %cst_57 {dimension_numbers = #tpu.dot_dimension_numbers<[1], [0], [0], [1], [0, 0, 1, 1], [], []>} : vector<4x512xbf16>, vector<512x192xbf16>, vector<4x192xf32> -> vector<4x192xf32>
    %c5_58 = arith.constant 5 : index
    %c0_59 = arith.constant 0 : index
    %c0_60 = arith.constant 0 : index
    %77 = vector.load %arg6[%c5_58, %c0_59, %c0_60] : memref<12x8x4xf32, #tpu.memory_space<vmem>>, vector<1x8x4xf32>
    %78 = vector.shape_cast %77 : vector<1x8x4xf32> to vector<8x4xf32>
    %cst_61 = arith.constant dense<0.000000e+00> : vector<8x192xf32>
    %79 = tpu.matmul %78, %76, %cst_61 {dimension_numbers = #tpu.dot_dimension_numbers<[1], [0], [0], [1], [0, 0, 1, 1], [], []>} : vector<8x4xf32>, vector<4x192xf32>, vector<8x192xf32> -> vector<8x192xf32>
    %80 = arith.addf %73, %79 : vector<8x192xf32>
    %c6 = arith.constant 6 : index
    %c0_62 = arith.constant 0 : index
    %c0_63 = arith.constant 0 : index
    %81 = vector.load %arg5[%c6, %c0_62, %c0_63] : memref<12x512x192xbf16, #tpu.memory_space<vmem>>, vector<1x512x192xbf16>
    %82 = vector.shape_cast %81 : vector<1x512x192xbf16> to vector<512x192xbf16>
    %cst_64 = arith.constant dense<0.000000e+00> : vector<4x192xf32>
    %83 = tpu.matmul %37, %82, %cst_64 {dimension_numbers = #tpu.dot_dimension_numbers<[1], [0], [0], [1], [0, 0, 1, 1], [], []>} : vector<4x512xbf16>, vector<512x192xbf16>, vector<4x192xf32> -> vector<4x192xf32>
    %c6_65 = arith.constant 6 : index
    %c0_66 = arith.constant 0 : index
    %c0_67 = arith.constant 0 : index
    %84 = vector.load %arg6[%c6_65, %c0_66, %c0_67] : memref<12x8x4xf32, #tpu.memory_space<vmem>>, vector<1x8x4xf32>
    %85 = vector.shape_cast %84 : vector<1x8x4xf32> to vector<8x4xf32>
    %cst_68 = arith.constant dense<0.000000e+00> : vector<8x192xf32>
    %86 = tpu.matmul %85, %83, %cst_68 {dimension_numbers = #tpu.dot_dimension_numbers<[1], [0], [0], [1], [0, 0, 1, 1], [], []>} : vector<8x4xf32>, vector<4x192xf32>, vector<8x192xf32> -> vector<8x192xf32>
    %87 = arith.addf %80, %86 : vector<8x192xf32>
    %c7 = arith.constant 7 : index
    %c0_69 = arith.constant 0 : index
    %c0_70 = arith.constant 0 : index
    %88 = vector.load %arg5[%c7, %c0_69, %c0_70] : memref<12x512x192xbf16, #tpu.memory_space<vmem>>, vector<1x512x192xbf16>
    %89 = vector.shape_cast %88 : vector<1x512x192xbf16> to vector<512x192xbf16>
    %cst_71 = arith.constant dense<0.000000e+00> : vector<4x192xf32>
    %90 = tpu.matmul %37, %89, %cst_71 {dimension_numbers = #tpu.dot_dimension_numbers<[1], [0], [0], [1], [0, 0, 1, 1], [], []>} : vector<4x512xbf16>, vector<512x192xbf16>, vector<4x192xf32> -> vector<4x192xf32>
    %c7_72 = arith.constant 7 : index
    %c0_73 = arith.constant 0 : index
    %c0_74 = arith.constant 0 : index
    %91 = vector.load %arg6[%c7_72, %c0_73, %c0_74] : memref<12x8x4xf32, #tpu.memory_space<vmem>>, vector<1x8x4xf32>
    %92 = vector.shape_cast %91 : vector<1x8x4xf32> to vector<8x4xf32>
    %cst_75 = arith.constant dense<0.000000e+00> : vector<8x192xf32>
    %93 = tpu.matmul %92, %90, %cst_75 {dimension_numbers = #tpu.dot_dimension_numbers<[1], [0], [0], [1], [0, 0, 1, 1], [], []>} : vector<8x4xf32>, vector<4x192xf32>, vector<8x192xf32> -> vector<8x192xf32>
    %94 = arith.addf %87, %93 : vector<8x192xf32>
    %c8 = arith.constant 8 : index
    %c0_76 = arith.constant 0 : index
    %c0_77 = arith.constant 0 : index
    %95 = vector.load %arg5[%c8, %c0_76, %c0_77] : memref<12x512x192xbf16, #tpu.memory_space<vmem>>, vector<1x512x192xbf16>
    %96 = vector.shape_cast %95 : vector<1x512x192xbf16> to vector<512x192xbf16>
    %cst_78 = arith.constant dense<0.000000e+00> : vector<4x192xf32>
    %97 = tpu.matmul %37, %96, %cst_78 {dimension_numbers = #tpu.dot_dimension_numbers<[1], [0], [0], [1], [0, 0, 1, 1], [], []>} : vector<4x512xbf16>, vector<512x192xbf16>, vector<4x192xf32> -> vector<4x192xf32>
    %c8_79 = arith.constant 8 : index
    %c0_80 = arith.constant 0 : index
    %c0_81 = arith.constant 0 : index
    %98 = vector.load %arg6[%c8_79, %c0_80, %c0_81] : memref<12x8x4xf32, #tpu.memory_space<vmem>>, vector<1x8x4xf32>
    %99 = vector.shape_cast %98 : vector<1x8x4xf32> to vector<8x4xf32>
    %cst_82 = arith.constant dense<0.000000e+00> : vector<8x192xf32>
    %100 = tpu.matmul %99, %97, %cst_82 {dimension_numbers = #tpu.dot_dimension_numbers<[1], [0], [0], [1], [0, 0, 1, 1], [], []>} : vector<8x4xf32>, vector<4x192xf32>, vector<8x192xf32> -> vector<8x192xf32>
    %101 = arith.addf %94, %100 : vector<8x192xf32>
    %c9 = arith.constant 9 : index
    %c0_83 = arith.constant 0 : index
    %c0_84 = arith.constant 0 : index
    %102 = vector.load %arg5[%c9, %c0_83, %c0_84] : memref<12x512x192xbf16, #tpu.memory_space<vmem>>, vector<1x512x192xbf16>
    %103 = vector.shape_cast %102 : vector<1x512x192xbf16> to vector<512x192xbf16>
    %cst_85 = arith.constant dense<0.000000e+00> : vector<4x192xf32>
    %104 = tpu.matmul %37, %103, %cst_85 {dimension_numbers = #tpu.dot_dimension_numbers<[1], [0], [0], [1], [0, 0, 1, 1], [], []>} : vector<4x512xbf16>, vector<512x192xbf16>, vector<4x192xf32> -> vector<4x192xf32>
    %c9_86 = arith.constant 9 : index
    %c0_87 = arith.constant 0 : index
    %c0_88 = arith.constant 0 : index
    %105 = vector.load %arg6[%c9_86, %c0_87, %c0_88] : memref<12x8x4xf32, #tpu.memory_space<vmem>>, vector<1x8x4xf32>
    %106 = vector.shape_cast %105 : vector<1x8x4xf32> to vector<8x4xf32>
    %cst_89 = arith.constant dense<0.000000e+00> : vector<8x192xf32>
    %107 = tpu.matmul %106, %104, %cst_89 {dimension_numbers = #tpu.dot_dimension_numbers<[1], [0], [0], [1], [0, 0, 1, 1], [], []>} : vector<8x4xf32>, vector<4x192xf32>, vector<8x192xf32> -> vector<8x192xf32>
    %108 = arith.addf %101, %107 : vector<8x192xf32>
    %c10 = arith.constant 10 : index
    %c0_90 = arith.constant 0 : index
    %c0_91 = arith.constant 0 : index
    %109 = vector.load %arg5[%c10, %c0_90, %c0_91] : memref<12x512x192xbf16, #tpu.memory_space<vmem>>, vector<1x512x192xbf16>
    %110 = vector.shape_cast %109 : vector<1x512x192xbf16> to vector<512x192xbf16>
    %cst_92 = arith.constant dense<0.000000e+00> : vector<4x192xf32>
    %111 = tpu.matmul %37, %110, %cst_92 {dimension_numbers = #tpu.dot_dimension_numbers<[1], [0], [0], [1], [0, 0, 1, 1], [], []>} : vector<4x512xbf16>, vector<512x192xbf16>, vector<4x192xf32> -> vector<4x192xf32>
    %c10_93 = arith.constant 10 : index
    %c0_94 = arith.constant 0 : index
    %c0_95 = arith.constant 0 : index
    %112 = vector.load %arg6[%c10_93, %c0_94, %c0_95] : memref<12x8x4xf32, #tpu.memory_space<vmem>>, vector<1x8x4xf32>
    %113 = vector.shape_cast %112 : vector<1x8x4xf32> to vector<8x4xf32>
    %cst_96 = arith.constant dense<0.000000e+00> : vector<8x192xf32>
    %114 = tpu.matmul %113, %111, %cst_96 {dimension_numbers = #tpu.dot_dimension_numbers<[1], [0], [0], [1], [0, 0, 1, 1], [], []>} : vector<8x4xf32>, vector<4x192xf32>, vector<8x192xf32> -> vector<8x192xf32>
    %115 = arith.addf %108, %114 : vector<8x192xf32>
    %c11 = arith.constant 11 : index
    %c0_97 = arith.constant 0 : index
    %c0_98 = arith.constant 0 : index
    %116 = vector.load %arg5[%c11, %c0_97, %c0_98] : memref<12x512x192xbf16, #tpu.memory_space<vmem>>, vector<1x512x192xbf16>
    %117 = vector.shape_cast %116 : vector<1x512x192xbf16> to vector<512x192xbf16>
    %cst_99 = arith.constant dense<0.000000e+00> : vector<4x192xf32>
    %118 = tpu.matmul %37, %117, %cst_99 {dimension_numbers = #tpu.dot_dimension_numbers<[1], [0], [0], [1], [0, 0, 1, 1], [], []>} : vector<4x512xbf16>, vector<512x192xbf16>, vector<4x192xf32> -> vector<4x192xf32>
    %c11_100 = arith.constant 11 : index
    %c0_101 = arith.constant 0 : index
    %c0_102 = arith.constant 0 : index
    %119 = vector.load %arg6[%c11_100, %c0_101, %c0_102] : memref<12x8x4xf32, #tpu.memory_space<vmem>>, vector<1x8x4xf32>
    %120 = vector.shape_cast %119 : vector<1x8x4xf32> to vector<8x4xf32>
    %cst_103 = arith.constant dense<0.000000e+00> : vector<8x192xf32>
    %121 = tpu.matmul %120, %118, %cst_103 {dimension_numbers = #tpu.dot_dimension_numbers<[1], [0], [0], [1], [0, 0, 1, 1], [], []>} : vector<8x4xf32>, vector<4x192xf32>, vector<8x192xf32> -> vector<8x192xf32>
    %122 = arith.addf %115, %121 : vector<8x192xf32>
    %c0_104 = arith.constant 0 : index
    %c0_105 = arith.constant 0 : index
    %123 = vector.load %arg7[%c0_104, %c0_105] : memref<8x192xf32, #tpu.memory_space<vmem>>, vector<8x192xf32>
    %c0_106 = arith.constant 0 : index
    %c0_107 = arith.constant 0 : index
    %124 = vector.load %arg8[%c0_106, %c0_107] : memref<8x192xf32, #tpu.memory_space<vmem>>, vector<8x192xf32>
    %cst_108 = arith.constant dense<0.000000e+00> : vector<8xf32>
    %125 = vector.multi_reduction <add>, %122, %cst_108 [1] : vector<8x192xf32> to vector<8xf32>
    %126 = vector.shape_cast %125 : vector<8xf32> to vector<8x1xf32>
    %cst_109 = arith.constant dense<0.000000e+00> : vector<1xf32>
    %127 = vector.multi_reduction <add>, %126, %cst_109 [0] : vector<8x1xf32> to vector<1xf32>
    %128 = vector.shape_cast %127 : vector<1xf32> to vector<1x1xf32>
    %129 = arith.mulf %122, %122 : vector<8x192xf32>
    %cst_110 = arith.constant dense<0.000000e+00> : vector<8xf32>
    %130 = vector.multi_reduction <add>, %129, %cst_110 [1] : vector<8x192xf32> to vector<8xf32>
    %131 = vector.shape_cast %130 : vector<8xf32> to vector<8x1xf32>
    %cst_111 = arith.constant dense<0.000000e+00> : vector<1xf32>
    %132 = vector.multi_reduction <add>, %131, %cst_111 [0] : vector<8x1xf32> to vector<1xf32>
    %133 = vector.shape_cast %132 : vector<1xf32> to vector<1x1xf32>
    %cst_112 = arith.constant 6.51041686E-4 : f32
    %134 = vector.broadcast %cst_112 : f32 to vector<1x1xf32>
    %135 = arith.mulf %128, %134 : vector<1x1xf32>
    %cst_113 = arith.constant 6.51041686E-4 : f32
    %136 = vector.broadcast %cst_113 : f32 to vector<1x1xf32>
    %137 = arith.mulf %133, %136 : vector<1x1xf32>
    %138 = arith.mulf %135, %135 : vector<1x1xf32>
    %139 = arith.subf %137, %138 : vector<1x1xf32>
    %cst_114 = arith.constant 0.000000e+00 : f32
    %140 = vector.broadcast %cst_114 : f32 to vector<1x1xf32>
    %141 = arith.maximumf %139, %140 : vector<1x1xf32>
    %142 = vector.broadcast %135 : vector<1x1xf32> to vector<8x192xf32>
    %143 = arith.subf %122, %142 : vector<8x192xf32>
    %cst_115 = arith.constant 9.99999974E-6 : f32
    %144 = vector.broadcast %cst_115 : f32 to vector<1x1xf32>
    %145 = arith.addf %141, %144 : vector<1x1xf32>
    %146 = math.rsqrt %145 : vector<1x1xf32>
    %147 = vector.broadcast %146 : vector<1x1xf32> to vector<8x192xf32>
    %148 = arith.mulf %143, %147 : vector<8x192xf32>
    %149 = arith.mulf %148, %123 : vector<8x192xf32>
    %150 = arith.addf %149, %124 : vector<8x192xf32>
    %cst_116 = arith.constant 0.000000e+00 : f32
    %151 = vector.broadcast %cst_116 : f32 to vector<8x192xf32>
    %152 = arith.cmpf oge, %150, %151 : vector<8x192xf32>
    %cst_117 = arith.constant 2.000000e-01 : f32
    %153 = vector.broadcast %cst_117 : f32 to vector<8x192xf32>
    %154 = arith.mulf %153, %150 : vector<8x192xf32>
    %155 = arith.select %152, %150, %154 : vector<8x192xi1>, vector<8x192xf32>
    %156 = arith.truncf %155 : vector<8x192xf32> to vector<8x192xbf16>
    %cst_118 = arith.constant 0.000000e+00 : f32
    %157 = vector.broadcast %cst_118 : f32 to vector<16x68xf32>
    %c0_119 = arith.constant 0 : index
    %c0_120 = arith.constant 0 : index
    %c0_121 = arith.constant 0 : index
    %158 = vector.load %arg9[%c0_119, %c0_120, %c0_121] : memref<12x192x68xbf16, #tpu.memory_space<vmem>>, vector<1x192x68xbf16>
    %159 = vector.shape_cast %158 : vector<1x192x68xbf16> to vector<192x68xbf16>
    %cst_122 = arith.constant dense<0.000000e+00> : vector<8x68xf32>
    %160 = tpu.matmul %156, %159, %cst_122 {dimension_numbers = #tpu.dot_dimension_numbers<[1], [0], [0], [1], [0, 0, 1, 1], [], []>} : vector<8x192xbf16>, vector<192x68xbf16>, vector<8x68xf32> -> vector<8x68xf32>
    %c0_123 = arith.constant 0 : index
    %c0_124 = arith.constant 0 : index
    %c0_125 = arith.constant 0 : index
    %161 = vector.load %arg10[%c0_123, %c0_124, %c0_125] : memref<12x16x8xf32, #tpu.memory_space<vmem>>, vector<1x16x8xf32>
    %162 = vector.shape_cast %161 : vector<1x16x8xf32> to vector<16x8xf32>
    %cst_126 = arith.constant dense<0.000000e+00> : vector<16x68xf32>
    %163 = tpu.matmul %162, %160, %cst_126 {dimension_numbers = #tpu.dot_dimension_numbers<[1], [0], [0], [1], [0, 0, 1, 1], [], []>} : vector<16x8xf32>, vector<8x68xf32>, vector<16x68xf32> -> vector<16x68xf32>
    %164 = arith.addf %157, %163 : vector<16x68xf32>
    %c1_127 = arith.constant 1 : index
    %c0_128 = arith.constant 0 : index
    %c0_129 = arith.constant 0 : index
    %165 = vector.load %arg9[%c1_127, %c0_128, %c0_129] : memref<12x192x68xbf16, #tpu.memory_space<vmem>>, vector<1x192x68xbf16>
    %166 = vector.shape_cast %165 : vector<1x192x68xbf16> to vector<192x68xbf16>
    %cst_130 = arith.constant dense<0.000000e+00> : vector<8x68xf32>
    %167 = tpu.matmul %156, %166, %cst_130 {dimension_numbers = #tpu.dot_dimension_numbers<[1], [0], [0], [1], [0, 0, 1, 1], [], []>} : vector<8x192xbf16>, vector<192x68xbf16>, vector<8x68xf32> -> vector<8x68xf32>
    %c1_131 = arith.constant 1 : index
    %c0_132 = arith.constant 0 : index
    %c0_133 = arith.constant 0 : index
    %168 = vector.load %arg10[%c1_131, %c0_132, %c0_133] : memref<12x16x8xf32, #tpu.memory_space<vmem>>, vector<1x16x8xf32>
    %169 = vector.shape_cast %168 : vector<1x16x8xf32> to vector<16x8xf32>
    %cst_134 = arith.constant dense<0.000000e+00> : vector<16x68xf32>
    %170 = tpu.matmul %169, %167, %cst_134 {dimension_numbers = #tpu.dot_dimension_numbers<[1], [0], [0], [1], [0, 0, 1, 1], [], []>} : vector<16x8xf32>, vector<8x68xf32>, vector<16x68xf32> -> vector<16x68xf32>
    %171 = arith.addf %164, %170 : vector<16x68xf32>
    %c2_135 = arith.constant 2 : index
    %c0_136 = arith.constant 0 : index
    %c0_137 = arith.constant 0 : index
    %172 = vector.load %arg9[%c2_135, %c0_136, %c0_137] : memref<12x192x68xbf16, #tpu.memory_space<vmem>>, vector<1x192x68xbf16>
    %173 = vector.shape_cast %172 : vector<1x192x68xbf16> to vector<192x68xbf16>
    %cst_138 = arith.constant dense<0.000000e+00> : vector<8x68xf32>
    %174 = tpu.matmul %156, %173, %cst_138 {dimension_numbers = #tpu.dot_dimension_numbers<[1], [0], [0], [1], [0, 0, 1, 1], [], []>} : vector<8x192xbf16>, vector<192x68xbf16>, vector<8x68xf32> -> vector<8x68xf32>
    %c2_139 = arith.constant 2 : index
    %c0_140 = arith.constant 0 : index
    %c0_141 = arith.constant 0 : index
    %175 = vector.load %arg10[%c2_139, %c0_140, %c0_141] : memref<12x16x8xf32, #tpu.memory_space<vmem>>, vector<1x16x8xf32>
    %176 = vector.shape_cast %175 : vector<1x16x8xf32> to vector<16x8xf32>
    %cst_142 = arith.constant dense<0.000000e+00> : vector<16x68xf32>
    %177 = tpu.matmul %176, %174, %cst_142 {dimension_numbers = #tpu.dot_dimension_numbers<[1], [0], [0], [1], [0, 0, 1, 1], [], []>} : vector<16x8xf32>, vector<8x68xf32>, vector<16x68xf32> -> vector<16x68xf32>
    %178 = arith.addf %171, %177 : vector<16x68xf32>
    %c3_143 = arith.constant 3 : index
    %c0_144 = arith.constant 0 : index
    %c0_145 = arith.constant 0 : index
    %179 = vector.load %arg9[%c3_143, %c0_144, %c0_145] : memref<12x192x68xbf16, #tpu.memory_space<vmem>>, vector<1x192x68xbf16>
    %180 = vector.shape_cast %179 : vector<1x192x68xbf16> to vector<192x68xbf16>
    %cst_146 = arith.constant dense<0.000000e+00> : vector<8x68xf32>
    %181 = tpu.matmul %156, %180, %cst_146 {dimension_numbers = #tpu.dot_dimension_numbers<[1], [0], [0], [1], [0, 0, 1, 1], [], []>} : vector<8x192xbf16>, vector<192x68xbf16>, vector<8x68xf32> -> vector<8x68xf32>
    %c3_147 = arith.constant 3 : index
    %c0_148 = arith.constant 0 : index
    %c0_149 = arith.constant 0 : index
    %182 = vector.load %arg10[%c3_147, %c0_148, %c0_149] : memref<12x16x8xf32, #tpu.memory_space<vmem>>, vector<1x16x8xf32>
    %183 = vector.shape_cast %182 : vector<1x16x8xf32> to vector<16x8xf32>
    %cst_150 = arith.constant dense<0.000000e+00> : vector<16x68xf32>
    %184 = tpu.matmul %183, %181, %cst_150 {dimension_numbers = #tpu.dot_dimension_numbers<[1], [0], [0], [1], [0, 0, 1, 1], [], []>} : vector<16x8xf32>, vector<8x68xf32>, vector<16x68xf32> -> vector<16x68xf32>
    %185 = arith.addf %178, %184 : vector<16x68xf32>
    %c4_151 = arith.constant 4 : index
    %c0_152 = arith.constant 0 : index
    %c0_153 = arith.constant 0 : index
    %186 = vector.load %arg9[%c4_151, %c0_152, %c0_153] : memref<12x192x68xbf16, #tpu.memory_space<vmem>>, vector<1x192x68xbf16>
    %187 = vector.shape_cast %186 : vector<1x192x68xbf16> to vector<192x68xbf16>
    %cst_154 = arith.constant dense<0.000000e+00> : vector<8x68xf32>
    %188 = tpu.matmul %156, %187, %cst_154 {dimension_numbers = #tpu.dot_dimension_numbers<[1], [0], [0], [1], [0, 0, 1, 1], [], []>} : vector<8x192xbf16>, vector<192x68xbf16>, vector<8x68xf32> -> vector<8x68xf32>
    %c4_155 = arith.constant 4 : index
    %c0_156 = arith.constant 0 : index
    %c0_157 = arith.constant 0 : index
    %189 = vector.load %arg10[%c4_155, %c0_156, %c0_157] : memref<12x16x8xf32, #tpu.memory_space<vmem>>, vector<1x16x8xf32>
    %190 = vector.shape_cast %189 : vector<1x16x8xf32> to vector<16x8xf32>
    %cst_158 = arith.constant dense<0.000000e+00> : vector<16x68xf32>
    %191 = tpu.matmul %190, %188, %cst_158 {dimension_numbers = #tpu.dot_dimension_numbers<[1], [0], [0], [1], [0, 0, 1, 1], [], []>} : vector<16x8xf32>, vector<8x68xf32>, vector<16x68xf32> -> vector<16x68xf32>
    %192 = arith.addf %185, %191 : vector<16x68xf32>
    %c5_159 = arith.constant 5 : index
    %c0_160 = arith.constant 0 : index
    %c0_161 = arith.constant 0 : index
    %193 = vector.load %arg9[%c5_159, %c0_160, %c0_161] : memref<12x192x68xbf16, #tpu.memory_space<vmem>>, vector<1x192x68xbf16>
    %194 = vector.shape_cast %193 : vector<1x192x68xbf16> to vector<192x68xbf16>
    %cst_162 = arith.constant dense<0.000000e+00> : vector<8x68xf32>
    %195 = tpu.matmul %156, %194, %cst_162 {dimension_numbers = #tpu.dot_dimension_numbers<[1], [0], [0], [1], [0, 0, 1, 1], [], []>} : vector<8x192xbf16>, vector<192x68xbf16>, vector<8x68xf32> -> vector<8x68xf32>
    %c5_163 = arith.constant 5 : index
    %c0_164 = arith.constant 0 : index
    %c0_165 = arith.constant 0 : index
    %196 = vector.load %arg10[%c5_163, %c0_164, %c0_165] : memref<12x16x8xf32, #tpu.memory_space<vmem>>, vector<1x16x8xf32>
    %197 = vector.shape_cast %196 : vector<1x16x8xf32> to vector<16x8xf32>
    %cst_166 = arith.constant dense<0.000000e+00> : vector<16x68xf32>
    %198 = tpu.matmul %197, %195, %cst_166 {dimension_numbers = #tpu.dot_dimension_numbers<[1], [0], [0], [1], [0, 0, 1, 1], [], []>} : vector<16x8xf32>, vector<8x68xf32>, vector<16x68xf32> -> vector<16x68xf32>
    %199 = arith.addf %192, %198 : vector<16x68xf32>
    %c6_167 = arith.constant 6 : index
    %c0_168 = arith.constant 0 : index
    %c0_169 = arith.constant 0 : index
    %200 = vector.load %arg9[%c6_167, %c0_168, %c0_169] : memref<12x192x68xbf16, #tpu.memory_space<vmem>>, vector<1x192x68xbf16>
    %201 = vector.shape_cast %200 : vector<1x192x68xbf16> to vector<192x68xbf16>
    %cst_170 = arith.constant dense<0.000000e+00> : vector<8x68xf32>
    %202 = tpu.matmul %156, %201, %cst_170 {dimension_numbers = #tpu.dot_dimension_numbers<[1], [0], [0], [1], [0, 0, 1, 1], [], []>} : vector<8x192xbf16>, vector<192x68xbf16>, vector<8x68xf32> -> vector<8x68xf32>
    %c6_171 = arith.constant 6 : index
    %c0_172 = arith.constant 0 : index
    %c0_173 = arith.constant 0 : index
    %203 = vector.load %arg10[%c6_171, %c0_172, %c0_173] : memref<12x16x8xf32, #tpu.memory_space<vmem>>, vector<1x16x8xf32>
    %204 = vector.shape_cast %203 : vector<1x16x8xf32> to vector<16x8xf32>
    %cst_174 = arith.constant dense<0.000000e+00> : vector<16x68xf32>
    %205 = tpu.matmul %204, %202, %cst_174 {dimension_numbers = #tpu.dot_dimension_numbers<[1], [0], [0], [1], [0, 0, 1, 1], [], []>} : vector<16x8xf32>, vector<8x68xf32>, vector<16x68xf32> -> vector<16x68xf32>
    %206 = arith.addf %199, %205 : vector<16x68xf32>
    %c7_175 = arith.constant 7 : index
    %c0_176 = arith.constant 0 : index
    %c0_177 = arith.constant 0 : index
    %207 = vector.load %arg9[%c7_175, %c0_176, %c0_177] : memref<12x192x68xbf16, #tpu.memory_space<vmem>>, vector<1x192x68xbf16>
    %208 = vector.shape_cast %207 : vector<1x192x68xbf16> to vector<192x68xbf16>
    %cst_178 = arith.constant dense<0.000000e+00> : vector<8x68xf32>
    %209 = tpu.matmul %156, %208, %cst_178 {dimension_numbers = #tpu.dot_dimension_numbers<[1], [0], [0], [1], [0, 0, 1, 1], [], []>} : vector<8x192xbf16>, vector<192x68xbf16>, vector<8x68xf32> -> vector<8x68xf32>
    %c7_179 = arith.constant 7 : index
    %c0_180 = arith.constant 0 : index
    %c0_181 = arith.constant 0 : index
    %210 = vector.load %arg10[%c7_179, %c0_180, %c0_181] : memref<12x16x8xf32, #tpu.memory_space<vmem>>, vector<1x16x8xf32>
    %211 = vector.shape_cast %210 : vector<1x16x8xf32> to vector<16x8xf32>
    %cst_182 = arith.constant dense<0.000000e+00> : vector<16x68xf32>
    %212 = tpu.matmul %211, %209, %cst_182 {dimension_numbers = #tpu.dot_dimension_numbers<[1], [0], [0], [1], [0, 0, 1, 1], [], []>} : vector<16x8xf32>, vector<8x68xf32>, vector<16x68xf32> -> vector<16x68xf32>
    %213 = arith.addf %206, %212 : vector<16x68xf32>
    %c8_183 = arith.constant 8 : index
    %c0_184 = arith.constant 0 : index
    %c0_185 = arith.constant 0 : index
    %214 = vector.load %arg9[%c8_183, %c0_184, %c0_185] : memref<12x192x68xbf16, #tpu.memory_space<vmem>>, vector<1x192x68xbf16>
    %215 = vector.shape_cast %214 : vector<1x192x68xbf16> to vector<192x68xbf16>
    %cst_186 = arith.constant dense<0.000000e+00> : vector<8x68xf32>
    %216 = tpu.matmul %156, %215, %cst_186 {dimension_numbers = #tpu.dot_dimension_numbers<[1], [0], [0], [1], [0, 0, 1, 1], [], []>} : vector<8x192xbf16>, vector<192x68xbf16>, vector<8x68xf32> -> vector<8x68xf32>
    %c8_187 = arith.constant 8 : index
    %c0_188 = arith.constant 0 : index
    %c0_189 = arith.constant 0 : index
    %217 = vector.load %arg10[%c8_187, %c0_188, %c0_189] : memref<12x16x8xf32, #tpu.memory_space<vmem>>, vector<1x16x8xf32>
    %218 = vector.shape_cast %217 : vector<1x16x8xf32> to vector<16x8xf32>
    %cst_190 = arith.constant dense<0.000000e+00> : vector<16x68xf32>
    %219 = tpu.matmul %218, %216, %cst_190 {dimension_numbers = #tpu.dot_dimension_numbers<[1], [0], [0], [1], [0, 0, 1, 1], [], []>} : vector<16x8xf32>, vector<8x68xf32>, vector<16x68xf32> -> vector<16x68xf32>
    %220 = arith.addf %213, %219 : vector<16x68xf32>
    %c9_191 = arith.constant 9 : index
    %c0_192 = arith.constant 0 : index
    %c0_193 = arith.constant 0 : index
    %221 = vector.load %arg9[%c9_191, %c0_192, %c0_193] : memref<12x192x68xbf16, #tpu.memory_space<vmem>>, vector<1x192x68xbf16>
    %222 = vector.shape_cast %221 : vector<1x192x68xbf16> to vector<192x68xbf16>
    %cst_194 = arith.constant dense<0.000000e+00> : vector<8x68xf32>
    %223 = tpu.matmul %156, %222, %cst_194 {dimension_numbers = #tpu.dot_dimension_numbers<[1], [0], [0], [1], [0, 0, 1, 1], [], []>} : vector<8x192xbf16>, vector<192x68xbf16>, vector<8x68xf32> -> vector<8x68xf32>
    %c9_195 = arith.constant 9 : index
    %c0_196 = arith.constant 0 : index
    %c0_197 = arith.constant 0 : index
    %224 = vector.load %arg10[%c9_195, %c0_196, %c0_197] : memref<12x16x8xf32, #tpu.memory_space<vmem>>, vector<1x16x8xf32>
    %225 = vector.shape_cast %224 : vector<1x16x8xf32> to vector<16x8xf32>
    %cst_198 = arith.constant dense<0.000000e+00> : vector<16x68xf32>
    %226 = tpu.matmul %225, %223, %cst_198 {dimension_numbers = #tpu.dot_dimension_numbers<[1], [0], [0], [1], [0, 0, 1, 1], [], []>} : vector<16x8xf32>, vector<8x68xf32>, vector<16x68xf32> -> vector<16x68xf32>
    %227 = arith.addf %220, %226 : vector<16x68xf32>
    %c10_199 = arith.constant 10 : index
    %c0_200 = arith.constant 0 : index
    %c0_201 = arith.constant 0 : index
    %228 = vector.load %arg9[%c10_199, %c0_200, %c0_201] : memref<12x192x68xbf16, #tpu.memory_space<vmem>>, vector<1x192x68xbf16>
    %229 = vector.shape_cast %228 : vector<1x192x68xbf16> to vector<192x68xbf16>
    %cst_202 = arith.constant dense<0.000000e+00> : vector<8x68xf32>
    %230 = tpu.matmul %156, %229, %cst_202 {dimension_numbers = #tpu.dot_dimension_numbers<[1], [0], [0], [1], [0, 0, 1, 1], [], []>} : vector<8x192xbf16>, vector<192x68xbf16>, vector<8x68xf32> -> vector<8x68xf32>
    %c10_203 = arith.constant 10 : index
    %c0_204 = arith.constant 0 : index
    %c0_205 = arith.constant 0 : index
    %231 = vector.load %arg10[%c10_203, %c0_204, %c0_205] : memref<12x16x8xf32, #tpu.memory_space<vmem>>, vector<1x16x8xf32>
    %232 = vector.shape_cast %231 : vector<1x16x8xf32> to vector<16x8xf32>
    %cst_206 = arith.constant dense<0.000000e+00> : vector<16x68xf32>
    %233 = tpu.matmul %232, %230, %cst_206 {dimension_numbers = #tpu.dot_dimension_numbers<[1], [0], [0], [1], [0, 0, 1, 1], [], []>} : vector<16x8xf32>, vector<8x68xf32>, vector<16x68xf32> -> vector<16x68xf32>
    %234 = arith.addf %227, %233 : vector<16x68xf32>
    %c11_207 = arith.constant 11 : index
    %c0_208 = arith.constant 0 : index
    %c0_209 = arith.constant 0 : index
    %235 = vector.load %arg9[%c11_207, %c0_208, %c0_209] : memref<12x192x68xbf16, #tpu.memory_space<vmem>>, vector<1x192x68xbf16>
    %236 = vector.shape_cast %235 : vector<1x192x68xbf16> to vector<192x68xbf16>
    %cst_210 = arith.constant dense<0.000000e+00> : vector<8x68xf32>
    %237 = tpu.matmul %156, %236, %cst_210 {dimension_numbers = #tpu.dot_dimension_numbers<[1], [0], [0], [1], [0, 0, 1, 1], [], []>} : vector<8x192xbf16>, vector<192x68xbf16>, vector<8x68xf32> -> vector<8x68xf32>
    %c11_211 = arith.constant 11 : index
    %c0_212 = arith.constant 0 : index
    %c0_213 = arith.constant 0 : index
    %238 = vector.load %arg10[%c11_211, %c0_212, %c0_213] : memref<12x16x8xf32, #tpu.memory_space<vmem>>, vector<1x16x8xf32>
    %239 = vector.shape_cast %238 : vector<1x16x8xf32> to vector<16x8xf32>
    %cst_214 = arith.constant dense<0.000000e+00> : vector<16x68xf32>
    %240 = tpu.matmul %239, %237, %cst_214 {dimension_numbers = #tpu.dot_dimension_numbers<[1], [0], [0], [1], [0, 0, 1, 1], [], []>} : vector<16x8xf32>, vector<8x68xf32>, vector<16x68xf32> -> vector<16x68xf32>
    %241 = arith.addf %234, %240 : vector<16x68xf32>
    %c0_215 = arith.constant 0 : index
    %c0_216 = arith.constant 0 : index
    %242 = vector.load %arg11[%c0_215, %c0_216] : memref<16x68xf32, #tpu.memory_space<vmem>>, vector<16x68xf32>
    %c0_217 = arith.constant 0 : index
    %c0_218 = arith.constant 0 : index
    %243 = vector.load %arg12[%c0_217, %c0_218] : memref<16x68xf32, #tpu.memory_space<vmem>>, vector<16x68xf32>
    %cst_219 = arith.constant dense<0.000000e+00> : vector<16xf32>
    %244 = vector.multi_reduction <add>, %241, %cst_219 [1] : vector<16x68xf32> to vector<16xf32>
    %245 = vector.shape_cast %244 : vector<16xf32> to vector<16x1xf32>
    %cst_220 = arith.constant dense<0.000000e+00> : vector<1xf32>
    %246 = vector.multi_reduction <add>, %245, %cst_220 [0] : vector<16x1xf32> to vector<1xf32>
    %247 = vector.shape_cast %246 : vector<1xf32> to vector<1x1xf32>
    %248 = arith.mulf %241, %241 : vector<16x68xf32>
    %cst_221 = arith.constant dense<0.000000e+00> : vector<16xf32>
    %249 = vector.multi_reduction <add>, %248, %cst_221 [1] : vector<16x68xf32> to vector<16xf32>
    %250 = vector.shape_cast %249 : vector<16xf32> to vector<16x1xf32>
    %cst_222 = arith.constant dense<0.000000e+00> : vector<1xf32>
    %251 = vector.multi_reduction <add>, %250, %cst_222 [0] : vector<16x1xf32> to vector<1xf32>
    %252 = vector.shape_cast %251 : vector<1xf32> to vector<1x1xf32>
    %cst_223 = arith.constant 9.1911765E-4 : f32
    %253 = vector.broadcast %cst_223 : f32 to vector<1x1xf32>
    %254 = arith.mulf %247, %253 : vector<1x1xf32>
    %cst_224 = arith.constant 9.1911765E-4 : f32
    %255 = vector.broadcast %cst_224 : f32 to vector<1x1xf32>
    %256 = arith.mulf %252, %255 : vector<1x1xf32>
    %257 = arith.mulf %254, %254 : vector<1x1xf32>
    %258 = arith.subf %256, %257 : vector<1x1xf32>
    %cst_225 = arith.constant 0.000000e+00 : f32
    %259 = vector.broadcast %cst_225 : f32 to vector<1x1xf32>
    %260 = arith.maximumf %258, %259 : vector<1x1xf32>
    %261 = vector.broadcast %254 : vector<1x1xf32> to vector<16x68xf32>
    %262 = arith.subf %241, %261 : vector<16x68xf32>
    %cst_226 = arith.constant 9.99999974E-6 : f32
    %263 = vector.broadcast %cst_226 : f32 to vector<1x1xf32>
    %264 = arith.addf %260, %263 : vector<1x1xf32>
    %265 = math.rsqrt %264 : vector<1x1xf32>
    %266 = vector.broadcast %265 : vector<1x1xf32> to vector<16x68xf32>
    %267 = arith.mulf %262, %266 : vector<16x68xf32>
    %268 = arith.mulf %267, %242 : vector<16x68xf32>
    %269 = arith.addf %268, %243 : vector<16x68xf32>
    %cst_227 = arith.constant 0.000000e+00 : f32
    %270 = vector.broadcast %cst_227 : f32 to vector<16x68xf32>
    %271 = arith.cmpf oge, %269, %270 : vector<16x68xf32>
    %cst_228 = arith.constant 2.000000e-01 : f32
    %272 = vector.broadcast %cst_228 : f32 to vector<16x68xf32>
    %273 = arith.mulf %272, %269 : vector<16x68xf32>
    %274 = arith.select %271, %269, %273 : vector<16x68xi1>, vector<16x68xf32>
    %275 = arith.truncf %274 : vector<16x68xf32> to vector<16x68xbf16>
    %cst_229 = arith.constant 0.000000e+00 : f32
    %276 = vector.broadcast %cst_229 : f32 to vector<32x18xf32>
    %c0_230 = arith.constant 0 : index
    %c0_231 = arith.constant 0 : index
    %c0_232 = arith.constant 0 : index
    %277 = vector.load %arg13[%c0_230, %c0_231, %c0_232] : memref<32x68x18xbf16, #tpu.memory_space<vmem>>, vector<1x68x18xbf16>
    %278 = vector.shape_cast %277 : vector<1x68x18xbf16> to vector<68x18xbf16>
    %cst_233 = arith.constant dense<0.000000e+00> : vector<16x18xf32>
    %279 = tpu.matmul %275, %278, %cst_233 {dimension_numbers = #tpu.dot_dimension_numbers<[1], [0], [0], [1], [0, 0, 1, 1], [], []>} : vector<16x68xbf16>, vector<68x18xbf16>, vector<16x18xf32> -> vector<16x18xf32>
    %c0_234 = arith.constant 0 : index
    %c0_235 = arith.constant 0 : index
    %c0_236 = arith.constant 0 : index
    %280 = vector.load %arg14[%c0_234, %c0_235, %c0_236] : memref<32x32x16xf32, #tpu.memory_space<vmem>>, vector<1x32x16xf32>
    %281 = vector.shape_cast %280 : vector<1x32x16xf32> to vector<32x16xf32>
    %cst_237 = arith.constant dense<0.000000e+00> : vector<32x18xf32>
    %282 = tpu.matmul %281, %279, %cst_237 {dimension_numbers = #tpu.dot_dimension_numbers<[1], [0], [0], [1], [0, 0, 1, 1], [], []>} : vector<32x16xf32>, vector<16x18xf32>, vector<32x18xf32> -> vector<32x18xf32>
    %283 = arith.addf %276, %282 : vector<32x18xf32>
    %c1_238 = arith.constant 1 : index
    %c0_239 = arith.constant 0 : index
    %c0_240 = arith.constant 0 : index
    %284 = vector.load %arg13[%c1_238, %c0_239, %c0_240] : memref<32x68x18xbf16, #tpu.memory_space<vmem>>, vector<1x68x18xbf16>
    %285 = vector.shape_cast %284 : vector<1x68x18xbf16> to vector<68x18xbf16>
    %cst_241 = arith.constant dense<0.000000e+00> : vector<16x18xf32>
    %286 = tpu.matmul %275, %285, %cst_241 {dimension_numbers = #tpu.dot_dimension_numbers<[1], [0], [0], [1], [0, 0, 1, 1], [], []>} : vector<16x68xbf16>, vector<68x18xbf16>, vector<16x18xf32> -> vector<16x18xf32>
    %c1_242 = arith.constant 1 : index
    %c0_243 = arith.constant 0 : index
    %c0_244 = arith.constant 0 : index
    %287 = vector.load %arg14[%c1_242, %c0_243, %c0_244] : memref<32x32x16xf32, #tpu.memory_space<vmem>>, vector<1x32x16xf32>
    %288 = vector.shape_cast %287 : vector<1x32x16xf32> to vector<32x16xf32>
    %cst_245 = arith.constant dense<0.000000e+00> : vector<32x18xf32>
    %289 = tpu.matmul %288, %286, %cst_245 {dimension_numbers = #tpu.dot_dimension_numbers<[1], [0], [0], [1], [0, 0, 1, 1], [], []>} : vector<32x16xf32>, vector<16x18xf32>, vector<32x18xf32> -> vector<32x18xf32>
    %290 = arith.addf %283, %289 : vector<32x18xf32>
    %c2_246 = arith.constant 2 : index
    %c0_247 = arith.constant 0 : index
    %c0_248 = arith.constant 0 : index
    %291 = vector.load %arg13[%c2_246, %c0_247, %c0_248] : memref<32x68x18xbf16, #tpu.memory_space<vmem>>, vector<1x68x18xbf16>
    %292 = vector.shape_cast %291 : vector<1x68x18xbf16> to vector<68x18xbf16>
    %cst_249 = arith.constant dense<0.000000e+00> : vector<16x18xf32>
    %293 = tpu.matmul %275, %292, %cst_249 {dimension_numbers = #tpu.dot_dimension_numbers<[1], [0], [0], [1], [0, 0, 1, 1], [], []>} : vector<16x68xbf16>, vector<68x18xbf16>, vector<16x18xf32> -> vector<16x18xf32>
    %c2_250 = arith.constant 2 : index
    %c0_251 = arith.constant 0 : index
    %c0_252 = arith.constant 0 : index
    %294 = vector.load %arg14[%c2_250, %c0_251, %c0_252] : memref<32x32x16xf32, #tpu.memory_space<vmem>>, vector<1x32x16xf32>
    %295 = vector.shape_cast %294 : vector<1x32x16xf32> to vector<32x16xf32>
    %cst_253 = arith.constant dense<0.000000e+00> : vector<32x18xf32>
    %296 = tpu.matmul %295, %293, %cst_253 {dimension_numbers = #tpu.dot_dimension_numbers<[1], [0], [0], [1], [0, 0, 1, 1], [], []>} : vector<32x16xf32>, vector<16x18xf32>, vector<32x18xf32> -> vector<32x18xf32>
    %297 = arith.addf %290, %296 : vector<32x18xf32>
    %c3_254 = arith.constant 3 : index
    %c0_255 = arith.constant 0 : index
    %c0_256 = arith.constant 0 : index
    %298 = vector.load %arg13[%c3_254, %c0_255, %c0_256] : memref<32x68x18xbf16, #tpu.memory_space<vmem>>, vector<1x68x18xbf16>
    %299 = vector.shape_cast %298 : vector<1x68x18xbf16> to vector<68x18xbf16>
    %cst_257 = arith.constant dense<0.000000e+00> : vector<16x18xf32>
    %300 = tpu.matmul %275, %299, %cst_257 {dimension_numbers = #tpu.dot_dimension_numbers<[1], [0], [0], [1], [0, 0, 1, 1], [], []>} : vector<16x68xbf16>, vector<68x18xbf16>, vector<16x18xf32> -> vector<16x18xf32>
    %c3_258 = arith.constant 3 : index
    %c0_259 = arith.constant 0 : index
    %c0_260 = arith.constant 0 : index
    %301 = vector.load %arg14[%c3_258, %c0_259, %c0_260] : memref<32x32x16xf32, #tpu.memory_space<vmem>>, vector<1x32x16xf32>
    %302 = vector.shape_cast %301 : vector<1x32x16xf32> to vector<32x16xf32>
    %cst_261 = arith.constant dense<0.000000e+00> : vector<32x18xf32>
    %303 = tpu.matmul %302, %300, %cst_261 {dimension_numbers = #tpu.dot_dimension_numbers<[1], [0], [0], [1], [0, 0, 1, 1], [], []>} : vector<32x16xf32>, vector<16x18xf32>, vector<32x18xf32> -> vector<32x18xf32>
    %304 = arith.addf %297, %303 : vector<32x18xf32>
    %c4_262 = arith.constant 4 : index
    %c0_263 = arith.constant 0 : index
    %c0_264 = arith.constant 0 : index
    %305 = vector.load %arg13[%c4_262, %c0_263, %c0_264] : memref<32x68x18xbf16, #tpu.memory_space<vmem>>, vector<1x68x18xbf16>
    %306 = vector.shape_cast %305 : vector<1x68x18xbf16> to vector<68x18xbf16>
    %cst_265 = arith.constant dense<0.000000e+00> : vector<16x18xf32>
    %307 = tpu.matmul %275, %306, %cst_265 {dimension_numbers = #tpu.dot_dimension_numbers<[1], [0], [0], [1], [0, 0, 1, 1], [], []>} : vector<16x68xbf16>, vector<68x18xbf16>, vector<16x18xf32> -> vector<16x18xf32>
    %c4_266 = arith.constant 4 : index
    %c0_267 = arith.constant 0 : index
    %c0_268 = arith.constant 0 : index
    %308 = vector.load %arg14[%c4_266, %c0_267, %c0_268] : memref<32x32x16xf32, #tpu.memory_space<vmem>>, vector<1x32x16xf32>
    %309 = vector.shape_cast %308 : vector<1x32x16xf32> to vector<32x16xf32>
    %cst_269 = arith.constant dense<0.000000e+00> : vector<32x18xf32>
    %310 = tpu.matmul %309, %307, %cst_269 {dimension_numbers = #tpu.dot_dimension_numbers<[1], [0], [0], [1], [0, 0, 1, 1], [], []>} : vector<32x16xf32>, vector<16x18xf32>, vector<32x18xf32> -> vector<32x18xf32>
    %311 = arith.addf %304, %310 : vector<32x18xf32>
    %c5_270 = arith.constant 5 : index
    %c0_271 = arith.constant 0 : index
    %c0_272 = arith.constant 0 : index
    %312 = vector.load %arg13[%c5_270, %c0_271, %c0_272] : memref<32x68x18xbf16, #tpu.memory_space<vmem>>, vector<1x68x18xbf16>
    %313 = vector.shape_cast %312 : vector<1x68x18xbf16> to vector<68x18xbf16>
    %cst_273 = arith.constant dense<0.000000e+00> : vector<16x18xf32>
    %314 = tpu.matmul %275, %313, %cst_273 {dimension_numbers = #tpu.dot_dimension_numbers<[1], [0], [0], [1], [0, 0, 1, 1], [], []>} : vector<16x68xbf16>, vector<68x18xbf16>, vector<16x18xf32> -> vector<16x18xf32>
    %c5_274 = arith.constant 5 : index
    %c0_275 = arith.constant 0 : index
    %c0_276 = arith.constant 0 : index
    %315 = vector.load %arg14[%c5_274, %c0_275, %c0_276] : memref<32x32x16xf32, #tpu.memory_space<vmem>>, vector<1x32x16xf32>
    %316 = vector.shape_cast %315 : vector<1x32x16xf32> to vector<32x16xf32>
    %cst_277 = arith.constant dense<0.000000e+00> : vector<32x18xf32>
    %317 = tpu.matmul %316, %314, %cst_277 {dimension_numbers = #tpu.dot_dimension_numbers<[1], [0], [0], [1], [0, 0, 1, 1], [], []>} : vector<32x16xf32>, vector<16x18xf32>, vector<32x18xf32> -> vector<32x18xf32>
    %318 = arith.addf %311, %317 : vector<32x18xf32>
    %c6_278 = arith.constant 6 : index
    %c0_279 = arith.constant 0 : index
    %c0_280 = arith.constant 0 : index
    %319 = vector.load %arg13[%c6_278, %c0_279, %c0_280] : memref<32x68x18xbf16, #tpu.memory_space<vmem>>, vector<1x68x18xbf16>
    %320 = vector.shape_cast %319 : vector<1x68x18xbf16> to vector<68x18xbf16>
    %cst_281 = arith.constant dense<0.000000e+00> : vector<16x18xf32>
    %321 = tpu.matmul %275, %320, %cst_281 {dimension_numbers = #tpu.dot_dimension_numbers<[1], [0], [0], [1], [0, 0, 1, 1], [], []>} : vector<16x68xbf16>, vector<68x18xbf16>, vector<16x18xf32> -> vector<16x18xf32>
    %c6_282 = arith.constant 6 : index
    %c0_283 = arith.constant 0 : index
    %c0_284 = arith.constant 0 : index
    %322 = vector.load %arg14[%c6_282, %c0_283, %c0_284] : memref<32x32x16xf32, #tpu.memory_space<vmem>>, vector<1x32x16xf32>
    %323 = vector.shape_cast %322 : vector<1x32x16xf32> to vector<32x16xf32>
    %cst_285 = arith.constant dense<0.000000e+00> : vector<32x18xf32>
    %324 = tpu.matmul %323, %321, %cst_285 {dimension_numbers = #tpu.dot_dimension_numbers<[1], [0], [0], [1], [0, 0, 1, 1], [], []>} : vector<32x16xf32>, vector<16x18xf32>, vector<32x18xf32> -> vector<32x18xf32>
    %325 = arith.addf %318, %324 : vector<32x18xf32>
    %c7_286 = arith.constant 7 : index
    %c0_287 = arith.constant 0 : index
    %c0_288 = arith.constant 0 : index
    %326 = vector.load %arg13[%c7_286, %c0_287, %c0_288] : memref<32x68x18xbf16, #tpu.memory_space<vmem>>, vector<1x68x18xbf16>
    %327 = vector.shape_cast %326 : vector<1x68x18xbf16> to vector<68x18xbf16>
    %cst_289 = arith.constant dense<0.000000e+00> : vector<16x18xf32>
    %328 = tpu.matmul %275, %327, %cst_289 {dimension_numbers = #tpu.dot_dimension_numbers<[1], [0], [0], [1], [0, 0, 1, 1], [], []>} : vector<16x68xbf16>, vector<68x18xbf16>, vector<16x18xf32> -> vector<16x18xf32>
    %c7_290 = arith.constant 7 : index
    %c0_291 = arith.constant 0 : index
    %c0_292 = arith.constant 0 : index
    %329 = vector.load %arg14[%c7_290, %c0_291, %c0_292] : memref<32x32x16xf32, #tpu.memory_space<vmem>>, vector<1x32x16xf32>
    %330 = vector.shape_cast %329 : vector<1x32x16xf32> to vector<32x16xf32>
    %cst_293 = arith.constant dense<0.000000e+00> : vector<32x18xf32>
    %331 = tpu.matmul %330, %328, %cst_293 {dimension_numbers = #tpu.dot_dimension_numbers<[1], [0], [0], [1], [0, 0, 1, 1], [], []>} : vector<32x16xf32>, vector<16x18xf32>, vector<32x18xf32> -> vector<32x18xf32>
    %332 = arith.addf %325, %331 : vector<32x18xf32>
    %c8_294 = arith.constant 8 : index
    %c0_295 = arith.constant 0 : index
    %c0_296 = arith.constant 0 : index
    %333 = vector.load %arg13[%c8_294, %c0_295, %c0_296] : memref<32x68x18xbf16, #tpu.memory_space<vmem>>, vector<1x68x18xbf16>
    %334 = vector.shape_cast %333 : vector<1x68x18xbf16> to vector<68x18xbf16>
    %cst_297 = arith.constant dense<0.000000e+00> : vector<16x18xf32>
    %335 = tpu.matmul %275, %334, %cst_297 {dimension_numbers = #tpu.dot_dimension_numbers<[1], [0], [0], [1], [0, 0, 1, 1], [], []>} : vector<16x68xbf16>, vector<68x18xbf16>, vector<16x18xf32> -> vector<16x18xf32>
    %c8_298 = arith.constant 8 : index
    %c0_299 = arith.constant 0 : index
    %c0_300 = arith.constant 0 : index
    %336 = vector.load %arg14[%c8_298, %c0_299, %c0_300] : memref<32x32x16xf32, #tpu.memory_space<vmem>>, vector<1x32x16xf32>
    %337 = vector.shape_cast %336 : vector<1x32x16xf32> to vector<32x16xf32>
    %cst_301 = arith.constant dense<0.000000e+00> : vector<32x18xf32>
    %338 = tpu.matmul %337, %335, %cst_301 {dimension_numbers = #tpu.dot_dimension_numbers<[1], [0], [0], [1], [0, 0, 1, 1], [], []>} : vector<32x16xf32>, vector<16x18xf32>, vector<32x18xf32> -> vector<32x18xf32>
    %339 = arith.addf %332, %338 : vector<32x18xf32>
    %c9_302 = arith.constant 9 : index
    %c0_303 = arith.constant 0 : index
    %c0_304 = arith.constant 0 : index
    %340 = vector.load %arg13[%c9_302, %c0_303, %c0_304] : memref<32x68x18xbf16, #tpu.memory_space<vmem>>, vector<1x68x18xbf16>
    %341 = vector.shape_cast %340 : vector<1x68x18xbf16> to vector<68x18xbf16>
    %cst_305 = arith.constant dense<0.000000e+00> : vector<16x18xf32>
    %342 = tpu.matmul %275, %341, %cst_305 {dimension_numbers = #tpu.dot_dimension_numbers<[1], [0], [0], [1], [0, 0, 1, 1], [], []>} : vector<16x68xbf16>, vector<68x18xbf16>, vector<16x18xf32> -> vector<16x18xf32>
    %c9_306 = arith.constant 9 : index
    %c0_307 = arith.constant 0 : index
    %c0_308 = arith.constant 0 : index
    %343 = vector.load %arg14[%c9_306, %c0_307, %c0_308] : memref<32x32x16xf32, #tpu.memory_space<vmem>>, vector<1x32x16xf32>
    %344 = vector.shape_cast %343 : vector<1x32x16xf32> to vector<32x16xf32>
    %cst_309 = arith.constant dense<0.000000e+00> : vector<32x18xf32>
    %345 = tpu.matmul %344, %342, %cst_309 {dimension_numbers = #tpu.dot_dimension_numbers<[1], [0], [0], [1], [0, 0, 1, 1], [], []>} : vector<32x16xf32>, vector<16x18xf32>, vector<32x18xf32> -> vector<32x18xf32>
    %346 = arith.addf %339, %345 : vector<32x18xf32>
    %c10_310 = arith.constant 10 : index
    %c0_311 = arith.constant 0 : index
    %c0_312 = arith.constant 0 : index
    %347 = vector.load %arg13[%c10_310, %c0_311, %c0_312] : memref<32x68x18xbf16, #tpu.memory_space<vmem>>, vector<1x68x18xbf16>
    %348 = vector.shape_cast %347 : vector<1x68x18xbf16> to vector<68x18xbf16>
    %cst_313 = arith.constant dense<0.000000e+00> : vector<16x18xf32>
    %349 = tpu.matmul %275, %348, %cst_313 {dimension_numbers = #tpu.dot_dimension_numbers<[1], [0], [0], [1], [0, 0, 1, 1], [], []>} : vector<16x68xbf16>, vector<68x18xbf16>, vector<16x18xf32> -> vector<16x18xf32>
    %c10_314 = arith.constant 10 : index
    %c0_315 = arith.constant 0 : index
    %c0_316 = arith.constant 0 : index
    %350 = vector.load %arg14[%c10_314, %c0_315, %c0_316] : memref<32x32x16xf32, #tpu.memory_space<vmem>>, vector<1x32x16xf32>
    %351 = vector.shape_cast %350 : vector<1x32x16xf32> to vector<32x16xf32>
    %cst_317 = arith.constant dense<0.000000e+00> : vector<32x18xf32>
    %352 = tpu.matmul %351, %349, %cst_317 {dimension_numbers = #tpu.dot_dimension_numbers<[1], [0], [0], [1], [0, 0, 1, 1], [], []>} : vector<32x16xf32>, vector<16x18xf32>, vector<32x18xf32> -> vector<32x18xf32>
    %353 = arith.addf %346, %352 : vector<32x18xf32>
    %c11_318 = arith.constant 11 : index
    %c0_319 = arith.constant 0 : index
    %c0_320 = arith.constant 0 : index
    %354 = vector.load %arg13[%c11_318, %c0_319, %c0_320] : memref<32x68x18xbf16, #tpu.memory_space<vmem>>, vector<1x68x18xbf16>
    %355 = vector.shape_cast %354 : vector<1x68x18xbf16> to vector<68x18xbf16>
    %cst_321 = arith.constant dense<0.000000e+00> : vector<16x18xf32>
    %356 = tpu.matmul %275, %355, %cst_321 {dimension_numbers = #tpu.dot_dimension_numbers<[1], [0], [0], [1], [0, 0, 1, 1], [], []>} : vector<16x68xbf16>, vector<68x18xbf16>, vector<16x18xf32> -> vector<16x18xf32>
    %c11_322 = arith.constant 11 : index
    %c0_323 = arith.constant 0 : index
    %c0_324 = arith.constant 0 : index
    %357 = vector.load %arg14[%c11_322, %c0_323, %c0_324] : memref<32x32x16xf32, #tpu.memory_space<vmem>>, vector<1x32x16xf32>
    %358 = vector.shape_cast %357 : vector<1x32x16xf32> to vector<32x16xf32>
    %cst_325 = arith.constant dense<0.000000e+00> : vector<32x18xf32>
    %359 = tpu.matmul %358, %356, %cst_325 {dimension_numbers = #tpu.dot_dimension_numbers<[1], [0], [0], [1], [0, 0, 1, 1], [], []>} : vector<32x16xf32>, vector<16x18xf32>, vector<32x18xf32> -> vector<32x18xf32>
    %360 = arith.addf %353, %359 : vector<32x18xf32>
    %c12 = arith.constant 12 : index
    %c0_326 = arith.constant 0 : index
    %c0_327 = arith.constant 0 : index
    %361 = vector.load %arg13[%c12, %c0_326, %c0_327] : memref<32x68x18xbf16, #tpu.memory_space<vmem>>, vector<1x68x18xbf16>
    %362 = vector.shape_cast %361 : vector<1x68x18xbf16> to vector<68x18xbf16>
    %cst_328 = arith.constant dense<0.000000e+00> : vector<16x18xf32>
    %363 = tpu.matmul %275, %362, %cst_328 {dimension_numbers = #tpu.dot_dimension_numbers<[1], [0], [0], [1], [0, 0, 1, 1], [], []>} : vector<16x68xbf16>, vector<68x18xbf16>, vector<16x18xf32> -> vector<16x18xf32>
    %c12_329 = arith.constant 12 : index
    %c0_330 = arith.constant 0 : index
    %c0_331 = arith.constant 0 : index
    %364 = vector.load %arg14[%c12_329, %c0_330, %c0_331] : memref<32x32x16xf32, #tpu.memory_space<vmem>>, vector<1x32x16xf32>
    %365 = vector.shape_cast %364 : vector<1x32x16xf32> to vector<32x16xf32>
    %cst_332 = arith.constant dense<0.000000e+00> : vector<32x18xf32>
    %366 = tpu.matmul %365, %363, %cst_332 {dimension_numbers = #tpu.dot_dimension_numbers<[1], [0], [0], [1], [0, 0, 1, 1], [], []>} : vector<32x16xf32>, vector<16x18xf32>, vector<32x18xf32> -> vector<32x18xf32>
    %367 = arith.addf %360, %366 : vector<32x18xf32>
    %c13 = arith.constant 13 : index
    %c0_333 = arith.constant 0 : index
    %c0_334 = arith.constant 0 : index
    %368 = vector.load %arg13[%c13, %c0_333, %c0_334] : memref<32x68x18xbf16, #tpu.memory_space<vmem>>, vector<1x68x18xbf16>
    %369 = vector.shape_cast %368 : vector<1x68x18xbf16> to vector<68x18xbf16>
    %cst_335 = arith.constant dense<0.000000e+00> : vector<16x18xf32>
    %370 = tpu.matmul %275, %369, %cst_335 {dimension_numbers = #tpu.dot_dimension_numbers<[1], [0], [0], [1], [0, 0, 1, 1], [], []>} : vector<16x68xbf16>, vector<68x18xbf16>, vector<16x18xf32> -> vector<16x18xf32>
    %c13_336 = arith.constant 13 : index
    %c0_337 = arith.constant 0 : index
    %c0_338 = arith.constant 0 : index
    %371 = vector.load %arg14[%c13_336, %c0_337, %c0_338] : memref<32x32x16xf32, #tpu.memory_space<vmem>>, vector<1x32x16xf32>
    %372 = vector.shape_cast %371 : vector<1x32x16xf32> to vector<32x16xf32>
    %cst_339 = arith.constant dense<0.000000e+00> : vector<32x18xf32>
    %373 = tpu.matmul %372, %370, %cst_339 {dimension_numbers = #tpu.dot_dimension_numbers<[1], [0], [0], [1], [0, 0, 1, 1], [], []>} : vector<32x16xf32>, vector<16x18xf32>, vector<32x18xf32> -> vector<32x18xf32>
    %374 = arith.addf %367, %373 : vector<32x18xf32>
    %c14 = arith.constant 14 : index
    %c0_340 = arith.constant 0 : index
    %c0_341 = arith.constant 0 : index
    %375 = vector.load %arg13[%c14, %c0_340, %c0_341] : memref<32x68x18xbf16, #tpu.memory_space<vmem>>, vector<1x68x18xbf16>
    %376 = vector.shape_cast %375 : vector<1x68x18xbf16> to vector<68x18xbf16>
    %cst_342 = arith.constant dense<0.000000e+00> : vector<16x18xf32>
    %377 = tpu.matmul %275, %376, %cst_342 {dimension_numbers = #tpu.dot_dimension_numbers<[1], [0], [0], [1], [0, 0, 1, 1], [], []>} : vector<16x68xbf16>, vector<68x18xbf16>, vector<16x18xf32> -> vector<16x18xf32>
    %c14_343 = arith.constant 14 : index
    %c0_344 = arith.constant 0 : index
    %c0_345 = arith.constant 0 : index
    %378 = vector.load %arg14[%c14_343, %c0_344, %c0_345] : memref<32x32x16xf32, #tpu.memory_space<vmem>>, vector<1x32x16xf32>
    %379 = vector.shape_cast %378 : vector<1x32x16xf32> to vector<32x16xf32>
    %cst_346 = arith.constant dense<0.000000e+00> : vector<32x18xf32>
    %380 = tpu.matmul %379, %377, %cst_346 {dimension_numbers = #tpu.dot_dimension_numbers<[1], [0], [0], [1], [0, 0, 1, 1], [], []>} : vector<32x16xf32>, vector<16x18xf32>, vector<32x18xf32> -> vector<32x18xf32>
    %381 = arith.addf %374, %380 : vector<32x18xf32>
    %c15 = arith.constant 15 : index
    %c0_347 = arith.constant 0 : index
    %c0_348 = arith.constant 0 : index
    %382 = vector.load %arg13[%c15, %c0_347, %c0_348] : memref<32x68x18xbf16, #tpu.memory_space<vmem>>, vector<1x68x18xbf16>
    %383 = vector.shape_cast %382 : vector<1x68x18xbf16> to vector<68x18xbf16>
    %cst_349 = arith.constant dense<0.000000e+00> : vector<16x18xf32>
    %384 = tpu.matmul %275, %383, %cst_349 {dimension_numbers = #tpu.dot_dimension_numbers<[1], [0], [0], [1], [0, 0, 1, 1], [], []>} : vector<16x68xbf16>, vector<68x18xbf16>, vector<16x18xf32> -> vector<16x18xf32>
    %c15_350 = arith.constant 15 : index
    %c0_351 = arith.constant 0 : index
    %c0_352 = arith.constant 0 : index
    %385 = vector.load %arg14[%c15_350, %c0_351, %c0_352] : memref<32x32x16xf32, #tpu.memory_space<vmem>>, vector<1x32x16xf32>
    %386 = vector.shape_cast %385 : vector<1x32x16xf32> to vector<32x16xf32>
    %cst_353 = arith.constant dense<0.000000e+00> : vector<32x18xf32>
    %387 = tpu.matmul %386, %384, %cst_353 {dimension_numbers = #tpu.dot_dimension_numbers<[1], [0], [0], [1], [0, 0, 1, 1], [], []>} : vector<32x16xf32>, vector<16x18xf32>, vector<32x18xf32> -> vector<32x18xf32>
    %388 = arith.addf %381, %387 : vector<32x18xf32>
    %c16 = arith.constant 16 : index
    %c0_354 = arith.constant 0 : index
    %c0_355 = arith.constant 0 : index
    %389 = vector.load %arg13[%c16, %c0_354, %c0_355] : memref<32x68x18xbf16, #tpu.memory_space<vmem>>, vector<1x68x18xbf16>
    %390 = vector.shape_cast %389 : vector<1x68x18xbf16> to vector<68x18xbf16>
    %cst_356 = arith.constant dense<0.000000e+00> : vector<16x18xf32>
    %391 = tpu.matmul %275, %390, %cst_356 {dimension_numbers = #tpu.dot_dimension_numbers<[1], [0], [0], [1], [0, 0, 1, 1], [], []>} : vector<16x68xbf16>, vector<68x18xbf16>, vector<16x18xf32> -> vector<16x18xf32>
    %c16_357 = arith.constant 16 : index
    %c0_358 = arith.constant 0 : index
    %c0_359 = arith.constant 0 : index
    %392 = vector.load %arg14[%c16_357, %c0_358, %c0_359] : memref<32x32x16xf32, #tpu.memory_space<vmem>>, vector<1x32x16xf32>
    %393 = vector.shape_cast %392 : vector<1x32x16xf32> to vector<32x16xf32>
    %cst_360 = arith.constant dense<0.000000e+00> : vector<32x18xf32>
    %394 = tpu.matmul %393, %391, %cst_360 {dimension_numbers = #tpu.dot_dimension_numbers<[1], [0], [0], [1], [0, 0, 1, 1], [], []>} : vector<32x16xf32>, vector<16x18xf32>, vector<32x18xf32> -> vector<32x18xf32>
    %395 = arith.addf %388, %394 : vector<32x18xf32>
    %c17 = arith.constant 17 : index
    %c0_361 = arith.constant 0 : index
    %c0_362 = arith.constant 0 : index
    %396 = vector.load %arg13[%c17, %c0_361, %c0_362] : memref<32x68x18xbf16, #tpu.memory_space<vmem>>, vector<1x68x18xbf16>
    %397 = vector.shape_cast %396 : vector<1x68x18xbf16> to vector<68x18xbf16>
    %cst_363 = arith.constant dense<0.000000e+00> : vector<16x18xf32>
    %398 = tpu.matmul %275, %397, %cst_363 {dimension_numbers = #tpu.dot_dimension_numbers<[1], [0], [0], [1], [0, 0, 1, 1], [], []>} : vector<16x68xbf16>, vector<68x18xbf16>, vector<16x18xf32> -> vector<16x18xf32>
    %c17_364 = arith.constant 17 : index
    %c0_365 = arith.constant 0 : index
    %c0_366 = arith.constant 0 : index
    %399 = vector.load %arg14[%c17_364, %c0_365, %c0_366] : memref<32x32x16xf32, #tpu.memory_space<vmem>>, vector<1x32x16xf32>
    %400 = vector.shape_cast %399 : vector<1x32x16xf32> to vector<32x16xf32>
    %cst_367 = arith.constant dense<0.000000e+00> : vector<32x18xf32>
    %401 = tpu.matmul %400, %398, %cst_367 {dimension_numbers = #tpu.dot_dimension_numbers<[1], [0], [0], [1], [0, 0, 1, 1], [], []>} : vector<32x16xf32>, vector<16x18xf32>, vector<32x18xf32> -> vector<32x18xf32>
    %402 = arith.addf %395, %401 : vector<32x18xf32>
    %c18 = arith.constant 18 : index
    %c0_368 = arith.constant 0 : index
    %c0_369 = arith.constant 0 : index
    %403 = vector.load %arg13[%c18, %c0_368, %c0_369] : memref<32x68x18xbf16, #tpu.memory_space<vmem>>, vector<1x68x18xbf16>
    %404 = vector.shape_cast %403 : vector<1x68x18xbf16> to vector<68x18xbf16>
    %cst_370 = arith.constant dense<0.000000e+00> : vector<16x18xf32>
    %405 = tpu.matmul %275, %404, %cst_370 {dimension_numbers = #tpu.dot_dimension_numbers<[1], [0], [0], [1], [0, 0, 1, 1], [], []>} : vector<16x68xbf16>, vector<68x18xbf16>, vector<16x18xf32> -> vector<16x18xf32>
    %c18_371 = arith.constant 18 : index
    %c0_372 = arith.constant 0 : index
    %c0_373 = arith.constant 0 : index
    %406 = vector.load %arg14[%c18_371, %c0_372, %c0_373] : memref<32x32x16xf32, #tpu.memory_space<vmem>>, vector<1x32x16xf32>
    %407 = vector.shape_cast %406 : vector<1x32x16xf32> to vector<32x16xf32>
    %cst_374 = arith.constant dense<0.000000e+00> : vector<32x18xf32>
    %408 = tpu.matmul %407, %405, %cst_374 {dimension_numbers = #tpu.dot_dimension_numbers<[1], [0], [0], [1], [0, 0, 1, 1], [], []>} : vector<32x16xf32>, vector<16x18xf32>, vector<32x18xf32> -> vector<32x18xf32>
    %409 = arith.addf %402, %408 : vector<32x18xf32>
    %c19 = arith.constant 19 : index
    %c0_375 = arith.constant 0 : index
    %c0_376 = arith.constant 0 : index
    %410 = vector.load %arg13[%c19, %c0_375, %c0_376] : memref<32x68x18xbf16, #tpu.memory_space<vmem>>, vector<1x68x18xbf16>
    %411 = vector.shape_cast %410 : vector<1x68x18xbf16> to vector<68x18xbf16>
    %cst_377 = arith.constant dense<0.000000e+00> : vector<16x18xf32>
    %412 = tpu.matmul %275, %411, %cst_377 {dimension_numbers = #tpu.dot_dimension_numbers<[1], [0], [0], [1], [0, 0, 1, 1], [], []>} : vector<16x68xbf16>, vector<68x18xbf16>, vector<16x18xf32> -> vector<16x18xf32>
    %c19_378 = arith.constant 19 : index
    %c0_379 = arith.constant 0 : index
    %c0_380 = arith.constant 0 : index
    %413 = vector.load %arg14[%c19_378, %c0_379, %c0_380] : memref<32x32x16xf32, #tpu.memory_space<vmem>>, vector<1x32x16xf32>
    %414 = vector.shape_cast %413 : vector<1x32x16xf32> to vector<32x16xf32>
    %cst_381 = arith.constant dense<0.000000e+00> : vector<32x18xf32>
    %415 = tpu.matmul %414, %412, %cst_381 {dimension_numbers = #tpu.dot_dimension_numbers<[1], [0], [0], [1], [0, 0, 1, 1], [], []>} : vector<32x16xf32>, vector<16x18xf32>, vector<32x18xf32> -> vector<32x18xf32>
    %416 = arith.addf %409, %415 : vector<32x18xf32>
    %c20 = arith.constant 20 : index
    %c0_382 = arith.constant 0 : index
    %c0_383 = arith.constant 0 : index
    %417 = vector.load %arg13[%c20, %c0_382, %c0_383] : memref<32x68x18xbf16, #tpu.memory_space<vmem>>, vector<1x68x18xbf16>
    %418 = vector.shape_cast %417 : vector<1x68x18xbf16> to vector<68x18xbf16>
    %cst_384 = arith.constant dense<0.000000e+00> : vector<16x18xf32>
    %419 = tpu.matmul %275, %418, %cst_384 {dimension_numbers = #tpu.dot_dimension_numbers<[1], [0], [0], [1], [0, 0, 1, 1], [], []>} : vector<16x68xbf16>, vector<68x18xbf16>, vector<16x18xf32> -> vector<16x18xf32>
    %c20_385 = arith.constant 20 : index
    %c0_386 = arith.constant 0 : index
    %c0_387 = arith.constant 0 : index
    %420 = vector.load %arg14[%c20_385, %c0_386, %c0_387] : memref<32x32x16xf32, #tpu.memory_space<vmem>>, vector<1x32x16xf32>
    %421 = vector.shape_cast %420 : vector<1x32x16xf32> to vector<32x16xf32>
    %cst_388 = arith.constant dense<0.000000e+00> : vector<32x18xf32>
    %422 = tpu.matmul %421, %419, %cst_388 {dimension_numbers = #tpu.dot_dimension_numbers<[1], [0], [0], [1], [0, 0, 1, 1], [], []>} : vector<32x16xf32>, vector<16x18xf32>, vector<32x18xf32> -> vector<32x18xf32>
    %423 = arith.addf %416, %422 : vector<32x18xf32>
    %c21 = arith.constant 21 : index
    %c0_389 = arith.constant 0 : index
    %c0_390 = arith.constant 0 : index
    %424 = vector.load %arg13[%c21, %c0_389, %c0_390] : memref<32x68x18xbf16, #tpu.memory_space<vmem>>, vector<1x68x18xbf16>
    %425 = vector.shape_cast %424 : vector<1x68x18xbf16> to vector<68x18xbf16>
    %cst_391 = arith.constant dense<0.000000e+00> : vector<16x18xf32>
    %426 = tpu.matmul %275, %425, %cst_391 {dimension_numbers = #tpu.dot_dimension_numbers<[1], [0], [0], [1], [0, 0, 1, 1], [], []>} : vector<16x68xbf16>, vector<68x18xbf16>, vector<16x18xf32> -> vector<16x18xf32>
    %c21_392 = arith.constant 21 : index
    %c0_393 = arith.constant 0 : index
    %c0_394 = arith.constant 0 : index
    %427 = vector.load %arg14[%c21_392, %c0_393, %c0_394] : memref<32x32x16xf32, #tpu.memory_space<vmem>>, vector<1x32x16xf32>
    %428 = vector.shape_cast %427 : vector<1x32x16xf32> to vector<32x16xf32>
    %cst_395 = arith.constant dense<0.000000e+00> : vector<32x18xf32>
    %429 = tpu.matmul %428, %426, %cst_395 {dimension_numbers = #tpu.dot_dimension_numbers<[1], [0], [0], [1], [0, 0, 1, 1], [], []>} : vector<32x16xf32>, vector<16x18xf32>, vector<32x18xf32> -> vector<32x18xf32>
    %430 = arith.addf %423, %429 : vector<32x18xf32>
    %c22 = arith.constant 22 : index
    %c0_396 = arith.constant 0 : index
    %c0_397 = arith.constant 0 : index
    %431 = vector.load %arg13[%c22, %c0_396, %c0_397] : memref<32x68x18xbf16, #tpu.memory_space<vmem>>, vector<1x68x18xbf16>
    %432 = vector.shape_cast %431 : vector<1x68x18xbf16> to vector<68x18xbf16>
    %cst_398 = arith.constant dense<0.000000e+00> : vector<16x18xf32>
    %433 = tpu.matmul %275, %432, %cst_398 {dimension_numbers = #tpu.dot_dimension_numbers<[1], [0], [0], [1], [0, 0, 1, 1], [], []>} : vector<16x68xbf16>, vector<68x18xbf16>, vector<16x18xf32> -> vector<16x18xf32>
    %c22_399 = arith.constant 22 : index
    %c0_400 = arith.constant 0 : index
    %c0_401 = arith.constant 0 : index
    %434 = vector.load %arg14[%c22_399, %c0_400, %c0_401] : memref<32x32x16xf32, #tpu.memory_space<vmem>>, vector<1x32x16xf32>
    %435 = vector.shape_cast %434 : vector<1x32x16xf32> to vector<32x16xf32>
    %cst_402 = arith.constant dense<0.000000e+00> : vector<32x18xf32>
    %436 = tpu.matmul %435, %433, %cst_402 {dimension_numbers = #tpu.dot_dimension_numbers<[1], [0], [0], [1], [0, 0, 1, 1], [], []>} : vector<32x16xf32>, vector<16x18xf32>, vector<32x18xf32> -> vector<32x18xf32>
    %437 = arith.addf %430, %436 : vector<32x18xf32>
    %c23 = arith.constant 23 : index
    %c0_403 = arith.constant 0 : index
    %c0_404 = arith.constant 0 : index
    %438 = vector.load %arg13[%c23, %c0_403, %c0_404] : memref<32x68x18xbf16, #tpu.memory_space<vmem>>, vector<1x68x18xbf16>
    %439 = vector.shape_cast %438 : vector<1x68x18xbf16> to vector<68x18xbf16>
    %cst_405 = arith.constant dense<0.000000e+00> : vector<16x18xf32>
    %440 = tpu.matmul %275, %439, %cst_405 {dimension_numbers = #tpu.dot_dimension_numbers<[1], [0], [0], [1], [0, 0, 1, 1], [], []>} : vector<16x68xbf16>, vector<68x18xbf16>, vector<16x18xf32> -> vector<16x18xf32>
    %c23_406 = arith.constant 23 : index
    %c0_407 = arith.constant 0 : index
    %c0_408 = arith.constant 0 : index
    %441 = vector.load %arg14[%c23_406, %c0_407, %c0_408] : memref<32x32x16xf32, #tpu.memory_space<vmem>>, vector<1x32x16xf32>
    %442 = vector.shape_cast %441 : vector<1x32x16xf32> to vector<32x16xf32>
    %cst_409 = arith.constant dense<0.000000e+00> : vector<32x18xf32>
    %443 = tpu.matmul %442, %440, %cst_409 {dimension_numbers = #tpu.dot_dimension_numbers<[1], [0], [0], [1], [0, 0, 1, 1], [], []>} : vector<32x16xf32>, vector<16x18xf32>, vector<32x18xf32> -> vector<32x18xf32>
    %444 = arith.addf %437, %443 : vector<32x18xf32>
    %c24 = arith.constant 24 : index
    %c0_410 = arith.constant 0 : index
    %c0_411 = arith.constant 0 : index
    %445 = vector.load %arg13[%c24, %c0_410, %c0_411] : memref<32x68x18xbf16, #tpu.memory_space<vmem>>, vector<1x68x18xbf16>
    %446 = vector.shape_cast %445 : vector<1x68x18xbf16> to vector<68x18xbf16>
    %cst_412 = arith.constant dense<0.000000e+00> : vector<16x18xf32>
    %447 = tpu.matmul %275, %446, %cst_412 {dimension_numbers = #tpu.dot_dimension_numbers<[1], [0], [0], [1], [0, 0, 1, 1], [], []>} : vector<16x68xbf16>, vector<68x18xbf16>, vector<16x18xf32> -> vector<16x18xf32>
    %c24_413 = arith.constant 24 : index
    %c0_414 = arith.constant 0 : index
    %c0_415 = arith.constant 0 : index
    %448 = vector.load %arg14[%c24_413, %c0_414, %c0_415] : memref<32x32x16xf32, #tpu.memory_space<vmem>>, vector<1x32x16xf32>
    %449 = vector.shape_cast %448 : vector<1x32x16xf32> to vector<32x16xf32>
    %cst_416 = arith.constant dense<0.000000e+00> : vector<32x18xf32>
    %450 = tpu.matmul %449, %447, %cst_416 {dimension_numbers = #tpu.dot_dimension_numbers<[1], [0], [0], [1], [0, 0, 1, 1], [], []>} : vector<32x16xf32>, vector<16x18xf32>, vector<32x18xf32> -> vector<32x18xf32>
    %451 = arith.addf %444, %450 : vector<32x18xf32>
    %c25 = arith.constant 25 : index
    %c0_417 = arith.constant 0 : index
    %c0_418 = arith.constant 0 : index
    %452 = vector.load %arg13[%c25, %c0_417, %c0_418] : memref<32x68x18xbf16, #tpu.memory_space<vmem>>, vector<1x68x18xbf16>
    %453 = vector.shape_cast %452 : vector<1x68x18xbf16> to vector<68x18xbf16>
    %cst_419 = arith.constant dense<0.000000e+00> : vector<16x18xf32>
    %454 = tpu.matmul %275, %453, %cst_419 {dimension_numbers = #tpu.dot_dimension_numbers<[1], [0], [0], [1], [0, 0, 1, 1], [], []>} : vector<16x68xbf16>, vector<68x18xbf16>, vector<16x18xf32> -> vector<16x18xf32>
    %c25_420 = arith.constant 25 : index
    %c0_421 = arith.constant 0 : index
    %c0_422 = arith.constant 0 : index
    %455 = vector.load %arg14[%c25_420, %c0_421, %c0_422] : memref<32x32x16xf32, #tpu.memory_space<vmem>>, vector<1x32x16xf32>
    %456 = vector.shape_cast %455 : vector<1x32x16xf32> to vector<32x16xf32>
    %cst_423 = arith.constant dense<0.000000e+00> : vector<32x18xf32>
    %457 = tpu.matmul %456, %454, %cst_423 {dimension_numbers = #tpu.dot_dimension_numbers<[1], [0], [0], [1], [0, 0, 1, 1], [], []>} : vector<32x16xf32>, vector<16x18xf32>, vector<32x18xf32> -> vector<32x18xf32>
    %458 = arith.addf %451, %457 : vector<32x18xf32>
    %c26 = arith.constant 26 : index
    %c0_424 = arith.constant 0 : index
    %c0_425 = arith.constant 0 : index
    %459 = vector.load %arg13[%c26, %c0_424, %c0_425] : memref<32x68x18xbf16, #tpu.memory_space<vmem>>, vector<1x68x18xbf16>
    %460 = vector.shape_cast %459 : vector<1x68x18xbf16> to vector<68x18xbf16>
    %cst_426 = arith.constant dense<0.000000e+00> : vector<16x18xf32>
    %461 = tpu.matmul %275, %460, %cst_426 {dimension_numbers = #tpu.dot_dimension_numbers<[1], [0], [0], [1], [0, 0, 1, 1], [], []>} : vector<16x68xbf16>, vector<68x18xbf16>, vector<16x18xf32> -> vector<16x18xf32>
    %c26_427 = arith.constant 26 : index
    %c0_428 = arith.constant 0 : index
    %c0_429 = arith.constant 0 : index
    %462 = vector.load %arg14[%c26_427, %c0_428, %c0_429] : memref<32x32x16xf32, #tpu.memory_space<vmem>>, vector<1x32x16xf32>
    %463 = vector.shape_cast %462 : vector<1x32x16xf32> to vector<32x16xf32>
    %cst_430 = arith.constant dense<0.000000e+00> : vector<32x18xf32>
    %464 = tpu.matmul %463, %461, %cst_430 {dimension_numbers = #tpu.dot_dimension_numbers<[1], [0], [0], [1], [0, 0, 1, 1], [], []>} : vector<32x16xf32>, vector<16x18xf32>, vector<32x18xf32> -> vector<32x18xf32>
    %465 = arith.addf %458, %464 : vector<32x18xf32>
    %c27 = arith.constant 27 : index
    %c0_431 = arith.constant 0 : index
    %c0_432 = arith.constant 0 : index
    %466 = vector.load %arg13[%c27, %c0_431, %c0_432] : memref<32x68x18xbf16, #tpu.memory_space<vmem>>, vector<1x68x18xbf16>
    %467 = vector.shape_cast %466 : vector<1x68x18xbf16> to vector<68x18xbf16>
    %cst_433 = arith.constant dense<0.000000e+00> : vector<16x18xf32>
    %468 = tpu.matmul %275, %467, %cst_433 {dimension_numbers = #tpu.dot_dimension_numbers<[1], [0], [0], [1], [0, 0, 1, 1], [], []>} : vector<16x68xbf16>, vector<68x18xbf16>, vector<16x18xf32> -> vector<16x18xf32>
    %c27_434 = arith.constant 27 : index
    %c0_435 = arith.constant 0 : index
    %c0_436 = arith.constant 0 : index
    %469 = vector.load %arg14[%c27_434, %c0_435, %c0_436] : memref<32x32x16xf32, #tpu.memory_space<vmem>>, vector<1x32x16xf32>
    %470 = vector.shape_cast %469 : vector<1x32x16xf32> to vector<32x16xf32>
    %cst_437 = arith.constant dense<0.000000e+00> : vector<32x18xf32>
    %471 = tpu.matmul %470, %468, %cst_437 {dimension_numbers = #tpu.dot_dimension_numbers<[1], [0], [0], [1], [0, 0, 1, 1], [], []>} : vector<32x16xf32>, vector<16x18xf32>, vector<32x18xf32> -> vector<32x18xf32>
    %472 = arith.addf %465, %471 : vector<32x18xf32>
    %c28 = arith.constant 28 : index
    %c0_438 = arith.constant 0 : index
    %c0_439 = arith.constant 0 : index
    %473 = vector.load %arg13[%c28, %c0_438, %c0_439] : memref<32x68x18xbf16, #tpu.memory_space<vmem>>, vector<1x68x18xbf16>
    %474 = vector.shape_cast %473 : vector<1x68x18xbf16> to vector<68x18xbf16>
    %cst_440 = arith.constant dense<0.000000e+00> : vector<16x18xf32>
    %475 = tpu.matmul %275, %474, %cst_440 {dimension_numbers = #tpu.dot_dimension_numbers<[1], [0], [0], [1], [0, 0, 1, 1], [], []>} : vector<16x68xbf16>, vector<68x18xbf16>, vector<16x18xf32> -> vector<16x18xf32>
    %c28_441 = arith.constant 28 : index
    %c0_442 = arith.constant 0 : index
    %c0_443 = arith.constant 0 : index
    %476 = vector.load %arg14[%c28_441, %c0_442, %c0_443] : memref<32x32x16xf32, #tpu.memory_space<vmem>>, vector<1x32x16xf32>
    %477 = vector.shape_cast %476 : vector<1x32x16xf32> to vector<32x16xf32>
    %cst_444 = arith.constant dense<0.000000e+00> : vector<32x18xf32>
    %478 = tpu.matmul %477, %475, %cst_444 {dimension_numbers = #tpu.dot_dimension_numbers<[1], [0], [0], [1], [0, 0, 1, 1], [], []>} : vector<32x16xf32>, vector<16x18xf32>, vector<32x18xf32> -> vector<32x18xf32>
    %479 = arith.addf %472, %478 : vector<32x18xf32>
    %c29 = arith.constant 29 : index
    %c0_445 = arith.constant 0 : index
    %c0_446 = arith.constant 0 : index
    %480 = vector.load %arg13[%c29, %c0_445, %c0_446] : memref<32x68x18xbf16, #tpu.memory_space<vmem>>, vector<1x68x18xbf16>
    %481 = vector.shape_cast %480 : vector<1x68x18xbf16> to vector<68x18xbf16>
    %cst_447 = arith.constant dense<0.000000e+00> : vector<16x18xf32>
    %482 = tpu.matmul %275, %481, %cst_447 {dimension_numbers = #tpu.dot_dimension_numbers<[1], [0], [0], [1], [0, 0, 1, 1], [], []>} : vector<16x68xbf16>, vector<68x18xbf16>, vector<16x18xf32> -> vector<16x18xf32>
    %c29_448 = arith.constant 29 : index
    %c0_449 = arith.constant 0 : index
    %c0_450 = arith.constant 0 : index
    %483 = vector.load %arg14[%c29_448, %c0_449, %c0_450] : memref<32x32x16xf32, #tpu.memory_space<vmem>>, vector<1x32x16xf32>
    %484 = vector.shape_cast %483 : vector<1x32x16xf32> to vector<32x16xf32>
    %cst_451 = arith.constant dense<0.000000e+00> : vector<32x18xf32>
    %485 = tpu.matmul %484, %482, %cst_451 {dimension_numbers = #tpu.dot_dimension_numbers<[1], [0], [0], [1], [0, 0, 1, 1], [], []>} : vector<32x16xf32>, vector<16x18xf32>, vector<32x18xf32> -> vector<32x18xf32>
    %486 = arith.addf %479, %485 : vector<32x18xf32>
    %c30 = arith.constant 30 : index
    %c0_452 = arith.constant 0 : index
    %c0_453 = arith.constant 0 : index
    %487 = vector.load %arg13[%c30, %c0_452, %c0_453] : memref<32x68x18xbf16, #tpu.memory_space<vmem>>, vector<1x68x18xbf16>
    %488 = vector.shape_cast %487 : vector<1x68x18xbf16> to vector<68x18xbf16>
    %cst_454 = arith.constant dense<0.000000e+00> : vector<16x18xf32>
    %489 = tpu.matmul %275, %488, %cst_454 {dimension_numbers = #tpu.dot_dimension_numbers<[1], [0], [0], [1], [0, 0, 1, 1], [], []>} : vector<16x68xbf16>, vector<68x18xbf16>, vector<16x18xf32> -> vector<16x18xf32>
    %c30_455 = arith.constant 30 : index
    %c0_456 = arith.constant 0 : index
    %c0_457 = arith.constant 0 : index
    %490 = vector.load %arg14[%c30_455, %c0_456, %c0_457] : memref<32x32x16xf32, #tpu.memory_space<vmem>>, vector<1x32x16xf32>
    %491 = vector.shape_cast %490 : vector<1x32x16xf32> to vector<32x16xf32>
    %cst_458 = arith.constant dense<0.000000e+00> : vector<32x18xf32>
    %492 = tpu.matmul %491, %489, %cst_458 {dimension_numbers = #tpu.dot_dimension_numbers<[1], [0], [0], [1], [0, 0, 1, 1], [], []>} : vector<32x16xf32>, vector<16x18xf32>, vector<32x18xf32> -> vector<32x18xf32>
    %493 = arith.addf %486, %492 : vector<32x18xf32>
    %c31 = arith.constant 31 : index
    %c0_459 = arith.constant 0 : index
    %c0_460 = arith.constant 0 : index
    %494 = vector.load %arg13[%c31, %c0_459, %c0_460] : memref<32x68x18xbf16, #tpu.memory_space<vmem>>, vector<1x68x18xbf16>
    %495 = vector.shape_cast %494 : vector<1x68x18xbf16> to vector<68x18xbf16>
    %cst_461 = arith.constant dense<0.000000e+00> : vector<16x18xf32>
    %496 = tpu.matmul %275, %495, %cst_461 {dimension_numbers = #tpu.dot_dimension_numbers<[1], [0], [0], [1], [0, 0, 1, 1], [], []>} : vector<16x68xbf16>, vector<68x18xbf16>, vector<16x18xf32> -> vector<16x18xf32>
    %c31_462 = arith.constant 31 : index
    %c0_463 = arith.constant 0 : index
    %c0_464 = arith.constant 0 : index
    %497 = vector.load %arg14[%c31_462, %c0_463, %c0_464] : memref<32x32x16xf32, #tpu.memory_space<vmem>>, vector<1x32x16xf32>
    %498 = vector.shape_cast %497 : vector<1x32x16xf32> to vector<32x16xf32>
    %cst_465 = arith.constant dense<0.000000e+00> : vector<32x18xf32>
    %499 = tpu.matmul %498, %496, %cst_465 {dimension_numbers = #tpu.dot_dimension_numbers<[1], [0], [0], [1], [0, 0, 1, 1], [], []>} : vector<32x16xf32>, vector<16x18xf32>, vector<32x18xf32> -> vector<32x18xf32>
    %500 = arith.addf %493, %499 : vector<32x18xf32>
    %c0_466 = arith.constant 0 : index
    %c0_467 = arith.constant 0 : index
    %501 = vector.load %arg15[%c0_466, %c0_467] : memref<32x18xf32, #tpu.memory_space<vmem>>, vector<32x18xf32>
    %c0_468 = arith.constant 0 : index
    %c0_469 = arith.constant 0 : index
    %502 = vector.load %arg16[%c0_468, %c0_469] : memref<32x18xf32, #tpu.memory_space<vmem>>, vector<32x18xf32>
    %cst_470 = arith.constant dense<0.000000e+00> : vector<32xf32>
    %503 = vector.multi_reduction <add>, %500, %cst_470 [1] : vector<32x18xf32> to vector<32xf32>
    %504 = vector.shape_cast %503 : vector<32xf32> to vector<32x1xf32>
    %cst_471 = arith.constant dense<0.000000e+00> : vector<1xf32>
    %505 = vector.multi_reduction <add>, %504, %cst_471 [0] : vector<32x1xf32> to vector<1xf32>
    %506 = vector.shape_cast %505 : vector<1xf32> to vector<1x1xf32>
    %507 = arith.mulf %500, %500 : vector<32x18xf32>
    %cst_472 = arith.constant dense<0.000000e+00> : vector<32xf32>
    %508 = vector.multi_reduction <add>, %507, %cst_472 [1] : vector<32x18xf32> to vector<32xf32>
    %509 = vector.shape_cast %508 : vector<32xf32> to vector<32x1xf32>
    %cst_473 = arith.constant dense<0.000000e+00> : vector<1xf32>
    %510 = vector.multi_reduction <add>, %509, %cst_473 [0] : vector<32x1xf32> to vector<1xf32>
    %511 = vector.shape_cast %510 : vector<1xf32> to vector<1x1xf32>
    %cst_474 = arith.constant 0.00173611112 : f32
    %512 = vector.broadcast %cst_474 : f32 to vector<1x1xf32>
    %513 = arith.mulf %506, %512 : vector<1x1xf32>
    %cst_475 = arith.constant 0.00173611112 : f32
    %514 = vector.broadcast %cst_475 : f32 to vector<1x1xf32>
    %515 = arith.mulf %511, %514 : vector<1x1xf32>
    %516 = arith.mulf %513, %513 : vector<1x1xf32>
    %517 = arith.subf %515, %516 : vector<1x1xf32>
    %cst_476 = arith.constant 0.000000e+00 : f32
    %518 = vector.broadcast %cst_476 : f32 to vector<1x1xf32>
    %519 = arith.maximumf %517, %518 : vector<1x1xf32>
    %520 = vector.broadcast %513 : vector<1x1xf32> to vector<32x18xf32>
    %521 = arith.subf %500, %520 : vector<32x18xf32>
    %cst_477 = arith.constant 9.99999974E-6 : f32
    %522 = vector.broadcast %cst_477 : f32 to vector<1x1xf32>
    %523 = arith.addf %519, %522 : vector<1x1xf32>
    %524 = math.rsqrt %523 : vector<1x1xf32>
    %525 = vector.broadcast %524 : vector<1x1xf32> to vector<32x18xf32>
    %526 = arith.mulf %521, %525 : vector<32x18xf32>
    %527 = arith.mulf %526, %501 : vector<32x18xf32>
    %528 = arith.addf %527, %502 : vector<32x18xf32>
    %cst_478 = arith.constant 0.000000e+00 : f32
    %529 = vector.broadcast %cst_478 : f32 to vector<32x18xf32>
    %530 = arith.cmpf oge, %528, %529 : vector<32x18xf32>
    %cst_479 = arith.constant 2.000000e-01 : f32
    %531 = vector.broadcast %cst_479 : f32 to vector<32x18xf32>
    %532 = arith.mulf %531, %528 : vector<32x18xf32>
    %533 = arith.select %530, %528, %532 : vector<32x18xi1>, vector<32x18xf32>
    %c0_480 = arith.constant 0 : index
    %c0_481 = arith.constant 0 : index
    %534 = vector.load %arg17[%c0_480, %c0_481] : memref<32x18xf32, #tpu.memory_space<vmem>>, vector<32x18xf32>
    %535 = arith.mulf %533, %534 : vector<32x18xf32>
    %cst_482 = arith.constant dense<0.000000e+00> : vector<32xf32>
    %536 = vector.multi_reduction <add>, %535, %cst_482 [1] : vector<32x18xf32> to vector<32xf32>
    %537 = vector.shape_cast %536 : vector<32xf32> to vector<32x1xf32>
    %cst_483 = arith.constant dense<0.000000e+00> : vector<1xf32>
    %538 = vector.multi_reduction <add>, %537, %cst_483 [0] : vector<32x1xf32> to vector<1xf32>
    %539 = vector.shape_cast %538 : vector<1xf32> to vector<1x1xf32>
    %540 = arith.negf %539 : vector<1x1xf32>
    %541 = math.exp %540 : vector<1x1xf32>
    %cst_484 = arith.constant 1.000000e+00 : f32
    %542 = vector.broadcast %cst_484 : f32 to vector<1x1xf32>
    %543 = arith.addf %542, %541 : vector<1x1xf32>
    %544 = arith.divf %542, %543 : vector<1x1xf32>
    %c0_485 = arith.constant 0 : index
    %c0_486 = arith.constant 0 : index
    %c0_487 = arith.constant 0 : index
    %545 = vector.load %arg18[%c0_485, %c0_486, %c0_487] : memref<1x1x1xf32, #tpu.memory_space<vmem>>, vector<1x1x1xf32>
    %546 = vector.shape_cast %545 : vector<1x1x1xf32> to vector<1x1xf32>
    %547 = vector.shape_cast %544 : vector<1x1xf32> to vector<1x1x1xf32>
    tpu.vector_store %arg18[%c0_485, %c0_486, %c0_487], %547 {strides = array<i32>} : memref<1x1x1xf32, #tpu.memory_space<vmem>>, vector<1x1x1xf32>,
    return
  }
  func.func @transform_0(%arg0: i32) -> (i32, i32, i32) {
    %c0_i32 = arith.constant 0 : i32
    %c0_i32_0 = arith.constant 0 : i32
    %c0_i32_1 = arith.constant 0 : i32
    return %arg0, %c0_i32, %c0_i32_0 : i32, i32, i32
  }
  func.func @transform_1(%arg0: i32) -> (i32, i32) {
    %c0_i32 = arith.constant 0 : i32
    %c0_i32_0 = arith.constant 0 : i32
    %c0_i32_1 = arith.constant 0 : i32
    return %c0_i32, %c0_i32_0 : i32, i32
  }
  func.func @transform_2(%arg0: i32) -> (i32, i32) {
    %c0_i32 = arith.constant 0 : i32
    %c0_i32_0 = arith.constant 0 : i32
    %c0_i32_1 = arith.constant 0 : i32
    return %c0_i32, %c0_i32_0 : i32, i32
  }
  func.func @transform_3(%arg0: i32) -> (i32, i32) {
    %c0_i32 = arith.constant 0 : i32
    %c0_i32_0 = arith.constant 0 : i32
    %c0_i32_1 = arith.constant 0 : i32
    return %c0_i32, %c0_i32_0 : i32, i32
  }
  func.func @transform_4(%arg0: i32) -> (i32, i32, i32) {
    %c0_i32 = arith.constant 0 : i32
    %c0_i32_0 = arith.constant 0 : i32
    %c0_i32_1 = arith.constant 0 : i32
    %c0_i32_2 = arith.constant 0 : i32
    return %c0_i32, %c0_i32_0, %c0_i32_1 : i32, i32, i32
  }
  func.func @transform_5(%arg0: i32) -> (i32, i32, i32) {
    %c0_i32 = arith.constant 0 : i32
    %c0_i32_0 = arith.constant 0 : i32
    %c0_i32_1 = arith.constant 0 : i32
    %c0_i32_2 = arith.constant 0 : i32
    return %c0_i32, %c0_i32_0, %c0_i32_1 : i32, i32, i32
  }
  func.func @transform_6(%arg0: i32) -> (i32, i32) {
    %c0_i32 = arith.constant 0 : i32
    %c0_i32_0 = arith.constant 0 : i32
    %c0_i32_1 = arith.constant 0 : i32
    return %c0_i32, %c0_i32_0 : i32, i32
  }
  func.func @transform_7(%arg0: i32) -> (i32, i32) {
    %c0_i32 = arith.constant 0 : i32
    %c0_i32_0 = arith.constant 0 : i32
    %c0_i32_1 = arith.constant 0 : i32
    return %c0_i32, %c0_i32_0 : i32, i32
  }
  func.func @transform_8(%arg0: i32) -> (i32, i32, i32) {
    %c0_i32 = arith.constant 0 : i32
    %c0_i32_0 = arith.constant 0 : i32
    %c0_i32_1 = arith.constant 0 : i32
    %c0_i32_2 = arith.constant 0 : i32
    return %c0_i32, %c0_i32_0, %c0_i32_1 : i32, i32, i32
  }
  func.func @transform_9(%arg0: i32) -> (i32, i32, i32) {
    %c0_i32 = arith.constant 0 : i32
    %c0_i32_0 = arith.constant 0 : i32
    %c0_i32_1 = arith.constant 0 : i32
    %c0_i32_2 = arith.constant 0 : i32
    return %c0_i32, %c0_i32_0, %c0_i32_1 : i32, i32, i32
  }
  func.func @transform_10(%arg0: i32) -> (i32, i32) {
    %c0_i32 = arith.constant 0 : i32
    %c0_i32_0 = arith.constant 0 : i32
    %c0_i32_1 = arith.constant 0 : i32
    return %c0_i32, %c0_i32_0 : i32, i32
  }
  func.func @transform_11(%arg0: i32) -> (i32, i32) {
    %c0_i32 = arith.constant 0 : i32
    %c0_i32_0 = arith.constant 0 : i32
    %c0_i32_1 = arith.constant 0 : i32
    return %c0_i32, %c0_i32_0 : i32, i32
  }
  func.func @transform_12(%arg0: i32) -> (i32, i32, i32) {
    %c0_i32 = arith.constant 0 : i32
    %c0_i32_0 = arith.constant 0 : i32
    %c0_i32_1 = arith.constant 0 : i32
    %c0_i32_2 = arith.constant 0 : i32
    return %c0_i32, %c0_i32_0, %c0_i32_1 : i32, i32, i32
  }
  func.func @transform_13(%arg0: i32) -> (i32, i32, i32) {
    %c0_i32 = arith.constant 0 : i32
    %c0_i32_0 = arith.constant 0 : i32
    %c0_i32_1 = arith.constant 0 : i32
    %c0_i32_2 = arith.constant 0 : i32
    return %c0_i32, %c0_i32_0, %c0_i32_1 : i32, i32, i32
  }
  func.func @transform_14(%arg0: i32) -> (i32, i32) {
    %c0_i32 = arith.constant 0 : i32
    %c0_i32_0 = arith.constant 0 : i32
    %c0_i32_1 = arith.constant 0 : i32
    return %c0_i32, %c0_i32_0 : i32, i32
  }
  func.func @transform_15(%arg0: i32) -> (i32, i32) {
    %c0_i32 = arith.constant 0 : i32
    %c0_i32_0 = arith.constant 0 : i32
    %c0_i32_1 = arith.constant 0 : i32
    return %c0_i32, %c0_i32_0 : i32, i32
  }
  func.func @transform_16(%arg0: i32) -> (i32, i32) {
    %c0_i32 = arith.constant 0 : i32
    %c0_i32_0 = arith.constant 0 : i32
    %c0_i32_1 = arith.constant 0 : i32
    return %c0_i32, %c0_i32_0 : i32, i32
  }
  func.func @transform_17(%arg0: i32) -> (i32, i32, i32) {
    %c0_i32 = arith.constant 0 : i32
    %c0_i32_0 = arith.constant 0 : i32
    %c0_i32_1 = arith.constant 0 : i32
    return %arg0, %c0_i32, %c0_i32_0 : i32, i32, i32
  }
}

</mosaic_0001>

<bundles_post_ra>
// kernel: netd_forward.1
= control target key start
LH: loop header
LB: loop body
LE: loop exit
PB: predicated region body
PF: predicated region fallthrough
CT: control target
= control target key end

     0   :  { %s22194_s24 = smov 0   ;;  %s26985_s0 = inlined_call_operand.vmem [shape: bf16[2,16,512], index: 0, kind: input, shape index: {}]   ;;  %s26986_s1 = inlined_call_operand.vmem [shape: bf16[4,16], index: 1, kind: input, shape index: {}]   ;;  %s26987_s2 = inlined_call_operand.vmem [shape: f32[4,512], index: 2, kind: input, shape index: {}]   ;;  %s26988_s3 = inlined_call_operand.vmem [shape: f32[4,512], index: 3, kind: input, shape index: {}]   ;;  %s26989_s4 = inlined_call_operand.vmem [shape: bf16[12,512,192], index: 4, kind: input, shape index: {}]   ;;  %s26990_s5 = inlined_call_operand.vmem [shape: f32[12,8,4], index: 5, kind: input, shape index: {}]   ;;  %s26991_s6 = inlined_call_operand.vmem [shape: f32[8,192], index: 6, kind: input, shape index: {}]   ;;  %s26992_s7 = inlined_call_operand.vmem [shape: f32[8,192], index: 7, kind: input, shape index: {}]   ;;  %s26993_s8 = inlined_call_operand.vmem [shape: bf16[12,192,68], index: 8, kind: input, shape index: {}]   ;;  %s26994_s9 = inlined_call_operand.vmem [shape: f32[12,16,8], index: 9, kind: input, shape index: {}]   ;;  %s26995_s10 = inlined_call_operand.vmem [shape: f32[16,68], index: 10, kind: input, shape index: {}]   ;;  %s26996_s11 = inlined_call_operand.vmem [shape: f32[16,68], index: 11, kind: input, shape index: {}]   ;;  %s26997_s12 = inlined_call_operand.vmem [shape: bf16[32,68,18], index: 12, kind: input, shape index: {}]   ;;  %s26998_s13 = inlined_call_operand.vmem [shape: f32[32,32,16], index: 13, kind: input, shape index: {}]   ;;  %s26999_s14 = inlined_call_operand.vmem [shape: f32[32,18], index: 14, kind: input, shape index: {}]   ;;  %s27000_s15 = inlined_call_operand.vmem [shape: f32[32,18], index: 15, kind: input, shape index: {}]   ;;  %s27001_s16 = inlined_call_operand.vmem [shape: f32[32,18], index: 16, kind: input, shape index: {}]   ;;  %s27002_s17 = inlined_call_operand.vmem [shape: f32[2,1,1], index: 17, kind: output, shape index: {}]  }
   0x1   :  { %27003 = sst [smem:[#allocation2_spill]] %s26985_s0 }
   0x2   :  { %27004 = sst [smem:[#allocation3_spill]] %s26986_s1 }
   0x3 LB: > { %s16287_s25 = sadd.s32 4294967295, %s22099_s24   ;;  %p16291_p0 = scmp.ge.s32.totalorder %s22099_s24, 1  ;;  %s22099_s24 = sphi %s22194_s24, %s27_s24  }
   0x4   : > { %p487_p1 = scmp.lt.s32.totalorder %s22099_s24, 3 }
   0x6   : > { %p488_p2 = pnand %p16291_p0, %p487_p1 }
   0x7   : > { %p537_p3 = scmp.lt.s32.totalorder (!%p488_p2), %s16287_s25, 1  ;;  %v22101_v0 = vmov (!%p488_p2), 0   ;;  %s27005_s29 = sld [smem:[#allocation2_spill]] (!%p488_p2)  ;;  %vm571_vm0 = vcmask (!%p488_p2), 130048   ;;  %v20621_v6 = vld [vmem:[%s26989_s4] ss:$8 sps:$4 sm:$0xff] (!%p488_p2)  }
   0x8   : > { %491 = sbr.rel (%p488_p2) target bundleno = 8435 (0x20f3), region = 88  ;;  %607 = vmatprep.mubr.bf16.mxu0 (!%p488_p2), %v22101_v0  ;;  %648 = vmatprep.mubr.bf16.mxu1 (!%p488_p2), %v22101_v0  ;;  %s27006_s19 = sld [smem:[#allocation3_spill]] (!%p488_p2)  ;;  %v20623_v7 = vld [vmem:[%s26989_s4 + $0x4] ss:$8 sps:$4 sm:$0xff] (!%p488_p2)   ;;  %v20624_v8 = vld [vmem:[%s26989_s4 + $0x200] ss:$8 sps:$4 sm:$0xff] (!%p488_p2)  }
   0x9   : > { %v20626_v9 = vld [vmem:[%s26989_s4 + $0x204] ss:$8 sps:$4 sm:$0xff] (!%p488_p2)   ;;  %v20629_v10 = vld [vmem:[%s26989_s4 + $0x14] ss:$8 sps:$4 sm:$0xff] (!%p488_p2)   ;;  %v20627_v12 = vld [vmem:[%s26989_s4 + $0x10] ss:$8 sps:$4 sm:$0xff] (!%p488_p2)  }
   0xa   : > { %v20632_v11 = vld [vmem:[%s26989_s4 + $0x214] ss:$8 sps:$4 sm:$0xff] (!%p488_p2)   ;;  %v20630_v13 = vld [vmem:[%s26989_s4 + $0x210] ss:$8 sps:$4 sm:$0xff] (!%p488_p2)   ;;  %v20635_v14 = vld [vmem:[%s26989_s4 + $0x24] ss:$8 sps:$4 sm:$0xff] (!%p488_p2)  }
   0xb   : > { %v20633_v15 = vld [vmem:[%s26989_s4 + $0x20] ss:$8 sps:$4 sm:$0xff] (!%p488_p2)   ;;  %v20638_v16 = vld [vmem:[%s26989_s4 + $0x224] ss:$8 sps:$4 sm:$0xff] (!%p488_p2)   ;;  %v20641_v18 = vld [vmem:[%s26989_s4 + $0x34] ss:$8 sps:$4 sm:$0xff] (!%p488_p2)  }
   0xc   : > { %v20636_v17 = vld [vmem:[%s26989_s4 + $0x220] ss:$8 sps:$4 sm:$0xff] (!%p488_p2)   ;;  %v20644_v19 = vld [vmem:[%s26989_s4 + $0x234] ss:$8 sps:$4 sm:$0xff] (!%p488_p2)   ;;  %v20639_v20 = vld [vmem:[%s26989_s4 + $0x30] ss:$8 sps:$4 sm:$0xff] (!%p488_p2)  }
   0xd   : > { %v20642_v21 = vld [vmem:[%s26989_s4 + $0x230] ss:$8 sps:$4 sm:$0xff] (!%p488_p2)   ;;  %v20647_v22 = vld [vmem:[%s26989_s4 + $0x44] ss:$8 sps:$4 sm:$0xff] (!%p488_p2)   ;;  %v20645_v24 = vld [vmem:[%s26989_s4 + $0x40] ss:$8 sps:$4 sm:$0xff] (!%p488_p2)  }
   0xe   : > { %v546_v5 = vld [vmem:[%s27006_s19] sm:$0x3] (!%p488_p2)  ;;  %v20650_v23 = vld [vmem:[%s26989_s4 + $0x244] ss:$8 sps:$4 sm:$0xff] (!%p488_p2)   ;;  %vm661_vm1 = vcmask (!%p488_p2), 1043456   ;;  %vm1685_vm6 = vcmask (!%p488_p2), 31744  }
   0xf   : > { %s27008_s25 = smov (!%p537_p3, %s16287_s25), 1  ;;  %v20648_v25 = vld [vmem:[%s26989_s4 + $0x240] ss:$8 sps:$4 sm:$0xff]   ;;  %v20653_v52 = vld [vmem:[%s26989_s4 + $0x54] ss:$8 sps:$4 sm:$0xff]   ;;  %vm7360_vm7 = vcmask 523264  }
  0x10   : > { %s19011_s26 = sshll.u32 %s27008_s25, 5  ;;  %v20656_v53 = vld [vmem:[%s26989_s4 + $0x254] ss:$8 sps:$4 sm:$0xff]   ;;  %v20651_v54 = vld [vmem:[%s26989_s4 + $0x50] ss:$8 sps:$4 sm:$0xff]   ;;  %vm7687_vm10 = vcmask 64512   ;;  %s544_s1 = scalar_lea.vmem %s27002_s17, %s27008_s25 }
  0x11   : > { %s541_s0 = scalar_lea.vmem %s27005_s29, %s19011_s26  ;;  %v20654_v55 = vld [vmem:[%s26989_s4 + $0x250] ss:$8 sps:$4 sm:$0xff]   ;;  %v20663_v56 = vld [vmem:[%s26989_s4 + $0x64] ss:$8 sps:$4 sm:$0xff]   ;;  %v20661_v58 = vld [vmem:[%s26989_s4 + $0x60] ss:$8 sps:$4 sm:$0xff]  }
  0x12   : > { %v20615_v1 = vld [vmem:[%s541_s0 + $0x4] ss:$16 sps:$4 sm:$0xff]   ;;  %v20617_v2 = vld [vmem:[%s541_s0 + $0xc] ss:$16 sps:$4 sm:$0xff]   ;;  %v20619_v3 = vld [vmem:[%s541_s0] ss:$16 sps:$4 sm:$0xff]  }
  0x13   : > { %575 = vmatprep.subr.bf16.mxu0 %v20615_v1  ;;  %v20620_v4 = vld [vmem:[%s541_s0 + $0x8] ss:$16 sps:$4 sm:$0xff]   ;;  %616 = vmatprep.subr.bf16.mxu1 %v20617_v2  ;;  %v20666_v57 = vld [vmem:[%s26989_s4 + $0x264] ss:$8 sps:$4 sm:$0xff]   ;;  %v20669_v60 = vld [vmem:[%s26989_s4 + $0x74] ss:$8 sps:$4 sm:$0xff]  }
  0x14   : > { %576 = vmatpush1.bf16.msra.mxu0 %v20619_v3  ;;  %617 = vmatpush1.bf16.msra.mxu1 %v20620_v4  ;;  %v20664_v59 = vld [vmem:[%s26989_s4 + $0x260] ss:$8 sps:$4 sm:$0xff]   ;;  %v20672_v61 = vld [vmem:[%s26989_s4 + $0x274] ss:$8 sps:$4 sm:$0xff]   ;;  %v20667_v62 = vld [vmem:[%s26989_s4 + $0x70] ss:$8 sps:$4 sm:$0xff]  }
  0x15   : > { %1133 = vmatprep.subr.bf16.mxu0 %v20623_v7  ;;  %1601 = vmatprep.subr.bf16.mxu1 %v20626_v9  ;;  %v20670_v63 = vld [vmem:[%s26989_s4 + $0x270] ss:$8 sps:$4 sm:$0xff]   ;;  %v20675_v1 = vld [vmem:[%s26989_s4 + $0x84] ss:$8 sps:$4 sm:$0xff]   ;;  %v20673_v3 = vld [vmem:[%s26989_s4 + $0x80] ss:$8 sps:$4 sm:$0xff]  }
  0x16   : > { %v20678_v2 = vld [vmem:[%s26989_s4 + $0x284] ss:$8 sps:$4 sm:$0xff]   ;;  %v20676_v4 = vld [vmem:[%s26989_s4 + $0x280] ss:$8 sps:$4 sm:$0xff]   ;;  %v20679_v7 = vld [vmem:[%s26989_s4 + $0x90] ss:$8 sps:$4 sm:$0xff]  }
  0x17   : > { %16298 = vmatmul.mubr.msk.bf16.vlgmr.msra.gmra.mrb[0].mxu0 %vm571_vm0, %v546_v5  ;;  %16299 = vmatmul.mubr.msk.bf16.vlgmr.msra.gmra.mrb[0].mxu1 %vm571_vm0, %v546_v5  ;;  %v20681_v5 = vld [vmem:[%s26989_s4 + $0x94] ss:$8 sps:$4 sm:$0xff]   ;;  %v20687_v9 = vld [vmem:[%s26989_s4 + $0xa4] ss:$8 sps:$4 sm:$0xff]   ;;  %vm10084_vm11 = vcmask 556032   ;;  %vm10174_vm12 = vcmask 1041408  }
  0x18   : > { %1134 = vmatpush1.bf16.msra.mxu0 %v20621_v6  ;;  %1602 = vmatpush1.bf16.msra.mxu1 %v20624_v8  ;;  %v20684_v6 = vld [vmem:[%s26989_s4 + $0x294] ss:$8 sps:$4 sm:$0xff]   ;;  %v20682_v8 = vld [vmem:[%s26989_s4 + $0x290] ss:$8 sps:$4 sm:$0xff]   ;;  %vm22103_vm13 = vmmov 0  }
  0x19   : > { %1135 = vmatprep.subr.bf16.mxu0 %v20629_v10  ;;  %1603 = vmatprep.subr.bf16.mxu1 %v20632_v11  ;;  %v20690_v10 = vld [vmem:[%s26989_s4 + $0x2a4] ss:$8 sps:$4 sm:$0xff]   ;;  %v20685_v11 = vld [vmem:[%s26989_s4 + $0xa0] ss:$8 sps:$4 sm:$0xff]  }
  0x1c   : > { %1136 = vmatpush1.bf16.msra.mxu0 %v20627_v12  ;;  %1604 = vmatpush1.bf16.msra.mxu1 %v20630_v13  ;;  %v20688_v12 = vld [vmem:[%s26989_s4 + $0x2a0] ss:$8 sps:$4 sm:$0xff]   ;;  %v20693_v13 = vld [vmem:[%s26989_s4 + $0xb4] ss:$8 sps:$4 sm:$0xff]  }
  0x1d   : > { %1137 = vmatprep.subr.bf16.mxu0 %v20635_v14  ;;  %1605 = vmatprep.subr.bf16.mxu1 %v20638_v16  ;;  %v20696_v14 = vld [vmem:[%s26989_s4 + $0x2b4] ss:$8 sps:$4 sm:$0xff]   ;;  %v20694_v16 = vld [vmem:[%s26989_s4 + $0x2b0] ss:$8 sps:$4 sm:$0xff]  }
  0x20   : > { %1138 = vmatpush1.bf16.msra.mxu0 %v20633_v15  ;;  %1606 = vmatpush1.bf16.msra.mxu1 %v20636_v17  ;;  %v20691_v15 = vld [vmem:[%s26989_s4 + $0xb0] ss:$8 sps:$4 sm:$0xff]   ;;  %v20699_v17 = vld [vmem:[%s26989_s4 + $0xc4] ss:$8 sps:$4 sm:$0xff]  }
  0x21   : > { %1139 = vmatprep.subr.bf16.mxu0 %v20641_v18  ;;  %1607 = vmatprep.subr.bf16.mxu1 %v20644_v19  ;;  %v20702_v18 = vld [vmem:[%s26989_s4 + $0x2c4] ss:$8 sps:$4 sm:$0xff]   ;;  %v20697_v19 = vld [vmem:[%s26989_s4 + $0xc0] ss:$8 sps:$4 sm:$0xff]  }
  0x24   : > { %1140 = vmatpush1.bf16.msra.mxu0 %v20639_v20  ;;  %1608 = vmatpush1.bf16.msra.mxu1 %v20642_v21  ;;  %v20700_v20 = vld [vmem:[%s26989_s4 + $0x2c0] ss:$8 sps:$4 sm:$0xff]   ;;  %v20705_v21 = vld [vmem:[%s26989_s4 + $0xd4] ss:$8 sps:$4 sm:$0xff]  }
  0x25   : > { %1141 = vmatprep.subr.bf16.mxu0 %v20647_v22  ;;  %1609 = vmatprep.subr.bf16.mxu1 %v20650_v23  ;;  %v20708_v22 = vld [vmem:[%s26989_s4 + $0x2d4] ss:$8 sps:$4 sm:$0xff]   ;;  %v20703_v23 = vld [vmem:[%s26989_s4 + $0xd0] ss:$8 sps:$4 sm:$0xff]  }
  0x28   : > { %1142 = vmatpush1.bf16.msra.mxu0 %v20645_v24  ;;  %1610 = vmatpush1.bf16.msra.mxu1 %v20648_v25  ;;  %v20706_v24 = vld [vmem:[%s26989_s4 + $0x2d0] ss:$8 sps:$4 sm:$0xff]   ;;  %v20711_v25 = vld [vmem:[%s26989_s4 + $0xe4] ss:$8 sps:$4 sm:$0xff]  }
  0x29   : > { %1143 = vmatprep.subr.bf16.mxu0 %v20653_v52  ;;  %1611 = vmatprep.subr.bf16.mxu1 %v20656_v53 }
  0x2c   : > { %1144 = vmatpush1.bf16.msra.mxu0 %v20651_v54  ;;  %1612 = vmatpush1.bf16.msra.mxu1 %v20654_v55 }
  0x2d   : > { %1145 = vmatprep.subr.bf16.mxu0 %v20663_v56  ;;  %1613 = vmatprep.subr.bf16.mxu1 %v20666_v57 }
  0x30   : > { %1146 = vmatpush1.bf16.msra.mxu0 %v20661_v58  ;;  %1614 = vmatpush1.bf16.msra.mxu1 %v20664_v59 }
  0x31   : > { %1147 = vmatprep.subr.bf16.mxu0 %v20669_v60  ;;  %1615 = vmatprep.subr.bf16.mxu1 %v20672_v61 }
  0x34   : > { %1148 = vmatpush1.bf16.msra.mxu0 %v20667_v62  ;;  %1616 = vmatpush1.bf16.msra.mxu1 %v20670_v63  ;;  %v657_v62 = vld [vmem:[%s26987_s2] sm:$0xff]  ;;  %v658_v63 = vld [vmem:[%s26987_s2 + $0x8] sm:$0xff] }
  0x35   : > { %1149 = vmatprep.subr.bf16.mxu0 %v20675_v1  ;;  %1617 = vmatprep.subr.bf16.mxu1 %v20678_v2  ;;  %v659_v1 = vld [vmem:[%s26988_s3] sm:$0xff]  ;;  %v715_v2 = vcombine.high %v657_v62, %v657_v62 }
  0x38   : > { %1150 = vmatpush1.bf16.msra.mxu0 %v20673_v3  ;;  %1618 = vmatpush1.bf16.msra.mxu1 %v20676_v4 }
  0x39   : > { %1151 = vmatprep.subr.bf16.mxu0 %v20681_v5  ;;  %1619 = vmatprep.subr.bf16.mxu1 %v20684_v6  ;;  %v716_v6 = vcombine.high %v658_v63, %v658_v63 }
  0x3c   : > { %1152 = vmatpush1.bf16.msra.mxu0 %v20679_v7  ;;  %1620 = vmatpush1.bf16.msra.mxu1 %v20682_v8  ;;  %v725_v8 = vcombine.high %v659_v1, %v659_v1 }
  0x3d   : > { %1153 = vmatprep.subr.bf16.mxu0 %v20687_v9  ;;  %1621 = vmatprep.subr.bf16.mxu1 %v20690_v10 }
  0x40   : > { %1154 = vmatpush1.bf16.msra.mxu0 %v20685_v11  ;;  %1622 = vmatpush1.bf16.msra.mxu1 %v20688_v12 }
  0x41   : > { %1155 = vmatprep.subr.bf16.mxu0 %v20693_v13  ;;  %1623 = vmatprep.subr.bf16.mxu1 %v20696_v14 }
  0x44   : > { %1156 = vmatpush1.bf16.msra.mxu0 %v20691_v15  ;;  %1624 = vmatpush1.bf16.msra.mxu1 %v20694_v16 }
  0x45   : > { %1157 = vmatprep.subr.bf16.mxu0 %v20699_v17  ;;  %1625 = vmatprep.subr.bf16.mxu1 %v20702_v18 }
  0x48   : > { %1158 = vmatpush1.bf16.msra.mxu0 %v20697_v19  ;;  %1626 = vmatpush1.bf16.msra.mxu1 %v20700_v20 }
  0x49   : > { %1159 = vmatprep.subr.bf16.mxu0 %v20705_v21  ;;  %1627 = vmatprep.subr.bf16.mxu1 %v20708_v22  ;;  %v20721_v22 = vld [vmem:[%s26989_s4 + $0x100] ss:$8 sps:$4 sm:$0xff]  }
  0x4c   : > { %1160 = vmatpush1.bf16.msra.mxu0 %v20703_v23  ;;  %1628 = vmatpush1.bf16.msra.mxu1 %v20706_v24  ;;  %v20724_v23 = vld [vmem:[%s26989_s4 + $0x300] ss:$8 sps:$4 sm:$0xff]  }
  0x4d   : > { %1161 = vmatprep.subr.bf16.mxu0 %v20711_v25 }
  0xea   : > { %v22275_v26 = vpop.f32.mrb[0].mxu0  ;;  %v22277_v27 = vpop.f32.mrb[0].mxu1 }
  0xeb   : > { %v662_v28 = vsel %vm661_vm1, %v22275_v26, 0.0  ;;  %v678_v29 = vmul.f32 %v22275_v26, %v22275_v26  ;;  %v680_v30 = vmul.f32 %v22277_v27, %v22277_v27  ;;  %v22285_v31 = vpop.f32.mrb[1].mxu0  ;;  %v22287_v32 = vpop.f32.mrb[1].mxu1  ;;  %v665_v37 = vsel %vm661_vm1, %v22277_v27, 0.0 }
  0xec   : > { %v663_v33 = vsel %vm661_vm1, %v22285_v31, 0.0  ;;  %v679_v34 = vmul.f32 %v22285_v31, %v22285_v31  ;;  %v613_v35 = vpop.f32.mrb[2].mxu0  ;;  %v654_v36 = vpop.f32.mrb[2].mxu1  ;;  %v681_v43 = vmul.f32 %v22287_v32, %v22287_v32  ;;  %v667_v47 = vsel %vm661_vm1, %v22287_v32, 0.0 }
  0xed   : > { %v682_v38 = vsel %vm661_vm1, %v678_v29, 0.0  ;;  %v614_v39 = vpop.f32.mrb[3].mxu0  ;;  %v655_v40 = vpop.f32.mrb[3].mxu1  ;;  %v664_v41 = vadd.f32 %v663_v33, %v662_v28  ;;  %v685_v44 = vsel %vm661_vm1, %v680_v30, 0.0  ;;  %v20714_v28 = vld [vmem:[%s26989_s4 + $0x2e4] ss:$8 sps:$4 sm:$0xff]  }
  0xee   : > { %v683_v42 = vsel %vm661_vm1, %v679_v34, 0.0  ;;  %v687_v50 = vsel %vm661_vm1, %v681_v43, 0.0  ;;  %v20709_v29 = vld [vmem:[%s26989_s4 + $0xe0] ss:$8 sps:$4 sm:$0xff]   ;;  %1629 = vmatprep.subr.bf16.mxu1 %v20714_v28  ;;  %v20717_v33 = vld [vmem:[%s26989_s4 + $0xf4] ss:$8 sps:$4 sm:$0xff]  }
  0xef   : > { %v666_v45 = vadd.f32 %v665_v37, %v664_v41  ;;  %v684_v46 = vadd.f32 %v683_v42, %v682_v38  ;;  %v20712_v30 = vld [vmem:[%s26989_s4 + $0x2e0] ss:$8 sps:$4 sm:$0xff]   ;;  %1162 = vmatpush1.bf16.msra.mxu0 %v20709_v29  ;;  %v20720_v34 = vld [vmem:[%s26989_s4 + $0x2f4] ss:$8 sps:$4 sm:$0xff]   ;;  %v20715_v35 = vld [vmem:[%s26989_s4 + $0xf0] ss:$8 sps:$4 sm:$0xff]  }
  0xf0   : > { %1630 = vmatpush1.bf16.msra.mxu1 %v20712_v30  ;;  %v20718_v36 = vld [vmem:[%s26989_s4 + $0x2f0] ss:$8 sps:$4 sm:$0xff]   ;;  %1163 = vmatprep.subr.bf16.mxu0 %v20717_v33  ;;  %v20723_v37 = vld [vmem:[%s26989_s4 + $0x104] ss:$8 sps:$4 sm:$0xff]   ;;  %v20729_v33 = vld [vmem:[%s26989_s4 + $0x114] ss:$8 sps:$4 sm:$0xff]  }
  0xf1   : > { %v668_v48 = vadd.f32 %v667_v47, %v666_v45  ;;  %v686_v49 = vadd.f32 %v685_v44, %v684_v46  ;;  %1631 = vmatprep.subr.bf16.mxu1 %v20720_v34  ;;  %v20726_v38 = vld [vmem:[%s26989_s4 + $0x304] ss:$8 sps:$4 sm:$0xff]   ;;  %v20732_v34 = vld [vmem:[%s26989_s4 + $0x314] ss:$8 sps:$4 sm:$0xff]  }
  0xf3   : > { %669 = vadd.xlane.f32.xlu0 %v668_v48  ;;  %v688_v51 = vadd.f32 %v687_v50, %v686_v49  ;;  %1164 = vmatpush1.bf16.msra.mxu0 %v20715_v35  ;;  %v20727_v35 = vld [vmem:[%s26989_s4 + $0x110] ss:$8 sps:$4 sm:$0xff]  }
  0xf4   : > { %1632 = vmatpush1.bf16.msra.mxu1 %v20718_v36  ;;  %1174 = vmatprep.subr.bf16.mxu0 %v20723_v37  ;;  %v20730_v36 = vld [vmem:[%s26989_s4 + $0x310] ss:$8 sps:$4 sm:$0xff]  }
  0xf5   : > { %1642 = vmatprep.subr.bf16.mxu1 %v20726_v38  ;;  %v20735_v38 = vld [vmem:[%s26989_s4 + $0x124] ss:$8 sps:$4 sm:$0xff]  }
  0xf7   : > { %689 = vadd.xlane.f32.xlu0 %v688_v51 }
 0x180   : > { %v670_v39 = vpop.xlane.xlu0 %669 }
 0x181   : > { %v671_v40 = vsel %vm661_vm1, %v670_v39, 0.0  ;;  %v20738_v39 = vld [vmem:[%s26989_s4 + $0x324] ss:$8 sps:$4 sm:$0xff]  }
 0x182   : > { %v672_v41 = vrot.slane %v671_v40, 4 }
 0x184   : > { %v673_v42 = vadd.f32 %v672_v41, %v671_v40  ;;  %v690_v43 = vpop.xlane.xlu0 %689  ;;  %v20733_v40 = vld [vmem:[%s26989_s4 + $0x120] ss:$8 sps:$4 sm:$0xff]  }
 0x185   : > { %v691_v44 = vsel %vm661_vm1, %v690_v43, 0.0  ;;  %v20736_v41 = vld [vmem:[%s26989_s4 + $0x320] ss:$8 sps:$4 sm:$0xff]   ;;  %v20744_v43 = vld [vmem:[%s26989_s4 + $0x334] ss:$8 sps:$4 sm:$0xff]  }
 0x186   : > { %v674_v45 = vrot.slane %v673_v42, 2  ;;  %v692_v46 = vrot.slane %v691_v44, 4 }
 0x188   : > { %v675_v47 = vadd.f32 %v674_v45, %v673_v42  ;;  %v693_v48 = vadd.f32 %v692_v46, %v691_v44  ;;  %v20741_v42 = vld [vmem:[%s26989_s4 + $0x134] ss:$8 sps:$4 sm:$0xff]   ;;  %v20739_v44 = vld [vmem:[%s26989_s4 + $0x130] ss:$8 sps:$4 sm:$0xff]   ;;  %v20747_v46 = vld [vmem:[%s26989_s4 + $0x144] ss:$8 sps:$4 sm:$0xff]  }
 0x189   : > { %v20742_v45 = vld [vmem:[%s26989_s4 + $0x330] ss:$8 sps:$4 sm:$0xff]  }
 0x18a   : > { %v676_v49 = vrot.slane %v675_v47, 1  ;;  %v694_v50 = vrot.slane %v693_v48, 2 }
 0x18c   : > { %v677_v51 = vadd.f32 %v676_v49, %v675_v47  ;;  %v695_v52 = vadd.f32 %v694_v50, %v693_v48  ;;  %v20750_v47 = vld [vmem:[%s26989_s4 + $0x344] ss:$8 sps:$4 sm:$0xff]   ;;  %v20745_v48 = vld [vmem:[%s26989_s4 + $0x140] ss:$8 sps:$4 sm:$0xff]   ;;  %v20753_v50 = vld [vmem:[%s26989_s4 + $0x154] ss:$8 sps:$4 sm:$0xff]  }
 0x18d   : > { %v20748_v49 = vld [vmem:[%s26989_s4 + $0x340] ss:$8 sps:$4 sm:$0xff]  }
 0x18e   : > { %v698_v53 = vmul.f32 0.00048828125, %v677_v51  ;;  %v696_v54 = vrot.slane %v695_v52, 1  ;;  %v20756_v51 = vld [vmem:[%s26989_s4 + $0x354] ss:$8 sps:$4 sm:$0xff]  }
 0x190   : > { %v705_v55 = vsub.f32 %v22277_v27, %v698_v53  ;;  %v697_v56 = vadd.f32 %v696_v54, %v695_v52  ;;  %v700_v57 = vmul.f32 %v698_v53, %v698_v53  ;;  %v660_v27 = vld [vmem:[%s26988_s3 + $0x8] sm:$0xff]  ;;  %v703_v3 = vsub.f32 %v22275_v26, %v698_v53  ;;  %v20751_v52 = vld [vmem:[%s26989_s4 + $0x150] ss:$8 sps:$4 sm:$0xff]  }
 0x191   : > { %v704_v4 = vsub.f32 %v22285_v31, %v698_v53  ;;  %v706_v5 = vsub.f32 %v22287_v32, %v698_v53  ;;  %v726_v9 = vcombine.high %v660_v27, %v660_v27  ;;  %v20754_v53 = vld [vmem:[%s26989_s4 + $0x350] ss:$8 sps:$4 sm:$0xff]   ;;  %v20759_v54 = vld [vmem:[%s26989_s4 + $0x164] ss:$8 sps:$4 sm:$0xff]  }
 0x192   : > { %v699_v58 = vmul.f32 0.00048828125, %v697_v56  ;;  %v20757_v56 = vld [vmem:[%s26989_s4 + $0x160] ss:$8 sps:$4 sm:$0xff]  }
 0x194   : > { %v701_v59 = vsub.f32 %v699_v58, %v700_v57  ;;  %v20760_v57 = vld [vmem:[%s26989_s4 + $0x360] ss:$8 sps:$4 sm:$0xff]   ;;  %v20765_v58 = vld [vmem:[%s26989_s4 + $0x174] ss:$8 sps:$4 sm:$0xff]  }
 0x196   : > { %v702_v60 = vmax.f32 %v701_v59, 0.0  ;;  %v20768_v59 = vld [vmem:[%s26989_s4 + $0x374] ss:$8 sps:$4 sm:$0xff]  }
 0x198   : > { %v707_v61 = vadd.f32 1e-05, %v702_v60  ;;  %v20763_v60 = vld [vmem:[%s26989_s4 + $0x170] ss:$8 sps:$4 sm:$0xff]  }
 0x19a   : > { %22081 = vrsqrt.f32 %v707_v61  ;;  %v20766_v61 = vld [vmem:[%s26989_s4 + $0x370] ss:$8 sps:$4 sm:$0xff]  }
 0x1a4   : > { %v22082_v7 = vpop.eup %22081 }
 0x1a5   : > { %v709_v10 = vmul.f32 %v22082_v7, %v703_v3  ;;  %v710_v11 = vmul.f32 %v22082_v7, %v704_v4  ;;  %v711_v12 = vmul.f32 %v22082_v7, %v705_v55  ;;  %v712_v13 = vmul.f32 %v22082_v7, %v706_v5  ;;  %v20762_v55 = vld [vmem:[%s26989_s4 + $0x364] ss:$8 sps:$4 sm:$0xff]   ;;  %v20780_v3 = vld [vmem:[%s26989_s4 + $0x394] ss:$8 sps:$4 sm:$0xff]   ;;  %v20775_v4 = vld [vmem:[%s26989_s4 + $0x190] ss:$8 sps:$4 sm:$0xff]  }
 0x1a6   : > { %v20778_v5 = vld [vmem:[%s26989_s4 + $0x390] ss:$8 sps:$4 sm:$0xff]   ;;  %v20786_v7 = vld [vmem:[%s26989_s4 + $0x3a4] ss:$8 sps:$4 sm:$0xff]  }
 0x1a7   : > { %v719_v14 = vmul.f32 %v709_v10, %v657_v62  ;;  %v720_v15 = vmul.f32 %v715_v2, %v710_v11  ;;  %v721_v16 = vmul.f32 %v711_v12, %v658_v63  ;;  %v722_v17 = vmul.f32 %v716_v6, %v712_v13  ;;  %v20771_v62 = vld [vmem:[%s26989_s4 + $0x184] ss:$8 sps:$4 sm:$0xff]   ;;  %v20777_v2 = vld [vmem:[%s26989_s4 + $0x194] ss:$8 sps:$4 sm:$0xff]   ;;  %v20787_v12 = vld [vmem:[%s26989_s4 + $0x1b0] ss:$8 sps:$4 sm:$0xff]  }
 0x1a8   : > { %v20774_v63 = vld [vmem:[%s26989_s4 + $0x384] ss:$8 sps:$4 sm:$0xff]   ;;  %v20789_v10 = vld [vmem:[%s26989_s4 + $0x1b4] ss:$8 sps:$4 sm:$0xff]   ;;  %v20790_v13 = vld [vmem:[%s26989_s4 + $0x3b0] ss:$8 sps:$4 sm:$0xff]  }
 0x1a9   : > { %v729_v18 = vadd.f32 %v719_v14, %v659_v1  ;;  %v730_v19 = vadd.f32 %v725_v8, %v720_v15  ;;  %v22459_v20 = vadd.f32 %v721_v16, %v660_v27  ;;  %v732_v26 = vadd.f32 %v726_v9, %v722_v17  ;;  %v20769_v1 = vld [vmem:[%s26989_s4 + $0x180] ss:$8 sps:$4 sm:$0xff]   ;;  %v20783_v6 = vld [vmem:[%s26989_s4 + $0x1a4] ss:$8 sps:$4 sm:$0xff]   ;;  %v20792_v11 = vld [vmem:[%s26989_s4 + $0x3b4] ss:$8 sps:$4 sm:$0xff]  }
 0x1aa   : > { %v20772_v27 = vld [vmem:[%s26989_s4 + $0x380] ss:$8 sps:$4 sm:$0xff]   ;;  %v20795_v14 = vld [vmem:[%s26989_s4 + $0x1c4] ss:$8 sps:$4 sm:$0xff]  }
 0x1ab   : > { %vm733_vm2 = vcmp.ge.f32.partialorder %v729_v18, 0.0  ;;  %vm734_vm3 = vcmp.ge.f32.partialorder %v730_v19, 0.0  ;;  %vm736_vm4 = vcmp.ge.f32.partialorder %v732_v26, 0.0  ;;  %v737_v31 = vmul.f32 0.2, %v729_v18 }
 0x1ac   : > { %v738_v32 = vmul.f32 0.2, %v730_v19  ;;  %v740_v21 = vmul.f32 0.2, %v732_v26  ;;  %v20781_v8 = vld [vmem:[%s26989_s4 + $0x1a0] ss:$8 sps:$4 sm:$0xff]  }
 0x1ad   : > { %v741_v24 = vsel %vm733_vm2, %v729_v18, %v737_v31  ;;  %v20784_v9 = vld [vmem:[%s26989_s4 + $0x3a0] ss:$8 sps:$4 sm:$0xff]   ;;  %v20798_v15 = vld [vmem:[%s26989_s4 + $0x3c4] ss:$8 sps:$4 sm:$0xff]   ;;  %v20801_v18 = vld [vmem:[%s26989_s4 + $0x1d4] ss:$8 sps:$4 sm:$0xff]  }
 0x1ae   : > { %v742_v25 = vsel %vm734_vm3, %v730_v19, %v738_v32  ;;  %v744_v28 = vsel %vm736_vm4, %v732_v26, %v740_v21  ;;  %v22467_v29 = vpack.c.bf16 %v741_v24, %v741_v24  ;;  %v20793_v16 = vld [vmem:[%s26989_s4 + $0x1c0] ss:$8 sps:$4 sm:$0xff]   ;;  %v20804_v19 = vld [vmem:[%s26989_s4 + $0x3d4] ss:$8 sps:$4 sm:$0xff]   ;;  %v20799_v26 = vld [vmem:[%s26989_s4 + $0x1d0] ss:$8 sps:$4 sm:$0xff]  }
 0x1af   : > { %v22469_v30 = vpack.c.bf16 %v742_v25, %v742_v25  ;;  %v22485_v37 = vpack.c.bf16 %v744_v28, %v744_v28  ;;  %v20796_v17 = vld [vmem:[%s26989_s4 + $0x3c0] ss:$8 sps:$4 sm:$0xff]   ;;  %v20802_v31 = vld [vmem:[%s26989_s4 + $0x3d0] ss:$8 sps:$4 sm:$0xff]   ;;  %v20807_v32 = vld [vmem:[%s26989_s4 + $0x1e4] ss:$8 sps:$4 sm:$0xff]  }
 0x1b0   : > { %v20810_v21 = vld [vmem:[%s26989_s4 + $0x3e4] ss:$8 sps:$4 sm:$0xff]   ;;  %v20813_v24 = vld [vmem:[%s26989_s4 + $0x1f4] ss:$8 sps:$4 sm:$0xff]   ;;  %vm735_vm5 = vcmp.ge.f32.partialorder %v22459_v20, 0.0 }
 0x1b1   : > { %1165 = vmatprep.mubr.bf16.mxu0 %v22469_v30  ;;  %1633 = vmatprep.mubr.bf16.mxu1 %v22469_v30  ;;  %v20816_v25 = vld [vmem:[%s26989_s4 + $0x3f4] ss:$8 sps:$4 sm:$0xff]   ;;  %v739_v28 = vmul.f32 0.2, %v22459_v20 }
 0x1b2   : > { %1166 = vmatmul.mubr.bf16.vlgmr.msra.gmra.mrb[4].mxu0 %v22467_v29  ;;  %1634 = vmatmul.mubr.bf16.vlgmr.msra.gmra.mrb[4].mxu1 %v22467_v29 }
 0x1b3   : > { %1175 = vmatpush1.bf16.msra.mxu0 %v20721_v22  ;;  %1643 = vmatpush1.bf16.msra.mxu1 %v20724_v23  ;;  %v20805_v22 = vld [vmem:[%s26989_s4 + $0x1e0] ss:$8 sps:$4 sm:$0xff]  }
 0x1b4   : > { %1206 = vmatprep.mubr.bf16.mxu0 %v22485_v37  ;;  %1674 = vmatprep.mubr.bf16.mxu1 %v22485_v37  ;;  %v20808_v23 = vld [vmem:[%s26989_s4 + $0x3e0] ss:$8 sps:$4 sm:$0xff]  }
 0x1b5   : > { %1176 = vmatprep.subr.bf16.mxu0 %v20729_v33  ;;  %1644 = vmatprep.subr.bf16.mxu1 %v20732_v34  ;;  %v20811_v33 = vld [vmem:[%s26989_s4 + $0x1f0] ss:$8 sps:$4 sm:$0xff]  }
 0x1b6   : > { %v20814_v34 = vld [vmem:[%s26989_s4 + $0x3f0] ss:$8 sps:$4 sm:$0xff]  }
 0x1b7   : > { %1177 = vmatpush1.bf16.msra.mxu0 %v20727_v35  ;;  %1645 = vmatpush1.bf16.msra.mxu1 %v20730_v36  ;;  %v20819_v35 = vld [vmem:[%s26989_s4 + $0x404] ss:$8 sps:$4 sm:$0xff]   ;;  %v743_v36 = vsel %vm735_vm5, %v22459_v20, %v739_v28  ;;  %v20820_v20 = vld [vmem:[%s26989_s4 + $0x410] ss:$8 sps:$4 sm:$0xff]   ;;  %v20900_v28 = vld [vmem:[%s26989_s4 + $0x5b4] ss:$8 sps:$4 sm:$0xff]  }
 0x1b8   : > { %1178 = vmatprep.subr.bf16.mxu0 %v20735_v38  ;;  %1646 = vmatprep.subr.bf16.mxu1 %v20738_v39  ;;  %v20817_v38 = vld [vmem:[%s26989_s4 + $0x400] ss:$8 sps:$4 sm:$0xff]   ;;  %v22668_v39 = vpack.c.bf16 %v743_v36, %v743_v36  ;;  %v20906_v36 = vld [vmem:[%s26989_s4 + $0x5d4] ss:$8 sps:$4 sm:$0xff]   ;;  %vm16238_vm5 = vcmask 0  }
 0x1bb   : > { %1179 = vmatpush1.bf16.msra.mxu0 %v20733_v40  ;;  %1647 = vmatpush1.bf16.msra.mxu1 %v20736_v41  ;;  %v20822_v40 = vld [vmem:[%s26989_s4 + $0x414] ss:$8 sps:$4 sm:$0xff]   ;;  %v20825_v41 = vld [vmem:[%s26989_s4 + $0x424] ss:$8 sps:$4 sm:$0xff]  }
 0x1bc   : > { %1180 = vmatprep.subr.bf16.mxu0 %v20741_v42  ;;  %1648 = vmatprep.subr.bf16.mxu1 %v20744_v43  ;;  %v20823_v42 = vld [vmem:[%s26989_s4 + $0x420] ss:$8 sps:$4 sm:$0xff]   ;;  %v20828_v43 = vld [vmem:[%s26989_s4 + $0x434] ss:$8 sps:$4 sm:$0xff]  }
 0x1bf   : > { %1181 = vmatpush1.bf16.msra.mxu0 %v20739_v44  ;;  %1649 = vmatpush1.bf16.msra.mxu1 %v20742_v45  ;;  %v20826_v44 = vld [vmem:[%s26989_s4 + $0x430] ss:$8 sps:$4 sm:$0xff]   ;;  %v20831_v45 = vld [vmem:[%s26989_s4 + $0x444] ss:$8 sps:$4 sm:$0xff]  }
 0x1c0   : > { %1182 = vmatprep.subr.bf16.mxu0 %v20747_v46  ;;  %1650 = vmatprep.subr.bf16.mxu1 %v20750_v47  ;;  %v20829_v46 = vld [vmem:[%s26989_s4 + $0x440] ss:$8 sps:$4 sm:$0xff]   ;;  %v20834_v47 = vld [vmem:[%s26989_s4 + $0x454] ss:$8 sps:$4 sm:$0xff]  }
 0x1c3   : > { %1183 = vmatpush1.bf16.msra.mxu0 %v20745_v48  ;;  %1651 = vmatpush1.bf16.msra.mxu1 %v20748_v49  ;;  %v20832_v48 = vld [vmem:[%s26989_s4 + $0x450] ss:$8 sps:$4 sm:$0xff]   ;;  %v20837_v49 = vld [vmem:[%s26989_s4 + $0x464] ss:$8 sps:$4 sm:$0xff]  }
 0x1c4   : > { %1184 = vmatprep.subr.bf16.mxu0 %v20753_v50  ;;  %1652 = vmatprep.subr.bf16.mxu1 %v20756_v51  ;;  %v20835_v50 = vld [vmem:[%s26989_s4 + $0x460] ss:$8 sps:$4 sm:$0xff]   ;;  %v20840_v51 = vld [vmem:[%s26989_s4 + $0x474] ss:$8 sps:$4 sm:$0xff]  }
 0x1c7   : > { %1185 = vmatpush1.bf16.msra.mxu0 %v20751_v52  ;;  %1653 = vmatpush1.bf16.msra.mxu1 %v20754_v53  ;;  %v20838_v52 = vld [vmem:[%s26989_s4 + $0x470] ss:$8 sps:$4 sm:$0xff]   ;;  %v20843_v53 = vld [vmem:[%s26989_s4 + $0x484] ss:$8 sps:$4 sm:$0xff]  }
 0x1c8   : > { %1186 = vmatprep.subr.bf16.mxu0 %v20759_v54  ;;  %1654 = vmatprep.subr.bf16.mxu1 %v20762_v55  ;;  %v20841_v54 = vld [vmem:[%s26989_s4 + $0x480] ss:$8 sps:$4 sm:$0xff]   ;;  %v20846_v55 = vld [vmem:[%s26989_s4 + $0x494] ss:$8 sps:$4 sm:$0xff]  }
 0x1cb   : > { %1187 = vmatpush1.bf16.msra.mxu0 %v20757_v56  ;;  %1655 = vmatpush1.bf16.msra.mxu1 %v20760_v57  ;;  %v20844_v56 = vld [vmem:[%s26989_s4 + $0x490] ss:$8 sps:$4 sm:$0xff]   ;;  %v20849_v57 = vld [vmem:[%s26989_s4 + $0x4a4] ss:$8 sps:$4 sm:$0xff]  }
 0x1cc   : > { %1188 = vmatprep.subr.bf16.mxu0 %v20765_v58  ;;  %1656 = vmatprep.subr.bf16.mxu1 %v20768_v59  ;;  %v20847_v58 = vld [vmem:[%s26989_s4 + $0x4a0] ss:$8 sps:$4 sm:$0xff]   ;;  %v20852_v59 = vld [vmem:[%s26989_s4 + $0x4b4] ss:$8 sps:$4 sm:$0xff]  }
 0x1cf   : > { %1189 = vmatpush1.bf16.msra.mxu0 %v20763_v60  ;;  %1657 = vmatpush1.bf16.msra.mxu1 %v20766_v61  ;;  %v20850_v60 = vld [vmem:[%s26989_s4 + $0x4b0] ss:$8 sps:$4 sm:$0xff]   ;;  %v20855_v61 = vld [vmem:[%s26989_s4 + $0x4c4] ss:$8 sps:$4 sm:$0xff]  }
 0x1d0   : > { %1190 = vmatprep.subr.bf16.mxu0 %v20771_v62  ;;  %1658 = vmatprep.subr.bf16.mxu1 %v20774_v63  ;;  %v20853_v62 = vld [vmem:[%s26989_s4 + $0x4c0] ss:$8 sps:$4 sm:$0xff]   ;;  %v20858_v63 = vld [vmem:[%s26989_s4 + $0x4d4] ss:$8 sps:$4 sm:$0xff]  }
 0x1d3   : > { %1191 = vmatpush1.bf16.msra.mxu0 %v20769_v1  ;;  %1659 = vmatpush1.bf16.msra.mxu1 %v20772_v27  ;;  %v20856_v1 = vld [vmem:[%s26989_s4 + $0x4d0] ss:$8 sps:$4 sm:$0xff]   ;;  %v20861_v27 = vld [vmem:[%s26989_s4 + $0x4e4] ss:$8 sps:$4 sm:$0xff]  }
 0x1d4   : > { %1192 = vmatprep.subr.bf16.mxu0 %v20777_v2  ;;  %1660 = vmatprep.subr.bf16.mxu1 %v20780_v3  ;;  %v20859_v2 = vld [vmem:[%s26989_s4 + $0x4e0] ss:$8 sps:$4 sm:$0xff]   ;;  %v20864_v3 = vld [vmem:[%s26989_s4 + $0x4f4] ss:$8 sps:$4 sm:$0xff]  }
 0x1d7   : > { %1193 = vmatpush1.bf16.msra.mxu0 %v20775_v4  ;;  %1661 = vmatpush1.bf16.msra.mxu1 %v20778_v5  ;;  %v20862_v4 = vld [vmem:[%s26989_s4 + $0x4f0] ss:$8 sps:$4 sm:$0xff]   ;;  %v20867_v5 = vld [vmem:[%s26989_s4 + $0x504] ss:$8 sps:$4 sm:$0xff]  }
 0x1d8   : > { %1194 = vmatprep.subr.bf16.mxu0 %v20783_v6  ;;  %1662 = vmatprep.subr.bf16.mxu1 %v20786_v7  ;;  %v20865_v6 = vld [vmem:[%s26989_s4 + $0x500] ss:$8 sps:$4 sm:$0xff]   ;;  %v20870_v7 = vld [vmem:[%s26989_s4 + $0x514] ss:$8 sps:$4 sm:$0xff]  }
 0x1db   : > { %1195 = vmatpush1.bf16.msra.mxu0 %v20781_v8  ;;  %1663 = vmatpush1.bf16.msra.mxu1 %v20784_v9  ;;  %v20868_v8 = vld [vmem:[%s26989_s4 + $0x510] ss:$8 sps:$4 sm:$0xff]   ;;  %v20873_v9 = vld [vmem:[%s26989_s4 + $0x524] ss:$8 sps:$4 sm:$0xff]  }
 0x1dc   : > { %1196 = vmatprep.subr.bf16.mxu0 %v20789_v10  ;;  %1664 = vmatprep.subr.bf16.mxu1 %v20792_v11  ;;  %v20871_v10 = vld [vmem:[%s26989_s4 + $0x520] ss:$8 sps:$4 sm:$0xff]   ;;  %v20876_v11 = vld [vmem:[%s26989_s4 + $0x534] ss:$8 sps:$4 sm:$0xff]  }
 0x1df   : > { %1197 = vmatpush1.bf16.msra.mxu0 %v20787_v12  ;;  %1665 = vmatpush1.bf16.msra.mxu1 %v20790_v13  ;;  %v20874_v12 = vld [vmem:[%s26989_s4 + $0x530] ss:$8 sps:$4 sm:$0xff]   ;;  %v20879_v13 = vld [vmem:[%s26989_s4 + $0x544] ss:$8 sps:$4 sm:$0xff]  }
 0x1e0   : > { %1198 = vmatprep.subr.bf16.mxu0 %v20795_v14  ;;  %1666 = vmatprep.subr.bf16.mxu1 %v20798_v15  ;;  %v20877_v14 = vld [vmem:[%s26989_s4 + $0x540] ss:$8 sps:$4 sm:$0xff]   ;;  %v20882_v15 = vld [vmem:[%s26989_s4 + $0x554] ss:$8 sps:$4 sm:$0xff]  }
 0x1e3   : > { %1199 = vmatpush1.bf16.msra.mxu0 %v20793_v16  ;;  %1667 = vmatpush1.bf16.msra.mxu1 %v20796_v17  ;;  %v20880_v16 = vld [vmem:[%s26989_s4 + $0x550] ss:$8 sps:$4 sm:$0xff]   ;;  %v20885_v17 = vld [vmem:[%s26989_s4 + $0x564] ss:$8 sps:$4 sm:$0xff]  }
 0x1e4   : > { %1200 = vmatprep.subr.bf16.mxu0 %v20801_v18  ;;  %1668 = vmatprep.subr.bf16.mxu1 %v20804_v19  ;;  %v20883_v18 = vld [vmem:[%s26989_s4 + $0x560] ss:$8 sps:$4 sm:$0xff]   ;;  %v20888_v19 = vld [vmem:[%s26989_s4 + $0x574] ss:$8 sps:$4 sm:$0xff]  }
 0x1e7   : > { %1201 = vmatpush1.bf16.msra.mxu0 %v20799_v26  ;;  %1669 = vmatpush1.bf16.msra.mxu1 %v20802_v31  ;;  %v22102_v26 = vmov 0.0   ;;  %v20886_v31 = vld [vmem:[%s26989_s4 + $0x570] ss:$8 sps:$4 sm:$0xff]  }
 0x1e8   : > { %1202 = vmatprep.subr.bf16.mxu0 %v20807_v32  ;;  %1670 = vmatprep.subr.bf16.mxu1 %v20810_v21  ;;  %v20891_v32 = vld [vmem:[%s26989_s4 + $0x584] ss:$8 sps:$4 sm:$0xff]   ;;  %v20889_v21 = vld [vmem:[%s26989_s4 + $0x580] ss:$8 sps:$4 sm:$0xff]  }
 0x1eb   : > { %1203 = vmatpush1.bf16.msra.mxu0 %v20805_v22  ;;  %1671 = vmatpush1.bf16.msra.mxu1 %v20808_v23  ;;  %v20894_v22 = vld [vmem:[%s26989_s4 + $0x594] ss:$8 sps:$4 sm:$0xff]   ;;  %v20892_v23 = vld [vmem:[%s26989_s4 + $0x590] ss:$8 sps:$4 sm:$0xff]  }
 0x1ec   : > { %1204 = vmatprep.subr.bf16.mxu0 %v20813_v24  ;;  %1672 = vmatprep.subr.bf16.mxu1 %v20816_v25  ;;  %v20897_v24 = vld [vmem:[%s26989_s4 + $0x5a4] ss:$8 sps:$4 sm:$0xff]   ;;  %v20895_v25 = vld [vmem:[%s26989_s4 + $0x5a0] ss:$8 sps:$4 sm:$0xff]  }
 0x1ef   : > { %1205 = vmatpush1.bf16.msra.mxu0 %v20811_v33  ;;  %1673 = vmatpush1.bf16.msra.mxu1 %v20814_v34  ;;  %v20898_v33 = vld [vmem:[%s26989_s4 + $0x5b0] ss:$8 sps:$4 sm:$0xff]   ;;  %v20903_v34 = vld [vmem:[%s26989_s4 + $0x5c4] ss:$8 sps:$4 sm:$0xff]  }
 0x1f0   : > { %2231 = vmatprep.subr.bf16.mxu1 %v20819_v35  ;;  %v20901_v35 = vld [vmem:[%s26989_s4 + $0x5c0] ss:$8 sps:$4 sm:$0xff]  }
 0x1f2   : > { %1207 = vmatmul.mubr.bf16.vlgmr.msra.gmra.mrb[4].mxu0 %v22668_v39  ;;  %1675 = vmatmul.mubr.bf16.vlgmr.msra.gmra.mrb[4].mxu1 %v22668_v39 }
 0x1f3   : > { %2232 = vmatpush1.bf16.msra.mxu1 %v20817_v38  ;;  %2263 = vmatprep.mubr.bf16.mxu1 %v22469_v30  ;;  %v20904_v38 = vld [vmem:[%s26989_s4 + $0x5d0] ss:$8 sps:$4 sm:$0xff]  }
 0x1f4   : > { %2233 = vmatprep.subr.bf16.mxu1 %v20822_v40  ;;  %1759 = vmatprep.mubr.f32.mxu0 %v22102_v26  ;;  %v20909_v40 = vld [vmem:[%s26989_s4 + $0x5e4] ss:$8 sps:$4 sm:$0xff]  }
 0x1f7   : > { %2234 = vmatpush1.bf16.msra.mxu1 %v20820_v20  ;;  %v20907_v20 = vld [vmem:[%s26989_s4 + $0x5e0] ss:$8 sps:$4 sm:$0xff]  }
 0x1f8   : > { %2235 = vmatprep.subr.bf16.mxu1 %v20825_v41  ;;  %v20912_v41 = vld [vmem:[%s26989_s4 + $0x5f4] ss:$8 sps:$4 sm:$0xff]  }
 0x1fb   : > { %2236 = vmatpush1.bf16.msra.mxu1 %v20823_v42  ;;  %v20910_v42 = vld [vmem:[%s26989_s4 + $0x5f0] ss:$8 sps:$4 sm:$0xff]  }
 0x1fc   : > { %2237 = vmatprep.subr.bf16.mxu1 %v20828_v43  ;;  %v20915_v43 = vld [vmem:[%s26989_s4 + $0x804] ss:$8 sps:$4 sm:$0xff]  }
 0x1ff   : > { %2238 = vmatpush1.bf16.msra.mxu1 %v20826_v44  ;;  %v20913_v44 = vld [vmem:[%s26989_s4 + $0x800] ss:$8 sps:$4 sm:$0xff]  }
 0x200   : > { %2239 = vmatprep.subr.bf16.mxu1 %v20831_v45  ;;  %v20918_v45 = vld [vmem:[%s26989_s4 + $0x814] ss:$8 sps:$4 sm:$0xff]  }
 0x203   : > { %2240 = vmatpush1.bf16.msra.mxu1 %v20829_v46  ;;  %v20916_v46 = vld [vmem:[%s26989_s4 + $0x810] ss:$8 sps:$4 sm:$0xff]  }
 0x204   : > { %2241 = vmatprep.subr.bf16.mxu1 %v20834_v47  ;;  %v20921_v47 = vld [vmem:[%s26989_s4 + $0x824] ss:$8 sps:$4 sm:$0xff]  }
 0x207   : > { %2242 = vmatpush1.bf16.msra.mxu1 %v20832_v48  ;;  %v20919_v48 = vld [vmem:[%s26989_s4 + $0x820] ss:$8 sps:$4 sm:$0xff]  }
 0x208   : > { %2243 = vmatprep.subr.bf16.mxu1 %v20837_v49  ;;  %v20924_v49 = vld [vmem:[%s26989_s4 + $0x834] ss:$8 sps:$4 sm:$0xff]  }
 0x20b   : > { %2244 = vmatpush1.bf16.msra.mxu1 %v20835_v50  ;;  %v20922_v50 = vld [vmem:[%s26989_s4 + $0x830] ss:$8 sps:$4 sm:$0xff]  }
 0x20c   : > { %2245 = vmatprep.subr.bf16.mxu1 %v20840_v51  ;;  %v20927_v51 = vld [vmem:[%s26989_s4 + $0x844] ss:$8 sps:$4 sm:$0xff]  }
 0x20f   : > { %2246 = vmatpush1.bf16.msra.mxu1 %v20838_v52  ;;  %v20925_v52 = vld [vmem:[%s26989_s4 + $0x840] ss:$8 sps:$4 sm:$0xff]  }
 0x210   : > { %2247 = vmatprep.subr.bf16.mxu1 %v20843_v53  ;;  %v20930_v53 = vld [vmem:[%s26989_s4 + $0x854] ss:$8 sps:$4 sm:$0xff]  }
 0x213   : > { %2248 = vmatpush1.bf16.msra.mxu1 %v20841_v54  ;;  %v20928_v54 = vld [vmem:[%s26989_s4 + $0x850] ss:$8 sps:$4 sm:$0xff]  }
 0x214   : > { %2249 = vmatprep.subr.bf16.mxu1 %v20846_v55  ;;  %v20933_v55 = vld [vmem:[%s26989_s4 + $0x864] ss:$8 sps:$4 sm:$0xff]  }
 0x217   : > { %2250 = vmatpush1.bf16.msra.mxu1 %v20844_v56  ;;  %v20931_v56 = vld [vmem:[%s26989_s4 + $0x860] ss:$8 sps:$4 sm:$0xff]  }
 0x218   : > { %2251 = vmatprep.subr.bf16.mxu1 %v20849_v57  ;;  %v20936_v57 = vld [vmem:[%s26989_s4 + $0x874] ss:$8 sps:$4 sm:$0xff]  }
 0x21b   : > { %2252 = vmatpush1.bf16.msra.mxu1 %v20847_v58  ;;  %v20934_v58 = vld [vmem:[%s26989_s4 + $0x870] ss:$8 sps:$4 sm:$0xff]  }
 0x21c   : > { %2253 = vmatprep.subr.bf16.mxu1 %v20852_v59  ;;  %v20939_v59 = vld [vmem:[%s26989_s4 + $0x884] ss:$8 sps:$4 sm:$0xff]  }
 0x21f   : > { %2254 = vmatpush1.bf16.msra.mxu1 %v20850_v60  ;;  %v20937_v60 = vld [vmem:[%s26989_s4 + $0x880] ss:$8 sps:$4 sm:$0xff]  }
 0x220   : > { %2255 = vmatprep.subr.bf16.mxu1 %v20855_v61  ;;  %v20942_v61 = vld [vmem:[%s26989_s4 + $0x894] ss:$8 sps:$4 sm:$0xff]  }
 0x223   : > { %2256 = vmatpush1.bf16.msra.mxu1 %v20853_v62  ;;  %v20940_v62 = vld [vmem:[%s26989_s4 + $0x890] ss:$8 sps:$4 sm:$0xff]  }
 0x224   : > { %2257 = vmatprep.subr.bf16.mxu1 %v20858_v63  ;;  %v20945_v63 = vld [vmem:[%s26989_s4 + $0x8a4] ss:$8 sps:$4 sm:$0xff]  }
 0x227   : > { %2258 = vmatpush1.bf16.msra.mxu1 %v20856_v1  ;;  %v20943_v1 = vld [vmem:[%s26989_s4 + $0x8a0] ss:$8 sps:$4 sm:$0xff]  }
 0x228   : > { %2259 = vmatprep.subr.bf16.mxu1 %v20861_v27  ;;  %v20948_v27 = vld [vmem:[%s26989_s4 + $0x8b4] ss:$8 sps:$4 sm:$0xff]  }
 0x22b   : > { %2260 = vmatpush1.bf16.msra.mxu1 %v20859_v2  ;;  %v20946_v2 = vld [vmem:[%s26989_s4 + $0x8b0] ss:$8 sps:$4 sm:$0xff]  }
 0x22c   : > { %2261 = vmatprep.subr.bf16.mxu1 %v20864_v3  ;;  %v20951_v3 = vld [vmem:[%s26989_s4 + $0x8c4] ss:$8 sps:$4 sm:$0xff]  }
 0x22f   : > { %2262 = vmatpush1.bf16.msra.mxu1 %v20862_v4  ;;  %v20949_v4 = vld [vmem:[%s26989_s4 + $0x8c0] ss:$8 sps:$4 sm:$0xff]  }
 0x230   : > { %2272 = vmatprep.subr.bf16.mxu1 %v20867_v5  ;;  %v20954_v5 = vld [vmem:[%s26989_s4 + $0x8d4] ss:$8 sps:$4 sm:$0xff]  }
 0x232   : > { %2264 = vmatmul.mubr.bf16.vlgmr.msra.gmra.mrb[8].mxu1 %v22467_v29 }
 0x233   : > { %2273 = vmatpush1.bf16.msra.mxu1 %v20865_v6  ;;  %2304 = vmatprep.mubr.bf16.mxu1 %v22485_v37  ;;  %v20952_v6 = vld [vmem:[%s26989_s4 + $0x8d0] ss:$8 sps:$4 sm:$0xff]  }
 0x234   : > { %2274 = vmatprep.subr.bf16.mxu1 %v20870_v7  ;;  %v20957_v7 = vld [vmem:[%s26989_s4 + $0x8e4] ss:$8 sps:$4 sm:$0xff]  }
 0x237   : > { %2275 = vmatpush1.bf16.msra.mxu1 %v20868_v8  ;;  %v20955_v8 = vld [vmem:[%s26989_s4 + $0x8e0] ss:$8 sps:$4 sm:$0xff]  }
 0x238   : > { %2276 = vmatprep.subr.bf16.mxu1 %v20873_v9  ;;  %v20960_v9 = vld [vmem:[%s26989_s4 + $0x8f4] ss:$8 sps:$4 sm:$0xff]  }
 0x23b   : > { %2277 = vmatpush1.bf16.msra.mxu1 %v20871_v10  ;;  %v20958_v10 = vld [vmem:[%s26989_s4 + $0x8f0] ss:$8 sps:$4 sm:$0xff]  }
 0x23c   : > { %2278 = vmatprep.subr.bf16.mxu1 %v20876_v11  ;;  %v20963_v11 = vld [vmem:[%s26989_s4 + $0x904] ss:$8 sps:$4 sm:$0xff]  }
 0x23f   : > { %2279 = vmatpush1.bf16.msra.mxu1 %v20874_v12  ;;  %v20961_v12 = vld [vmem:[%s26989_s4 + $0x900] ss:$8 sps:$4 sm:$0xff]  }
 0x240   : > { %2280 = vmatprep.subr.bf16.mxu1 %v20879_v13  ;;  %v20966_v13 = vld [vmem:[%s26989_s4 + $0x914] ss:$8 sps:$4 sm:$0xff]  }
 0x243   : > { %2281 = vmatpush1.bf16.msra.mxu1 %v20877_v14  ;;  %v20964_v14 = vld [vmem:[%s26989_s4 + $0x910] ss:$8 sps:$4 sm:$0xff]  }
 0x244   : > { %2282 = vmatprep.subr.bf16.mxu1 %v20882_v15  ;;  %v20969_v15 = vld [vmem:[%s26989_s4 + $0x924] ss:$8 sps:$4 sm:$0xff]  }
 0x247   : > { %2283 = vmatpush1.bf16.msra.mxu1 %v20880_v16  ;;  %v20967_v16 = vld [vmem:[%s26989_s4 + $0x920] ss:$8 sps:$4 sm:$0xff]  }
 0x248   : > { %2284 = vmatprep.subr.bf16.mxu1 %v20885_v17  ;;  %v20972_v17 = vld [vmem:[%s26989_s4 + $0x934] ss:$8 sps:$4 sm:$0xff]  }
 0x24b   : > { %2285 = vmatpush1.bf16.msra.mxu1 %v20883_v18  ;;  %v20970_v18 = vld [vmem:[%s26989_s4 + $0x930] ss:$8 sps:$4 sm:$0xff]  }
 0x24c   : > { %2286 = vmatprep.subr.bf16.mxu1 %v20888_v19  ;;  %v20975_v19 = vld [vmem:[%s26989_s4 + $0x944] ss:$8 sps:$4 sm:$0xff]  }
 0x24f   : > { %2287 = vmatpush1.bf16.msra.mxu1 %v20886_v31  ;;  %v20973_v31 = vld [vmem:[%s26989_s4 + $0x940] ss:$8 sps:$4 sm:$0xff]  }
 0x250   : > { %2288 = vmatprep.subr.bf16.mxu1 %v20891_v32  ;;  %v20978_v32 = vld [vmem:[%s26989_s4 + $0x954] ss:$8 sps:$4 sm:$0xff]  }
 0x253   : > { %2289 = vmatpush1.bf16.msra.mxu1 %v20889_v21  ;;  %v20976_v21 = vld [vmem:[%s26989_s4 + $0x950] ss:$8 sps:$4 sm:$0xff]  }
 0x254   : > { %2290 = vmatprep.subr.bf16.mxu1 %v20894_v22  ;;  %v20981_v22 = vld [vmem:[%s26989_s4 + $0x964] ss:$8 sps:$4 sm:$0xff]  }
 0x257   : > { %2291 = vmatpush1.bf16.msra.mxu1 %v20892_v23 }
 0x258   : > { %2292 = vmatprep.subr.bf16.mxu1 %v20897_v24 }
 0x25b   : > { %2293 = vmatpush1.bf16.msra.mxu1 %v20895_v25 }
 0x25c   : > { %2294 = vmatprep.subr.bf16.mxu1 %v20900_v28 }
 0x25f   : > { %2295 = vmatpush1.bf16.msra.mxu1 %v20898_v33  ;;  %v16492_v33 = vld [vmem:[%s26990_s5 + $0x8] sm:$0xff] }
 0x260   : > { %2296 = vmatprep.subr.bf16.mxu1 %v20903_v34 }
 0x263   : > { %2297 = vmatpush1.bf16.msra.mxu1 %v20901_v35 }
 0x264   : > { %2298 = vmatprep.subr.bf16.mxu1 %v20906_v36  ;;  %v20979_v36 = vld [vmem:[%s26989_s4 + $0x960] ss:$8 sps:$4 sm:$0xff]  }
 0x267   : > { %2299 = vmatpush1.bf16.msra.mxu1 %v20904_v38 }
 0x268   : > { %2300 = vmatprep.subr.bf16.mxu1 %v20909_v40 }
 0x26b   : > { %2301 = vmatpush1.bf16.msra.mxu1 %v20907_v20  ;;  %v20984_v20 = vld [vmem:[%s26989_s4 + $0x974] ss:$8 sps:$4 sm:$0xff]  }
 0x26c   : > { %2302 = vmatprep.subr.bf16.mxu1 %v20912_v41  ;;  %v20982_v41 = vld [vmem:[%s26989_s4 + $0x970] ss:$8 sps:$4 sm:$0xff]  }
 0x26f   : > { %2303 = vmatpush1.bf16.msra.mxu1 %v20910_v42  ;;  %v20987_v42 = vld [vmem:[%s26989_s4 + $0x984] ss:$8 sps:$4 sm:$0xff]  }
 0x270   : > { %3333 = vmatprep.subr.bf16.mxu1 %v20915_v43  ;;  %v1215_v43 = vld [vmem:[%s26990_s5] sm:$0xff] }
 0x272   : > { %2305 = vmatmul.mubr.bf16.vlgmr.msra.gmra.mrb[8].mxu1 %v22668_v39 }
 0x273   : > { %3334 = vmatpush1.bf16.msra.mxu1 %v20913_v44  ;;  %3365 = vmatprep.mubr.bf16.mxu1 %v22469_v30  ;;  %v20985_v44 = vld [vmem:[%s26989_s4 + $0x980] ss:$8 sps:$4 sm:$0xff]  }
 0x274   : > { %3335 = vmatprep.subr.bf16.mxu1 %v20918_v45  ;;  %v20990_v45 = vld [vmem:[%s26989_s4 + $0x994] ss:$8 sps:$4 sm:$0xff]  }
 0x277   : > { %3336 = vmatpush1.bf16.msra.mxu1 %v20916_v46  ;;  %v20988_v46 = vld [vmem:[%s26989_s4 + $0x990] ss:$8 sps:$4 sm:$0xff]  }
 0x278   : > { %3337 = vmatprep.subr.bf16.mxu1 %v20921_v47  ;;  %v20993_v47 = vld [vmem:[%s26989_s4 + $0x9a4] ss:$8 sps:$4 sm:$0xff]  }
 0x27b   : > { %3338 = vmatpush1.bf16.msra.mxu1 %v20919_v48  ;;  %v20991_v48 = vld [vmem:[%s26989_s4 + $0x9a0] ss:$8 sps:$4 sm:$0xff]  }
 0x27c   : > { %3339 = vmatprep.subr.bf16.mxu1 %v20924_v49  ;;  %v20996_v49 = vld [vmem:[%s26989_s4 + $0x9b4] ss:$8 sps:$4 sm:$0xff]  }
 0x27f   : > { %3340 = vmatpush1.bf16.msra.mxu1 %v20922_v50  ;;  %v20994_v50 = vld [vmem:[%s26989_s4 + $0x9b0] ss:$8 sps:$4 sm:$0xff]  }
 0x280   : > { %3341 = vmatprep.subr.bf16.mxu1 %v20927_v51  ;;  %v20999_v51 = vld [vmem:[%s26989_s4 + $0x9c4] ss:$8 sps:$4 sm:$0xff]  }
 0x283   : > { %3342 = vmatpush1.bf16.msra.mxu1 %v20925_v52  ;;  %v20997_v52 = vld [vmem:[%s26989_s4 + $0x9c0] ss:$8 sps:$4 sm:$0xff]  }
 0x284   : > { %3343 = vmatprep.subr.bf16.mxu1 %v20930_v53  ;;  %v21002_v53 = vld [vmem:[%s26989_s4 + $0x9d4] ss:$8 sps:$4 sm:$0xff]  }
 0x287   : > { %3344 = vmatpush1.bf16.msra.mxu1 %v20928_v54  ;;  %v21000_v54 = vld [vmem:[%s26989_s4 + $0x9d0] ss:$8 sps:$4 sm:$0xff]  }
 0x288   : > { %3345 = vmatprep.subr.bf16.mxu1 %v20933_v55  ;;  %v21005_v55 = vld [vmem:[%s26989_s4 + $0x9e4] ss:$8 sps:$4 sm:$0xff]  }
 0x28b   : > { %3346 = vmatpush1.bf16.msra.mxu1 %v20931_v56  ;;  %v21003_v56 = vld [vmem:[%s26989_s4 + $0x9e0] ss:$8 sps:$4 sm:$0xff]  }
 0x28c   : > { %3347 = vmatprep.subr.bf16.mxu1 %v20936_v57  ;;  %v21008_v57 = vld [vmem:[%s26989_s4 + $0x9f4] ss:$8 sps:$4 sm:$0xff]  }
 0x28f   : > { %3348 = vmatpush1.bf16.msra.mxu1 %v20934_v58  ;;  %v21006_v58 = vld [vmem:[%s26989_s4 + $0x9f0] ss:$8 sps:$4 sm:$0xff]  }
 0x290   : > { %3349 = vmatprep.subr.bf16.mxu1 %v20939_v59  ;;  %v21011_v59 = vld [vmem:[%s26989_s4 + $0xc04] ss:$8 sps:$4 sm:$0xff]  }
 0x293   : > { %3350 = vmatpush1.bf16.msra.mxu1 %v20937_v60  ;;  %v21009_v60 = vld [vmem:[%s26989_s4 + $0xc00] ss:$8 sps:$4 sm:$0xff]  }
 0x294   : > { %3351 = vmatprep.subr.bf16.mxu1 %v20942_v61  ;;  %v21014_v61 = vld [vmem:[%s26989_s4 + $0xc14] ss:$8 sps:$4 sm:$0xff]  }
 0x297   : > { %3352 = vmatpush1.bf16.msra.mxu1 %v20940_v62  ;;  %v21012_v62 = vld [vmem:[%s26989_s4 + $0xc10] ss:$8 sps:$4 sm:$0xff]  }
 0x298   : > { %3353 = vmatprep.subr.bf16.mxu1 %v20945_v63  ;;  %v21017_v63 = vld [vmem:[%s26989_s4 + $0xc24] ss:$8 sps:$4 sm:$0xff]  }
 0x29b   : > { %3354 = vmatpush1.bf16.msra.mxu1 %v20943_v1  ;;  %v21015_v1 = vld [vmem:[%s26989_s4 + $0xc20] ss:$8 sps:$4 sm:$0xff]  }
 0x29c   : > { %3355 = vmatprep.subr.bf16.mxu1 %v20948_v27  ;;  %v21020_v27 = vld [vmem:[%s26989_s4 + $0xc34] ss:$8 sps:$4 sm:$0xff]  }
 0x29f   : > { %3356 = vmatpush1.bf16.msra.mxu1 %v20946_v2  ;;  %v21018_v2 = vld [vmem:[%s26989_s4 + $0xc30] ss:$8 sps:$4 sm:$0xff]  }
 0x2a0   : > { %3357 = vmatprep.subr.bf16.mxu1 %v20951_v3  ;;  %v21023_v3 = vld [vmem:[%s26989_s4 + $0xc44] ss:$8 sps:$4 sm:$0xff]  }
 0x2a3   : > { %3358 = vmatpush1.bf16.msra.mxu1 %v20949_v4  ;;  %v21021_v4 = vld [vmem:[%s26989_s4 + $0xc40] ss:$8 sps:$4 sm:$0xff]  }
 0x2a4   : > { %3359 = vmatprep.subr.bf16.mxu1 %v20954_v5  ;;  %v21026_v5 = vld [vmem:[%s26989_s4 + $0xc54] ss:$8 sps:$4 sm:$0xff]  }
 0x2a7   : > { %3360 = vmatpush1.bf16.msra.mxu1 %v20952_v6  ;;  %v21024_v6 = vld [vmem:[%s26989_s4 + $0xc50] ss:$8 sps:$4 sm:$0xff]  }
 0x2a8   : > { %3361 = vmatprep.subr.bf16.mxu1 %v20957_v7  ;;  %v21029_v7 = vld [vmem:[%s26989_s4 + $0xc64] ss:$8 sps:$4 sm:$0xff]  }
 0x2ab   : > { %3362 = vmatpush1.bf16.msra.mxu1 %v20955_v8  ;;  %v21027_v8 = vld [vmem:[%s26989_s4 + $0xc60] ss:$8 sps:$4 sm:$0xff]  }
 0x2ac   : > { %3363 = vmatprep.subr.bf16.mxu1 %v20960_v9  ;;  %v21032_v9 = vld [vmem:[%s26989_s4 + $0xc74] ss:$8 sps:$4 sm:$0xff]  }
 0x2af   : > { %3364 = vmatpush1.bf16.msra.mxu1 %v20958_v10  ;;  %v21030_v10 = vld [vmem:[%s26989_s4 + $0xc70] ss:$8 sps:$4 sm:$0xff]  }
 0x2b0   : > { %3374 = vmatprep.subr.bf16.mxu1 %v20963_v11  ;;  %v21035_v11 = vld [vmem:[%s26989_s4 + $0xc84] ss:$8 sps:$4 sm:$0xff]  }
 0x2b2   : > { %3366 = vmatmul.mubr.bf16.vlgmr.msra.gmra.mrb[12].mxu1 %v22467_v29 }
 0x2b3   : > { %3375 = vmatpush1.bf16.msra.mxu1 %v20961_v12  ;;  %3406 = vmatprep.mubr.bf16.mxu1 %v22485_v37  ;;  %v21033_v12 = vld [vmem:[%s26989_s4 + $0xc80] ss:$8 sps:$4 sm:$0xff]  }
 0x2b4   : > { %3376 = vmatprep.subr.bf16.mxu1 %v20966_v13  ;;  %v21038_v13 = vld [vmem:[%s26989_s4 + $0xc94] ss:$8 sps:$4 sm:$0xff]  }
 0x2b7   : > { %3377 = vmatpush1.bf16.msra.mxu1 %v20964_v14  ;;  %v21036_v14 = vld [vmem:[%s26989_s4 + $0xc90] ss:$8 sps:$4 sm:$0xff]  }
 0x2b8   : > { %3378 = vmatprep.subr.bf16.mxu1 %v20969_v15  ;;  %v21041_v15 = vld [vmem:[%s26989_s4 + $0xca4] ss:$8 sps:$4 sm:$0xff]  }
 0x2bb   : > { %3379 = vmatpush1.bf16.msra.mxu1 %v20967_v16  ;;  %v21039_v16 = vld [vmem:[%s26989_s4 + $0xca0] ss:$8 sps:$4 sm:$0xff]  }
 0x2bc   : > { %3380 = vmatprep.subr.bf16.mxu1 %v20972_v17  ;;  %v21044_v17 = vld [vmem:[%s26989_s4 + $0xcb4] ss:$8 sps:$4 sm:$0xff]  }
 0x2bf   : > { %3381 = vmatpush1.bf16.msra.mxu1 %v20970_v18  ;;  %v21042_v18 = vld [vmem:[%s26989_s4 + $0xcb0] ss:$8 sps:$4 sm:$0xff]  }
 0x2c0   : > { %3382 = vmatprep.subr.bf16.mxu1 %v20975_v19  ;;  %v21047_v19 = vld [vmem:[%s26989_s4 + $0xcc4] ss:$8 sps:$4 sm:$0xff]  }
 0x2c3   : > { %3383 = vmatpush1.bf16.msra.mxu1 %v20973_v31  ;;  %v21045_v31 = vld [vmem:[%s26989_s4 + $0xcc0] ss:$8 sps:$4 sm:$0xff]  }
 0x2c4   : > { %3384 = vmatprep.subr.bf16.mxu1 %v20978_v32  ;;  %v21050_v32 = vld [vmem:[%s26989_s4 + $0xcd4] ss:$8 sps:$4 sm:$0xff]  }
 0x2c5   : > { %v1208_v23 = vpop.f32.mrb[4].mxu0  ;;  %v1676_v24 = vpop.f32.mrb[4].mxu1 }
 0x2c6   : > { %v1210_v25 = vpop.f32.mrb[5].mxu0  ;;  %v1678_v28 = vpop.f32.mrb[5].mxu1 }
 0x2c7   : > { %v1212_v34 = vpop.f32.mrb[6].mxu0  ;;  %v1680_v35 = vpop.f32.mrb[6].mxu1  ;;  %16493 = vmatprep.subr.msk.mxu0 %vm661_vm1, %v1678_v28  ;;  %3385 = vmatpush1.bf16.msra.mxu1 %v20976_v21  ;;  %v21048_v21 = vld [vmem:[%s26989_s4 + $0xcd0] ss:$8 sps:$4 sm:$0xff]   ;;  %v21059_v28 = vld [vmem:[%s26989_s4 + $0xd04] ss:$8 sps:$4 sm:$0xff]  }
 0x2c8   : > { %v1213_v38 = vpop.f32.mrb[7].mxu0  ;;  %v1681_v40 = vpop.f32.mrb[7].mxu1  ;;  %16494 = vmatpush1.msk.msra.mxu0 %vm661_vm1, %v1676_v24  ;;  %3386 = vmatprep.subr.bf16.mxu1 %v20981_v22  ;;  %v21053_v22 = vld [vmem:[%s26989_s4 + $0xce4] ss:$8 sps:$4 sm:$0xff]   ;;  %v21056_v24 = vld [vmem:[%s26989_s4 + $0xcf4] ss:$8 sps:$4 sm:$0xff]  }
 0x2c9   : > { %16496 = vmatprep.subr.msk.mxu0 %vm661_vm1, %v1210_v25  ;;  %16495 = vmatmul.mubr.msk.f32.vlgmr.msra.gmra.mrb[8].mxu0 %vm1685_vm6, %v16492_v33  ;;  %v21054_v25 = vld [vmem:[%s26989_s4 + $0xcf0] ss:$8 sps:$4 sm:$0xff]   ;;  %v21057_v33 = vld [vmem:[%s26989_s4 + $0xd00] ss:$8 sps:$4 sm:$0xff]   ;;  %v21062_v34 = vld [vmem:[%s26989_s4 + $0xd14] ss:$8 sps:$4 sm:$0xff]  }
 0x2ca   : > { %16497 = vmatpush1.msk.msra.mxu0 %vm661_vm1, %v1208_v23  ;;  %1839 = vmatprep.mubr.f32.mxu0 %v22102_v26  ;;  %v21051_v23 = vld [vmem:[%s26989_s4 + $0xce0] ss:$8 sps:$4 sm:$0xff]   ;;  %v21060_v35 = vld [vmem:[%s26989_s4 + $0xd10] ss:$8 sps:$4 sm:$0xff]   ;;  %v21068_v40 = vld [vmem:[%s26989_s4 + $0xd34] ss:$8 sps:$4 sm:$0xff]  }
 0x2cb   : > { %3387 = vmatpush1.bf16.msra.mxu1 %v20979_v36  ;;  %v21065_v36 = vld [vmem:[%s26989_s4 + $0xd24] ss:$8 sps:$4 sm:$0xff]   ;;  %v21063_v38 = vld [vmem:[%s26989_s4 + $0xd20] ss:$8 sps:$4 sm:$0xff]  }
 0x2cc   : > { %3388 = vmatprep.subr.bf16.mxu1 %v20984_v20  ;;  %v21066_v20 = vld [vmem:[%s26989_s4 + $0xd30] ss:$8 sps:$4 sm:$0xff]  }
 0x2cf   : > { %3389 = vmatpush1.bf16.msra.mxu1 %v20982_v41  ;;  %v21071_v41 = vld [vmem:[%s26989_s4 + $0xd44] ss:$8 sps:$4 sm:$0xff]  }
 0x2d0   : > { %3390 = vmatprep.subr.bf16.mxu1 %v20987_v42  ;;  %v21069_v42 = vld [vmem:[%s26989_s4 + $0xd40] ss:$8 sps:$4 sm:$0xff]  }
 0x2d1   : > { %16498 = vmatmul.mubr.msk.f32.vlgmr.msra.gmra.mrb[8].mxu0 %vm1685_vm6, %v1215_v43  ;;  %v21074_v43 = vld [vmem:[%s26989_s4 + $0xd54] ss:$8 sps:$4 sm:$0xff]  }
 0x2d2   : > { %2388 = vmatprep.mubr.f32.mxu0 %v22102_v26 }
 0x2d3   : > { %3391 = vmatpush1.bf16.msra.mxu1 %v20985_v44  ;;  %v21072_v44 = vld [vmem:[%s26989_s4 + $0xd50] ss:$8 sps:$4 sm:$0xff]  }
 0x2d4   : > { %3392 = vmatprep.subr.bf16.mxu1 %v20990_v45  ;;  %v21080_v45 = vld [vmem:[%s26989_s4 + $0xd64] ss:$8 sps:$4 sm:$0xff]  }
 0x2d7   : > { %3393 = vmatpush1.bf16.msra.mxu1 %v20988_v46 }
 0x2d8   : > { %3394 = vmatprep.subr.bf16.mxu1 %v20993_v47  ;;  %v21077_v47 = vld [vmem:[%s26989_s4 + $0x604] ss:$8 sps:$4 sm:$0xff]  }
 0x2db   : > { %3395 = vmatpush1.bf16.msra.mxu1 %v20991_v48 }
 0x2dc   : > { %3396 = vmatprep.subr.bf16.mxu1 %v20996_v49  ;;  %v16627_v49 = vld [vmem:[%s26990_s5 + $0x10] sm:$0xff] }
 0x2df   : > { %3397 = vmatpush1.bf16.msra.mxu1 %v20994_v50  ;;  %v21075_v50 = vld [vmem:[%s26989_s4 + $0x600] ss:$8 sps:$4 sm:$0xff]  }
 0x2e0   : > { %3398 = vmatprep.subr.bf16.mxu1 %v20999_v51 }
 0x2e3   : > { %3399 = vmatpush1.bf16.msra.mxu1 %v20997_v52  ;;  %v21078_v52 = vld [vmem:[%s26989_s4 + $0xd60] ss:$8 sps:$4 sm:$0xff]  }
 0x2e4   : > { %3400 = vmatprep.subr.bf16.mxu1 %v21002_v53  ;;  %v21083_v53 = vld [vmem:[%s26989_s4 + $0x614] ss:$8 sps:$4 sm:$0xff]  }
 0x2e7   : > { %3401 = vmatpush1.bf16.msra.mxu1 %v21000_v54 }
 0x2e8   : > { %3402 = vmatprep.subr.bf16.mxu1 %v21005_v55  ;;  %v21086_v55 = vld [vmem:[%s26989_s4 + $0xd74] ss:$8 sps:$4 sm:$0xff]  }
 0x2eb   : > { %3403 = vmatpush1.bf16.msra.mxu1 %v21003_v56  ;;  %v21081_v56 = vld [vmem:[%s26989_s4 + $0x610] ss:$8 sps:$4 sm:$0xff]  }
 0x2ec   : > { %3404 = vmatprep.subr.bf16.mxu1 %v21008_v57  ;;  %v21084_v57 = vld [vmem:[%s26989_s4 + $0xd70] ss:$8 sps:$4 sm:$0xff]  }
 0x2ef   : > { %3405 = vmatpush1.bf16.msra.mxu1 %v21006_v58  ;;  %v21089_v58 = vld [vmem:[%s26989_s4 + $0x624] ss:$8 sps:$4 sm:$0xff]  }
 0x2f0   : > { %4435 = vmatprep.subr.bf16.mxu1 %v21011_v59  ;;  %v21092_v59 = vld [vmem:[%s26989_s4 + $0xd84] ss:$8 sps:$4 sm:$0xff]  }
 0x2f2   : > { %3407 = vmatmul.mubr.bf16.vlgmr.msra.gmra.mrb[12].mxu1 %v22668_v39 }
 0x2f3   : > { %4436 = vmatpush1.bf16.msra.mxu1 %v21009_v60  ;;  %4467 = vmatprep.mubr.bf16.mxu1 %v22469_v30  ;;  %v21087_v60 = vld [vmem:[%s26989_s4 + $0x620] ss:$8 sps:$4 sm:$0xff]  }
 0x2f4   : > { %4437 = vmatprep.subr.bf16.mxu1 %v21014_v61  ;;  %v21090_v61 = vld [vmem:[%s26989_s4 + $0xd80] ss:$8 sps:$4 sm:$0xff]  }
 0x2f7   : > { %4438 = vmatpush1.bf16.msra.mxu1 %v21012_v62  ;;  %v21095_v62 = vld [vmem:[%s26989_s4 + $0x634] ss:$8 sps:$4 sm:$0xff]  }
 0x2f8   : > { %4439 = vmatprep.subr.bf16.mxu1 %v21017_v63  ;;  %v21098_v63 = vld [vmem:[%s26989_s4 + $0xd94] ss:$8 sps:$4 sm:$0xff]  }
 0x2fb   : > { %4440 = vmatpush1.bf16.msra.mxu1 %v21015_v1  ;;  %v21093_v1 = vld [vmem:[%s26989_s4 + $0x630] ss:$8 sps:$4 sm:$0xff]  }
 0x2fc   : > { %4441 = vmatprep.subr.bf16.mxu1 %v21020_v27  ;;  %v21096_v27 = vld [vmem:[%s26989_s4 + $0xd90] ss:$8 sps:$4 sm:$0xff]  }
 0x2ff   : > { %4442 = vmatpush1.bf16.msra.mxu1 %v21018_v2  ;;  %v21101_v2 = vld [vmem:[%s26989_s4 + $0x644] ss:$8 sps:$4 sm:$0xff]  }
 0x300   : > { %4443 = vmatprep.subr.bf16.mxu1 %v21023_v3  ;;  %v21104_v3 = vld [vmem:[%s26989_s4 + $0xda4] ss:$8 sps:$4 sm:$0xff]  }
 0x303   : > { %4444 = vmatpush1.bf16.msra.mxu1 %v21021_v4  ;;  %v21099_v4 = vld [vmem:[%s26989_s4 + $0x640] ss:$8 sps:$4 sm:$0xff]  }
 0x304   : > { %4445 = vmatprep.subr.bf16.mxu1 %v21026_v5  ;;  %v21102_v5 = vld [vmem:[%s26989_s4 + $0xda0] ss:$8 sps:$4 sm:$0xff]  }
 0x307   : > { %4446 = vmatpush1.bf16.msra.mxu1 %v21024_v6  ;;  %v21107_v6 = vld [vmem:[%s26989_s4 + $0x654] ss:$8 sps:$4 sm:$0xff]  }
 0x308   : > { %4447 = vmatprep.subr.bf16.mxu1 %v21029_v7  ;;  %v21110_v7 = vld [vmem:[%s26989_s4 + $0xdb4] ss:$8 sps:$4 sm:$0xff]  }
 0x30b   : > { %4448 = vmatpush1.bf16.msra.mxu1 %v21027_v8  ;;  %v21105_v8 = vld [vmem:[%s26989_s4 + $0x650] ss:$8 sps:$4 sm:$0xff]  }
 0x30c   : > { %4449 = vmatprep.subr.bf16.mxu1 %v21032_v9  ;;  %v21108_v9 = vld [vmem:[%s26989_s4 + $0xdb0] ss:$8 sps:$4 sm:$0xff]  }
 0x30f   : > { %4450 = vmatpush1.bf16.msra.mxu1 %v21030_v10  ;;  %v21113_v10 = vld [vmem:[%s26989_s4 + $0x664] ss:$8 sps:$4 sm:$0xff]  }
 0x310   : > { %4451 = vmatprep.subr.bf16.mxu1 %v21035_v11  ;;  %v21116_v11 = vld [vmem:[%s26989_s4 + $0xdc4] ss:$8 sps:$4 sm:$0xff]  }
 0x313   : > { %4452 = vmatpush1.bf16.msra.mxu1 %v21033_v12  ;;  %v21111_v12 = vld [vmem:[%s26989_s4 + $0x660] ss:$8 sps:$4 sm:$0xff]  }
 0x314   : > { %4453 = vmatprep.subr.bf16.mxu1 %v21038_v13  ;;  %v21114_v13 = vld [vmem:[%s26989_s4 + $0xdc0] ss:$8 sps:$4 sm:$0xff]  }
 0x317   : > { %4454 = vmatpush1.bf16.msra.mxu1 %v21036_v14  ;;  %v21119_v14 = vld [vmem:[%s26989_s4 + $0x674] ss:$8 sps:$4 sm:$0xff]  }
 0x318   : > { %4455 = vmatprep.subr.bf16.mxu1 %v21041_v15  ;;  %v21122_v15 = vld [vmem:[%s26989_s4 + $0xdd4] ss:$8 sps:$4 sm:$0xff]  }
 0x31b   : > { %4456 = vmatpush1.bf16.msra.mxu1 %v21039_v16  ;;  %v21117_v16 = vld [vmem:[%s26989_s4 + $0x670] ss:$8 sps:$4 sm:$0xff]  }
 0x31c   : > { %4457 = vmatprep.subr.bf16.mxu1 %v21044_v17  ;;  %v21120_v17 = vld [vmem:[%s26989_s4 + $0xdd0] ss:$8 sps:$4 sm:$0xff]  }
 0x31f   : > { %4458 = vmatpush1.bf16.msra.mxu1 %v21042_v18  ;;  %v21125_v18 = vld [vmem:[%s26989_s4 + $0x684] ss:$8 sps:$4 sm:$0xff]  }
 0x320   : > { %4459 = vmatprep.subr.bf16.mxu1 %v21047_v19  ;;  %v21128_v19 = vld [vmem:[%s26989_s4 + $0xde4] ss:$8 sps:$4 sm:$0xff]  }
 0x323   : > { %4460 = vmatpush1.bf16.msra.mxu1 %v21045_v31  ;;  %v21123_v31 = vld [vmem:[%s26989_s4 + $0x680] ss:$8 sps:$4 sm:$0xff]  }
 0x324   : > { %4461 = vmatprep.subr.bf16.mxu1 %v21050_v32  ;;  %v21126_v32 = vld [vmem:[%s26989_s4 + $0xde0] ss:$8 sps:$4 sm:$0xff]  }
 0x327   : > { %4462 = vmatpush1.bf16.msra.mxu1 %v21048_v21  ;;  %v21131_v21 = vld [vmem:[%s26989_s4 + $0x694] ss:$8 sps:$4 sm:$0xff]  }
 0x328   : > { %4463 = vmatprep.subr.bf16.mxu1 %v21053_v22  ;;  %v21134_v22 = vld [vmem:[%s26989_s4 + $0xdf4] ss:$8 sps:$4 sm:$0xff]  }
 0x32b   : > { %4464 = vmatpush1.bf16.msra.mxu1 %v21051_v23  ;;  %v21129_v23 = vld [vmem:[%s26989_s4 + $0x690] ss:$8 sps:$4 sm:$0xff]  }
 0x32c   : > { %4465 = vmatprep.subr.bf16.mxu1 %v21056_v24  ;;  %v21132_v24 = vld [vmem:[%s26989_s4 + $0xdf0] ss:$8 sps:$4 sm:$0xff]  }
 0x32f   : > { %4466 = vmatpush1.bf16.msra.mxu1 %v21054_v25  ;;  %v21137_v25 = vld [vmem:[%s26989_s4 + $0x6a4] ss:$8 sps:$4 sm:$0xff]  }
 0x330   : > { %4476 = vmatprep.subr.bf16.mxu1 %v21059_v28  ;;  %v21140_v28 = vld [vmem:[%s26989_s4 + $0x1004] ss:$8 sps:$4 sm:$0xff]  }
 0x332   : > { %4468 = vmatmul.mubr.bf16.vlgmr.msra.gmra.mrb[16].mxu1 %v22467_v29 }
 0x333   : > { %4477 = vmatpush1.bf16.msra.mxu1 %v21057_v33  ;;  %4508 = vmatprep.mubr.bf16.mxu1 %v22485_v37  ;;  %v21135_v33 = vld [vmem:[%s26989_s4 + $0x6a0] ss:$8 sps:$4 sm:$0xff]  }
 0x334   : > { %4478 = vmatprep.subr.bf16.mxu1 %v21062_v34  ;;  %v21138_v34 = vld [vmem:[%s26989_s4 + $0x1000] ss:$8 sps:$4 sm:$0xff]  }
 0x337   : > { %4479 = vmatpush1.bf16.msra.mxu1 %v21060_v35  ;;  %v21143_v35 = vld [vmem:[%s26989_s4 + $0x6b4] ss:$8 sps:$4 sm:$0xff]  }
 0x338   : > { %4480 = vmatprep.subr.bf16.mxu1 %v21065_v36  ;;  %v21146_v36 = vld [vmem:[%s26989_s4 + $0x1014] ss:$8 sps:$4 sm:$0xff]  }
 0x33b   : > { %4481 = vmatpush1.bf16.msra.mxu1 %v21063_v38  ;;  %v21141_v38 = vld [vmem:[%s26989_s4 + $0x6b0] ss:$8 sps:$4 sm:$0xff]  }
 0x33c   : > { %4482 = vmatprep.subr.bf16.mxu1 %v21068_v40  ;;  %v21144_v40 = vld [vmem:[%s26989_s4 + $0x1010] ss:$8 sps:$4 sm:$0xff]  }
 0x33f   : > { %4483 = vmatpush1.bf16.msra.mxu1 %v21066_v20  ;;  %v21149_v20 = vld [vmem:[%s26989_s4 + $0x6c4] ss:$8 sps:$4 sm:$0xff]  }
 0x340   : > { %4484 = vmatprep.subr.bf16.mxu1 %v21071_v41  ;;  %v21152_v41 = vld [vmem:[%s26989_s4 + $0x1024] ss:$8 sps:$4 sm:$0xff]  }
 0x343   : > { %4485 = vmatpush1.bf16.msra.mxu1 %v21069_v42  ;;  %v21147_v42 = vld [vmem:[%s26989_s4 + $0x6c0] ss:$8 sps:$4 sm:$0xff]  }
 0x344   : > { %4486 = vmatprep.subr.bf16.mxu1 %v21074_v43  ;;  %v21150_v43 = vld [vmem:[%s26989_s4 + $0x1020] ss:$8 sps:$4 sm:$0xff]  }
 0x345   : > { %v2306_v46 = vpop.f32.mrb[8].mxu1 }
 0x346   : > { %v2308_v48 = vpop.f32.mrb[9].mxu1 }
 0x347   : > { %v2310_v51 = vpop.f32.mrb[10].mxu1  ;;  %16628 = vmatprep.subr.msk.mxu0 %vm661_vm1, %v2308_v48  ;;  %4487 = vmatpush1.bf16.msra.mxu1 %v21072_v44  ;;  %v21155_v44 = vld [vmem:[%s26989_s4 + $0x6d4] ss:$8 sps:$4 sm:$0xff]   ;;  %v21161_v48 = vld [vmem:[%s26989_s4 + $0x6e4] ss:$8 sps:$4 sm:$0xff]  }
 0x348   : > { %v2311_v54 = vpop.f32.mrb[11].mxu1  ;;  %16629 = vmatpush1.msk.msra.mxu0 %vm661_vm1, %v2306_v46  ;;  %4488 = vmatprep.subr.bf16.mxu1 %v21080_v45  ;;  %v21158_v45 = vld [vmem:[%s26989_s4 + $0x1034] ss:$8 sps:$4 sm:$0xff]   ;;  %v21153_v46 = vld [vmem:[%s26989_s4 + $0x6d0] ss:$8 sps:$4 sm:$0xff]  }
 0x349   : > { %16630 = vmatmul.mubr.msk.f32.vlgmr.msra.gmra.mrb[8].mxu0 %vm1685_vm6, %v16627_v49  ;;  %2782 = vmatprep.subr.bf16.mxu0 %v21077_v47  ;;  %v21156_v47 = vld [vmem:[%s26989_s4 + $0x1030] ss:$8 sps:$4 sm:$0xff]   ;;  %v21164_v49 = vld [vmem:[%s26989_s4 + $0x1044] ss:$8 sps:$4 sm:$0xff]   ;;  %v21162_v51 = vld [vmem:[%s26989_s4 + $0x1040] ss:$8 sps:$4 sm:$0xff]  }
 0x34a   : > { %2783 = vmatpush1.bf16.msra.mxu0 %v21075_v50  ;;  %2814 = vmatprep.mubr.bf16.mxu0 %v22469_v30  ;;  %v21159_v50 = vld [vmem:[%s26989_s4 + $0x6e0] ss:$8 sps:$4 sm:$0xff]   ;;  %v21165_v54 = vld [vmem:[%s26989_s4 + $0x6f0] ss:$8 sps:$4 sm:$0xff]  }
 0x34b   : > { %4489 = vmatpush1.bf16.msra.mxu1 %v21078_v52  ;;  %2784 = vmatprep.subr.bf16.mxu0 %v21083_v53  ;;  %v21167_v52 = vld [vmem:[%s26989_s4 + $0x6f4] ss:$8 sps:$4 sm:$0xff]  }
 0x34c   : > { %4490 = vmatprep.subr.bf16.mxu1 %v21086_v55  ;;  %v21170_v53 = vld [vmem:[%s26989_s4 + $0x1054] ss:$8 sps:$4 sm:$0xff]   ;;  %v21168_v55 = vld [vmem:[%s26989_s4 + $0x1050] ss:$8 sps:$4 sm:$0xff]  }
 0x34e   : > { %2785 = vmatpush1.bf16.msra.mxu0 %v21081_v56  ;;  %v21173_v56 = vld [vmem:[%s26989_s4 + $0x704] ss:$8 sps:$4 sm:$0xff]  }
 0x34f   : > { %4491 = vmatpush1.bf16.msra.mxu1 %v21084_v57  ;;  %2786 = vmatprep.subr.bf16.mxu0 %v21089_v58  ;;  %v21176_v57 = vld [vmem:[%s26989_s4 + $0x1064] ss:$8 sps:$4 sm:$0xff]   ;;  %v21171_v58 = vld [vmem:[%s26989_s4 + $0x700] ss:$8 sps:$4 sm:$0xff]  }
 0x350   : > { %4492 = vmatprep.subr.bf16.mxu1 %v21092_v59  ;;  %v21174_v59 = vld [vmem:[%s26989_s4 + $0x1060] ss:$8 sps:$4 sm:$0xff]  }
 0x352   : > { %2787 = vmatpush1.bf16.msra.mxu0 %v21087_v60  ;;  %v21179_v60 = vld [vmem:[%s26989_s4 + $0x714] ss:$8 sps:$4 sm:$0xff]  }
 0x353   : > { %4493 = vmatpush1.bf16.msra.mxu1 %v21090_v61  ;;  %2788 = vmatprep.subr.bf16.mxu0 %v21095_v62  ;;  %v21182_v61 = vld [vmem:[%s26989_s4 + $0x1074] ss:$8 sps:$4 sm:$0xff]   ;;  %v21177_v62 = vld [vmem:[%s26989_s4 + $0x710] ss:$8 sps:$4 sm:$0xff]  }
 0x354   : > { %4494 = vmatprep.subr.bf16.mxu1 %v21098_v63  ;;  %v21180_v63 = vld [vmem:[%s26989_s4 + $0x1070] ss:$8 sps:$4 sm:$0xff]  }
 0x356   : > { %2789 = vmatpush1.bf16.msra.mxu0 %v21093_v1  ;;  %v21185_v1 = vld [vmem:[%s26989_s4 + $0x724] ss:$8 sps:$4 sm:$0xff]  }
 0x357   : > { %4495 = vmatpush1.bf16.msra.mxu1 %v21096_v27  ;;  %2790 = vmatprep.subr.bf16.mxu0 %v21101_v2  ;;  %v21188_v27 = vld [vmem:[%s26989_s4 + $0x1084] ss:$8 sps:$4 sm:$0xff]   ;;  %v21183_v2 = vld [vmem:[%s26989_s4 + $0x720] ss:$8 sps:$4 sm:$0xff]  }
 0x358   : > { %4496 = vmatprep.subr.bf16.mxu1 %v21104_v3  ;;  %v21186_v3 = vld [vmem:[%s26989_s4 + $0x1080] ss:$8 sps:$4 sm:$0xff]  }
 0x35a   : > { %2791 = vmatpush1.bf16.msra.mxu0 %v21099_v4  ;;  %v21191_v4 = vld [vmem:[%s26989_s4 + $0x734] ss:$8 sps:$4 sm:$0xff]  }
 0x35b   : > { %4497 = vmatpush1.bf16.msra.mxu1 %v21102_v5  ;;  %2792 = vmatprep.subr.bf16.mxu0 %v21107_v6  ;;  %v21194_v5 = vld [vmem:[%s26989_s4 + $0x1094] ss:$8 sps:$4 sm:$0xff]   ;;  %v21189_v6 = vld [vmem:[%s26989_s4 + $0x730] ss:$8 sps:$4 sm:$0xff]  }
 0x35c   : > { %4498 = vmatprep.subr.bf16.mxu1 %v21110_v7  ;;  %v21192_v7 = vld [vmem:[%s26989_s4 + $0x1090] ss:$8 sps:$4 sm:$0xff]  }
 0x35e   : > { %2793 = vmatpush1.bf16.msra.mxu0 %v21105_v8  ;;  %v21197_v8 = vld [vmem:[%s26989_s4 + $0x744] ss:$8 sps:$4 sm:$0xff]  }
 0x35f   : > { %4499 = vmatpush1.bf16.msra.mxu1 %v21108_v9  ;;  %2794 = vmatprep.subr.bf16.mxu0 %v21113_v10  ;;  %v21200_v9 = vld [vmem:[%s26989_s4 + $0x10a4] ss:$8 sps:$4 sm:$0xff]   ;;  %v21195_v10 = vld [vmem:[%s26989_s4 + $0x740] ss:$8 sps:$4 sm:$0xff]  }
 0x360   : > { %4500 = vmatprep.subr.bf16.mxu1 %v21116_v11  ;;  %v21198_v11 = vld [vmem:[%s26989_s4 + $0x10a0] ss:$8 sps:$4 sm:$0xff]  }
 0x362   : > { %2795 = vmatpush1.bf16.msra.mxu0 %v21111_v12  ;;  %v21203_v12 = vld [vmem:[%s26989_s4 + $0x754] ss:$8 sps:$4 sm:$0xff]  }
 0x363   : > { %4501 = vmatpush1.bf16.msra.mxu1 %v21114_v13  ;;  %2796 = vmatprep.subr.bf16.mxu0 %v21119_v14  ;;  %v21206_v13 = vld [vmem:[%s26989_s4 + $0x10b4] ss:$8 sps:$4 sm:$0xff]   ;;  %v21201_v14 = vld [vmem:[%s26989_s4 + $0x750] ss:$8 sps:$4 sm:$0xff]  }
 0x364   : > { %4502 = vmatprep.subr.bf16.mxu1 %v21122_v15  ;;  %v21204_v15 = vld [vmem:[%s26989_s4 + $0x10b0] ss:$8 sps:$4 sm:$0xff]  }
 0x366   : > { %2797 = vmatpush1.bf16.msra.mxu0 %v21117_v16  ;;  %v21209_v16 = vld [vmem:[%s26989_s4 + $0x764] ss:$8 sps:$4 sm:$0xff]  }
 0x367   : > { %4503 = vmatpush1.bf16.msra.mxu1 %v21120_v17  ;;  %2798 = vmatprep.subr.bf16.mxu0 %v21125_v18  ;;  %v21212_v17 = vld [vmem:[%s26989_s4 + $0x10c4] ss:$8 sps:$4 sm:$0xff]   ;;  %v21207_v18 = vld [vmem:[%s26989_s4 + $0x760] ss:$8 sps:$4 sm:$0xff]  }
 0x368   : > { %4504 = vmatprep.subr.bf16.mxu1 %v21128_v19  ;;  %v21210_v19 = vld [vmem:[%s26989_s4 + $0x10c0] ss:$8 sps:$4 sm:$0xff]  }
 0x36a   : > { %2799 = vmatpush1.bf16.msra.mxu0 %v21123_v31  ;;  %v21215_v31 = vld [vmem:[%s26989_s4 + $0x774] ss:$8 sps:$4 sm:$0xff]  }
 0x36b   : > { %4505 = vmatpush1.bf16.msra.mxu1 %v21126_v32  ;;  %2800 = vmatprep.subr.bf16.mxu0 %v21131_v21  ;;  %v21218_v32 = vld [vmem:[%s26989_s4 + $0x10d4] ss:$8 sps:$4 sm:$0xff]   ;;  %v21213_v21 = vld [vmem:[%s26989_s4 + $0x770] ss:$8 sps:$4 sm:$0xff]  }
 0x36c   : > { %4506 = vmatprep.subr.bf16.mxu1 %v21134_v22  ;;  %v21216_v22 = vld [vmem:[%s26989_s4 + $0x10d0] ss:$8 sps:$4 sm:$0xff]  }
 0x36e   : > { %2801 = vmatpush1.bf16.msra.mxu0 %v21129_v23  ;;  %v21221_v23 = vld [vmem:[%s26989_s4 + $0x784] ss:$8 sps:$4 sm:$0xff]  }
 0x36f   : > { %4507 = vmatpush1.bf16.msra.mxu1 %v21132_v24  ;;  %2802 = vmatprep.subr.bf16.mxu0 %v21137_v25  ;;  %v21224_v24 = vld [vmem:[%s26989_s4 + $0x10e4] ss:$8 sps:$4 sm:$0xff]   ;;  %v21219_v25 = vld [vmem:[%s26989_s4 + $0x780] ss:$8 sps:$4 sm:$0xff]  }
 0x370   : > { %5537 = vmatprep.subr.bf16.mxu1 %v21140_v28  ;;  %v21222_v28 = vld [vmem:[%s26989_s4 + $0x10e0] ss:$8 sps:$4 sm:$0xff]  }
 0x372   : > { %2803 = vmatpush1.bf16.msra.mxu0 %v21135_v33  ;;  %4509 = vmatmul.mubr.bf16.vlgmr.msra.gmra.mrb[16].mxu1 %v22668_v39  ;;  %v21227_v33 = vld [vmem:[%s26989_s4 + $0x794] ss:$8 sps:$4 sm:$0xff]  }
 0x373   : > { %5538 = vmatpush1.bf16.msra.mxu1 %v21138_v34  ;;  %5569 = vmatprep.mubr.bf16.mxu1 %v22469_v30  ;;  %v21230_v34 = vld [vmem:[%s26989_s4 + $0x10f4] ss:$8 sps:$4 sm:$0xff]  }
 0x374   : > { %2804 = vmatprep.subr.bf16.mxu0 %v21143_v35  ;;  %5539 = vmatprep.subr.bf16.mxu1 %v21146_v36  ;;  %v21225_v35 = vld [vmem:[%s26989_s4 + $0x790] ss:$8 sps:$4 sm:$0xff]  }
 0x375   : > { %v21228_v36 = vld [vmem:[%s26989_s4 + $0x10f0] ss:$8 sps:$4 sm:$0xff]  }
 0x376   : > { %2805 = vmatpush1.bf16.msra.mxu0 %v21141_v38  ;;  %v21233_v38 = vld [vmem:[%s26989_s4 + $0x7a4] ss:$8 sps:$4 sm:$0xff]  }
 0x377   : > { %5540 = vmatpush1.bf16.msra.mxu1 %v21144_v40  ;;  %2806 = vmatprep.subr.bf16.mxu0 %v21149_v20  ;;  %v21236_v40 = vld [vmem:[%s26989_s4 + $0x1104] ss:$8 sps:$4 sm:$0xff]   ;;  %v21231_v20 = vld [vmem:[%s26989_s4 + $0x7a0] ss:$8 sps:$4 sm:$0xff]  }
 0x378   : > { %5541 = vmatprep.subr.bf16.mxu1 %v21152_v41  ;;  %v21234_v41 = vld [vmem:[%s26989_s4 + $0x1100] ss:$8 sps:$4 sm:$0xff]  }
 0x37a   : > { %2807 = vmatpush1.bf16.msra.mxu0 %v21147_v42  ;;  %v21239_v42 = vld [vmem:[%s26989_s4 + $0x7b4] ss:$8 sps:$4 sm:$0xff]  }
 0x37b   : > { %5542 = vmatpush1.bf16.msra.mxu1 %v21150_v43  ;;  %2808 = vmatprep.subr.bf16.mxu0 %v21155_v44  ;;  %v21242_v43 = vld [vmem:[%s26989_s4 + $0x1114] ss:$8 sps:$4 sm:$0xff]   ;;  %v21237_v44 = vld [vmem:[%s26989_s4 + $0x7b0] ss:$8 sps:$4 sm:$0xff]  }
 0x37c   : > { %5543 = vmatprep.subr.bf16.mxu1 %v21158_v45  ;;  %v21240_v45 = vld [vmem:[%s26989_s4 + $0x1110] ss:$8 sps:$4 sm:$0xff]  }
 0x37e   : > { %2809 = vmatpush1.bf16.msra.mxu0 %v21153_v46  ;;  %v21245_v46 = vld [vmem:[%s26989_s4 + $0x7c4] ss:$8 sps:$4 sm:$0xff]  }
 0x37f   : > { %5544 = vmatpush1.bf16.msra.mxu1 %v21156_v47  ;;  %2810 = vmatprep.subr.bf16.mxu0 %v21161_v48  ;;  %v21248_v47 = vld [vmem:[%s26989_s4 + $0x1124] ss:$8 sps:$4 sm:$0xff]   ;;  %v21243_v48 = vld [vmem:[%s26989_s4 + $0x7c0] ss:$8 sps:$4 sm:$0xff]  }
 0x380   : > { %5545 = vmatprep.subr.bf16.mxu1 %v21164_v49  ;;  %v21246_v49 = vld [vmem:[%s26989_s4 + $0x1120] ss:$8 sps:$4 sm:$0xff]  }
 0x382   : > { %2811 = vmatpush1.bf16.msra.mxu0 %v21159_v50  ;;  %v21251_v50 = vld [vmem:[%s26989_s4 + $0x7d4] ss:$8 sps:$4 sm:$0xff]  }
 0x383   : > { %5546 = vmatpush1.bf16.msra.mxu1 %v21162_v51  ;;  %2812 = vmatprep.subr.bf16.mxu0 %v21167_v52  ;;  %v21254_v51 = vld [vmem:[%s26989_s4 + $0x1134] ss:$8 sps:$4 sm:$0xff]   ;;  %v21249_v52 = vld [vmem:[%s26989_s4 + $0x7d0] ss:$8 sps:$4 sm:$0xff]  }
 0x384   : > { %5547 = vmatprep.subr.bf16.mxu1 %v21170_v53  ;;  %v21252_v53 = vld [vmem:[%s26989_s4 + $0x1130] ss:$8 sps:$4 sm:$0xff]  }
 0x386   : > { %2813 = vmatpush1.bf16.msra.mxu0 %v21165_v54  ;;  %v21257_v54 = vld [vmem:[%s26989_s4 + $0x7e4] ss:$8 sps:$4 sm:$0xff]  }
 0x387   : > { %5548 = vmatpush1.bf16.msra.mxu1 %v21168_v55  ;;  %2823 = vmatprep.subr.bf16.mxu0 %v21173_v56  ;;  %v21260_v55 = vld [vmem:[%s26989_s4 + $0x1144] ss:$8 sps:$4 sm:$0xff]   ;;  %v21255_v56 = vld [vmem:[%s26989_s4 + $0x7e0] ss:$8 sps:$4 sm:$0xff]  }
 0x388   : > { %5549 = vmatprep.subr.bf16.mxu1 %v21176_v57  ;;  %v21258_v57 = vld [vmem:[%s26989_s4 + $0x1140] ss:$8 sps:$4 sm:$0xff]  }
 0x389   : > { %2815 = vmatmul.mubr.bf16.vlgmr.msra.gmra.mrb[12].mxu0 %v22467_v29 }
 0x38a   : > { %2824 = vmatpush1.bf16.msra.mxu0 %v21171_v58  ;;  %2855 = vmatprep.mubr.bf16.mxu0 %v22485_v37  ;;  %v21263_v58 = vld [vmem:[%s26989_s4 + $0x7f4] ss:$8 sps:$4 sm:$0xff]  }
 0x38b   : > { %5550 = vmatpush1.bf16.msra.mxu1 %v21174_v59  ;;  %2825 = vmatprep.subr.bf16.mxu0 %v21179_v60  ;;  %v21266_v59 = vld [vmem:[%s26989_s4 + $0x1154] ss:$8 sps:$4 sm:$0xff]   ;;  %v21261_v60 = vld [vmem:[%s26989_s4 + $0x7f0] ss:$8 sps:$4 sm:$0xff]  }
 0x38c   : > { %5551 = vmatprep.subr.bf16.mxu1 %v21182_v61  ;;  %v21264_v61 = vld [vmem:[%s26989_s4 + $0x1150] ss:$8 sps:$4 sm:$0xff]  }
 0x38e   : > { %2826 = vmatpush1.bf16.msra.mxu0 %v21177_v62  ;;  %v21269_v62 = vld [vmem:[%s26989_s4 + $0x1164] ss:$8 sps:$4 sm:$0xff]  }
 0x38f   : > { %5552 = vmatpush1.bf16.msra.mxu1 %v21180_v63  ;;  %2827 = vmatprep.subr.bf16.mxu0 %v21185_v1 }
 0x390   : > { %5553 = vmatprep.subr.bf16.mxu1 %v21188_v27 }
 0x392   : > { %2828 = vmatpush1.bf16.msra.mxu0 %v21183_v2  ;;  %v21267_v2 = vld [vmem:[%s26989_s4 + $0x1160] ss:$8 sps:$4 sm:$0xff]  }
 0x393   : > { %5554 = vmatpush1.bf16.msra.mxu1 %v21186_v3  ;;  %2829 = vmatprep.subr.bf16.mxu0 %v21191_v4  ;;  %v21272_v4 = vld [vmem:[%s26989_s4 + $0x1174] ss:$8 sps:$4 sm:$0xff]  }
 0x394   : > { %5555 = vmatprep.subr.bf16.mxu1 %v21194_v5  ;;  %v21270_v5 = vld [vmem:[%s26989_s4 + $0x1170] ss:$8 sps:$4 sm:$0xff]  }
 0x396   : > { %2830 = vmatpush1.bf16.msra.mxu0 %v21189_v6  ;;  %v21275_v6 = vld [vmem:[%s26989_s4 + $0x1184] ss:$8 sps:$4 sm:$0xff]  }
 0x397   : > { %5556 = vmatpush1.bf16.msra.mxu1 %v21192_v7  ;;  %2831 = vmatprep.subr.bf16.mxu0 %v21197_v8  ;;  %v21273_v7 = vld [vmem:[%s26989_s4 + $0x1180] ss:$8 sps:$4 sm:$0xff]   ;;  %v21278_v8 = vld [vmem:[%s26989_s4 + $0x1194] ss:$8 sps:$4 sm:$0xff]  }
 0x398   : > { %5557 = vmatprep.subr.bf16.mxu1 %v21200_v9  ;;  %v21276_v9 = vld [vmem:[%s26989_s4 + $0x1190] ss:$8 sps:$4 sm:$0xff]  }
 0x39a   : > { %2832 = vmatpush1.bf16.msra.mxu0 %v21195_v10  ;;  %v21281_v10 = vld [vmem:[%s26989_s4 + $0x11a4] ss:$8 sps:$4 sm:$0xff]  }
 0x39b   : > { %5558 = vmatpush1.bf16.msra.mxu1 %v21198_v11  ;;  %2833 = vmatprep.subr.bf16.mxu0 %v21203_v12  ;;  %v21279_v11 = vld [vmem:[%s26989_s4 + $0x11a0] ss:$8 sps:$4 sm:$0xff]   ;;  %v21284_v12 = vld [vmem:[%s26989_s4 + $0x11b4] ss:$8 sps:$4 sm:$0xff]  }
 0x39c   : > { %5559 = vmatprep.subr.bf16.mxu1 %v21206_v13  ;;  %v21282_v13 = vld [vmem:[%s26989_s4 + $0x11b0] ss:$8 sps:$4 sm:$0xff]  }
 0x39e   : > { %2834 = vmatpush1.bf16.msra.mxu0 %v21201_v14  ;;  %v21287_v14 = vld [vmem:[%s26989_s4 + $0x11c4] ss:$8 sps:$4 sm:$0xff]  }
 0x39f   : > { %5560 = vmatpush1.bf16.msra.mxu1 %v21204_v15  ;;  %2835 = vmatprep.subr.bf16.mxu0 %v21209_v16  ;;  %v21285_v15 = vld [vmem:[%s26989_s4 + $0x11c0] ss:$8 sps:$4 sm:$0xff]   ;;  %v21290_v16 = vld [vmem:[%s26989_s4 + $0x11d4] ss:$8 sps:$4 sm:$0xff]  }
 0x3a0   : > { %5561 = vmatprep.subr.bf16.mxu1 %v21212_v17  ;;  %v21288_v17 = vld [vmem:[%s26989_s4 + $0x11d0] ss:$8 sps:$4 sm:$0xff]  }
 0x3a2   : > { %2836 = vmatpush1.bf16.msra.mxu0 %v21207_v18  ;;  %v21293_v18 = vld [vmem:[%s26989_s4 + $0x11e4] ss:$8 sps:$4 sm:$0xff]  }
 0x3a3   : > { %5562 = vmatpush1.bf16.msra.mxu1 %v21210_v19  ;;  %2837 = vmatprep.subr.bf16.mxu0 %v21215_v31  ;;  %v21291_v19 = vld [vmem:[%s26989_s4 + $0x11e0] ss:$8 sps:$4 sm:$0xff]   ;;  %v21296_v31 = vld [vmem:[%s26989_s4 + $0x11f4] ss:$8 sps:$4 sm:$0xff]  }
 0x3a4   : > { %5563 = vmatprep.subr.bf16.mxu1 %v21218_v32  ;;  %v21294_v32 = vld [vmem:[%s26989_s4 + $0x11f0] ss:$8 sps:$4 sm:$0xff]  }
 0x3a6   : > { %2838 = vmatpush1.bf16.msra.mxu0 %v21213_v21  ;;  %v21299_v21 = vld [vmem:[%s26989_s4 + $0x1404] ss:$8 sps:$4 sm:$0xff]  }
 0x3a7   : > { %5564 = vmatpush1.bf16.msra.mxu1 %v21216_v22  ;;  %2839 = vmatprep.subr.bf16.mxu0 %v21221_v23  ;;  %v21297_v22 = vld [vmem:[%s26989_s4 + $0x1400] ss:$8 sps:$4 sm:$0xff]   ;;  %v21302_v23 = vld [vmem:[%s26989_s4 + $0x1414] ss:$8 sps:$4 sm:$0xff]  }
 0x3a8   : > { %5565 = vmatprep.subr.bf16.mxu1 %v21224_v24  ;;  %v21300_v24 = vld [vmem:[%s26989_s4 + $0x1410] ss:$8 sps:$4 sm:$0xff]  }
 0x3aa   : > { %2840 = vmatpush1.bf16.msra.mxu0 %v21219_v25  ;;  %v21305_v25 = vld [vmem:[%s26989_s4 + $0x1424] ss:$8 sps:$4 sm:$0xff]  }
 0x3ab   : > { %5566 = vmatpush1.bf16.msra.mxu1 %v21222_v28  ;;  %2841 = vmatprep.subr.bf16.mxu0 %v21227_v33  ;;  %v21303_v28 = vld [vmem:[%s26989_s4 + $0x1420] ss:$8 sps:$4 sm:$0xff]   ;;  %v21308_v33 = vld [vmem:[%s26989_s4 + $0x1434] ss:$8 sps:$4 sm:$0xff]  }
 0x3ac   : > { %5567 = vmatprep.subr.bf16.mxu1 %v21230_v34  ;;  %v21306_v34 = vld [vmem:[%s26989_s4 + $0x1430] ss:$8 sps:$4 sm:$0xff]  }
 0x3ae   : > { %2842 = vmatpush1.bf16.msra.mxu0 %v21225_v35  ;;  %v21311_v35 = vld [vmem:[%s26989_s4 + $0x1444] ss:$8 sps:$4 sm:$0xff]  }
 0x3af   : > { %5568 = vmatpush1.bf16.msra.mxu1 %v21228_v36  ;;  %2843 = vmatprep.subr.bf16.mxu0 %v21233_v38  ;;  %v21309_v36 = vld [vmem:[%s26989_s4 + $0x1440] ss:$8 sps:$4 sm:$0xff]   ;;  %v21314_v38 = vld [vmem:[%s26989_s4 + $0x1454] ss:$8 sps:$4 sm:$0xff]  }
 0x3b0   : > { %5578 = vmatprep.subr.bf16.mxu1 %v21236_v40  ;;  %v21312_v40 = vld [vmem:[%s26989_s4 + $0x1450] ss:$8 sps:$4 sm:$0xff]  }
 0x3b2   : > { %2844 = vmatpush1.bf16.msra.mxu0 %v21231_v20  ;;  %5570 = vmatmul.mubr.bf16.vlgmr.msra.gmra.mrb[20].mxu1 %v22467_v29  ;;  %v21317_v20 = vld [vmem:[%s26989_s4 + $0x1464] ss:$8 sps:$4 sm:$0xff]  }
 0x3b3   : > { %5579 = vmatpush1.bf16.msra.mxu1 %v21234_v41  ;;  %5610 = vmatprep.mubr.bf16.mxu1 %v22485_v37  ;;  %v21315_v41 = vld [vmem:[%s26989_s4 + $0x1460] ss:$8 sps:$4 sm:$0xff]  }
 0x3b4   : > { %2845 = vmatprep.subr.bf16.mxu0 %v21239_v42  ;;  %5580 = vmatprep.subr.bf16.mxu1 %v21242_v43  ;;  %v21320_v42 = vld [vmem:[%s26989_s4 + $0x1474] ss:$8 sps:$4 sm:$0xff]   ;;  %v21318_v43 = vld [vmem:[%s26989_s4 + $0x1470] ss:$8 sps:$4 sm:$0xff]  }
 0x3b6   : > { %2846 = vmatpush1.bf16.msra.mxu0 %v21237_v44  ;;  %v21323_v44 = vld [vmem:[%s26989_s4 + $0x1484] ss:$8 sps:$4 sm:$0xff]  }
 0x3b7   : > { %5581 = vmatpush1.bf16.msra.mxu1 %v21240_v45  ;;  %2847 = vmatprep.subr.bf16.mxu0 %v21245_v46  ;;  %v21321_v45 = vld [vmem:[%s26989_s4 + $0x1480] ss:$8 sps:$4 sm:$0xff]   ;;  %v21326_v46 = vld [vmem:[%s26989_s4 + $0x1494] ss:$8 sps:$4 sm:$0xff]  }
 0x3b8   : > { %5582 = vmatprep.subr.bf16.mxu1 %v21248_v47  ;;  %v21324_v47 = vld [vmem:[%s26989_s4 + $0x1490] ss:$8 sps:$4 sm:$0xff]  }
 0x3ba   : > { %2848 = vmatpush1.bf16.msra.mxu0 %v21243_v48  ;;  %v21329_v48 = vld [vmem:[%s26989_s4 + $0x14a4] ss:$8 sps:$4 sm:$0xff]  }
 0x3bb   : > { %5583 = vmatpush1.bf16.msra.mxu1 %v21246_v49  ;;  %2849 = vmatprep.subr.bf16.mxu0 %v21251_v50  ;;  %v21327_v49 = vld [vmem:[%s26989_s4 + $0x14a0] ss:$8 sps:$4 sm:$0xff]   ;;  %v21332_v50 = vld [vmem:[%s26989_s4 + $0x14b4] ss:$8 sps:$4 sm:$0xff]  }
 0x3bc   : > { %5584 = vmatprep.subr.bf16.mxu1 %v21254_v51  ;;  %v21330_v51 = vld [vmem:[%s26989_s4 + $0x14b0] ss:$8 sps:$4 sm:$0xff]  }
 0x3be   : > { %2850 = vmatpush1.bf16.msra.mxu0 %v21249_v52  ;;  %v21335_v52 = vld [vmem:[%s26989_s4 + $0x14c4] ss:$8 sps:$4 sm:$0xff]  }
 0x3bf   : > { %5585 = vmatpush1.bf16.msra.mxu1 %v21252_v53  ;;  %2851 = vmatprep.subr.bf16.mxu0 %v21257_v54  ;;  %v21333_v53 = vld [vmem:[%s26989_s4 + $0x14c0] ss:$8 sps:$4 sm:$0xff]   ;;  %v21338_v54 = vld [vmem:[%s26989_s4 + $0x14d4] ss:$8 sps:$4 sm:$0xff]  }
 0x3c0   : > { %5586 = vmatprep.subr.bf16.mxu1 %v21260_v55  ;;  %v21336_v55 = vld [vmem:[%s26989_s4 + $0x14d0] ss:$8 sps:$4 sm:$0xff]  }
 0x3c2   : > { %2852 = vmatpush1.bf16.msra.mxu0 %v21255_v56  ;;  %v21341_v56 = vld [vmem:[%s26989_s4 + $0x14e4] ss:$8 sps:$4 sm:$0xff]  }
 0x3c3   : > { %5587 = vmatpush1.bf16.msra.mxu1 %v21258_v57  ;;  %2853 = vmatprep.subr.bf16.mxu0 %v21263_v58  ;;  %v21339_v57 = vld [vmem:[%s26989_s4 + $0x14e0] ss:$8 sps:$4 sm:$0xff]   ;;  %v21344_v58 = vld [vmem:[%s26989_s4 + $0x14f4] ss:$8 sps:$4 sm:$0xff]  }
 0x3c4   : > { %5588 = vmatprep.subr.bf16.mxu1 %v21266_v59  ;;  %v21342_v59 = vld [vmem:[%s26989_s4 + $0x14f0] ss:$8 sps:$4 sm:$0xff]  }
 0x3c5   : > { %v23608_v63 = vpop.f32.mrb[12].mxu1 }
 0x3c6   : > { %2854 = vmatpush1.bf16.msra.mxu0 %v21261_v60  ;;  %v23610_v1 = vpop.f32.mrb[13].mxu1  ;;  %v21347_v60 = vld [vmem:[%s26989_s4 + $0x1504] ss:$8 sps:$4 sm:$0xff]  }
 0x3c7   : > { %v3412_v27 = vpop.f32.mrb[14].mxu1  ;;  %5589 = vmatpush1.bf16.msra.mxu1 %v21264_v61  ;;  %v21345_v61 = vld [vmem:[%s26989_s4 + $0x1500] ss:$8 sps:$4 sm:$0xff]  }
 0x3c8   : > { %v3413_v3 = vpop.f32.mrb[15].mxu1  ;;  %5590 = vmatprep.subr.bf16.mxu1 %v21269_v62  ;;  %v21350_v62 = vld [vmem:[%s26989_s4 + $0x1514] ss:$8 sps:$4 sm:$0xff]   ;;  %v21348_v27 = vld [vmem:[%s26989_s4 + $0x1510] ss:$8 sps:$4 sm:$0xff]  }
 0x3c9   : > { %2856 = vmatmul.mubr.bf16.vlgmr.msra.gmra.mrb[12].mxu0 %v22668_v39  ;;  %v21351_v3 = vld [vmem:[%s26989_s4 + $0x1520] ss:$8 sps:$4 sm:$0xff]  }
 0x3ca   : > { %2939 = vmatprep.mubr.f32.mxu0 %v22102_v26 }
 0x3cb   : > { %5591 = vmatpush1.bf16.msra.mxu1 %v21267_v2  ;;  %v21353_v2 = vld [vmem:[%s26989_s4 + $0x1524] ss:$8 sps:$4 sm:$0xff]  }
 0x3cc   : > { %5592 = vmatprep.subr.bf16.mxu1 %v21272_v4  ;;  %v21356_v4 = vld [vmem:[%s26989_s4 + $0x1534] ss:$8 sps:$4 sm:$0xff]  }
 0x3cf   : > { %5593 = vmatpush1.bf16.msra.mxu1 %v21270_v5  ;;  %v21354_v5 = vld [vmem:[%s26989_s4 + $0x1530] ss:$8 sps:$4 sm:$0xff]  }
 0x3d0   : > { %5594 = vmatprep.subr.bf16.mxu1 %v21275_v6  ;;  %v21359_v6 = vld [vmem:[%s26989_s4 + $0x1544] ss:$8 sps:$4 sm:$0xff]  }
 0x3d3   : > { %5595 = vmatpush1.bf16.msra.mxu1 %v21273_v7  ;;  %v21357_v7 = vld [vmem:[%s26989_s4 + $0x1540] ss:$8 sps:$4 sm:$0xff]  }
 0x3d4   : > { %5596 = vmatprep.subr.bf16.mxu1 %v21278_v8  ;;  %v21362_v8 = vld [vmem:[%s26989_s4 + $0x1554] ss:$8 sps:$4 sm:$0xff]  }
 0x3d7   : > { %5597 = vmatpush1.bf16.msra.mxu1 %v21276_v9  ;;  %v21360_v9 = vld [vmem:[%s26989_s4 + $0x1550] ss:$8 sps:$4 sm:$0xff]  }
 0x3d8   : > { %5598 = vmatprep.subr.bf16.mxu1 %v21281_v10  ;;  %v21365_v10 = vld [vmem:[%s26989_s4 + $0x1564] ss:$8 sps:$4 sm:$0xff]  }
 0x3db   : > { %5599 = vmatpush1.bf16.msra.mxu1 %v21279_v11 }
 0x3dc   : > { %5600 = vmatprep.subr.bf16.mxu1 %v21284_v12 }
 0x3df   : > { %5601 = vmatpush1.bf16.msra.mxu1 %v21282_v13 }
 0x3e0   : > { %5602 = vmatprep.subr.bf16.mxu1 %v21287_v14  ;;  %v21363_v14 = vld [vmem:[%s26989_s4 + $0x1560] ss:$8 sps:$4 sm:$0xff]  }
 0x3e3   : > { %5603 = vmatpush1.bf16.msra.mxu1 %v21285_v15 }
 0x3e4   : > { %5604 = vmatprep.subr.bf16.mxu1 %v21290_v16  ;;  %v21368_v16 = vld [vmem:[%s26989_s4 + $0x1574] ss:$8 sps:$4 sm:$0xff]  }
 0x3e7   : > { %5605 = vmatpush1.bf16.msra.mxu1 %v21288_v17  ;;  %v21366_v17 = vld [vmem:[%s26989_s4 + $0x1570] ss:$8 sps:$4 sm:$0xff]  }
 0x3e8   : > { %5606 = vmatprep.subr.bf16.mxu1 %v21293_v18  ;;  %v21371_v18 = vld [vmem:[%s26989_s4 + $0x1584] ss:$8 sps:$4 sm:$0xff]  }
 0x3eb   : > { %5607 = vmatpush1.bf16.msra.mxu1 %v21291_v19  ;;  %v21369_v19 = vld [vmem:[%s26989_s4 + $0x1580] ss:$8 sps:$4 sm:$0xff]  }
 0x3ec   : > { %5608 = vmatprep.subr.bf16.mxu1 %v21296_v31  ;;  %v21374_v31 = vld [vmem:[%s26989_s4 + $0x1594] ss:$8 sps:$4 sm:$0xff]  }
 0x3ef   : > { %5609 = vmatpush1.bf16.msra.mxu1 %v21294_v32  ;;  %v21372_v32 = vld [vmem:[%s26989_s4 + $0x1590] ss:$8 sps:$4 sm:$0xff]  }
 0x3f0   : > { %6639 = vmatprep.subr.bf16.mxu1 %v21299_v21  ;;  %v21377_v21 = vld [vmem:[%s26989_s4 + $0x15a4] ss:$8 sps:$4 sm:$0xff]  }
 0x3f2   : > { %5611 = vmatmul.mubr.bf16.vlgmr.msra.gmra.mrb[20].mxu1 %v22668_v39 }
 0x3f3   : > { %6640 = vmatpush1.bf16.msra.mxu1 %v21297_v22  ;;  %6671 = vmatprep.mubr.bf16.mxu1 %v22469_v30  ;;  %v21375_v22 = vld [vmem:[%s26989_s4 + $0x15a0] ss:$8 sps:$4 sm:$0xff]  }
 0x3f4   : > { %6641 = vmatprep.subr.bf16.mxu1 %v21302_v23  ;;  %v21380_v23 = vld [vmem:[%s26989_s4 + $0x15b4] ss:$8 sps:$4 sm:$0xff]  }
 0x3f7   : > { %6642 = vmatpush1.bf16.msra.mxu1 %v21300_v24  ;;  %v21378_v24 = vld [vmem:[%s26989_s4 + $0x15b0] ss:$8 sps:$4 sm:$0xff]  }
 0x3f8   : > { %6643 = vmatprep.subr.bf16.mxu1 %v21305_v25  ;;  %v21383_v25 = vld [vmem:[%s26989_s4 + $0x15c4] ss:$8 sps:$4 sm:$0xff]  }
 0x3fb   : > { %6644 = vmatpush1.bf16.msra.mxu1 %v21303_v28  ;;  %v21381_v28 = vld [vmem:[%s26989_s4 + $0x15c0] ss:$8 sps:$4 sm:$0xff]  }
 0x3fc   : > { %6645 = vmatprep.subr.bf16.mxu1 %v21308_v33  ;;  %v21386_v33 = vld [vmem:[%s26989_s4 + $0x15d4] ss:$8 sps:$4 sm:$0xff]  }
 0x3ff   : > { %6646 = vmatpush1.bf16.msra.mxu1 %v21306_v34  ;;  %v21384_v34 = vld [vmem:[%s26989_s4 + $0x15d0] ss:$8 sps:$4 sm:$0xff]  }
 0x400   : > { %6647 = vmatprep.subr.bf16.mxu1 %v21311_v35  ;;  %v21389_v35 = vld [vmem:[%s26989_s4 + $0x15e4] ss:$8 sps:$4 sm:$0xff]  }
 0x403   : > { %6648 = vmatpush1.bf16.msra.mxu1 %v21309_v36  ;;  %v21387_v36 = vld [vmem:[%s26989_s4 + $0x15e0] ss:$8 sps:$4 sm:$0xff]  }
 0x404   : > { %6649 = vmatprep.subr.bf16.mxu1 %v21314_v38  ;;  %v21392_v38 = vld [vmem:[%s26989_s4 + $0x15f4] ss:$8 sps:$4 sm:$0xff]  }
 0x407   : > { %6650 = vmatpush1.bf16.msra.mxu1 %v21312_v40  ;;  %v21390_v40 = vld [vmem:[%s26989_s4 + $0x15f0] ss:$8 sps:$4 sm:$0xff]  }
 0x408   : > { %6651 = vmatprep.subr.bf16.mxu1 %v21317_v20 }
 0x40b   : > { %6652 = vmatpush1.bf16.msra.mxu1 %v21315_v41 }
 0x40c   : > { %6653 = vmatprep.subr.bf16.mxu1 %v21320_v42  ;;  %v16759_v42 = vld [vmem:[%s26990_s5 + $0x18] sm:$0xff] }
 0x40f   : > { %6654 = vmatpush1.bf16.msra.mxu1 %v21318_v43 }
 0x410   : > { %6655 = vmatprep.subr.bf16.mxu1 %v21323_v44  ;;  %v21395_v44 = vld [vmem:[%s26989_s4 + $0xa04] ss:$8 sps:$4 sm:$0xff]  }
 0x413   : > { %6656 = vmatpush1.bf16.msra.mxu1 %v21321_v45 }
 0x414   : > { %6657 = vmatprep.subr.bf16.mxu1 %v21326_v46  ;;  %v21393_v46 = vld [vmem:[%s26989_s4 + $0xa00] ss:$8 sps:$4 sm:$0xff]  }
 0x417   : > { %6658 = vmatpush1.bf16.msra.mxu1 %v21324_v47  ;;  %v16891_v47 = vld [vmem:[%s26990_s5 + $0x20] sm:$0xff] }
 0x418   : > { %6659 = vmatprep.subr.bf16.mxu1 %v21329_v48  ;;  %v21398_v48 = vld [vmem:[%s26989_s4 + $0xa14] ss:$8 sps:$4 sm:$0xff]  }
 0x41b   : > { %6660 = vmatpush1.bf16.msra.mxu1 %v21327_v49  ;;  %v21399_v49 = vld [vmem:[%s26989_s4 + $0xa20] ss:$8 sps:$4 sm:$0xff]  }
 0x41c   : > { %6661 = vmatprep.subr.bf16.mxu1 %v21332_v50  ;;  %v21404_v50 = vld [vmem:[%s26989_s4 + $0xa34] ss:$8 sps:$4 sm:$0xff]  }
 0x41f   : > { %6662 = vmatpush1.bf16.msra.mxu1 %v21330_v51  ;;  %v21402_v51 = vld [vmem:[%s26989_s4 + $0xa30] ss:$8 sps:$4 sm:$0xff]  }
 0x420   : > { %6663 = vmatprep.subr.bf16.mxu1 %v21335_v52  ;;  %v21407_v52 = vld [vmem:[%s26989_s4 + $0xa44] ss:$8 sps:$4 sm:$0xff]  }
 0x423   : > { %6664 = vmatpush1.bf16.msra.mxu1 %v21333_v53  ;;  %v21405_v53 = vld [vmem:[%s26989_s4 + $0xa40] ss:$8 sps:$4 sm:$0xff]  }
 0x424   : > { %6665 = vmatprep.subr.bf16.mxu1 %v21338_v54  ;;  %v21410_v54 = vld [vmem:[%s26989_s4 + $0xa54] ss:$8 sps:$4 sm:$0xff]  }
 0x427   : > { %6666 = vmatpush1.bf16.msra.mxu1 %v21336_v55  ;;  %v21408_v55 = vld [vmem:[%s26989_s4 + $0xa50] ss:$8 sps:$4 sm:$0xff]  }
 0x428   : > { %6667 = vmatprep.subr.bf16.mxu1 %v21341_v56  ;;  %v21413_v56 = vld [vmem:[%s26989_s4 + $0xa64] ss:$8 sps:$4 sm:$0xff]  }
 0x42b   : > { %6668 = vmatpush1.bf16.msra.mxu1 %v21339_v57  ;;  %v21411_v57 = vld [vmem:[%s26989_s4 + $0xa60] ss:$8 sps:$4 sm:$0xff]  }
 0x42c   : > { %6669 = vmatprep.subr.bf16.mxu1 %v21344_v58  ;;  %v21416_v58 = vld [vmem:[%s26989_s4 + $0xa74] ss:$8 sps:$4 sm:$0xff]  }
 0x42f   : > { %6670 = vmatpush1.bf16.msra.mxu1 %v21342_v59  ;;  %v21414_v59 = vld [vmem:[%s26989_s4 + $0xa70] ss:$8 sps:$4 sm:$0xff]  }
 0x430   : > { %6680 = vmatprep.subr.bf16.mxu1 %v21347_v60  ;;  %v21419_v60 = vld [vmem:[%s26989_s4 + $0xa84] ss:$8 sps:$4 sm:$0xff]  }
 0x432   : > { %6672 = vmatmul.mubr.bf16.vlgmr.msra.gmra.mrb[24].mxu1 %v22467_v29 }
 0x433   : > { %6681 = vmatpush1.bf16.msra.mxu1 %v21345_v61  ;;  %6712 = vmatprep.mubr.bf16.mxu1 %v22485_v37 }
 0x434   : > { %6682 = vmatprep.subr.bf16.mxu1 %v21350_v62  ;;  %v21417_v62 = vld [vmem:[%s26989_s4 + $0xa80] ss:$8 sps:$4 sm:$0xff]  }
 0x437   : > { %6683 = vmatpush1.bf16.msra.mxu1 %v21348_v27 }
 0x438   : > { %6684 = vmatprep.subr.bf16.mxu1 %v21353_v2  ;;  %v21422_v2 = vld [vmem:[%s26989_s4 + $0xa94] ss:$8 sps:$4 sm:$0xff]  }
 0x43b   : > { %6685 = vmatpush1.bf16.msra.mxu1 %v21351_v3 }
 0x43c   : > { %6686 = vmatprep.subr.bf16.mxu1 %v21356_v4 }
 0x43f   : > { %6687 = vmatpush1.bf16.msra.mxu1 %v21354_v5  ;;  %v21420_v5 = vld [vmem:[%s26989_s4 + $0xa90] ss:$8 sps:$4 sm:$0xff]  }
 0x440   : > { %6688 = vmatprep.subr.bf16.mxu1 %v21359_v6  ;;  %v21425_v6 = vld [vmem:[%s26989_s4 + $0xaa4] ss:$8 sps:$4 sm:$0xff]  }
 0x443   : > { %6689 = vmatpush1.bf16.msra.mxu1 %v21357_v7  ;;  %v21423_v7 = vld [vmem:[%s26989_s4 + $0xaa0] ss:$8 sps:$4 sm:$0xff]  }
 0x444   : > { %6690 = vmatprep.subr.bf16.mxu1 %v21362_v8  ;;  %v21428_v8 = vld [vmem:[%s26989_s4 + $0xab4] ss:$8 sps:$4 sm:$0xff]  }
 0x445   : > { %v23810_v11 = vpop.f32.mrb[16].mxu1 }
 0x446   : > { %v23812_v12 = vpop.f32.mrb[17].mxu1 }
 0x447   : > { %v4514_v13 = vpop.f32.mrb[18].mxu1  ;;  %6691 = vmatpush1.bf16.msra.mxu1 %v21360_v9  ;;  %v21426_v9 = vld [vmem:[%s26989_s4 + $0xab0] ss:$8 sps:$4 sm:$0xff]  }
 0x448   : > { %v4515_v15 = vpop.f32.mrb[19].mxu1  ;;  %6692 = vmatprep.subr.bf16.mxu1 %v21365_v10  ;;  %v21431_v10 = vld [vmem:[%s26989_s4 + $0xac4] ss:$8 sps:$4 sm:$0xff]   ;;  %v21429_v13 = vld [vmem:[%s26989_s4 + $0xac0] ss:$8 sps:$4 sm:$0xff]  }
 0x449   : > { %v21432_v15 = vld [vmem:[%s26989_s4 + $0xad0] ss:$8 sps:$4 sm:$0xff]  }
 0x44b   : > { %6693 = vmatpush1.bf16.msra.mxu1 %v21363_v14  ;;  %v21434_v14 = vld [vmem:[%s26989_s4 + $0xad4] ss:$8 sps:$4 sm:$0xff]  }
 0x44c   : > { %6694 = vmatprep.subr.bf16.mxu1 %v21368_v16  ;;  %v21437_v16 = vld [vmem:[%s26989_s4 + $0xae4] ss:$8 sps:$4 sm:$0xff]  }
 0x44f   : > { %6695 = vmatpush1.bf16.msra.mxu1 %v21366_v17  ;;  %v21435_v17 = vld [vmem:[%s26989_s4 + $0xae0] ss:$8 sps:$4 sm:$0xff]  }
 0x450   : > { %6696 = vmatprep.subr.bf16.mxu1 %v21371_v18  ;;  %v21440_v18 = vld [vmem:[%s26989_s4 + $0xaf4] ss:$8 sps:$4 sm:$0xff]  }
 0x453   : > { %6697 = vmatpush1.bf16.msra.mxu1 %v21369_v19  ;;  %v21438_v19 = vld [vmem:[%s26989_s4 + $0xaf0] ss:$8 sps:$4 sm:$0xff]  }
 0x454   : > { %6698 = vmatprep.subr.bf16.mxu1 %v21374_v31  ;;  %v21443_v31 = vld [vmem:[%s26989_s4 + $0xb04] ss:$8 sps:$4 sm:$0xff]  }
 0x457   : > { %6699 = vmatpush1.bf16.msra.mxu1 %v21372_v32  ;;  %v21441_v32 = vld [vmem:[%s26989_s4 + $0xb00] ss:$8 sps:$4 sm:$0xff]  }
 0x458   : > { %6700 = vmatprep.subr.bf16.mxu1 %v21377_v21  ;;  %v21446_v21 = vld [vmem:[%s26989_s4 + $0xb14] ss:$8 sps:$4 sm:$0xff]  }
 0x45b   : > { %6701 = vmatpush1.bf16.msra.mxu1 %v21375_v22  ;;  %v21444_v22 = vld [vmem:[%s26989_s4 + $0xb10] ss:$8 sps:$4 sm:$0xff]  }
 0x45c   : > { %6702 = vmatprep.subr.bf16.mxu1 %v21380_v23  ;;  %v21449_v23 = vld [vmem:[%s26989_s4 + $0xb24] ss:$8 sps:$4 sm:$0xff]  }
 0x45f   : > { %6703 = vmatpush1.bf16.msra.mxu1 %v21378_v24  ;;  %v21447_v24 = vld [vmem:[%s26989_s4 + $0xb20] ss:$8 sps:$4 sm:$0xff]  }
 0x460   : > { %6704 = vmatprep.subr.bf16.mxu1 %v21383_v25  ;;  %v21452_v25 = vld [vmem:[%s26989_s4 + $0xb34] ss:$8 sps:$4 sm:$0xff]  }
 0x463   : > { %6705 = vmatpush1.bf16.msra.mxu1 %v21381_v28  ;;  %v21450_v28 = vld [vmem:[%s26989_s4 + $0xb30] ss:$8 sps:$4 sm:$0xff]  }
 0x464   : > { %6706 = vmatprep.subr.bf16.mxu1 %v21386_v33  ;;  %v21455_v33 = vld [vmem:[%s26989_s4 + $0xb44] ss:$8 sps:$4 sm:$0xff]  }
 0x467   : > { %6707 = vmatpush1.bf16.msra.mxu1 %v21384_v34  ;;  %v21453_v34 = vld [vmem:[%s26989_s4 + $0xb40] ss:$8 sps:$4 sm:$0xff]  }
 0x468   : > { %6708 = vmatprep.subr.bf16.mxu1 %v21389_v35  ;;  %v21458_v35 = vld [vmem:[%s26989_s4 + $0xb54] ss:$8 sps:$4 sm:$0xff]  }
 0x46b   : > { %6709 = vmatpush1.bf16.msra.mxu1 %v21387_v36  ;;  %v21456_v36 = vld [vmem:[%s26989_s4 + $0xb50] ss:$8 sps:$4 sm:$0xff]  }
 0x46c   : > { %6710 = vmatprep.subr.bf16.mxu1 %v21392_v38  ;;  %v21461_v38 = vld [vmem:[%s26989_s4 + $0xb64] ss:$8 sps:$4 sm:$0xff]  }
 0x46f   : > { %6711 = vmatpush1.bf16.msra.mxu1 %v21390_v40  ;;  %v21459_v40 = vld [vmem:[%s26989_s4 + $0xb60] ss:$8 sps:$4 sm:$0xff]  }
 0x470   : > { %7505 = vmatprep.subr.bf16.mxu1 %v22101_v0 }
 0x472   : > { %6713 = vmatmul.mubr.bf16.vlgmr.msra.gmra.mrb[24].mxu1 %v22668_v39 }
 0x49c   : > { %v2857_v20 = vpop.f32.mrb[12].mxu0 }
 0x49d   : > { %v2859_v41 = vpop.f32.mrb[13].mxu0 }
 0x49e   : > { %v2861_v43 = vpop.f32.mrb[14].mxu0  ;;  %16760 = vmatprep.subr.msk.mxu0 %vm661_vm1, %v2859_v41  ;;  %v21462_v41 = vld [vmem:[%s26989_s4 + $0xb70] ss:$8 sps:$4 sm:$0xff]  }
 0x49f   : > { %v2862_v45 = vpop.f32.mrb[15].mxu0  ;;  %16761 = vmatpush1.msk.msra.mxu0 %vm661_vm1, %v2857_v20  ;;  %v21464_v20 = vld [vmem:[%s26989_s4 + $0xb74] ss:$8 sps:$4 sm:$0xff]   ;;  %v21465_v43 = vld [vmem:[%s26989_s4 + $0xb80] ss:$8 sps:$4 sm:$0xff]  }
 0x4a0   : > { %16762 = vmatmul.mubr.msk.f32.vlgmr.msra.gmra.mrb[8].mxu0 %vm1685_vm6, %v16759_v42  ;;  %16892 = vmatprep.subr.msk.mxu0 %vm661_vm1, %v23610_v1  ;;  %v21401_v1 = vld [vmem:[%s26989_s4 + $0xa24] ss:$8 sps:$4 sm:$0xff]   ;;  %v21468_v45 = vld [vmem:[%s26989_s4 + $0xb90] ss:$8 sps:$4 sm:$0xff]  }
 0x4a1   : > { %16893 = vmatpush1.msk.msra.mxu0 %vm661_vm1, %v23608_v63  ;;  %3490 = vmatprep.mubr.f32.mxu0 %v22102_v26  ;;  %v21396_v63 = vld [vmem:[%s26989_s4 + $0xa10] ss:$8 sps:$4 sm:$0xff]   ;;  %v21467_v42 = vld [vmem:[%s26989_s4 + $0xb84] ss:$8 sps:$4 sm:$0xff]  }
 0x4a2   : > { %3884 = vmatprep.subr.bf16.mxu0 %v21395_v44  ;;  %v21470_v44 = vld [vmem:[%s26989_s4 + $0xb94] ss:$8 sps:$4 sm:$0xff]  }
 0x4a8   : > { %16894 = vmatmul.mubr.msk.f32.vlgmr.msra.gmra.mrb[8].mxu0 %vm1685_vm6, %v16891_v47  ;;  %v21471_v47 = vld [vmem:[%s26989_s4 + $0xba0] ss:$8 sps:$4 sm:$0xff]  }
 0x4a9   : > { %3885 = vmatpush1.bf16.msra.mxu0 %v21393_v46  ;;  %3916 = vmatprep.mubr.bf16.mxu0 %v22469_v30  ;;  %v21473_v46 = vld [vmem:[%s26989_s4 + $0xba4] ss:$8 sps:$4 sm:$0xff]  }
 0x4aa   : > { %3886 = vmatprep.subr.bf16.mxu0 %v21398_v48  ;;  %v21476_v48 = vld [vmem:[%s26989_s4 + $0xbb4] ss:$8 sps:$4 sm:$0xff]  }
 0x4ad   : > { %3887 = vmatpush1.bf16.msra.mxu0 %v21396_v63  ;;  %v21474_v63 = vld [vmem:[%s26989_s4 + $0xbb0] ss:$8 sps:$4 sm:$0xff]  }
 0x4ae   : > { %3888 = vmatprep.subr.bf16.mxu0 %v21401_v1  ;;  %v21479_v1 = vld [vmem:[%s26989_s4 + $0xbc4] ss:$8 sps:$4 sm:$0xff]  }
 0x4b1   : > { %3889 = vmatpush1.bf16.msra.mxu0 %v21399_v49  ;;  %v21477_v49 = vld [vmem:[%s26989_s4 + $0xbc0] ss:$8 sps:$4 sm:$0xff]  }
 0x4b2   : > { %3890 = vmatprep.subr.bf16.mxu0 %v21404_v50  ;;  %v21482_v50 = vld [vmem:[%s26989_s4 + $0xbd4] ss:$8 sps:$4 sm:$0xff]  }
 0x4b5   : > { %3891 = vmatpush1.bf16.msra.mxu0 %v21402_v51  ;;  %v21480_v51 = vld [vmem:[%s26989_s4 + $0xbd0] ss:$8 sps:$4 sm:$0xff]  }
 0x4b6   : > { %3892 = vmatprep.subr.bf16.mxu0 %v21407_v52  ;;  %v21485_v52 = vld [vmem:[%s26989_s4 + $0xbe4] ss:$8 sps:$4 sm:$0xff]  }
 0x4b9   : > { %3893 = vmatpush1.bf16.msra.mxu0 %v21405_v53  ;;  %v21483_v53 = vld [vmem:[%s26989_s4 + $0xbe0] ss:$8 sps:$4 sm:$0xff]  }
 0x4ba   : > { %3894 = vmatprep.subr.bf16.mxu0 %v21410_v54  ;;  %v21488_v54 = vld [vmem:[%s26989_s4 + $0xbf4] ss:$8 sps:$4 sm:$0xff]  }
 0x4bd   : > { %3895 = vmatpush1.bf16.msra.mxu0 %v21408_v55  ;;  %v21486_v55 = vld [vmem:[%s26989_s4 + $0xbf0] ss:$8 sps:$4 sm:$0xff]  }
 0x4be   : > { %3896 = vmatprep.subr.bf16.mxu0 %v21413_v56 }
 0x4c1   : > { %3897 = vmatpush1.bf16.msra.mxu0 %v21411_v57 }
 0x4c2   : > { %3898 = vmatprep.subr.bf16.mxu0 %v21416_v58 }
 0x4c5   : > { %3899 = vmatpush1.bf16.msra.mxu0 %v21414_v59  ;;  %v23940_v61 = vpop.f32.mrb[20].mxu1 }
 0x4c6   : > { %v23945_v27 = vpop.f32.mrb[21].mxu1  ;;  %3900 = vmatprep.subr.bf16.mxu0 %v21419_v60 }
 0x4c7   : > { %v5616_v3 = vpop.f32.mrb[22].mxu1 }
 0x4c8   : > { %v5617_v4 = vpop.f32.mrb[23].mxu1 }
 0x4c9   : > { %3901 = vmatpush1.bf16.msra.mxu0 %v21417_v62  ;;  %v21491_v4 = vld [vmem:[%s26989_s4 + $0xe04] ss:$8 sps:$4 sm:$0xff]  }
 0x4ca   : > { %3902 = vmatprep.subr.bf16.mxu0 %v21422_v2  ;;  %v17023_v2 = vld [vmem:[%s26990_s5 + $0x28] sm:$0xff] }
 0x4cd   : > { %3903 = vmatpush1.bf16.msra.mxu0 %v21420_v5 }
 0x4ce   : > { %3904 = vmatprep.subr.bf16.mxu0 %v21425_v6  ;;  %v21489_v6 = vld [vmem:[%s26989_s4 + $0xe00] ss:$8 sps:$4 sm:$0xff]  }
 0x4d1   : > { %3905 = vmatpush1.bf16.msra.mxu0 %v21423_v7  ;;  %v17155_v7 = vld [vmem:[%s26990_s5 + $0x30] sm:$0xff] }
 0x4d2   : > { %3906 = vmatprep.subr.bf16.mxu0 %v21428_v8  ;;  %v21494_v8 = vld [vmem:[%s26989_s4 + $0xe14] ss:$8 sps:$4 sm:$0xff]  }
 0x4d5   : > { %3907 = vmatpush1.bf16.msra.mxu0 %v21426_v9  ;;  %v21495_v9 = vld [vmem:[%s26989_s4 + $0xe20] ss:$8 sps:$4 sm:$0xff]  }
 0x4d6   : > { %3908 = vmatprep.subr.bf16.mxu0 %v21431_v10  ;;  %v21500_v10 = vld [vmem:[%s26989_s4 + $0xe34] ss:$8 sps:$4 sm:$0xff]  }
 0x4d9   : > { %3909 = vmatpush1.bf16.msra.mxu0 %v21429_v13  ;;  %v21498_v13 = vld [vmem:[%s26989_s4 + $0xe30] ss:$8 sps:$4 sm:$0xff]  }
 0x4da   : > { %3910 = vmatprep.subr.bf16.mxu0 %v21434_v14  ;;  %v21503_v14 = vld [vmem:[%s26989_s4 + $0xe44] ss:$8 sps:$4 sm:$0xff]  }
 0x4dd   : > { %3911 = vmatpush1.bf16.msra.mxu0 %v21432_v15  ;;  %v21501_v15 = vld [vmem:[%s26989_s4 + $0xe40] ss:$8 sps:$4 sm:$0xff]  }
 0x4de   : > { %3912 = vmatprep.subr.bf16.mxu0 %v21437_v16  ;;  %v21506_v16 = vld [vmem:[%s26989_s4 + $0xe54] ss:$8 sps:$4 sm:$0xff]  }
 0x4e1   : > { %3913 = vmatpush1.bf16.msra.mxu0 %v21435_v17  ;;  %v21504_v17 = vld [vmem:[%s26989_s4 + $0xe50] ss:$8 sps:$4 sm:$0xff]  }
 0x4e2   : > { %3914 = vmatprep.subr.bf16.mxu0 %v21440_v18  ;;  %v21509_v18 = vld [vmem:[%s26989_s4 + $0xe64] ss:$8 sps:$4 sm:$0xff]  }
 0x4e5   : > { %3915 = vmatpush1.bf16.msra.mxu0 %v21438_v19  ;;  %v21507_v19 = vld [vmem:[%s26989_s4 + $0xe60] ss:$8 sps:$4 sm:$0xff]  }
 0x4e6   : > { %3925 = vmatprep.subr.bf16.mxu0 %v21443_v31  ;;  %v21512_v31 = vld [vmem:[%s26989_s4 + $0xe74] ss:$8 sps:$4 sm:$0xff]  }
 0x4e8   : > { %3917 = vmatmul.mubr.bf16.vlgmr.msra.gmra.mrb[16].mxu0 %v22467_v29 }
 0x4e9   : > { %3926 = vmatpush1.bf16.msra.mxu0 %v21441_v32  ;;  %3957 = vmatprep.mubr.bf16.mxu0 %v22485_v37  ;;  %v21510_v32 = vld [vmem:[%s26989_s4 + $0xe70] ss:$8 sps:$4 sm:$0xff]  }
 0x4ea   : > { %3927 = vmatprep.subr.bf16.mxu0 %v21446_v21  ;;  %v21515_v21 = vld [vmem:[%s26989_s4 + $0xe84] ss:$8 sps:$4 sm:$0xff]  }
 0x4ed   : > { %3928 = vmatpush1.bf16.msra.mxu0 %v21444_v22  ;;  %v21513_v22 = vld [vmem:[%s26989_s4 + $0xe80] ss:$8 sps:$4 sm:$0xff]  }
 0x4ee   : > { %3929 = vmatprep.subr.bf16.mxu0 %v21449_v23  ;;  %v21518_v23 = vld [vmem:[%s26989_s4 + $0xe94] ss:$8 sps:$4 sm:$0xff]  }
 0x4f1   : > { %3930 = vmatpush1.bf16.msra.mxu0 %v21447_v24  ;;  %v21516_v24 = vld [vmem:[%s26989_s4 + $0xe90] ss:$8 sps:$4 sm:$0xff]  }
 0x4f2   : > { %3931 = vmatprep.subr.bf16.mxu0 %v21452_v25  ;;  %v21521_v25 = vld [vmem:[%s26989_s4 + $0xea4] ss:$8 sps:$4 sm:$0xff]  }
 0x4f5   : > { %3932 = vmatpush1.bf16.msra.mxu0 %v21450_v28  ;;  %v21519_v28 = vld [vmem:[%s26989_s4 + $0xea0] ss:$8 sps:$4 sm:$0xff]  }
 0x4f6   : > { %3933 = vmatprep.subr.bf16.mxu0 %v21455_v33  ;;  %v21524_v33 = vld [vmem:[%s26989_s4 + $0xeb4] ss:$8 sps:$4 sm:$0xff]  }
 0x4f9   : > { %3934 = vmatpush1.bf16.msra.mxu0 %v21453_v34  ;;  %v21522_v34 = vld [vmem:[%s26989_s4 + $0xeb0] ss:$8 sps:$4 sm:$0xff]  }
 0x4fa   : > { %3935 = vmatprep.subr.bf16.mxu0 %v21458_v35  ;;  %v21527_v35 = vld [vmem:[%s26989_s4 + $0xec4] ss:$8 sps:$4 sm:$0xff]  }
 0x4fd   : > { %3936 = vmatpush1.bf16.msra.mxu0 %v21456_v36  ;;  %v21525_v36 = vld [vmem:[%s26989_s4 + $0xec0] ss:$8 sps:$4 sm:$0xff]  }
 0x4fe   : > { %3937 = vmatprep.subr.bf16.mxu0 %v21461_v38  ;;  %v21530_v38 = vld [vmem:[%s26989_s4 + $0xed4] ss:$8 sps:$4 sm:$0xff]  }
 0x501   : > { %3938 = vmatpush1.bf16.msra.mxu0 %v21459_v40  ;;  %v21528_v40 = vld [vmem:[%s26989_s4 + $0xed0] ss:$8 sps:$4 sm:$0xff]  }
 0x502   : > { %3939 = vmatprep.subr.bf16.mxu0 %v21464_v20  ;;  %v21533_v20 = vld [vmem:[%s26989_s4 + $0xee4] ss:$8 sps:$4 sm:$0xff]  }
 0x505   : > { %3940 = vmatpush1.bf16.msra.mxu0 %v21462_v41  ;;  %v21531_v41 = vld [vmem:[%s26989_s4 + $0xee0] ss:$8 sps:$4 sm:$0xff]  }
 0x506   : > { %3941 = vmatprep.subr.bf16.mxu0 %v21467_v42  ;;  %v21536_v42 = vld [vmem:[%s26989_s4 + $0xef4] ss:$8 sps:$4 sm:$0xff]  }
 0x509   : > { %3942 = vmatpush1.bf16.msra.mxu0 %v21465_v43  ;;  %v21534_v43 = vld [vmem:[%s26989_s4 + $0xef0] ss:$8 sps:$4 sm:$0xff]  }
 0x50a   : > { %3943 = vmatprep.subr.bf16.mxu0 %v21470_v44  ;;  %v21539_v44 = vld [vmem:[%s26989_s4 + $0xf04] ss:$8 sps:$4 sm:$0xff]  }
 0x50d   : > { %3944 = vmatpush1.bf16.msra.mxu0 %v21468_v45  ;;  %v21537_v45 = vld [vmem:[%s26989_s4 + $0xf00] ss:$8 sps:$4 sm:$0xff]  }
 0x50e   : > { %3945 = vmatprep.subr.bf16.mxu0 %v21473_v46  ;;  %v21542_v46 = vld [vmem:[%s26989_s4 + $0xf14] ss:$8 sps:$4 sm:$0xff]  }
 0x511   : > { %3946 = vmatpush1.bf16.msra.mxu0 %v21471_v47  ;;  %v21540_v47 = vld [vmem:[%s26989_s4 + $0xf10] ss:$8 sps:$4 sm:$0xff]  }
 0x512   : > { %3947 = vmatprep.subr.bf16.mxu0 %v21476_v48  ;;  %v21545_v48 = vld [vmem:[%s26989_s4 + $0xf24] ss:$8 sps:$4 sm:$0xff]  }
 0x515   : > { %3948 = vmatpush1.bf16.msra.mxu0 %v21474_v63  ;;  %v21543_v63 = vld [vmem:[%s26989_s4 + $0xf20] ss:$8 sps:$4 sm:$0xff]  }
 0x516   : > { %3949 = vmatprep.subr.bf16.mxu0 %v21479_v1  ;;  %v21548_v1 = vld [vmem:[%s26989_s4 + $0xf34] ss:$8 sps:$4 sm:$0xff]  }
 0x519   : > { %3950 = vmatpush1.bf16.msra.mxu0 %v21477_v49  ;;  %v21546_v49 = vld [vmem:[%s26989_s4 + $0xf30] ss:$8 sps:$4 sm:$0xff]  }
 0x51a   : > { %3951 = vmatprep.subr.bf16.mxu0 %v21482_v50  ;;  %v21551_v50 = vld [vmem:[%s26989_s4 + $0xf44] ss:$8 sps:$4 sm:$0xff]  }
 0x51d   : > { %3952 = vmatpush1.bf16.msra.mxu0 %v21480_v51  ;;  %v21549_v51 = vld [vmem:[%s26989_s4 + $0xf40] ss:$8 sps:$4 sm:$0xff]  }
 0x51e   : > { %3953 = vmatprep.subr.bf16.mxu0 %v21485_v52  ;;  %v21554_v52 = vld [vmem:[%s26989_s4 + $0xf54] ss:$8 sps:$4 sm:$0xff]  }
 0x521   : > { %3954 = vmatpush1.bf16.msra.mxu0 %v21483_v53  ;;  %v21552_v53 = vld [vmem:[%s26989_s4 + $0xf50] ss:$8 sps:$4 sm:$0xff]  }
 0x522   : > { %3955 = vmatprep.subr.bf16.mxu0 %v21488_v54  ;;  %v21557_v54 = vld [vmem:[%s26989_s4 + $0xf64] ss:$8 sps:$4 sm:$0xff]  }
 0x525   : > { %3956 = vmatpush1.bf16.msra.mxu0 %v21486_v55  ;;  %v21555_v55 = vld [vmem:[%s26989_s4 + $0xf60] ss:$8 sps:$4 sm:$0xff]  }
 0x528   : > { %3958 = vmatmul.mubr.bf16.vlgmr.msra.gmra.mrb[16].mxu0 %v22668_v39 }
 0x529   : > { %4041 = vmatprep.mubr.f32.mxu0 %v22102_v26 }
 0x545   : > { %v24089_v56 = vpop.f32.mrb[24].mxu1 }
 0x546   : > { %v24091_v57 = vpop.f32.mrb[25].mxu1 }
 0x547   : > { %v6718_v58 = vpop.f32.mrb[26].mxu1 }
 0x548   : > { %v6719_v59 = vpop.f32.mrb[27].mxu1  ;;  %v21560_v58 = vld [vmem:[%s26989_s4 + $0xf74] ss:$8 sps:$4 sm:$0xff]  }
 0x549   : > { %v21558_v59 = vld [vmem:[%s26989_s4 + $0xf70] ss:$8 sps:$4 sm:$0xff]  }
 0x5fb   : > { %v3959_v60 = vpop.f32.mrb[16].mxu0 }
 0x5fc   : > { %v3961_v62 = vpop.f32.mrb[17].mxu0 }
 0x5fd   : > { %v3963_v3 = vpop.f32.mrb[18].mxu0  ;;  %17024 = vmatprep.subr.msk.mxu0 %vm661_vm1, %v3961_v62  ;;  %v21561_v62 = vld [vmem:[%s26989_s4 + $0xf80] ss:$8 sps:$4 sm:$0xff]  }
 0x5fe   : > { %v3964_v5 = vpop.f32.mrb[19].mxu0  ;;  %17025 = vmatpush1.msk.msra.mxu0 %vm661_vm1, %v3959_v60  ;;  %v21563_v60 = vld [vmem:[%s26989_s4 + $0xf84] ss:$8 sps:$4 sm:$0xff]   ;;  %v21564_v3 = vld [vmem:[%s26989_s4 + $0xf90] ss:$8 sps:$4 sm:$0xff]  }
 0x5ff   : > { %17026 = vmatmul.mubr.msk.f32.vlgmr.msra.gmra.mrb[8].mxu0 %vm1685_vm6, %v17023_v2  ;;  %17156 = vmatprep.subr.msk.mxu0 %vm661_vm1, %v23812_v12  ;;  %v21497_v12 = vld [vmem:[%s26989_s4 + $0xe24] ss:$8 sps:$4 sm:$0xff]   ;;  %v21566_v2 = vld [vmem:[%s26989_s4 + $0xf94] ss:$8 sps:$4 sm:$0xff]   ;;  %v21567_v5 = vld [vmem:[%s26989_s4 + $0xfa0] ss:$8 sps:$4 sm:$0xff]  }
 0x600   : > { %17157 = vmatpush1.msk.msra.mxu0 %vm661_vm1, %v23810_v11  ;;  %4592 = vmatprep.mubr.f32.mxu0 %v22102_v26  ;;  %v21492_v11 = vld [vmem:[%s26989_s4 + $0xe10] ss:$8 sps:$4 sm:$0xff]  }
 0x601   : > { %4986 = vmatprep.subr.bf16.mxu0 %v21491_v4  ;;  %v21569_v4 = vld [vmem:[%s26989_s4 + $0xfa4] ss:$8 sps:$4 sm:$0xff]  }
 0x607   : > { %17158 = vmatmul.mubr.msk.f32.vlgmr.msra.gmra.mrb[8].mxu0 %vm1685_vm6, %v17155_v7  ;;  %v21570_v7 = vld [vmem:[%s26989_s4 + $0xfb0] ss:$8 sps:$4 sm:$0xff]  }
 0x608   : > { %4987 = vmatpush1.bf16.msra.mxu0 %v21489_v6  ;;  %5018 = vmatprep.mubr.bf16.mxu0 %v22469_v30  ;;  %v21572_v6 = vld [vmem:[%s26989_s4 + $0xfb4] ss:$8 sps:$4 sm:$0xff]  }
 0x609   : > { %4988 = vmatprep.subr.bf16.mxu0 %v21494_v8  ;;  %v21575_v8 = vld [vmem:[%s26989_s4 + $0xfc4] ss:$8 sps:$4 sm:$0xff]  }
 0x60c   : > { %4989 = vmatpush1.bf16.msra.mxu0 %v21492_v11  ;;  %v21573_v11 = vld [vmem:[%s26989_s4 + $0xfc0] ss:$8 sps:$4 sm:$0xff]  }
 0x60d   : > { %4990 = vmatprep.subr.bf16.mxu0 %v21497_v12  ;;  %v21578_v12 = vld [vmem:[%s26989_s4 + $0xfd4] ss:$8 sps:$4 sm:$0xff]  }
 0x610   : > { %4991 = vmatpush1.bf16.msra.mxu0 %v21495_v9  ;;  %v21576_v9 = vld [vmem:[%s26989_s4 + $0xfd0] ss:$8 sps:$4 sm:$0xff]  }
 0x611   : > { %4992 = vmatprep.subr.bf16.mxu0 %v21500_v10  ;;  %v21581_v10 = vld [vmem:[%s26989_s4 + $0xfe4] ss:$8 sps:$4 sm:$0xff]  }
 0x614   : > { %4993 = vmatpush1.bf16.msra.mxu0 %v21498_v13  ;;  %v21579_v13 = vld [vmem:[%s26989_s4 + $0xfe0] ss:$8 sps:$4 sm:$0xff]  }
 0x615   : > { %4994 = vmatprep.subr.bf16.mxu0 %v21503_v14  ;;  %v21584_v14 = vld [vmem:[%s26989_s4 + $0xff4] ss:$8 sps:$4 sm:$0xff]  }
 0x618   : > { %4995 = vmatpush1.bf16.msra.mxu0 %v21501_v15  ;;  %v21582_v15 = vld [vmem:[%s26989_s4 + $0xff0] ss:$8 sps:$4 sm:$0xff]  }
 0x619   : > { %4996 = vmatprep.subr.bf16.mxu0 %v21506_v16 }
 0x61c   : > { %4997 = vmatpush1.bf16.msra.mxu0 %v21504_v17 }
 0x61d   : > { %4998 = vmatprep.subr.bf16.mxu0 %v21509_v18  ;;  %v17287_v18 = vld [vmem:[%s26990_s5 + $0x38] sm:$0xff] }
 0x620   : > { %4999 = vmatpush1.bf16.msra.mxu0 %v21507_v19 }
 0x621   : > { %5000 = vmatprep.subr.bf16.mxu0 %v21512_v31  ;;  %v21587_v31 = vld [vmem:[%s26989_s4 + $0x1204] ss:$8 sps:$4 sm:$0xff]  }
 0x624   : > { %5001 = vmatpush1.bf16.msra.mxu0 %v21510_v32 }
 0x625   : > { %5002 = vmatprep.subr.bf16.mxu0 %v21515_v21  ;;  %v21585_v21 = vld [vmem:[%s26989_s4 + $0x1200] ss:$8 sps:$4 sm:$0xff]  }
 0x628   : > { %5003 = vmatpush1.bf16.msra.mxu0 %v21513_v22  ;;  %v17419_v22 = vld [vmem:[%s26990_s5 + $0x40] sm:$0xff] }
 0x629   : > { %5004 = vmatprep.subr.bf16.mxu0 %v21518_v23  ;;  %v21590_v23 = vld [vmem:[%s26989_s4 + $0x1214] ss:$8 sps:$4 sm:$0xff]  }
 0x62c   : > { %5005 = vmatpush1.bf16.msra.mxu0 %v21516_v24  ;;  %v21591_v24 = vld [vmem:[%s26989_s4 + $0x1220] ss:$8 sps:$4 sm:$0xff]  }
 0x62d   : > { %5006 = vmatprep.subr.bf16.mxu0 %v21521_v25  ;;  %v21596_v25 = vld [vmem:[%s26989_s4 + $0x1234] ss:$8 sps:$4 sm:$0xff]  }
 0x630   : > { %5007 = vmatpush1.bf16.msra.mxu0 %v21519_v28  ;;  %v21594_v28 = vld [vmem:[%s26989_s4 + $0x1230] ss:$8 sps:$4 sm:$0xff]  }
 0x631   : > { %5008 = vmatprep.subr.bf16.mxu0 %v21524_v33  ;;  %v21599_v33 = vld [vmem:[%s26989_s4 + $0x1244] ss:$8 sps:$4 sm:$0xff]  }
 0x634   : > { %5009 = vmatpush1.bf16.msra.mxu0 %v21522_v34  ;;  %v21597_v34 = vld [vmem:[%s26989_s4 + $0x1240] ss:$8 sps:$4 sm:$0xff]  }
 0x635   : > { %5010 = vmatprep.subr.bf16.mxu0 %v21527_v35  ;;  %v21602_v35 = vld [vmem:[%s26989_s4 + $0x1254] ss:$8 sps:$4 sm:$0xff]  }
 0x638   : > { %5011 = vmatpush1.bf16.msra.mxu0 %v21525_v36  ;;  %v21600_v36 = vld [vmem:[%s26989_s4 + $0x1250] ss:$8 sps:$4 sm:$0xff]  }
 0x639   : > { %5012 = vmatprep.subr.bf16.mxu0 %v21530_v38  ;;  %v21605_v38 = vld [vmem:[%s26989_s4 + $0x1264] ss:$8 sps:$4 sm:$0xff]  }
 0x63c   : > { %5013 = vmatpush1.bf16.msra.mxu0 %v21528_v40  ;;  %v21603_v40 = vld [vmem:[%s26989_s4 + $0x1260] ss:$8 sps:$4 sm:$0xff]  }
 0x63d   : > { %5014 = vmatprep.subr.bf16.mxu0 %v21533_v20  ;;  %v21608_v20 = vld [vmem:[%s26989_s4 + $0x1274] ss:$8 sps:$4 sm:$0xff]  }
 0x640   : > { %5015 = vmatpush1.bf16.msra.mxu0 %v21531_v41  ;;  %v21606_v41 = vld [vmem:[%s26989_s4 + $0x1270] ss:$8 sps:$4 sm:$0xff]  }
 0x641   : > { %5016 = vmatprep.subr.bf16.mxu0 %v21536_v42  ;;  %v21611_v42 = vld [vmem:[%s26989_s4 + $0x1284] ss:$8 sps:$4 sm:$0xff]  }
 0x644   : > { %5017 = vmatpush1.bf16.msra.mxu0 %v21534_v43  ;;  %v21609_v43 = vld [vmem:[%s26989_s4 + $0x1280] ss:$8 sps:$4 sm:$0xff]  }
 0x645   : > { %5027 = vmatprep.subr.bf16.mxu0 %v21539_v44  ;;  %v21614_v44 = vld [vmem:[%s26989_s4 + $0x1294] ss:$8 sps:$4 sm:$0xff]  }
 0x647   : > { %5019 = vmatmul.mubr.bf16.vlgmr.msra.gmra.mrb[20].mxu0 %v22467_v29 }
 0x648   : > { %5028 = vmatpush1.bf16.msra.mxu0 %v21537_v45  ;;  %5059 = vmatprep.mubr.bf16.mxu0 %v22485_v37  ;;  %v21612_v45 = vld [vmem:[%s26989_s4 + $0x1290] ss:$8 sps:$4 sm:$0xff]  }
 0x649   : > { %5029 = vmatprep.subr.bf16.mxu0 %v21542_v46  ;;  %v21617_v46 = vld [vmem:[%s26989_s4 + $0x12a4] ss:$8 sps:$4 sm:$0xff]  }
 0x64c   : > { %5030 = vmatpush1.bf16.msra.mxu0 %v21540_v47  ;;  %v21615_v47 = vld [vmem:[%s26989_s4 + $0x12a0] ss:$8 sps:$4 sm:$0xff]  }
 0x64d   : > { %5031 = vmatprep.subr.bf16.mxu0 %v21545_v48  ;;  %v21620_v48 = vld [vmem:[%s26989_s4 + $0x12b4] ss:$8 sps:$4 sm:$0xff]  }
 0x650   : > { %5032 = vmatpush1.bf16.msra.mxu0 %v21543_v63  ;;  %v21618_v63 = vld [vmem:[%s26989_s4 + $0x12b0] ss:$8 sps:$4 sm:$0xff]  }
 0x651   : > { %5033 = vmatprep.subr.bf16.mxu0 %v21548_v1  ;;  %v21623_v1 = vld [vmem:[%s26989_s4 + $0x12c4] ss:$8 sps:$4 sm:$0xff]  }
 0x654   : > { %5034 = vmatpush1.bf16.msra.mxu0 %v21546_v49  ;;  %v21621_v49 = vld [vmem:[%s26989_s4 + $0x12c0] ss:$8 sps:$4 sm:$0xff]  }
 0x655   : > { %5035 = vmatprep.subr.bf16.mxu0 %v21551_v50  ;;  %v21626_v50 = vld [vmem:[%s26989_s4 + $0x12d4] ss:$8 sps:$4 sm:$0xff]  }
 0x658   : > { %5036 = vmatpush1.bf16.msra.mxu0 %v21549_v51  ;;  %v21624_v51 = vld [vmem:[%s26989_s4 + $0x12d0] ss:$8 sps:$4 sm:$0xff]  }
 0x659   : > { %5037 = vmatprep.subr.bf16.mxu0 %v21554_v52  ;;  %v21629_v52 = vld [vmem:[%s26989_s4 + $0x12e4] ss:$8 sps:$4 sm:$0xff]  }
 0x65c   : > { %5038 = vmatpush1.bf16.msra.mxu0 %v21552_v53  ;;  %v21627_v53 = vld [vmem:[%s26989_s4 + $0x12e0] ss:$8 sps:$4 sm:$0xff]  }
 0x65d   : > { %5039 = vmatprep.subr.bf16.mxu0 %v21557_v54  ;;  %v21632_v54 = vld [vmem:[%s26989_s4 + $0x12f4] ss:$8 sps:$4 sm:$0xff]  }
 0x660   : > { %5040 = vmatpush1.bf16.msra.mxu0 %v21555_v55  ;;  %v21630_v55 = vld [vmem:[%s26989_s4 + $0x12f0] ss:$8 sps:$4 sm:$0xff]  }
 0x661   : > { %5041 = vmatprep.subr.bf16.mxu0 %v21560_v58  ;;  %v21635_v58 = vld [vmem:[%s26989_s4 + $0x1304] ss:$8 sps:$4 sm:$0xff]  }
 0x664   : > { %5042 = vmatpush1.bf16.msra.mxu0 %v21558_v59  ;;  %v21633_v59 = vld [vmem:[%s26989_s4 + $0x1300] ss:$8 sps:$4 sm:$0xff]  }
 0x665   : > { %5043 = vmatprep.subr.bf16.mxu0 %v21563_v60  ;;  %v21638_v60 = vld [vmem:[%s26989_s4 + $0x1314] ss:$8 sps:$4 sm:$0xff]  }
 0x668   : > { %5044 = vmatpush1.bf16.msra.mxu0 %v21561_v62  ;;  %v21636_v62 = vld [vmem:[%s26989_s4 + $0x1310] ss:$8 sps:$4 sm:$0xff]  }
 0x669   : > { %5045 = vmatprep.subr.bf16.mxu0 %v21566_v2  ;;  %v21641_v2 = vld [vmem:[%s26989_s4 + $0x1324] ss:$8 sps:$4 sm:$0xff]  }
 0x66c   : > { %5046 = vmatpush1.bf16.msra.mxu0 %v21564_v3  ;;  %v21639_v3 = vld [vmem:[%s26989_s4 + $0x1320] ss:$8 sps:$4 sm:$0xff]  }
 0x66d   : > { %5047 = vmatprep.subr.bf16.mxu0 %v21569_v4  ;;  %v21644_v4 = vld [vmem:[%s26989_s4 + $0x1334] ss:$8 sps:$4 sm:$0xff]  }
 0x670   : > { %5048 = vmatpush1.bf16.msra.mxu0 %v21567_v5  ;;  %v21642_v5 = vld [vmem:[%s26989_s4 + $0x1330] ss:$8 sps:$4 sm:$0xff]  }
 0x671   : > { %5049 = vmatprep.subr.bf16.mxu0 %v21572_v6  ;;  %v21647_v6 = vld [vmem:[%s26989_s4 + $0x1344] ss:$8 sps:$4 sm:$0xff]  }
 0x674   : > { %5050 = vmatpush1.bf16.msra.mxu0 %v21570_v7  ;;  %v21645_v7 = vld [vmem:[%s26989_s4 + $0x1340] ss:$8 sps:$4 sm:$0xff]  }
 0x675   : > { %5051 = vmatprep.subr.bf16.mxu0 %v21575_v8  ;;  %v21650_v8 = vld [vmem:[%s26989_s4 + $0x1354] ss:$8 sps:$4 sm:$0xff]  }
 0x678   : > { %5052 = vmatpush1.bf16.msra.mxu0 %v21573_v11  ;;  %v21648_v11 = vld [vmem:[%s26989_s4 + $0x1350] ss:$8 sps:$4 sm:$0xff]  }
 0x679   : > { %5053 = vmatprep.subr.bf16.mxu0 %v21578_v12  ;;  %v21653_v12 = vld [vmem:[%s26989_s4 + $0x1364] ss:$8 sps:$4 sm:$0xff]  }
 0x67c   : > { %5054 = vmatpush1.bf16.msra.mxu0 %v21576_v9  ;;  %v21651_v9 = vld [vmem:[%s26989_s4 + $0x1360] ss:$8 sps:$4 sm:$0xff]  }
 0x67d   : > { %5055 = vmatprep.subr.bf16.mxu0 %v21581_v10  ;;  %v21656_v10 = vld [vmem:[%s26989_s4 + $0x1374] ss:$8 sps:$4 sm:$0xff]  }
 0x680   : > { %5056 = vmatpush1.bf16.msra.mxu0 %v21579_v13  ;;  %v21654_v13 = vld [vmem:[%s26989_s4 + $0x1370] ss:$8 sps:$4 sm:$0xff]  }
 0x681   : > { %5057 = vmatprep.subr.bf16.mxu0 %v21584_v14  ;;  %v21659_v14 = vld [vmem:[%s26989_s4 + $0x1384] ss:$8 sps:$4 sm:$0xff]  }
 0x684   : > { %5058 = vmatpush1.bf16.msra.mxu0 %v21582_v15  ;;  %v21657_v15 = vld [vmem:[%s26989_s4 + $0x1380] ss:$8 sps:$4 sm:$0xff]  }
 0x687   : > { %5060 = vmatmul.mubr.bf16.vlgmr.msra.gmra.mrb[20].mxu0 %v22668_v39 }
 0x688   : > { %5143 = vmatprep.mubr.f32.mxu0 %v22102_v26 }
 0x75a   : > { %v5061_v16 = vpop.f32.mrb[20].mxu0 }
 0x75b   : > { %v5063_v17 = vpop.f32.mrb[21].mxu0 }
 0x75c   : > { %v5065_v19 = vpop.f32.mrb[22].mxu0  ;;  %17288 = vmatprep.subr.msk.mxu0 %vm661_vm1, %v5063_v17  ;;  %v21660_v17 = vld [vmem:[%s26989_s4 + $0x1390] ss:$8 sps:$4 sm:$0xff]  }
 0x75d   : > { %v5066_v32 = vpop.f32.mrb[23].mxu0  ;;  %17289 = vmatpush1.msk.msra.mxu0 %vm661_vm1, %v5061_v16  ;;  %v21662_v16 = vld [vmem:[%s26989_s4 + $0x1394] ss:$8 sps:$4 sm:$0xff]   ;;  %v21663_v19 = vld [vmem:[%s26989_s4 + $0x13a0] ss:$8 sps:$4 sm:$0xff]  }
 0x75e   : > { %17290 = vmatmul.mubr.msk.f32.vlgmr.msra.gmra.mrb[8].mxu0 %vm1685_vm6, %v17287_v18  ;;  %17420 = vmatprep.subr.msk.mxu0 %vm661_vm1, %v23945_v27  ;;  %v21593_v27 = vld [vmem:[%s26989_s4 + $0x1224] ss:$8 sps:$4 sm:$0xff]   ;;  %v21666_v32 = vld [vmem:[%s26989_s4 + $0x13b0] ss:$8 sps:$4 sm:$0xff]  }
 0x75f   : > { %17421 = vmatpush1.msk.msra.mxu0 %vm661_vm1, %v23940_v61  ;;  %5694 = vmatprep.mubr.f32.mxu0 %v22102_v26  ;;  %v21588_v61 = vld [vmem:[%s26989_s4 + $0x1210] ss:$8 sps:$4 sm:$0xff]   ;;  %v21665_v18 = vld [vmem:[%s26989_s4 + $0x13a4] ss:$8 sps:$4 sm:$0xff]  }
 0x760   : > { %6088 = vmatprep.subr.bf16.mxu0 %v21587_v31  ;;  %v21668_v31 = vld [vmem:[%s26989_s4 + $0x13b4] ss:$8 sps:$4 sm:$0xff]  }
 0x766   : > { %17422 = vmatmul.mubr.msk.f32.vlgmr.msra.gmra.mrb[8].mxu0 %vm1685_vm6, %v17419_v22  ;;  %v21669_v22 = vld [vmem:[%s26989_s4 + $0x13c0] ss:$8 sps:$4 sm:$0xff]  }
 0x767   : > { %6089 = vmatpush1.bf16.msra.mxu0 %v21585_v21  ;;  %6120 = vmatprep.mubr.bf16.mxu0 %v22469_v30  ;;  %v21671_v21 = vld [vmem:[%s26989_s4 + $0x13c4] ss:$8 sps:$4 sm:$0xff]  }
 0x768   : > { %6090 = vmatprep.subr.bf16.mxu0 %v21590_v23  ;;  %v21674_v23 = vld [vmem:[%s26989_s4 + $0x13d4] ss:$8 sps:$4 sm:$0xff]  }
 0x76b   : > { %6091 = vmatpush1.bf16.msra.mxu0 %v21588_v61  ;;  %v21672_v61 = vld [vmem:[%s26989_s4 + $0x13d0] ss:$8 sps:$4 sm:$0xff]  }
 0x76c   : > { %6092 = vmatprep.subr.bf16.mxu0 %v21593_v27  ;;  %v21677_v27 = vld [vmem:[%s26989_s4 + $0x13e4] ss:$8 sps:$4 sm:$0xff]  }
 0x76f   : > { %6093 = vmatpush1.bf16.msra.mxu0 %v21591_v24  ;;  %v21675_v24 = vld [vmem:[%s26989_s4 + $0x13e0] ss:$8 sps:$4 sm:$0xff]  }
 0x770   : > { %6094 = vmatprep.subr.bf16.mxu0 %v21596_v25  ;;  %v21680_v25 = vld [vmem:[%s26989_s4 + $0x13f4] ss:$8 sps:$4 sm:$0xff]  }
 0x773   : > { %6095 = vmatpush1.bf16.msra.mxu0 %v21594_v28  ;;  %v21678_v28 = vld [vmem:[%s26989_s4 + $0x13f0] ss:$8 sps:$4 sm:$0xff]  }
 0x774   : > { %6096 = vmatprep.subr.bf16.mxu0 %v21599_v33 }
 0x777   : > { %6097 = vmatpush1.bf16.msra.mxu0 %v21597_v34 }
 0x778   : > { %6098 = vmatprep.subr.bf16.mxu0 %v21602_v35  ;;  %v17551_v35 = vld [vmem:[%s26990_s5 + $0x48] sm:$0xff] }
 0x77b   : > { %6099 = vmatpush1.bf16.msra.mxu0 %v21600_v36 }
 0x77c   : > { %6100 = vmatprep.subr.bf16.mxu0 %v21605_v38  ;;  %v21683_v38 = vld [vmem:[%s26989_s4 + $0x1604] ss:$8 sps:$4 sm:$0xff]  }
 0x77f   : > { %6101 = vmatpush1.bf16.msra.mxu0 %v21603_v40 }
 0x780   : > { %6102 = vmatprep.subr.bf16.mxu0 %v21608_v20  ;;  %v21681_v20 = vld [vmem:[%s26989_s4 + $0x1600] ss:$8 sps:$4 sm:$0xff]  }
 0x783   : > { %6103 = vmatpush1.bf16.msra.mxu0 %v21606_v41  ;;  %v17683_v41 = vld [vmem:[%s26990_s5 + $0x50] sm:$0xff] }
 0x784   : > { %6104 = vmatprep.subr.bf16.mxu0 %v21611_v42  ;;  %v21686_v42 = vld [vmem:[%s26989_s4 + $0x1614] ss:$8 sps:$4 sm:$0xff]  }
 0x787   : > { %6105 = vmatpush1.bf16.msra.mxu0 %v21609_v43  ;;  %v21687_v43 = vld [vmem:[%s26989_s4 + $0x1620] ss:$8 sps:$4 sm:$0xff]  }
 0x788   : > { %6106 = vmatprep.subr.bf16.mxu0 %v21614_v44  ;;  %v21692_v44 = vld [vmem:[%s26989_s4 + $0x1634] ss:$8 sps:$4 sm:$0xff]  }
 0x78b   : > { %6107 = vmatpush1.bf16.msra.mxu0 %v21612_v45  ;;  %v21695_v45 = vld [vmem:[%s26989_s4 + $0x1644] ss:$8 sps:$4 sm:$0xff]  }
 0x78c   : > { %6108 = vmatprep.subr.bf16.mxu0 %v21617_v46  ;;  %v21693_v46 = vld [vmem:[%s26989_s4 + $0x1640] ss:$8 sps:$4 sm:$0xff]  }
 0x78f   : > { %6109 = vmatpush1.bf16.msra.mxu0 %v21615_v47  ;;  %v21698_v47 = vld [vmem:[%s26989_s4 + $0x1654] ss:$8 sps:$4 sm:$0xff]  }
 0x790   : > { %6110 = vmatprep.subr.bf16.mxu0 %v21620_v48  ;;  %v21696_v48 = vld [vmem:[%s26989_s4 + $0x1650] ss:$8 sps:$4 sm:$0xff]  }
 0x793   : > { %6111 = vmatpush1.bf16.msra.mxu0 %v21618_v63  ;;  %v21701_v63 = vld [vmem:[%s26989_s4 + $0x1664] ss:$8 sps:$4 sm:$0xff]  }
 0x794   : > { %6112 = vmatprep.subr.bf16.mxu0 %v21623_v1  ;;  %v21699_v1 = vld [vmem:[%s26989_s4 + $0x1660] ss:$8 sps:$4 sm:$0xff]  }
 0x797   : > { %6113 = vmatpush1.bf16.msra.mxu0 %v21621_v49  ;;  %v21704_v49 = vld [vmem:[%s26989_s4 + $0x1674] ss:$8 sps:$4 sm:$0xff]  }
 0x798   : > { %6114 = vmatprep.subr.bf16.mxu0 %v21626_v50  ;;  %v21702_v50 = vld [vmem:[%s26989_s4 + $0x1670] ss:$8 sps:$4 sm:$0xff]  }
 0x79b   : > { %6115 = vmatpush1.bf16.msra.mxu0 %v21624_v51  ;;  %v21707_v51 = vld [vmem:[%s26989_s4 + $0x1684] ss:$8 sps:$4 sm:$0xff]  }
 0x79c   : > { %6116 = vmatprep.subr.bf16.mxu0 %v21629_v52  ;;  %v21705_v52 = vld [vmem:[%s26989_s4 + $0x1680] ss:$8 sps:$4 sm:$0xff]  }
 0x79f   : > { %6117 = vmatpush1.bf16.msra.mxu0 %v21627_v53  ;;  %v21710_v53 = vld [vmem:[%s26989_s4 + $0x1694] ss:$8 sps:$4 sm:$0xff]  }
 0x7a0   : > { %6118 = vmatprep.subr.bf16.mxu0 %v21632_v54  ;;  %v21708_v54 = vld [vmem:[%s26989_s4 + $0x1690] ss:$8 sps:$4 sm:$0xff]  }
 0x7a3   : > { %6119 = vmatpush1.bf16.msra.mxu0 %v21630_v55  ;;  %v21713_v55 = vld [vmem:[%s26989_s4 + $0x16a4] ss:$8 sps:$4 sm:$0xff]  }
 0x7a4   : > { %6129 = vmatprep.subr.bf16.mxu0 %v21635_v58  ;;  %v21711_v58 = vld [vmem:[%s26989_s4 + $0x16a0] ss:$8 sps:$4 sm:$0xff]  }
 0x7a6   : > { %6121 = vmatmul.mubr.bf16.vlgmr.msra.gmra.mrb[24].mxu0 %v22467_v29 }
 0x7a7   : > { %6130 = vmatpush1.bf16.msra.mxu0 %v21633_v59  ;;  %6161 = vmatprep.mubr.bf16.mxu0 %v22485_v37  ;;  %v21716_v59 = vld [vmem:[%s26989_s4 + $0x16b4] ss:$8 sps:$4 sm:$0xff]  }
 0x7a8   : > { %6131 = vmatprep.subr.bf16.mxu0 %v21638_v60  ;;  %v21714_v60 = vld [vmem:[%s26989_s4 + $0x16b0] ss:$8 sps:$4 sm:$0xff]  }
 0x7ab   : > { %6132 = vmatpush1.bf16.msra.mxu0 %v21636_v62  ;;  %v21719_v62 = vld [vmem:[%s26989_s4 + $0x16c4] ss:$8 sps:$4 sm:$0xff]  }
 0x7ac   : > { %6133 = vmatprep.subr.bf16.mxu0 %v21641_v2  ;;  %v21717_v2 = vld [vmem:[%s26989_s4 + $0x16c0] ss:$8 sps:$4 sm:$0xff]  }
 0x7af   : > { %6134 = vmatpush1.bf16.msra.mxu0 %v21639_v3  ;;  %v21722_v3 = vld [vmem:[%s26989_s4 + $0x16d4] ss:$8 sps:$4 sm:$0xff]  }
 0x7b0   : > { %6135 = vmatprep.subr.bf16.mxu0 %v21644_v4  ;;  %v21720_v4 = vld [vmem:[%s26989_s4 + $0x16d0] ss:$8 sps:$4 sm:$0xff]  }
 0x7b3   : > { %6136 = vmatpush1.bf16.msra.mxu0 %v21642_v5  ;;  %v21725_v5 = vld [vmem:[%s26989_s4 + $0x16e4] ss:$8 sps:$4 sm:$0xff]  }
 0x7b4   : > { %6137 = vmatprep.subr.bf16.mxu0 %v21647_v6  ;;  %v21723_v6 = vld [vmem:[%s26989_s4 + $0x16e0] ss:$8 sps:$4 sm:$0xff]  }
 0x7b7   : > { %6138 = vmatpush1.bf16.msra.mxu0 %v21645_v7  ;;  %v21728_v7 = vld [vmem:[%s26989_s4 + $0x16f4] ss:$8 sps:$4 sm:$0xff]  }
 0x7b8   : > { %6139 = vmatprep.subr.bf16.mxu0 %v21650_v8  ;;  %v21726_v8 = vld [vmem:[%s26989_s4 + $0x16f0] ss:$8 sps:$4 sm:$0xff]  }
 0x7bb   : > { %6140 = vmatpush1.bf16.msra.mxu0 %v21648_v11  ;;  %v21731_v11 = vld [vmem:[%s26989_s4 + $0x1704] ss:$8 sps:$4 sm:$0xff]  }
 0x7bc   : > { %6141 = vmatprep.subr.bf16.mxu0 %v21653_v12  ;;  %v21729_v12 = vld [vmem:[%s26989_s4 + $0x1700] ss:$8 sps:$4 sm:$0xff]  }
 0x7bf   : > { %6142 = vmatpush1.bf16.msra.mxu0 %v21651_v9  ;;  %v21734_v9 = vld [vmem:[%s26989_s4 + $0x1714] ss:$8 sps:$4 sm:$0xff]  }
 0x7c0   : > { %6143 = vmatprep.subr.bf16.mxu0 %v21656_v10  ;;  %v21732_v10 = vld [vmem:[%s26989_s4 + $0x1710] ss:$8 sps:$4 sm:$0xff]  }
 0x7c3   : > { %6144 = vmatpush1.bf16.msra.mxu0 %v21654_v13  ;;  %v21737_v13 = vld [vmem:[%s26989_s4 + $0x1724] ss:$8 sps:$4 sm:$0xff]  }
 0x7c4   : > { %6145 = vmatprep.subr.bf16.mxu0 %v21659_v14  ;;  %v21735_v14 = vld [vmem:[%s26989_s4 + $0x1720] ss:$8 sps:$4 sm:$0xff]  }
 0x7c7   : > { %6146 = vmatpush1.bf16.msra.mxu0 %v21657_v15  ;;  %v21743_v15 = vld [vmem:[%s26989_s4 + $0x1744] ss:$8 sps:$4 sm:$0xff]  }
 0x7c8   : > { %6147 = vmatprep.subr.bf16.mxu0 %v21662_v16  ;;  %v21741_v16 = vld [vmem:[%s26989_s4 + $0x1740] ss:$8 sps:$4 sm:$0xff]  }
 0x7cb   : > { %6148 = vmatpush1.bf16.msra.mxu0 %v21660_v17  ;;  %v21746_v17 = vld [vmem:[%s26989_s4 + $0x1754] ss:$8 sps:$4 sm:$0xff]  }
 0x7cc   : > { %6149 = vmatprep.subr.bf16.mxu0 %v21665_v18  ;;  %v21744_v18 = vld [vmem:[%s26989_s4 + $0x1750] ss:$8 sps:$4 sm:$0xff]  }
 0x7cf   : > { %6150 = vmatpush1.bf16.msra.mxu0 %v21663_v19  ;;  %v21749_v19 = vld [vmem:[%s26989_s4 + $0x1764] ss:$8 sps:$4 sm:$0xff]  }
 0x7d0   : > { %6151 = vmatprep.subr.bf16.mxu0 %v21668_v31  ;;  %v21747_v31 = vld [vmem:[%s26989_s4 + $0x1760] ss:$8 sps:$4 sm:$0xff]  }
 0x7d3   : > { %6152 = vmatpush1.bf16.msra.mxu0 %v21666_v32  ;;  %v21752_v32 = vld [vmem:[%s26989_s4 + $0x1774] ss:$8 sps:$4 sm:$0xff]  }
 0x7d4   : > { %6153 = vmatprep.subr.bf16.mxu0 %v21671_v21  ;;  %v21750_v21 = vld [vmem:[%s26989_s4 + $0x1770] ss:$8 sps:$4 sm:$0xff]  }
 0x7d7   : > { %6154 = vmatpush1.bf16.msra.mxu0 %v21669_v22  ;;  %v21755_v22 = vld [vmem:[%s26989_s4 + $0x1784] ss:$8 sps:$4 sm:$0xff]  }
 0x7d8   : > { %6155 = vmatprep.subr.bf16.mxu0 %v21674_v23  ;;  %v21753_v23 = vld [vmem:[%s26989_s4 + $0x1780] ss:$8 sps:$4 sm:$0xff]  }
 0x7db   : > { %6156 = vmatpush1.bf16.msra.mxu0 %v21672_v61  ;;  %v21758_v61 = vld [vmem:[%s26989_s4 + $0x1794] ss:$8 sps:$4 sm:$0xff]  }
 0x7dc   : > { %6157 = vmatprep.subr.bf16.mxu0 %v21677_v27  ;;  %v21756_v27 = vld [vmem:[%s26989_s4 + $0x1790] ss:$8 sps:$4 sm:$0xff]  }
 0x7df   : > { %6158 = vmatpush1.bf16.msra.mxu0 %v21675_v24  ;;  %v21761_v24 = vld [vmem:[%s26989_s4 + $0x17a4] ss:$8 sps:$4 sm:$0xff]  }
 0x7e0   : > { %6159 = vmatprep.subr.bf16.mxu0 %v21680_v25  ;;  %v21759_v25 = vld [vmem:[%s26989_s4 + $0x17a0] ss:$8 sps:$4 sm:$0xff]  }
 0x7e3   : > { %6160 = vmatpush1.bf16.msra.mxu0 %v21678_v28  ;;  %v21764_v28 = vld [vmem:[%s26989_s4 + $0x17b4] ss:$8 sps:$4 sm:$0xff]  }
 0x7e6   : > { %6162 = vmatmul.mubr.bf16.vlgmr.msra.gmra.mrb[24].mxu0 %v22668_v39 }
 0x7e7   : > { %6245 = vmatprep.mubr.f32.mxu0 %v22102_v26 }
 0x8b9   : > { %v6163_v33 = vpop.f32.mrb[24].mxu0 }
 0x8ba   : > { %v6165_v34 = vpop.f32.mrb[25].mxu0 }
 0x8bb   : > { %v6167_v36 = vpop.f32.mrb[26].mxu0  ;;  %17552 = vmatprep.subr.msk.mxu0 %vm661_vm1, %v6165_v34  ;;  %v21767_v34 = vld [vmem:[%s26989_s4 + $0x17c4] ss:$8 sps:$4 sm:$0xff]  }
 0x8bc   : > { %v6168_v40 = vpop.f32.mrb[27].mxu0  ;;  %17553 = vmatpush1.msk.msra.mxu0 %vm661_vm1, %v6163_v33  ;;  %v21762_v33 = vld [vmem:[%s26989_s4 + $0x17b0] ss:$8 sps:$4 sm:$0xff]   ;;  %v21770_v36 = vld [vmem:[%s26989_s4 + $0x17d4] ss:$8 sps:$4 sm:$0xff]  }
 0x8bd   : > { %17554 = vmatmul.mubr.msk.f32.vlgmr.msra.gmra.mrb[8].mxu0 %vm1685_vm6, %v17551_v35  ;;  %17684 = vmatprep.subr.msk.mxu0 %vm661_vm1, %v24091_v57  ;;  %v21689_v57 = vld [vmem:[%s26989_s4 + $0x1624] ss:$8 sps:$4 sm:$0xff]   ;;  %v21765_v35 = vld [vmem:[%s26989_s4 + $0x17c0] ss:$8 sps:$4 sm:$0xff]  }
 0x8be   : > { %17685 = vmatpush1.msk.msra.mxu0 %vm661_vm1, %v24089_v56  ;;  %6796 = vmatprep.mubr.f32.mxu0 %v22102_v26  ;;  %v21684_v56 = vld [vmem:[%s26989_s4 + $0x1610] ss:$8 sps:$4 sm:$0xff]   ;;  %v21773_v40 = vld [vmem:[%s26989_s4 + $0x17e4] ss:$8 sps:$4 sm:$0xff]  }
 0x8bf   : > { %7190 = vmatprep.subr.bf16.mxu0 %v21683_v38  ;;  %v21768_v38 = vld [vmem:[%s26989_s4 + $0x17d0] ss:$8 sps:$4 sm:$0xff]  }
 0x8c5   : > { %17686 = vmatmul.mubr.msk.f32.vlgmr.msra.gmra.mrb[8].mxu0 %vm1685_vm6, %v17683_v41  ;;  %v21776_v41 = vld [vmem:[%s26989_s4 + $0x17f4] ss:$8 sps:$4 sm:$0xff]  }
 0x8c6   : > { %7191 = vmatpush1.bf16.msra.mxu0 %v21681_v20  ;;  %7222 = vmatprep.mubr.bf16.mxu0 %v22469_v30  ;;  %v21690_v30 = vld [vmem:[%s26989_s4 + $0x1630] ss:$8 sps:$4 sm:$0xff]   ;;  %v21771_v20 = vld [vmem:[%s26989_s4 + $0x17e0] ss:$8 sps:$4 sm:$0xff]  }
 0x8c7   : > { %7192 = vmatprep.subr.bf16.mxu0 %v21686_v42  ;;  %v21774_v42 = vld [vmem:[%s26989_s4 + $0x17f0] ss:$8 sps:$4 sm:$0xff]  }
 0x8ca   : > { %7193 = vmatpush1.bf16.msra.mxu0 %v21684_v56 }
 0x8cb   : > { %7194 = vmatprep.subr.bf16.mxu0 %v21689_v57 }
 0x8ce   : > { %7195 = vmatpush1.bf16.msra.mxu0 %v21687_v43  ;;  %v17815_v43 = vld [vmem:[%s26990_s5 + $0x58] sm:$0xff] }
 0x8cf   : > { %7196 = vmatprep.subr.bf16.mxu0 %v21692_v44 }
 0x8d2   : > { %7197 = vmatpush1.bf16.msra.mxu0 %v21690_v30 }
 0x8d3   : > { %7198 = vmatprep.subr.bf16.mxu0 %v21695_v45 }
 0x8d6   : > { %7199 = vmatpush1.bf16.msra.mxu0 %v21693_v46 }
 0x8d7   : > { %7200 = vmatprep.subr.bf16.mxu0 %v21698_v47 }
 0x8da   : > { %7201 = vmatpush1.bf16.msra.mxu0 %v21696_v48 }
 0x8db   : > { %7202 = vmatprep.subr.bf16.mxu0 %v21701_v63 }
 0x8de   : > { %7203 = vmatpush1.bf16.msra.mxu0 %v21699_v1 }
 0x8df   : > { %7204 = vmatprep.subr.bf16.mxu0 %v21704_v49 }
 0x8e2   : > { %7205 = vmatpush1.bf16.msra.mxu0 %v21702_v50 }
 0x8e3   : > { %7206 = vmatprep.subr.bf16.mxu0 %v21707_v51  ;;  %v21778_v51 = vld [vmem:[%s26993_s8 + $0x8] sm:$0xff]  }
 0x8e6   : > { %7207 = vmatpush1.bf16.msra.mxu0 %v21705_v52  ;;  %v21779_v52 = vld [vmem:[%s26993_s8 + $0x10] sm:$0xff]  }
 0x8e7   : > { %7208 = vmatprep.subr.bf16.mxu0 %v21710_v53  ;;  %v21780_v53 = vld [vmem:[%s26993_s8 + $0x18] sm:$0xff]  }
 0x8ea   : > { %7209 = vmatpush1.bf16.msra.mxu0 %v21708_v54  ;;  %v21781_v54 = vld [vmem:[%s26993_s8 + $0x20] sm:$0xff]  }
 0x8eb   : > { %7210 = vmatprep.subr.bf16.mxu0 %v21713_v55  ;;  %v21782_v55 = vld [vmem:[%s26993_s8 + $0x28] sm:$0xff]  }
 0x8ee   : > { %7211 = vmatpush1.bf16.msra.mxu0 %v21711_v58  ;;  %v21783_v58 = vld [vmem:[%s26993_s8 + $0x30] sm:$0xff]  }
 0x8ef   : > { %7212 = vmatprep.subr.bf16.mxu0 %v21716_v59  ;;  %v21784_v59 = vld [vmem:[%s26993_s8 + $0x38] sm:$0xff]  }
 0x8f2   : > { %7213 = vmatpush1.bf16.msra.mxu0 %v21714_v60  ;;  %v21785_v60 = vld [vmem:[%s26993_s8 + $0x40] sm:$0xff]  }
 0x8f3   : > { %7214 = vmatprep.subr.bf16.mxu0 %v21719_v62  ;;  %v21786_v62 = vld [vmem:[%s26993_s8 + $0x48] sm:$0xff]  }
 0x8f6   : > { %7215 = vmatpush1.bf16.msra.mxu0 %v21717_v2  ;;  %v21787_v2 = vld [vmem:[%s26993_s8 + $0x50] sm:$0xff]  }
 0x8f7   : > { %7216 = vmatprep.subr.bf16.mxu0 %v21722_v3  ;;  %v21788_v3 = vld [vmem:[%s26993_s8 + $0x58] sm:$0xff]  }
 0x8fa   : > { %7217 = vmatpush1.bf16.msra.mxu0 %v21720_v4 }
 0x8fb   : > { %7218 = vmatprep.subr.bf16.mxu0 %v21725_v5 }
 0x8fe   : > { %7219 = vmatpush1.bf16.msra.mxu0 %v21723_v6 }
 0x8ff   : > { %7220 = vmatprep.subr.bf16.mxu0 %v21728_v7 }
 0x902   : > { %7221 = vmatpush1.bf16.msra.mxu0 %v21726_v8 }
 0x903   : > { %7231 = vmatprep.subr.bf16.mxu0 %v21731_v11 }
 0x905   : > { %7223 = vmatmul.mubr.bf16.vlgmr.msra.gmra.mrb[28].mxu0 %v22467_v29  ;;  %v21740_v29 = vld [vmem:[%s26989_s4 + $0x1734] ss:$8 sps:$4 sm:$0xff]  }
 0x906   : > { %7232 = vmatpush1.bf16.msra.mxu0 %v21729_v12  ;;  %7263 = vmatprep.mubr.bf16.mxu0 %v22485_v37  ;;  %v21738_v37 = vld [vmem:[%s26989_s4 + $0x1730] ss:$8 sps:$4 sm:$0xff]  }
 0x907   : > { %7233 = vmatprep.subr.bf16.mxu0 %v21734_v9 }
 0x90a   : > { %7234 = vmatpush1.bf16.msra.mxu0 %v21732_v10 }
 0x90b   : > { %7235 = vmatprep.subr.bf16.mxu0 %v21737_v13 }
 0x90e   : > { %7236 = vmatpush1.bf16.msra.mxu0 %v21735_v14 }
 0x90f   : > { %7237 = vmatprep.subr.bf16.mxu0 %v21740_v29 }
 0x912   : > { %7238 = vmatpush1.bf16.msra.mxu0 %v21738_v37 }
 0x913   : > { %7239 = vmatprep.subr.bf16.mxu0 %v21743_v15 }
 0x916   : > { %7240 = vmatpush1.bf16.msra.mxu0 %v21741_v16 }
 0x917   : > { %7241 = vmatprep.subr.bf16.mxu0 %v21746_v17 }
 0x91a   : > { %7242 = vmatpush1.bf16.msra.mxu0 %v21744_v18 }
 0x91b   : > { %7243 = vmatprep.subr.bf16.mxu0 %v21749_v19 }
 0x91e   : > { %7244 = vmatpush1.bf16.msra.mxu0 %v21747_v31 }
 0x91f   : > { %7245 = vmatprep.subr.bf16.mxu0 %v21752_v32 }
 0x922   : > { %7246 = vmatpush1.bf16.msra.mxu0 %v21750_v21 }
 0x923   : > { %7247 = vmatprep.subr.bf16.mxu0 %v21755_v22 }
 0x926   : > { %7248 = vmatpush1.bf16.msra.mxu0 %v21753_v23 }
 0x927   : > { %7249 = vmatprep.subr.bf16.mxu0 %v21758_v61  ;;  %v7356_v61 = vld [vmem:[%s26991_s6] sm:$0xff] }
 0x92a   : > { %7250 = vmatpush1.bf16.msra.mxu0 %v21756_v27  ;;  %v7357_v27 = vld [vmem:[%s26991_s6 + $0x8] sm:$0xff] }
 0x92b   : > { %7251 = vmatprep.subr.bf16.mxu0 %v21761_v24 }
 0x92e   : > { %7252 = vmatpush1.bf16.msra.mxu0 %v21759_v25 }
 0x92f   : > { %7253 = vmatprep.subr.bf16.mxu0 %v21764_v28  ;;  %v7358_v28 = vld [vmem:[%s26992_s7] sm:$0xff] }
 0x932   : > { %7254 = vmatpush1.bf16.msra.mxu0 %v21762_v33  ;;  %v7359_v33 = vld [vmem:[%s26992_s7 + $0x8] sm:$0xff] }
 0x933   : > { %7255 = vmatprep.subr.bf16.mxu0 %v21767_v34 }
 0x936   : > { %7256 = vmatpush1.bf16.msra.mxu0 %v21765_v35 }
 0x937   : > { %7257 = vmatprep.subr.bf16.mxu0 %v21770_v36 }
 0x93a   : > { %7258 = vmatpush1.bf16.msra.mxu0 %v21768_v38 }
 0x93b   : > { %7259 = vmatprep.subr.bf16.mxu0 %v21773_v40 }
 0x93e   : > { %7260 = vmatpush1.bf16.msra.mxu0 %v21771_v20 }
 0x93f   : > { %7261 = vmatprep.subr.bf16.mxu0 %v21776_v41 }
 0x942   : > { %7262 = vmatpush1.bf16.msra.mxu0 %v21774_v42 }
 0x945   : > { %7264 = vmatmul.mubr.bf16.vlgmr.msra.gmra.mrb[28].mxu0 %v22668_v39  ;;  %v21777_v39 = vld [vmem:[%s26993_s8] sm:$0xff]  }
 0x946   : > { %7347 = vmatprep.mubr.f32.mxu0 %v22102_v26  ;;  %7506 = vmatpush1.bf16.msra.mxu1 %v21777_v39  ;;  %v21792_v39 = vld [vmem:[%s26993_s8 + $0x78] sm:$0xff]  }
 0x947   : > { %7507 = vmatprep.subr.bf16.mxu1 %v22101_v0 }
 0x94a   : > { %7508 = vmatpush1.bf16.msra.mxu1 %v21778_v51  ;;  %v21801_v51 = vld [vmem:[%s26993_s8 + $0x120] sm:$0xff]  }
 0x94b   : > { %7509 = vmatprep.subr.bf16.mxu1 %v22101_v0 }
 0x94e   : > { %7510 = vmatpush1.bf16.msra.mxu1 %v21779_v52  ;;  %v21802_v52 = vld [vmem:[%s26993_s8 + $0x128] sm:$0xff]  }
 0x94f   : > { %7511 = vmatprep.subr.bf16.mxu1 %v22101_v0 }
 0x952   : > { %7512 = vmatpush1.bf16.msra.mxu1 %v21780_v53  ;;  %v21803_v53 = vld [vmem:[%s26993_s8 + $0x130] sm:$0xff]  }
 0x953   : > { %7513 = vmatprep.subr.bf16.mxu1 %v22101_v0 }
 0x956   : > { %7514 = vmatpush1.bf16.msra.mxu1 %v21781_v54  ;;  %v21804_v54 = vld [vmem:[%s26993_s8 + $0x138] sm:$0xff]  }
 0x957   : > { %7515 = vmatprep.subr.bf16.mxu1 %v22101_v0 }
 0x95a   : > { %7516 = vmatpush1.bf16.msra.mxu1 %v21782_v55  ;;  %v21805_v55 = vld [vmem:[%s26993_s8 + $0x140] sm:$0xff]  }
 0x95b   : > { %7517 = vmatprep.subr.bf16.mxu1 %v22101_v0 }
 0x95e   : > { %7518 = vmatpush1.bf16.msra.mxu1 %v21783_v58  ;;  %v21806_v58 = vld [vmem:[%s26993_s8 + $0x148] sm:$0xff]  }
 0x95f   : > { %7519 = vmatprep.subr.bf16.mxu1 %v22101_v0 }
 0x962   : > { %7520 = vmatpush1.bf16.msra.mxu1 %v21784_v59  ;;  %v21807_v59 = vld [vmem:[%s26993_s8 + $0x150] sm:$0xff]  }
 0x963   : > { %7521 = vmatprep.subr.bf16.mxu1 %v22101_v0 }
 0x966   : > { %7522 = vmatpush1.bf16.msra.mxu1 %v21785_v60  ;;  %v21808_v60 = vld [vmem:[%s26993_s8 + $0x158] sm:$0xff]  }
 0x967   : > { %7523 = vmatprep.subr.bf16.mxu1 %v22101_v0 }
 0x96a   : > { %7524 = vmatpush1.bf16.msra.mxu1 %v21786_v62  ;;  %v21809_v62 = vld [vmem:[%s26993_s8 + $0x160] sm:$0xff]  }
 0x96b   : > { %7525 = vmatprep.subr.bf16.mxu1 %v22101_v0 }
 0x96e   : > { %7526 = vmatpush1.bf16.msra.mxu1 %v21787_v2  ;;  %v21810_v2 = vld [vmem:[%s26993_s8 + $0x168] sm:$0xff]  }
 0x96f   : > { %7527 = vmatprep.subr.bf16.mxu1 %v22101_v0 }
 0x972   : > { %7528 = vmatpush1.bf16.msra.mxu1 %v21788_v3  ;;  %v21811_v3 = vld [vmem:[%s26993_s8 + $0x170] sm:$0xff]  }
 0x973   : > { %7644 = vmatprep.subr.bf16.mxu1 %v22101_v0 }
 0xa18   : > { %v7265_v56 = vpop.f32.mrb[28].mxu0 }
 0xa19   : > { %v7267_v57 = vpop.f32.mrb[29].mxu0 }
 0xa1a   : > { %v7269_v44 = vpop.f32.mrb[30].mxu0  ;;  %17816 = vmatprep.subr.msk.mxu0 %vm661_vm1, %v7267_v57 }
 0xa1b   : > { %v7270_v30 = vpop.f32.mrb[31].mxu0  ;;  %17817 = vmatpush1.msk.msra.mxu0 %vm661_vm1, %v7265_v56  ;;  %v21790_v44 = vld [vmem:[%s26993_s8 + $0x68] sm:$0xff]   ;;  %vm16121_vm1 = vcmask 146432  }
 0xa1c   : > { %17818 = vmatmul.mubr.msk.f32.vlgmr.msra.gmra.mrb[8].mxu0 %vm1685_vm6, %v17815_v43  ;;  %v21789_v43 = vld [vmem:[%s26993_s8 + $0x60] sm:$0xff]   ;;  %v21791_v30 = vld [vmem:[%s26993_s8 + $0x70] sm:$0xff]  }
 0xaef   : > { %v24739_v45 = vpop.f32.mrb[8].mxu0 }
 0xaf0   : > { %v24741_v46 = vpop.f32.mrb[9].mxu0  ;;  %v7371_v1 = vmul.f32 %v24739_v45, %v24739_v45 }
 0xaf1   : > { %v7372_v47 = vmul.f32 %v24741_v46, %v24741_v46  ;;  %v7361_v48 = vsel %vm7360_vm7, %v24741_v46, 0.0 }
 0xaf2   : > { %v7362_v63 = vadd.f32 %v7361_v48, %v24739_v45  ;;  %v21796_v48 = vld [vmem:[%s26993_s8 + $0x98] sm:$0xff]  }
 0xaf3   : > { %v7373_v49 = vsel %vm7360_vm7, %v7372_v47, 0.0  ;;  %v21795_v47 = vld [vmem:[%s26993_s8 + $0x90] sm:$0xff]  }
 0xaf4   : > { %7363 = vadd.xlane.f32.xlu1 %v7362_v63  ;;  %v7374_v50 = vadd.f32 %v7373_v49, %v7371_v1  ;;  %v21797_v63 = vld [vmem:[%s26993_s8 + $0xa0] sm:$0xff]   ;;  %v21798_v1 = vld [vmem:[%s26993_s8 + $0xa8] sm:$0xff]   ;;  %v21799_v49 = vld [vmem:[%s26993_s8 + $0xb0] sm:$0xff]  }
 0xaf8   : > { %7375 = vadd.xlane.f32.xlu1 %v7374_v50  ;;  %v21800_v50 = vld [vmem:[%s26993_s8 + $0xb8] sm:$0xff]  }
 0xb81   : > { %v7364_v4 = vpop.xlane.xlu1 %7363 }
 0xb82   : > { %v7365_v5 = vrot.slane %v7364_v4, 4 }
 0xb84   : > { %v7366_v6 = vadd.f32 %v7365_v5, %v7364_v4  ;;  %v21812_v4 = vld [vmem:[%s26993_s8 + $0x178] sm:$0xff]   ;;  %v21813_v5 = vld [vmem:[%s26993_s8 + $0x1e0] sm:$0xff]  }
 0xb85   : > { %v7376_v7 = vpop.xlane.xlu1 %7375 }
 0xb86   : > { %v7367_v8 = vrot.slane %v7366_v6, 2  ;;  %v7377_v11 = vrot.slane %v7376_v7, 4 }
 0xb88   : > { %v7368_v12 = vadd.f32 %v7367_v8, %v7366_v6  ;;  %v7378_v9 = vadd.f32 %v7377_v11, %v7376_v7  ;;  %v21814_v6 = vld [vmem:[%s26993_s8 + $0x1e8] sm:$0xff]   ;;  %v21815_v7 = vld [vmem:[%s26993_s8 + $0x1f0] sm:$0xff]   ;;  %v21816_v8 = vld [vmem:[%s26993_s8 + $0x1f8] sm:$0xff]  }
 0xb89   : > { %v21817_v11 = vld [vmem:[%s26993_s8 + $0x200] sm:$0xff]  }
 0xb8a   : > { %v7369_v10 = vrot.slane %v7368_v12, 1  ;;  %v7379_v13 = vrot.slane %v7378_v9, 2 }
 0xb8c   : > { %v7370_v14 = vadd.f32 %v7369_v10, %v7368_v12  ;;  %v7380_v29 = vadd.f32 %v7379_v13, %v7378_v9  ;;  %v21818_v12 = vld [vmem:[%s26993_s8 + $0x208] sm:$0xff]   ;;  %v21819_v9 = vld [vmem:[%s26993_s8 + $0x210] sm:$0xff]   ;;  %v21820_v10 = vld [vmem:[%s26993_s8 + $0x218] sm:$0xff]  }
 0xb8d   : > { %v21821_v13 = vld [vmem:[%s26993_s8 + $0x220] sm:$0xff]  }
 0xb8e   : > { %v7383_v37 = vmul.f32 0.0006510417, %v7370_v14  ;;  %v7381_v15 = vrot.slane %v7380_v29, 1  ;;  %v21822_v14 = vld [vmem:[%s26993_s8 + $0x228] sm:$0xff]  }
 0xb90   : > { %v7382_v16 = vadd.f32 %v7381_v15, %v7380_v29  ;;  %v7385_v17 = vmul.f32 %v7383_v37, %v7383_v37  ;;  %v7388_v21 = vsub.f32 %v24739_v45, %v7383_v37  ;;  %v7389_v22 = vsub.f32 %v24741_v46, %v7383_v37  ;;  %v21793_v45 = vld [vmem:[%s26993_s8 + $0x80] sm:$0xff]   ;;  %v21794_v46 = vld [vmem:[%s26993_s8 + $0x88] sm:$0xff]   ;;  %v17869_v29 = vld [vmem:[%s26994_s9 + $0x10] sm:$0xff] }
 0xb91   : > { %v21823_v37 = vld [vmem:[%s26993_s8 + $0x230] sm:$0xff]   ;;  %19434 = vmatprep.mubr.msk.f32.mxu0 %vm7687_vm10, %v17869_v29  ;;  %v21824_v15 = vld [vmem:[%s26993_s8 + $0x238] sm:$0xff]  }
 0xb92   : > { %v7384_v18 = vmul.f32 0.0006510417, %v7382_v16  ;;  %v21825_v16 = vld [vmem:[%s26993_s8 + $0x240] sm:$0xff]  }
 0xb94   : > { %v7386_v19 = vsub.f32 %v7384_v18, %v7385_v17  ;;  %v21826_v17 = vld [vmem:[%s26993_s8 + $0x248] sm:$0xff]   ;;  %v21827_v18 = vld [vmem:[%s26993_s8 + $0x250] sm:$0xff]  }
 0xb96   : > { %v7387_v31 = vmax.f32 %v7386_v19, 0.0  ;;  %v21828_v19 = vld [vmem:[%s26993_s8 + $0x258] sm:$0xff]  }
 0xb98   : > { %v7390_v32 = vadd.f32 1e-05, %v7387_v31  ;;  %v21829_v31 = vld [vmem:[%s26993_s8 + $0x260] sm:$0xff]  }
 0xb9a   : > { %22083 = vrsqrt.f32 %v7390_v32  ;;  %v21830_v32 = vld [vmem:[%s26993_s8 + $0x268] sm:$0xff]  }
 0xba4   : > { %v22084_v23 = vpop.eup %22083 }
 0xba5   : > { %v7392_v24 = vmul.f32 %v22084_v23, %v7388_v21  ;;  %v7393_v25 = vmul.f32 %v22084_v23, %v7389_v22  ;;  %v21831_v21 = vld [vmem:[%s26993_s8 + $0x270] sm:$0xff]   ;;  %v21832_v22 = vld [vmem:[%s26993_s8 + $0x278] sm:$0xff]   ;;  %v21833_v23 = vld [vmem:[%s26993_s8 + $0x280] sm:$0xff]  }
 0xba7   : > { %v7394_v34 = vmul.f32 %v7392_v24, %v7356_v61  ;;  %v7395_v35 = vmul.f32 %v7393_v25, %v7357_v27  ;;  %v21834_v61 = vld [vmem:[%s26993_s8 + $0x288] sm:$0xff]   ;;  %v21835_v27 = vld [vmem:[%s26993_s8 + $0x290] sm:$0xff]   ;;  %v21836_v24 = vld [vmem:[%s26993_s8 + $0x298] sm:$0xff]  }
 0xba8   : > { %v21837_v25 = vld [vmem:[%s26993_s8 + $0x300] sm:$0xff]  }
 0xba9   : > { %v7396_v36 = vadd.f32 %v7394_v34, %v7358_v28  ;;  %v7397_v38 = vadd.f32 %v7395_v35, %v7359_v33  ;;  %v21838_v28 = vld [vmem:[%s26993_s8 + $0x308] sm:$0xff]   ;;  %v21839_v33 = vld [vmem:[%s26993_s8 + $0x310] sm:$0xff]   ;;  %v21840_v34 = vld [vmem:[%s26993_s8 + $0x318] sm:$0xff]  }
 0xbaa   : > { %v21841_v35 = vld [vmem:[%s26993_s8 + $0x320] sm:$0xff]  }
 0xbab   : > { %vm7398_vm8 = vcmp.ge.f32.partialorder %v7396_v36, 0.0  ;;  %vm7399_vm9 = vcmp.ge.f32.partialorder %v7397_v38, 0.0  ;;  %v7400_v40 = vmul.f32 0.2, %v7396_v36  ;;  %v7401_v20 = vmul.f32 0.2, %v7397_v38 }
 0xbad   : > { %v7402_v41 = vsel %vm7398_vm8, %v7396_v36, %v7400_v40  ;;  %v7403_v42 = vsel %vm7399_vm9, %v7397_v38, %v7401_v20  ;;  %v21842_v36 = vld [vmem:[%s26993_s8 + $0x328] sm:$0xff]  }
 0xbae   : > { %v24809_v56 = vpack.c.bf16 %v7402_v41, %v7402_v41  ;;  %v24811_v57 = vpack.c.bf16 %v7403_v42, %v7403_v42  ;;  %v21843_v41 = vld [vmem:[%s26993_s8 + $0x330] sm:$0xff]  }
 0xbb0   : > { %17831 = vmatprep.mubr.msk.bf16.mxu1 %vm7360_vm7, %v24811_v57 }
 0xbb1   : > { %7538 = vmatmul.mubr.bf16.vlgmr.msra.gmra.mrb[28].mxu1 %v24809_v56 }
 0xbb2   : > { %7645 = vmatpush1.bf16.msra.mxu1 %v21789_v43  ;;  %17868 = vmatprep.mubr.msk.bf16.mxu1 %vm7360_vm7, %v24811_v57  ;;  %v21844_v43 = vld [vmem:[%s26993_s8 + $0x338] sm:$0xff]  }
 0xbb3   : > { %7646 = vmatprep.subr.bf16.mxu1 %v22101_v0 }
 0xbb6   : > { %7647 = vmatpush1.bf16.msra.mxu1 %v21790_v44  ;;  %v21845_v44 = vld [vmem:[%s26993_s8 + $0x340] sm:$0xff]  }
 0xbb7   : > { %7648 = vmatprep.subr.bf16.mxu1 %v22101_v0 }
 0xbba   : > { %7649 = vmatpush1.bf16.msra.mxu1 %v21791_v30  ;;  %v21846_v30 = vld [vmem:[%s26993_s8 + $0x348] sm:$0xff]  }
 0xbbb   : > { %7650 = vmatprep.subr.bf16.mxu1 %v22101_v0 }
 0xbbe   : > { %7651 = vmatpush1.bf16.msra.mxu1 %v21792_v39  ;;  %v21847_v39 = vld [vmem:[%s26993_s8 + $0x350] sm:$0xff]  }
 0xbbf   : > { %7652 = vmatprep.subr.bf16.mxu1 %v22101_v0 }
 0xbc2   : > { %7653 = vmatpush1.bf16.msra.mxu1 %v21793_v45  ;;  %v21848_v45 = vld [vmem:[%s26993_s8 + $0x358] sm:$0xff]  }
 0xbc3   : > { %7654 = vmatprep.subr.bf16.mxu1 %v22101_v0 }
 0xbc6   : > { %7655 = vmatpush1.bf16.msra.mxu1 %v21794_v46  ;;  %v21849_v46 = vld [vmem:[%s26993_s8 + $0x3c0] sm:$0xff]  }
 0xbc7   : > { %7656 = vmatprep.subr.bf16.mxu1 %v22101_v0 }
 0xbca   : > { %7657 = vmatpush1.bf16.msra.mxu1 %v21795_v47  ;;  %v21850_v47 = vld [vmem:[%s26993_s8 + $0x3c8] sm:$0xff]  }
 0xbcb   : > { %7658 = vmatprep.subr.bf16.mxu1 %v22101_v0 }
 0xbce   : > { %7659 = vmatpush1.bf16.msra.mxu1 %v21796_v48  ;;  %v21851_v48 = vld [vmem:[%s26993_s8 + $0x3d0] sm:$0xff]  }
 0xbcf   : > { %7660 = vmatprep.subr.bf16.mxu1 %v22101_v0 }
 0xbd2   : > { %7661 = vmatpush1.bf16.msra.mxu1 %v21797_v63  ;;  %v21852_v63 = vld [vmem:[%s26993_s8 + $0x3d8] sm:$0xff]  }
 0xbd3   : > { %7662 = vmatprep.subr.bf16.mxu1 %v22101_v0 }
 0xbd6   : > { %7663 = vmatpush1.bf16.msra.mxu1 %v21798_v1  ;;  %v21853_v1 = vld [vmem:[%s26993_s8 + $0x3e0] sm:$0xff]  }
 0xbd7   : > { %7664 = vmatprep.subr.bf16.mxu1 %v22101_v0 }
 0xbda   : > { %7665 = vmatpush1.bf16.msra.mxu1 %v21799_v49  ;;  %v21854_v49 = vld [vmem:[%s26993_s8 + $0x3e8] sm:$0xff]  }
 0xbdb   : > { %7666 = vmatprep.subr.bf16.mxu1 %v22101_v0 }
 0xbde   : > { %7667 = vmatpush1.bf16.msra.mxu1 %v21800_v50 }
 0xbdf   : > { %8170 = vmatprep.subr.bf16.mxu1 %v22101_v0 }
 0xbe1   : > { %7677 = vmatmul.mubr.bf16.vlgmr.msra.gmra.mrb[32].mxu1 %v24809_v56 }
 0xbe2   : > { %8171 = vmatpush1.bf16.msra.mxu1 %v21801_v51  ;;  %17952 = vmatprep.mubr.msk.bf16.mxu1 %vm7360_vm7, %v24811_v57  ;;  %v17870_v51 = vld [vmem:[%s26994_s9 + $0x18] sm:$0xff] }
 0xbe3   : > { %8172 = vmatprep.subr.bf16.mxu1 %v22101_v0 }
 0xbe6   : > { %8173 = vmatpush1.bf16.msra.mxu1 %v21802_v52 }
 0xbe7   : > { %8174 = vmatprep.subr.bf16.mxu1 %v22101_v0 }
 0xbea   : > { %8175 = vmatpush1.bf16.msra.mxu1 %v21803_v53 }
 0xbeb   : > { %8176 = vmatprep.subr.bf16.mxu1 %v22101_v0 }
 0xbee   : > { %8177 = vmatpush1.bf16.msra.mxu1 %v21804_v54  ;;  %v21855_v54 = vld [vmem:[%s26993_s8 + $0x3f0] sm:$0xff]  }
 0xbef   : > { %8178 = vmatprep.subr.bf16.mxu1 %v22101_v0 }
 0xbf2   : > { %8179 = vmatpush1.bf16.msra.mxu1 %v21805_v55  ;;  %v7545_v55 = vld [vmem:[%s26994_s9] sm:$0xff] }
 0xbf3   : > { %8180 = vmatprep.subr.bf16.mxu1 %v22101_v0 }
 0xbf6   : > { %8181 = vmatpush1.bf16.msra.mxu1 %v21806_v58 }
 0xbf7   : > { %8182 = vmatprep.subr.bf16.mxu1 %v22101_v0 }
 0xbfa   : > { %8183 = vmatpush1.bf16.msra.mxu1 %v21807_v59  ;;  %v21856_v59 = vld [vmem:[%s26993_s8 + $0x3f8] sm:$0xff]  }
 0xbfb   : > { %8184 = vmatprep.subr.bf16.mxu1 %v22101_v0 }
 0xbfe   : > { %8185 = vmatpush1.bf16.msra.mxu1 %v21808_v60  ;;  %v7546_v60 = vld [vmem:[%s26994_s9 + $0x8] sm:$0xff] }
 0xbff   : > { %8186 = vmatprep.subr.bf16.mxu1 %v22101_v0 }
 0xc02   : > { %8187 = vmatpush1.bf16.msra.mxu1 %v21809_v62  ;;  %v21857_v62 = vld [vmem:[%s26993_s8 + $0xc0] sm:$0xff]  }
 0xc03   : > { %8188 = vmatprep.subr.bf16.mxu1 %v22101_v0 }
 0xc06   : > { %8189 = vmatpush1.bf16.msra.mxu1 %v21810_v2  ;;  %v21858_v2 = vld [vmem:[%s26993_s8 + $0x400] sm:$0xff]  }
 0xc07   : > { %8190 = vmatprep.subr.bf16.mxu1 %v22101_v0 }
 0xc0a   : > { %8191 = vmatpush1.bf16.msra.mxu1 %v21811_v3  ;;  %v21859_v3 = vld [vmem:[%s26993_s8 + $0xc8] sm:$0xff]  }
 0xc0b   : > { %8192 = vmatprep.subr.bf16.mxu1 %v22101_v0 }
 0xc0e   : > { %8193 = vmatpush1.bf16.msra.mxu1 %v21812_v4  ;;  %v21860_v4 = vld [vmem:[%s26993_s8 + $0x408] sm:$0xff]  }
 0xc0f   : > { %8616 = vmatprep.subr.bf16.mxu1 %v22101_v0 }
 0xc11   : > { %8203 = vmatmul.mubr.bf16.vlgmr.msra.gmra.mrb[36].mxu1 %v24809_v56 }
 0xc12   : > { %8617 = vmatpush1.bf16.msra.mxu1 %v21813_v5  ;;  %18034 = vmatprep.mubr.msk.bf16.mxu1 %vm7360_vm7, %v24811_v57  ;;  %v21861_v5 = vld [vmem:[%s26993_s8 + $0xd0] sm:$0xff]  }
 0xc13   : > { %8618 = vmatprep.subr.bf16.mxu1 %v22101_v0 }
 0xc16   : > { %8619 = vmatpush1.bf16.msra.mxu1 %v21814_v6  ;;  %v21862_v6 = vld [vmem:[%s26993_s8 + $0x410] sm:$0xff]  }
 0xc17   : > { %8620 = vmatprep.subr.bf16.mxu1 %v22101_v0 }
 0xc1a   : > { %8621 = vmatpush1.bf16.msra.mxu1 %v21815_v7  ;;  %v21863_v7 = vld [vmem:[%s26993_s8 + $0xd8] sm:$0xff]  }
 0xc1b   : > { %8622 = vmatprep.subr.bf16.mxu1 %v22101_v0 }
 0xc1e   : > { %8623 = vmatpush1.bf16.msra.mxu1 %v21816_v8  ;;  %v21864_v8 = vld [vmem:[%s26993_s8 + $0x418] sm:$0xff]  }
 0xc1f   : > { %8624 = vmatprep.subr.bf16.mxu1 %v22101_v0 }
 0xc22   : > { %8625 = vmatpush1.bf16.msra.mxu1 %v21817_v11  ;;  %v21865_v11 = vld [vmem:[%s26993_s8 + $0xe0] sm:$0xff]  }
 0xc23   : > { %8626 = vmatprep.subr.bf16.mxu1 %v22101_v0 }
 0xc26   : > { %8627 = vmatpush1.bf16.msra.mxu1 %v21818_v12  ;;  %v21866_v12 = vld [vmem:[%s26993_s8 + $0xe8] sm:$0xff]  }
 0xc27   : > { %8628 = vmatprep.subr.bf16.mxu1 %v22101_v0 }
 0xc2a   : > { %8629 = vmatpush1.bf16.msra.mxu1 %v21819_v9  ;;  %v21867_v9 = vld [vmem:[%s26993_s8 + $0xf0] sm:$0xff]  }
 0xc2b   : > { %8630 = vmatprep.subr.bf16.mxu1 %v22101_v0 }
 0xc2e   : > { %8631 = vmatpush1.bf16.msra.mxu1 %v21820_v10  ;;  %v21868_v10 = vld [vmem:[%s26993_s8 + $0xf8] sm:$0xff]  }
 0xc2f   : > { %8632 = vmatprep.subr.bf16.mxu1 %v22101_v0 }
 0xc32   : > { %8633 = vmatpush1.bf16.msra.mxu1 %v21821_v13  ;;  %v21869_v13 = vld [vmem:[%s26993_s8 + $0x100] sm:$0xff]  }
 0xc33   : > { %8634 = vmatprep.subr.bf16.mxu1 %v22101_v0 }
 0xc36   : > { %8635 = vmatpush1.bf16.msra.mxu1 %v21822_v14  ;;  %v21870_v14 = vld [vmem:[%s26993_s8 + $0x108] sm:$0xff]  }
 0xc37   : > { %8636 = vmatprep.subr.bf16.mxu1 %v22101_v0 }
 0xc3a   : > { %8637 = vmatpush1.bf16.msra.mxu1 %v21823_v37  ;;  %v21871_v37 = vld [vmem:[%s26993_s8 + $0x110] sm:$0xff]  }
 0xc3b   : > { %8638 = vmatprep.subr.bf16.mxu1 %v22101_v0 }
 0xc3e   : > { %8639 = vmatpush1.bf16.msra.mxu1 %v21824_v15 }
 0xc3f   : > { %8839 = vmatprep.subr.bf16.mxu1 %v22101_v0 }
 0xc41   : > { %8649 = vmatmul.mubr.bf16.vlgmr.msra.gmra.mrb[40].mxu1 %v24809_v56 }
 0xc42   : > { %8840 = vmatpush1.bf16.msra.mxu1 %v21825_v16  ;;  %18075 = vmatprep.mubr.msk.bf16.mxu1 %vm7360_vm7, %v24811_v57 }
 0xc43   : > { %8841 = vmatprep.subr.bf16.mxu1 %v22101_v0 }
 0xc46   : > { %8842 = vmatpush1.bf16.msra.mxu1 %v21826_v17 }
 0xc47   : > { %8843 = vmatprep.subr.bf16.mxu1 %v22101_v0 }
 0xc4a   : > { %8844 = vmatpush1.bf16.msra.mxu1 %v21827_v18  ;;  %v21872_v18 = vld [vmem:[%s26993_s8 + $0x118] sm:$0xff]  }
 0xc4b   : > { %8845 = vmatprep.subr.bf16.mxu1 %v22101_v0 }
 0xc4e   : > { %8846 = vmatpush1.bf16.msra.mxu1 %v21828_v19 }
 0xc4f   : > { %8847 = vmatprep.subr.bf16.mxu1 %v22101_v0 }
 0xc52   : > { %8848 = vmatpush1.bf16.msra.mxu1 %v21829_v31 }
 0xc53   : > { %8849 = vmatprep.subr.bf16.mxu1 %v22101_v0 }
 0xc56   : > { %8850 = vmatpush1.bf16.msra.mxu1 %v21830_v32 }
 0xc57   : > { %8851 = vmatprep.subr.bf16.mxu1 %v22101_v0 }
 0xc5a   : > { %8852 = vmatpush1.bf16.msra.mxu1 %v21831_v21 }
 0xc5b   : > { %8853 = vmatprep.subr.bf16.mxu1 %v22101_v0 }
 0xc5e   : > { %8854 = vmatpush1.bf16.msra.mxu1 %v21832_v22  ;;  %v17912_v22 = vld [vmem:[%s26994_s9 + $0x20] sm:$0xff] }
 0xc5f   : > { %8855 = vmatprep.subr.bf16.mxu1 %v22101_v0 }
 0xc62   : > { %8856 = vmatpush1.bf16.msra.mxu1 %v21833_v23 }
 0xc63   : > { %8857 = vmatprep.subr.bf16.mxu1 %v22101_v0 }
 0xc66   : > { %8858 = vmatpush1.bf16.msra.mxu1 %v21834_v61 }
 0xc67   : > { %8859 = vmatprep.subr.bf16.mxu1 %v22101_v0 }
 0xc6a   : > { %8860 = vmatpush1.bf16.msra.mxu1 %v21835_v27 }
 0xc6b   : > { %8861 = vmatprep.subr.bf16.mxu1 %v22101_v0 }
 0xc6e   : > { %8862 = vmatpush1.bf16.msra.mxu1 %v21836_v24 }
 0xc6f   : > { %9285 = vmatprep.subr.bf16.mxu1 %v22101_v0 }
 0xc71   : > { %8872 = vmatmul.mubr.bf16.vlgmr.msra.gmra.mrb[44].mxu1 %v24809_v56 }
 0xc72   : > { %9286 = vmatpush1.bf16.msra.mxu1 %v21837_v25  ;;  %18157 = vmatprep.mubr.msk.bf16.mxu1 %vm7360_vm7, %v24811_v57 }
 0xc73   : > { %9287 = vmatprep.subr.bf16.mxu1 %v22101_v0 }
 0xc76   : > { %9288 = vmatpush1.bf16.msra.mxu1 %v21838_v28 }
 0xc77   : > { %9289 = vmatprep.subr.bf16.mxu1 %v22101_v0 }
 0xc7a   : > { %9290 = vmatpush1.bf16.msra.mxu1 %v21839_v33 }
 0xc7b   : > { %9291 = vmatprep.subr.bf16.mxu1 %v22101_v0 }
 0xc7e   : > { %9292 = vmatpush1.bf16.msra.mxu1 %v21840_v34 }
 0xc7f   : > { %9293 = vmatprep.subr.bf16.mxu1 %v22101_v0 }
 0xc82   : > { %9294 = vmatpush1.bf16.msra.mxu1 %v21841_v35 }
 0xc83   : > { %9295 = vmatprep.subr.bf16.mxu1 %v22101_v0 }
 0xc84   : > { %v7539_v38 = vpop.f32.mrb[28].mxu1 }
 0xc85   : > { %v7541_v40 = vpop.f32.mrb[29].mxu1 }
 0xc86   : > { %9296 = vmatpush1.bf16.msra.mxu1 %v21842_v36  ;;  %v7542_v20 = vpop.f32.mrb[30].mxu1 }
 0xc87   : > { %v7543_v42 = vpop.f32.mrb[31].mxu1  ;;  %9297 = vmatprep.subr.bf16.mxu1 %v22101_v0 }
 0xc8a   : > { %9298 = vmatpush1.bf16.msra.mxu1 %v21843_v41  ;;  %v17913_v41 = vld [vmem:[%s26994_s9 + $0x28] sm:$0xff] }
 0xc8b   : > { %9299 = vmatprep.subr.bf16.mxu1 %v22101_v0 }
 0xc8e   : > { %9300 = vmatpush1.bf16.msra.mxu1 %v21844_v43  ;;  %v17953_v43 = vld [vmem:[%s26994_s9 + $0x30] sm:$0xff] }
 0xc8f   : > { %9301 = vmatprep.subr.bf16.mxu1 %v22101_v0 }
 0xc92   : > { %9302 = vmatpush1.bf16.msra.mxu1 %v21845_v44 }
 0xc93   : > { %9303 = vmatprep.subr.bf16.mxu1 %v22101_v0 }
 0xc96   : > { %9304 = vmatpush1.bf16.msra.mxu1 %v21846_v30 }
 0xc97   : > { %9305 = vmatprep.subr.bf16.mxu1 %v22101_v0 }
 0xc9a   : > { %9306 = vmatpush1.bf16.msra.mxu1 %v21847_v39  ;;  %v17954_v39 = vld [vmem:[%s26994_s9 + $0x38] sm:$0xff] }
 0xc9b   : > { %9307 = vmatprep.subr.bf16.mxu1 %v22101_v0 }
 0xc9e   : > { %9308 = vmatpush1.bf16.msra.mxu1 %v21848_v45  ;;  %v21873_v45 = vld [vmem:[%s26993_s8 + $0x180] sm:$0xff]  }
 0xc9f   : > { %9731 = vmatprep.subr.bf16.mxu1 %v22101_v0 }
 0xca1   : > { %9318 = vmatmul.mubr.bf16.vlgmr.msra.gmra.mrb[48].mxu1 %v24809_v56 }
 0xca2   : > { %9732 = vmatpush1.bf16.msra.mxu1 %v21849_v46  ;;  %18239 = vmatprep.mubr.msk.bf16.mxu1 %vm7360_vm7, %v24811_v57  ;;  %v21874_v46 = vld [vmem:[%s26993_s8 + $0x188] sm:$0xff]  }
 0xca3   : > { %9733 = vmatprep.subr.bf16.mxu1 %v22101_v0 }
 0xca6   : > { %9734 = vmatpush1.bf16.msra.mxu1 %v21850_v47  ;;  %v21875_v47 = vld [vmem:[%s26993_s8 + $0x190] sm:$0xff]  }
 0xca7   : > { %9735 = vmatprep.subr.bf16.mxu1 %v22101_v0 }
 0xcaa   : > { %9736 = vmatpush1.bf16.msra.mxu1 %v21851_v48  ;;  %v21876_v48 = vld [vmem:[%s26993_s8 + $0x198] sm:$0xff]  }
 0xcab   : > { %9737 = vmatprep.subr.bf16.mxu1 %v22101_v0 }
 0xcae   : > { %9738 = vmatpush1.bf16.msra.mxu1 %v21852_v63  ;;  %v21877_v63 = vld [vmem:[%s26993_s8 + $0x1a0] sm:$0xff]  }
 0xcaf   : > { %9739 = vmatprep.subr.bf16.mxu1 %v22101_v0 }
 0xcb2   : > { %9740 = vmatpush1.bf16.msra.mxu1 %v21853_v1  ;;  %v21878_v1 = vld [vmem:[%s26993_s8 + $0x1a8] sm:$0xff]  }
 0xcb3   : > { %9741 = vmatprep.subr.bf16.mxu1 %v22101_v0 }
 0xcb4   : > { %v7678_v50 = vpop.f32.mrb[32].mxu1 }
 0xcb5   : > { %v7680_v52 = vpop.f32.mrb[33].mxu1  ;;  %19432 = vmatprep.subr.mxu0 %v7678_v50 }
 0xcb6   : > { %v7681_v53 = vpop.f32.mrb[34].mxu1  ;;  %19433 = vmatpush3.msra.mxu0 %v7678_v50  ;;  %9742 = vmatpush1.bf16.msra.mxu1 %v21854_v49  ;;  %v21879_v49 = vld [vmem:[%s26993_s8 + $0x1b0] sm:$0xff]   ;;  %v21880_v50 = vld [vmem:[%s26993_s8 + $0x1b8] sm:$0xff]   ;;  %v21882_v52 = vld [vmem:[%s26993_s8 + $0x1c8] sm:$0xff]  }
 0xcb7   : > { %v7682_v58 = vpop.f32.mrb[35].mxu1  ;;  %19435 = vmatmul.mubr.msk.f32.vlgmr.msra.gmra.mrb[10].mxu0 %vm7687_vm10, %v17870_v51  ;;  %19437 = vmatprep.subr.mxu0 %v7539_v38  ;;  %v21881_v51 = vld [vmem:[%s26993_s8 + $0x1c0] sm:$0xff]   ;;  %v21883_v53 = vld [vmem:[%s26993_s8 + $0x1d0] sm:$0xff]  }
 0xcb8   : > { %19438 = vmatpush3.msra.mxu0 %v7539_v38  ;;  %9743 = vmatprep.subr.bf16.mxu1 %v22101_v0 }
 0xcb9   : > { %19439 = vmatprep.mubr.msk.f32.mxu0 %vm7687_vm10, %v7545_v55  ;;  %7947 = vmatprep.subr.bf16.mxu0 %v22101_v0  ;;  %v17994_v55 = vld [vmem:[%s26994_s9 + $0x40] sm:$0xff] }
 0xcba   : > { %9744 = vmatpush1.bf16.msra.mxu1 %v21855_v54  ;;  %v21884_v54 = vld [vmem:[%s26993_s8 + $0x1d8] sm:$0xff]  }
 0xcbb   : > { %9745 = vmatprep.subr.bf16.mxu1 %v22101_v0 }
 0xcbe   : > { %9746 = vmatpush1.bf16.msra.mxu1 %v21856_v59  ;;  %v17995_v59 = vld [vmem:[%s26994_s9 + $0x48] sm:$0xff] }
 0xcbf   : > { %19440 = vmatmul.mubr.msk.f32.vlgmr.msra.gmra.mrb[10].mxu0 %vm7687_vm10, %v7546_v60  ;;  %9747 = vmatprep.subr.bf16.mxu1 %v22101_v0 }
 0xcc0   : > { %7948 = vmatpush1.bf16.msra.mxu0 %v21857_v62  ;;  %17911 = vmatprep.mubr.msk.bf16.mxu0 %vm7360_vm7, %v24811_v57  ;;  %v18035_v62 = vld [vmem:[%s26994_s9 + $0x50] sm:$0xff] }
 0xcc1   : > { %7949 = vmatprep.subr.bf16.mxu0 %v22101_v0 }
 0xcc2   : > { %9748 = vmatpush1.bf16.msra.mxu1 %v21858_v2 }
 0xcc3   : > { %9749 = vmatprep.subr.bf16.mxu1 %v22101_v0 }
 0xcc4   : > { %7950 = vmatpush1.bf16.msra.mxu0 %v21859_v3 }
 0xcc5   : > { %7951 = vmatprep.subr.bf16.mxu0 %v22101_v0 }
 0xcc6   : > { %9750 = vmatpush1.bf16.msra.mxu1 %v21860_v4  ;;  %v18036_v4 = vld [vmem:[%s26994_s9 + $0x58] sm:$0xff] }
 0xcc7   : > { %9751 = vmatprep.subr.bf16.mxu1 %v22101_v0 }
 0xcc8   : > { %7952 = vmatpush1.bf16.msra.mxu0 %v21861_v5  ;;  %v18076_v5 = vld [vmem:[%s26994_s9 + $0x60] sm:$0xff] }
 0xcc9   : > { %7953 = vmatprep.subr.bf16.mxu0 %v22101_v0 }
 0xcca   : > { %9752 = vmatpush1.bf16.msra.mxu1 %v21862_v6  ;;  %v18077_v6 = vld [vmem:[%s26994_s9 + $0x68] sm:$0xff] }
 0xccb   : > { %9753 = vmatprep.subr.bf16.mxu1 %v22101_v0 }
 0xccc   : > { %7954 = vmatpush1.bf16.msra.mxu0 %v21863_v7  ;;  %v21885_v7 = vld [vmem:[%s26993_s8 + $0x2a0] sm:$0xff]  }
 0xccd   : > { %7955 = vmatprep.subr.bf16.mxu0 %v22101_v0 }
 0xcce   : > { %9754 = vmatpush1.bf16.msra.mxu1 %v21864_v8  ;;  %v21886_v8 = vld [vmem:[%s26993_s8 + $0x2a8] sm:$0xff]  }
 0xccf   : > { %19492 = vmatprep.subr.bf16.mxu1 %v22102_v26 }
 0xcd0   : > { %7956 = vmatpush1.bf16.msra.mxu0 %v21865_v11  ;;  %v21887_v11 = vld [vmem:[%s26993_s8 + $0x2b0] sm:$0xff]  }
 0xcd1   : > { %9764 = vmatmul.mubr.bf16.vlgmr.msra.gmra.mrb[52].mxu1 %v24809_v56  ;;  %7957 = vmatprep.subr.bf16.mxu0 %v22101_v0 }
 0xcd2   : > { %19502 = vmatprep.mubr.msk.bf16.mxu1 %vm22103_vm13, %v22102_v26 }
 0xcd4   : > { %7958 = vmatpush1.bf16.msra.mxu0 %v21866_v12  ;;  %v21888_v12 = vld [vmem:[%s26993_s8 + $0x2b8] sm:$0xff]  }
 0xcd5   : > { %7959 = vmatprep.subr.bf16.mxu0 %v22101_v0 }
 0xcd8   : > { %7960 = vmatpush1.bf16.msra.mxu0 %v21867_v9  ;;  %v21889_v9 = vld [vmem:[%s26993_s8 + $0x2c0] sm:$0xff]  }
 0xcd9   : > { %7961 = vmatprep.subr.bf16.mxu0 %v22101_v0 }
 0xcdc   : > { %7962 = vmatpush1.bf16.msra.mxu0 %v21868_v10  ;;  %v21890_v10 = vld [vmem:[%s26993_s8 + $0x2c8] sm:$0xff]  }
 0xcdd   : > { %7963 = vmatprep.subr.bf16.mxu0 %v22101_v0 }
 0xce0   : > { %7964 = vmatpush1.bf16.msra.mxu0 %v21869_v13  ;;  %v21891_v13 = vld [vmem:[%s26993_s8 + $0x2d0] sm:$0xff]  }
 0xce1   : > { %7965 = vmatprep.subr.bf16.mxu0 %v22101_v0 }
 0xce4   : > { %7966 = vmatpush1.bf16.msra.mxu0 %v21870_v14  ;;  %v8204_v29 = vpop.f32.mrb[36].mxu1  ;;  %v21892_v14 = vld [vmem:[%s26993_s8 + $0x2d8] sm:$0xff]  }
 0xce5   : > { %v8206_v15 = vpop.f32.mrb[37].mxu1  ;;  %7967 = vmatprep.subr.bf16.mxu0 %v22101_v0 }
 0xce6   : > { %v8207_v16 = vpop.f32.mrb[38].mxu1  ;;  %v21895_v15 = vld [vmem:[%s26993_s8 + $0x2f0] sm:$0xff]  }
 0xce7   : > { %v8208_v17 = vpop.f32.mrb[39].mxu1  ;;  %v21896_v16 = vld [vmem:[%s26993_s8 + $0x2f8] sm:$0xff]  }
 0xce8   : > { %7968 = vmatpush1.bf16.msra.mxu0 %v21871_v37  ;;  %v21894_v37 = vld [vmem:[%s26993_s8 + $0x2e8] sm:$0xff]   ;;  %v18117_v17 = vld [vmem:[%s26994_s9 + $0x70] sm:$0xff] }
 0xce9   : > { %7969 = vmatprep.subr.bf16.mxu0 %v22101_v0 }
 0xcec   : > { %7970 = vmatpush1.bf16.msra.mxu0 %v21872_v18 }
 0xcef   : > { %7980 = vmatmul.mubr.bf16.vlgmr.msra.gmra.mrb[32].mxu0 %v24809_v56 }
 0xcf0   : > { %19444 = vmatprep.mubr.msk.f32.mxu0 %vm7687_vm10, %v17912_v22 }
 0xd14   : > { %v25189_v19 = vpop.f32.mrb[40].mxu1 }
 0xd15   : > { %v8652_v31 = vpop.f32.mrb[41].mxu1 }
 0xd16   : > { %v8653_v32 = vpop.f32.mrb[42].mxu1 }
 0xd17   : > { %v8654_v21 = vpop.f32.mrb[43].mxu1  ;;  %v18158_v32 = vld [vmem:[%s26994_s9 + $0x80] sm:$0xff] }
 0xd44   : > { %v25194_v23 = vpop.f32.mrb[44].mxu1 }
 0xd45   : > { %v8875_v61 = vpop.f32.mrb[45].mxu1 }
 0xd46   : > { %v8876_v27 = vpop.f32.mrb[46].mxu1  ;;  %v21897_v61 = vld [vmem:[%s26993_s8 + $0x360] sm:$0xff]  }
 0xd47   : > { %v8877_v24 = vpop.f32.mrb[47].mxu1  ;;  %v21898_v27 = vld [vmem:[%s26993_s8 + $0x368] sm:$0xff]  }
 0xd48   : > { %v21899_v24 = vld [vmem:[%s26993_s8 + $0x370] sm:$0xff]  }
 0xd74   : > { %v25197_v25 = vpop.f32.mrb[48].mxu1 }
 0xd75   : > { %v9321_v28 = vpop.f32.mrb[49].mxu1 }
 0xd76   : > { %v9322_v33 = vpop.f32.mrb[50].mxu1  ;;  %v21901_v28 = vld [vmem:[%s26993_s8 + $0x380] sm:$0xff]  }
 0xd77   : > { %v9323_v34 = vpop.f32.mrb[51].mxu1  ;;  %v21902_v33 = vld [vmem:[%s26993_s8 + $0x388] sm:$0xff]  }
 0xd78   : > { %v21903_v34 = vld [vmem:[%s26993_s8 + $0x390] sm:$0xff]  }
 0xda4   : > { %v25199_v35 = vpop.f32.mrb[52].mxu1 }
 0xda5   : > { %v9767_v36 = vpop.f32.mrb[53].mxu1 }
 0xda6   : > { %v9768_v38 = vpop.f32.mrb[54].mxu1  ;;  %v21904_v36 = vld [vmem:[%s26993_s8 + $0x398] sm:$0xff]  }
 0xda7   : > { %v9769_v40 = vpop.f32.mrb[55].mxu1  ;;  %v21905_v38 = vld [vmem:[%s26993_s8 + $0x3a0] sm:$0xff]  }
 0xda8   : > { %v21906_v40 = vld [vmem:[%s26993_s8 + $0x3a8] sm:$0xff]  }
 0xdc2   : > { %v7981_v20 = vpop.f32.mrb[32].mxu0 }
 0xdc3   : > { %v7983_v42 = vpop.f32.mrb[33].mxu0  ;;  %19442 = vmatprep.subr.mxu0 %v7981_v20 }
 0xdc4   : > { %v7984_v44 = vpop.f32.mrb[34].mxu0  ;;  %19443 = vmatpush3.msra.mxu0 %v7981_v20  ;;  %v21907_v20 = vld [vmem:[%s26993_s8 + $0x3b0] sm:$0xff]  }
 0xdc5   : > { %v7985_v30 = vpop.f32.mrb[35].mxu0  ;;  %19445 = vmatmul.mubr.msk.f32.vlgmr.msra.gmra.mrb[10].mxu0 %vm7687_vm10, %v17913_v41  ;;  %19447 = vmatprep.subr.mxu0 %v8204_v29  ;;  %v21908_v41 = vld [vmem:[%s26993_s8 + $0x3b8] sm:$0xff]   ;;  %v18199_v42 = vld [vmem:[%s26994_s9 + $0x90] sm:$0xff] }
 0xdc6   : > { %19448 = vmatpush3.msra.mxu0 %v8204_v29  ;;  %19449 = vmatprep.mubr.msk.f32.mxu0 %vm7687_vm10, %v17953_v43  ;;  %v21893_v29 = vld [vmem:[%s26993_s8 + $0x2e0] sm:$0xff]   ;;  %v18200_v44 = vld [vmem:[%s26994_s9 + $0x98] sm:$0xff] }
 0xdc7   : > { %8393 = vmatprep.subr.bf16.mxu0 %v22101_v0 }
 0xdcd   : > { %19450 = vmatmul.mubr.msk.f32.vlgmr.msra.gmra.mrb[10].mxu0 %vm7687_vm10, %v17954_v39  ;;  %v18240_v39 = vld [vmem:[%s26994_s9 + $0xa0] sm:$0xff] }
 0xdce   : > { %8394 = vmatpush1.bf16.msra.mxu0 %v21873_v45  ;;  %17993 = vmatprep.mubr.msk.bf16.mxu0 %vm7360_vm7, %v24811_v57 }
 0xdcf   : > { %8395 = vmatprep.subr.bf16.mxu0 %v22101_v0 }
 0xdd2   : > { %8396 = vmatpush1.bf16.msra.mxu0 %v21874_v46 }
 0xdd3   : > { %8397 = vmatprep.subr.bf16.mxu0 %v22101_v0 }
 0xdd6   : > { %8398 = vmatpush1.bf16.msra.mxu0 %v21875_v47  ;;  %v18241_v47 = vld [vmem:[%s26994_s9 + $0xa8] sm:$0xff] }
 0xdd7   : > { %8399 = vmatprep.subr.bf16.mxu0 %v22101_v0 }
 0xdda   : > { %8400 = vmatpush1.bf16.msra.mxu0 %v21876_v48  ;;  %v21909_v48 = vld [vmem:[%s26993_s8 + $0x420] sm:$0xff]  }
 0xddb   : > { %8401 = vmatprep.subr.bf16.mxu0 %v22101_v0 }
 0xdde   : > { %8402 = vmatpush1.bf16.msra.mxu0 %v21877_v63  ;;  %v21911_v63 = vld [vmem:[%s26993_s8 + $0x430] sm:$0xff]  }
 0xddf   : > { %8403 = vmatprep.subr.bf16.mxu0 %v22101_v0 }
 0xde2   : > { %8404 = vmatpush1.bf16.msra.mxu0 %v21878_v1  ;;  %v21912_v1 = vld [vmem:[%s26993_s8 + $0x438] sm:$0xff]  }
 0xde3   : > { %8405 = vmatprep.subr.bf16.mxu0 %v22101_v0 }
 0xde6   : > { %8406 = vmatpush1.bf16.msra.mxu0 %v21879_v49  ;;  %v21914_v49 = vld [vmem:[%s26993_s8 + $0x448] sm:$0xff]  }
 0xde7   : > { %8407 = vmatprep.subr.bf16.mxu0 %v22101_v0 }
 0xdea   : > { %8408 = vmatpush1.bf16.msra.mxu0 %v21880_v50  ;;  %v21915_v50 = vld [vmem:[%s26993_s8 + $0x450] sm:$0xff]  }
 0xdeb   : > { %8409 = vmatprep.subr.bf16.mxu0 %v22101_v0 }
 0xdee   : > { %8410 = vmatpush1.bf16.msra.mxu0 %v21881_v51  ;;  %v21916_v51 = vld [vmem:[%s26993_s8 + $0x458] sm:$0xff]  }
 0xdef   : > { %8411 = vmatprep.subr.bf16.mxu0 %v22101_v0 }
 0xdf2   : > { %8412 = vmatpush1.bf16.msra.mxu0 %v21882_v52  ;;  %v21917_v52 = vld [vmem:[%s26993_s8 + $0x460] sm:$0xff]  }
 0xdf3   : > { %8413 = vmatprep.subr.bf16.mxu0 %v22101_v0 }
 0xdf6   : > { %8414 = vmatpush1.bf16.msra.mxu0 %v21883_v53  ;;  %v21918_v53 = vld [vmem:[%s26993_s8 + $0x468] sm:$0xff]  }
 0xdf7   : > { %8415 = vmatprep.subr.bf16.mxu0 %v22101_v0 }
 0xdfa   : > { %8416 = vmatpush1.bf16.msra.mxu0 %v21884_v54  ;;  %v21919_v54 = vld [vmem:[%s26993_s8 + $0x470] sm:$0xff]  }
 0xdfd   : > { %8426 = vmatmul.mubr.bf16.vlgmr.msra.gmra.mrb[36].mxu0 %v24809_v56 }
 0xdfe   : > { %19454 = vmatprep.mubr.msk.f32.mxu0 %vm7687_vm10, %v17994_v55  ;;  %v21920_v55 = vld [vmem:[%s26993_s8 + $0x478] sm:$0xff]  }
 0xed0   : > { %v8427_v58 = vpop.f32.mrb[36].mxu0 }
 0xed1   : > { %v8429_v60 = vpop.f32.mrb[37].mxu0  ;;  %19452 = vmatprep.subr.mxu0 %v8427_v58 }
 0xed2   : > { %v8430_v2 = vpop.f32.mrb[38].mxu0  ;;  %19453 = vmatpush3.msra.mxu0 %v8427_v58  ;;  %v18281_v58 = vld [vmem:[%s26994_s9 + $0xb0] sm:$0xff]  ;;  %v18282_v60 = vld [vmem:[%s26994_s9 + $0xb8] sm:$0xff] }
 0xed3   : > { %v8431_v3 = vpop.f32.mrb[39].mxu0  ;;  %19455 = vmatmul.mubr.msk.f32.vlgmr.msra.gmra.mrb[10].mxu0 %vm7687_vm10, %v17995_v59  ;;  %19457 = vmatprep.subr.mxu0 %v25189_v19 }
 0xed4   : > { %19458 = vmatpush3.msra.mxu0 %v25189_v19  ;;  %19459 = vmatprep.mubr.msk.f32.mxu0 %vm7687_vm10, %v18035_v62  ;;  %v18118_v19 = vld [vmem:[%s26994_s9 + $0x78] sm:$0xff] }
 0xed5   : > { %19462 = vmatprep.subr.mxu0 %v25194_v23 }
 0xedb   : > { %19460 = vmatmul.mubr.msk.f32.vlgmr.msra.gmra.mrb[10].mxu0 %vm7687_vm10, %v18036_v4 }
 0xedc   : > { %19463 = vmatpush3.msra.mxu0 %v25194_v23  ;;  %19464 = vmatprep.mubr.msk.f32.mxu0 %vm7687_vm10, %v18076_v5  ;;  %v18159_v23 = vld [vmem:[%s26994_s9 + $0x88] sm:$0xff] }
 0xedd   : > { %9062 = vmatprep.subr.bf16.mxu0 %v22101_v0 }
 0xee3   : > { %19465 = vmatmul.mubr.msk.f32.vlgmr.msra.gmra.mrb[10].mxu0 %vm7687_vm10, %v18077_v6 }
 0xee4   : > { %9063 = vmatpush1.bf16.msra.mxu0 %v21885_v7  ;;  %18116 = vmatprep.mubr.msk.bf16.mxu0 %vm7360_vm7, %v24811_v57 }
 0xee5   : > { %9064 = vmatprep.subr.bf16.mxu0 %v22101_v0 }
 0xee8   : > { %9065 = vmatpush1.bf16.msra.mxu0 %v21886_v8 }
 0xee9   : > { %9066 = vmatprep.subr.bf16.mxu0 %v22101_v0 }
 0xeec   : > { %9067 = vmatpush1.bf16.msra.mxu0 %v21887_v11 }
 0xeed   : > { %9068 = vmatprep.subr.bf16.mxu0 %v22101_v0 }
 0xef0   : > { %9069 = vmatpush1.bf16.msra.mxu0 %v21888_v12  ;;  %v21921_v12 = vld [vmem:[%s26997_s12] sm:$0xff]  }
 0xef1   : > { %9070 = vmatprep.subr.bf16.mxu0 %v22101_v0  ;;  %19493 = vmatpush3.bf16.msra.mxu1 %v21921_v12 }
 0xef2   : > { %19494 = vmatprep.subr.bf16.mxu1 %v22102_v26 }
 0xef4   : > { %9071 = vmatpush1.bf16.msra.mxu0 %v21889_v9  ;;  %v21922_v9 = vld [vmem:[%s26997_s12 + $0x8] sm:$0xff]  }
 0xef5   : > { %9072 = vmatprep.subr.bf16.mxu0 %v22101_v0  ;;  %19495 = vmatpush3.bf16.msra.mxu1 %v21922_v9 }
 0xef6   : > { %19496 = vmatprep.subr.bf16.mxu1 %v22102_v26 }
 0xef8   : > { %9073 = vmatpush1.bf16.msra.mxu0 %v21890_v10  ;;  %v21923_v10 = vld [vmem:[%s26997_s12 + $0x10] sm:$0xff]  }
 0xef9   : > { %9074 = vmatprep.subr.bf16.mxu0 %v22101_v0  ;;  %19497 = vmatpush3.bf16.msra.mxu1 %v21923_v10  ;;  %v18307_v10 = vld [vmem:[%s26998_s13 + $0x28] sm:$0xff] }
 0xefa   : > { %19498 = vmatprep.subr.bf16.mxu1 %v22102_v26 }
 0xefc   : > { %9075 = vmatpush1.bf16.msra.mxu0 %v21891_v13  ;;  %v21924_v13 = vld [vmem:[%s26997_s12 + $0x18] sm:$0xff]  }
 0xefd   : > { %9076 = vmatprep.subr.bf16.mxu0 %v22101_v0  ;;  %19499 = vmatpush3.bf16.msra.mxu1 %v21924_v13  ;;  %v21931_v13 = vld [vmem:[%s26997_s12 + $0x48] sm:$0xff]  }
 0xefe   : > { %19500 = vmatprep.subr.bf16.mxu1 %v22102_v26 }
 0xf00   : > { %9077 = vmatpush1.bf16.msra.mxu0 %v21892_v14  ;;  %v21925_v14 = vld [vmem:[%s26997_s12 + $0x20] ss:$0 sps:$4 sm:$0x33]  }
 0xf01   : > { %9078 = vmatprep.subr.bf16.mxu0 %v22101_v0 }
 0xf04   : > { %9079 = vmatpush1.bf16.msra.mxu0 %v21893_v29  ;;  %v10176_v29 = vsel %vm10174_vm12, %v21925_v14, 0  ;;  %v18308_v14 = vld [vmem:[%s26998_s13 + $0x30] sm:$0xff] }
 0xf05   : > { %9080 = vmatprep.subr.bf16.mxu0 %v22101_v0  ;;  %19501 = vmatpush3.bf16.msra.mxu1 %v10176_v29  ;;  %v21932_v29 = vld [vmem:[%s26997_s12 + $0x50] sm:$0xff]  }
 0xf06   : > { %19506 = vmatprep.subr.bf16.mxu1 %v22102_v26 }
 0xf08   : > { %9081 = vmatpush1.bf16.msra.mxu0 %v21894_v37 }
 0xf09   : > { %9082 = vmatprep.subr.bf16.mxu0 %v22101_v0 }
 0xf0c   : > { %9083 = vmatpush1.bf16.msra.mxu0 %v21895_v15 }
 0xf0d   : > { %9084 = vmatprep.subr.bf16.mxu0 %v22101_v0 }
 0xf10   : > { %9085 = vmatpush1.bf16.msra.mxu0 %v21896_v16 }
 0xf13   : > { %9095 = vmatmul.mubr.bf16.vlgmr.msra.gmra.mrb[40].mxu0 %v24809_v56 }
 0xf14   : > { %19469 = vmatprep.mubr.msk.f32.mxu0 %vm7687_vm10, %v18117_v17 }
 0xfe6   : > { %v9096_v18 = vpop.f32.mrb[40].mxu0 }
 0xfe7   : > { %v9098_v31 = vpop.f32.mrb[41].mxu0  ;;  %19467 = vmatprep.subr.mxu0 %v9096_v18 }
 0xfe8   : > { %v9099_v21 = vpop.f32.mrb[42].mxu0  ;;  %19468 = vmatpush3.msra.mxu0 %v9096_v18 }
 0xfe9   : > { %v9100_v22 = vpop.f32.mrb[43].mxu0  ;;  %19470 = vmatmul.mubr.msk.f32.vlgmr.msra.gmra.mrb[10].mxu0 %vm7687_vm10, %v18118_v19  ;;  %19472 = vmatprep.subr.mxu0 %v25197_v25 }
 0xfea   : > { %19473 = vmatpush3.msra.mxu0 %v25197_v25  ;;  %19474 = vmatprep.mubr.msk.f32.mxu0 %vm7687_vm10, %v18158_v32  ;;  %v21900_v25 = vld [vmem:[%s26993_s8 + $0x378] sm:$0xff]  }
 0xfeb   : > { %9508 = vmatprep.subr.bf16.mxu0 %v22101_v0 }
 0xff1   : > { %19475 = vmatmul.mubr.msk.f32.vlgmr.msra.gmra.mrb[10].mxu0 %vm7687_vm10, %v18159_v23 }
 0xff2   : > { %9509 = vmatpush1.bf16.msra.mxu0 %v21897_v61  ;;  %18198 = vmatprep.mubr.msk.bf16.mxu0 %vm7360_vm7, %v24811_v57 }
 0xff3   : > { %9510 = vmatprep.subr.bf16.mxu0 %v22101_v0 }
 0xff6   : > { %9511 = vmatpush1.bf16.msra.mxu0 %v21898_v27 }
 0xff7   : > { %9512 = vmatprep.subr.bf16.mxu0 %v22101_v0 }
 0xffa   : > { %9513 = vmatpush1.bf16.msra.mxu0 %v21899_v24 }
 0xffb   : > { %9514 = vmatprep.subr.bf16.mxu0 %v22101_v0 }
 0xffe   : > { %9515 = vmatpush1.bf16.msra.mxu0 %v21900_v25 }
 0xfff   : > { %9516 = vmatprep.subr.bf16.mxu0 %v22101_v0 }
0x1002   : > { %9517 = vmatpush1.bf16.msra.mxu0 %v21901_v28 }
0x1003   : > { %9518 = vmatprep.subr.bf16.mxu0 %v22101_v0 }
0x1006   : > { %9519 = vmatpush1.bf16.msra.mxu0 %v21902_v33 }
0x1007   : > { %9520 = vmatprep.subr.bf16.mxu0 %v22101_v0 }
0x100a   : > { %9521 = vmatpush1.bf16.msra.mxu0 %v21903_v34 }
0x100b   : > { %9522 = vmatprep.subr.bf16.mxu0 %v22101_v0 }
0x100e   : > { %9523 = vmatpush1.bf16.msra.mxu0 %v21904_v36 }
0x100f   : > { %9524 = vmatprep.subr.bf16.mxu0 %v22101_v0 }
0x1012   : > { %9525 = vmatpush1.bf16.msra.mxu0 %v21905_v38 }
0x1013   : > { %9526 = vmatprep.subr.bf16.mxu0 %v22101_v0 }
0x1016   : > { %9527 = vmatpush1.bf16.msra.mxu0 %v21906_v40 }
0x1017   : > { %9528 = vmatprep.subr.bf16.mxu0 %v22101_v0 }
0x101a   : > { %9529 = vmatpush1.bf16.msra.mxu0 %v21907_v20 }
0x101b   : > { %9530 = vmatprep.subr.bf16.mxu0 %v22101_v0 }
0x101e   : > { %9531 = vmatpush1.bf16.msra.mxu0 %v21908_v41 }
0x1021   : > { %9541 = vmatmul.mubr.bf16.vlgmr.msra.gmra.mrb[44].mxu0 %v24809_v56 }
0x1022   : > { %19479 = vmatprep.mubr.msk.f32.mxu0 %vm7687_vm10, %v18199_v42 }
0x10f4   : > { %v9542_v43 = vpop.f32.mrb[44].mxu0 }
0x10f5   : > { %v9544_v30 = vpop.f32.mrb[45].mxu0  ;;  %19477 = vmatprep.subr.mxu0 %v9542_v43 }
0x10f6   : > { %v9545_v45 = vpop.f32.mrb[46].mxu0  ;;  %19478 = vmatpush3.msra.mxu0 %v9542_v43 }
0x10f7   : > { %v9546_v46 = vpop.f32.mrb[47].mxu0  ;;  %19480 = vmatmul.mubr.msk.f32.vlgmr.msra.gmra.mrb[10].mxu0 %vm7687_vm10, %v18200_v44  ;;  %19482 = vmatprep.subr.mxu0 %v25199_v35  ;;  %v10081_v45 = vld [vmem:[%s26995_s10 + $0x8] sm:$0xff] }
0x10f8   : > { %19483 = vmatpush3.msra.mxu0 %v25199_v35  ;;  %19484 = vmatprep.mubr.msk.f32.mxu0 %vm7687_vm10, %v18240_v39  ;;  %v21910_v35 = vld [vmem:[%s26993_s8 + $0x428] sm:$0xff]   ;;  %v10080_v39 = vld [vmem:[%s26995_s10] sm:$0xff] }
0x10f9   : > { %9954 = vmatprep.subr.bf16.mxu0 %v22101_v0 }
0x10ff   : > { %19485 = vmatmul.mubr.msk.f32.vlgmr.msra.gmra.mrb[10].mxu0 %vm7687_vm10, %v18241_v47 }
0x1100   : > { %9955 = vmatpush1.bf16.msra.mxu0 %v21909_v48  ;;  %18280 = vmatprep.mubr.msk.bf16.mxu0 %vm7360_vm7, %v24811_v57  ;;  %v21913_v57 = vld [vmem:[%s26993_s8 + $0x440] sm:$0xff]  }
0x1101   : > { %9956 = vmatprep.subr.bf16.mxu0 %v22101_v0  ;;  %v10082_v48 = vld [vmem:[%s26996_s11] sm:$0xff] }
0x1104   : > { %9957 = vmatpush1.bf16.msra.mxu0 %v21910_v35  ;;  %v10083_v35 = vld [vmem:[%s26996_s11 + $0x8] sm:$0xff] }
0x1105   : > { %9958 = vmatprep.subr.bf16.mxu0 %v22101_v0 }
0x1108   : > { %9959 = vmatpush1.bf16.msra.mxu0 %v21911_v63 }
0x1109   : > { %9960 = vmatprep.subr.bf16.mxu0 %v22101_v0 }
0x110c   : > { %9961 = vmatpush1.bf16.msra.mxu0 %v21912_v1 }
0x110d   : > { %9962 = vmatprep.subr.bf16.mxu0 %v22101_v0 }
0x1110   : > { %9963 = vmatpush1.bf16.msra.mxu0 %v21913_v57 }
0x1111   : > { %9964 = vmatprep.subr.bf16.mxu0 %v22101_v0 }
0x1114   : > { %9965 = vmatpush1.bf16.msra.mxu0 %v21914_v49 }
0x1115   : > { %9966 = vmatprep.subr.bf16.mxu0 %v22101_v0 }
0x1118   : > { %9967 = vmatpush1.bf16.msra.mxu0 %v21915_v50 }
0x1119   : > { %9968 = vmatprep.subr.bf16.mxu0 %v22101_v0 }
0x111c   : > { %9969 = vmatpush1.bf16.msra.mxu0 %v21916_v51 }
0x111d   : > { %9970 = vmatprep.subr.bf16.mxu0 %v22101_v0 }
0x1120   : > { %9971 = vmatpush1.bf16.msra.mxu0 %v21917_v52 }
0x1121   : > { %9972 = vmatprep.subr.bf16.mxu0 %v22101_v0 }
0x1124   : > { %9973 = vmatpush1.bf16.msra.mxu0 %v21918_v53 }
0x1125   : > { %9974 = vmatprep.subr.bf16.mxu0 %v22101_v0 }
0x1128   : > { %9975 = vmatpush1.bf16.msra.mxu0 %v21919_v54  ;;  %v21926_v54 = vld [vmem:[%s26997_s12 + $0x24] sm:$0xff]  }
0x1129   : > { %9976 = vmatprep.subr.bf16.mxu0 %v22101_v0 }
0x112c   : > { %9977 = vmatpush1.bf16.msra.mxu0 %v21920_v55 }
0x112f   : > { %9987 = vmatmul.mubr.bf16.vlgmr.msra.gmra.mrb[48].mxu0 %v24809_v56 }
0x1130   : > { %19489 = vmatprep.mubr.msk.f32.mxu0 %vm7687_vm10, %v18281_v58  ;;  %v21927_v58 = vld [vmem:[%s26997_s12 + $0x2c] sm:$0xff]  }
0x1202   : > { %v9988_v59 = vpop.f32.mrb[48].mxu0 }
0x1203   : > { %v9990_v62 = vpop.f32.mrb[49].mxu0  ;;  %19487 = vmatprep.subr.mxu0 %v9988_v59 }
0x1204   : > { %v9991_v2 = vpop.f32.mrb[50].mxu0  ;;  %19488 = vmatpush3.msra.mxu0 %v9988_v59  ;;  %v21928_v59 = vld [vmem:[%s26997_s12 + $0x34] sm:$0xff]   ;;  %v21930_v62 = vld [vmem:[%s26997_s12 + $0x44] ss:$0 sps:$4 sm:$0x33]  }
0x1205   : > { %v9992_v3 = vpop.f32.mrb[51].mxu0  ;;  %19490 = vmatmul.mubr.msk.f32.vlgmr.msra.gmra.mrb[10].mxu0 %vm7687_vm10, %v18282_v60  ;;  %v21929_v60 = vld [vmem:[%s26997_s12 + $0x3c] sm:$0xff]   ;;  %v10261_v2 = vsel %vm10174_vm12, %v21930_v62, 0 }
0x1206   : > { %v18306_v3 = vld [vmem:[%s26998_s13 + $0x20] sm:$0xff] }
0x12d8   : > { %v25489_v0 = vpop.f32.mrb[10].mxu0 }
0x12d9   : > { %v10069_v56 = vpop.f32.mrb[11].mxu0  ;;  %v10088_v4 = vsel %vm10084_vm11, %v25489_v0, 0.0  ;;  %v10099_v5 = vmul.f32 %v25489_v0, %v25489_v0 }
0x12da   : > { %10089 = vadd.xlane.f32.xlu1 %v10088_v4  ;;  %v10085_v6 = vsel %vm10084_vm11, %v10069_v56, 0.0  ;;  %v10098_v7 = vmul.f32 %v10069_v56, %v10069_v56 }
0x12db   : > { %10086 = vadd.xlane.f32.xlu0 %v10085_v6  ;;  %v10103_v8 = vsel %vm10084_vm11, %v10099_v5, 0.0 }
0x12dc   : > { %v10100_v11 = vsel %vm10084_vm11, %v10098_v7, 0.0 }
0x12de   : > { %10104 = vadd.xlane.f32.xlu1 %v10103_v8 }
0x12df   : > { %10101 = vadd.xlane.f32.xlu0 %v10100_v11 }
0x1367   : > { %v10090_v37 = vpop.xlane.xlu1 %10089 }
0x1368   : > { %v10087_v15 = vpop.xlane.xlu0 %10086 }
0x1369   : > { %v10091_v16 = vadd.f32 %v10090_v37, %v10087_v15  ;;  %v18309_v37 = vld [vmem:[%s26998_s13 + $0x38] sm:$0xff] }
0x136a   : > { %v21933_v15 = vld [vmem:[%s26997_s12 + $0x58] sm:$0xff]  }
0x136b   : > { %v10092_v17 = vrot.slane %v10091_v16, 4  ;;  %v10105_v18 = vpop.xlane.xlu1 %10104 }
0x136c   : > { %v10102_v19 = vpop.xlane.xlu0 %10101 }
0x136d   : > { %v10093_v31 = vadd.f32 %v10092_v17, %v10091_v16  ;;  %v10106_v32 = vadd.f32 %v10105_v18, %v10102_v19  ;;  %v21934_v16 = vld [vmem:[%s26997_s12 + $0x60] sm:$0xff]   ;;  %v21935_v17 = vld [vmem:[%s26997_s12 + $0x68] ss:$0 sps:$4 sm:$0x33]   ;;  %v21936_v19 = vld [vmem:[%s26997_s12 + $0x6c] sm:$0xff]  }
0x136e   : > { %v10541_v18 = vsel %vm10174_vm12, %v21935_v17, 0  ;;  %v21982_v17 = vld [vmem:[%s26997_s12 + $0x248] sm:$0xff]  }
0x136f   : > { %v10094_v21 = vrot.slane %v10093_v31, 2  ;;  %v10107_v22 = vrot.slane %v10106_v32, 4 }
0x1371   : > { %v10095_v23 = vadd.f32 %v10094_v21, %v10093_v31  ;;  %v10108_v61 = vadd.f32 %v10107_v22, %v10106_v32  ;;  %v21937_v31 = vld [vmem:[%s26997_s12 + $0x74] sm:$0xff]   ;;  %v21938_v32 = vld [vmem:[%s26997_s12 + $0x7c] sm:$0xff]   ;;  %v21939_v21 = vld [vmem:[%s26997_s12 + $0x84] sm:$0xff]  }
0x1372   : > { %v21940_v22 = vld [vmem:[%s26997_s12 + $0x8c] ss:$0 sps:$4 sm:$0x33]  }
0x1373   : > { %v10096_v27 = vrot.slane %v10095_v23, 1  ;;  %v10109_v24 = vrot.slane %v10108_v61, 2 }
0x1375   : > { %v10097_v25 = vadd.f32 %v10096_v27, %v10095_v23  ;;  %v10110_v28 = vadd.f32 %v10109_v24, %v10108_v61  ;;  %v10728_v23 = vsel %vm10174_vm12, %v21940_v22, 0  ;;  %v21941_v61 = vld [vmem:[%s26997_s12 + $0xb4] sm:$0xff]   ;;  %v21942_v27 = vld [vmem:[%s26997_s12 + $0xbc] sm:$0xff]   ;;  %v21943_v24 = vld [vmem:[%s26997_s12 + $0xc4] sm:$0xff]  }
0x1377   : > { %v10113_v33 = vmul.f32 0.00091911765, %v10097_v25  ;;  %v10111_v34 = vrot.slane %v10110_v28, 1  ;;  %v21944_v25 = vld [vmem:[%s26997_s12 + $0xcc] sm:$0xff]  }
0x1379   : > { %v10112_v36 = vadd.f32 %v10111_v34, %v10110_v28  ;;  %v10115_v38 = vmul.f32 %v10113_v33, %v10113_v33  ;;  %v10118_v43 = vsub.f32 %v10069_v56, %v10113_v33  ;;  %v10119_v44 = vsub.f32 %v25489_v0, %v10113_v33  ;;  %v21945_v28 = vld [vmem:[%s26997_s12 + $0xd4] ss:$0 sps:$4 sm:$0x33]   ;;  %v21946_v34 = vld [vmem:[%s26997_s12 + $0xd8] sm:$0xff]  }
0x137a   : > { %v11102_v33 = vsel %vm10174_vm12, %v21945_v28, 0  ;;  %v21989_v28 = vld [vmem:[%s26997_s12 + $0x2a0] sm:$0xff]  }
0x137b   : > { %v10114_v40 = vmul.f32 0.00091911765, %v10112_v36  ;;  %v21947_v36 = vld [vmem:[%s26997_s12 + $0xe0] sm:$0xff]  }
0x137d   : > { %v10116_v20 = vsub.f32 %v10114_v40, %v10115_v38  ;;  %v21948_v38 = vld [vmem:[%s26997_s12 + $0xe8] sm:$0xff]   ;;  %v21949_v40 = vld [vmem:[%s26997_s12 + $0xf0] sm:$0xff]  }
0x137f   : > { %v10117_v41 = vmax.f32 %v10116_v20, 0.0  ;;  %v21950_v20 = vld [vmem:[%s26997_s12 + $0xf8] ss:$0 sps:$4 sm:$0x33]  }
0x1381   : > { %v10120_v42 = vadd.f32 1e-05, %v10117_v41  ;;  %v11289_v41 = vsel %vm10174_vm12, %v21950_v20, 0 }
0x1383   : > { %22085 = vrsqrt.f32 %v10120_v42  ;;  %v21951_v42 = vld [vmem:[%s26997_s12 + $0x120] sm:$0xff]  }
0x138d   : > { %v22086_v30 = vpop.eup %22085 }
0x138e   : > { %v10122_v46 = vmul.f32 %v22086_v30, %v10118_v43  ;;  %v10123_v47 = vmul.f32 %v22086_v30, %v10119_v44  ;;  %v21952_v43 = vld [vmem:[%s26997_s12 + $0x128] sm:$0xff]   ;;  %v21953_v44 = vld [vmem:[%s26997_s12 + $0x130] sm:$0xff]   ;;  %v21954_v30 = vld [vmem:[%s26997_s12 + $0x138] sm:$0xff]  }
0x1390   : > { %v10124_v63 = vmul.f32 %v10122_v46, %v10080_v39  ;;  %v10125_v1 = vmul.f32 %v10123_v47, %v10081_v45  ;;  %v21955_v39 = vld [vmem:[%s26997_s12 + $0x140] ss:$0 sps:$4 sm:$0x33]   ;;  %v21956_v46 = vld [vmem:[%s26997_s12 + $0x144] sm:$0xff]   ;;  %v21957_v47 = vld [vmem:[%s26997_s12 + $0x14c] sm:$0xff]  }
0x1391   : > { %v11663_v45 = vsel %vm10174_vm12, %v21955_v39, 0  ;;  %v18336_v39 = vld [vmem:[%s26998_s13 + $0x58] sm:$0xff] }
0x1392   : > { %v10126_v57 = vadd.f32 %v10124_v63, %v10082_v48  ;;  %v10127_v49 = vadd.f32 %v10125_v1, %v10083_v35  ;;  %v21958_v48 = vld [vmem:[%s26997_s12 + $0x154] sm:$0xff]   ;;  %v10219_v35 = vld [vmem:[%s26998_s13] sm:$0xff]  ;;  %v10220_v63 = vld [vmem:[%s26998_s13 + $0x8] sm:$0xff] }
0x1393   : > { %19534 = vmatprep.mubr.msk.f32.mxu0 %vm571_vm0, %v10219_v35  ;;  %v21959_v1 = vld [vmem:[%s26997_s12 + $0x15c] sm:$0xff]  }
0x1394   : > { %vm10128_vm14 = vcmp.ge.f32.partialorder %v10126_v57, 0.0  ;;  %vm10129_vm15 = vcmp.ge.f32.partialorder %v10127_v49, 0.0  ;;  %v10130_v50 = vmul.f32 0.2, %v10126_v57  ;;  %v10131_v51 = vmul.f32 0.2, %v10127_v49 }
0x1396   : > { %v10132_v52 = vsel %vm10128_vm14, %v10126_v57, %v10130_v50  ;;  %v10133_v53 = vsel %vm10129_vm15, %v10127_v49, %v10131_v51  ;;  %v21960_v57 = vld [vmem:[%s26997_s12 + $0x164] ss:$0 sps:$4 sm:$0x33]   ;;  %v21961_v50 = vld [vmem:[%s26997_s12 + $0x18c] sm:$0xff]  }
0x1397   : > { %v25537_v55 = vpack.c.bf16 %v10133_v53, %v10132_v52  ;;  %v11850_v49 = vsel %vm10174_vm12, %v21960_v57, 0  ;;  %v10221_v51 = vld [vmem:[%s26998_s13 + $0x10] sm:$0xff]  ;;  %v10222_v52 = vld [vmem:[%s26998_s13 + $0x18] sm:$0xff] }
0x1398   : > { %v21962_v53 = vld [vmem:[%s26997_s12 + $0x194] sm:$0xff]  }
0x1399   : > { %19503 = vmatmul.mubr.msk.bf16.vlgmr.msra.gmra.mrb[56].mxu1 %vm10084_vm11, %v25537_v55 }
0x139a   : > { %19507 = vmatpush3.bf16.msra.mxu1 %v21926_v54  ;;  %19516 = vmatprep.mubr.msk.bf16.mxu1 %vm22103_vm13, %v22102_v26  ;;  %v18333_v54 = vld [vmem:[%s26998_s13 + $0x40] sm:$0xff] }
0x139b   : > { %19508 = vmatprep.subr.bf16.mxu1 %v22102_v26 }
0x139e   : > { %19509 = vmatpush3.bf16.msra.mxu1 %v21927_v58  ;;  %v21963_v58 = vld [vmem:[%s26997_s12 + $0x19c] sm:$0xff]  }
0x139f   : > { %19510 = vmatprep.subr.bf16.mxu1 %v22102_v26 }
0x13a2   : > { %19511 = vmatpush3.bf16.msra.mxu1 %v21928_v59  ;;  %v21964_v59 = vld [vmem:[%s26997_s12 + $0x1a4] sm:$0xff]  }
0x13a3   : > { %19512 = vmatprep.subr.bf16.mxu1 %v22102_v26 }
0x13a6   : > { %19513 = vmatpush3.bf16.msra.mxu1 %v21929_v60  ;;  %v21965_v60 = vld [vmem:[%s26997_s12 + $0x1ac] ss:$0 sps:$4 sm:$0x33]  }
0x13a7   : > { %19514 = vmatprep.subr.bf16.mxu1 %v22102_v26  ;;  %v12224_v62 = vsel %vm10174_vm12, %v21965_v60, 0  ;;  %v18359_v60 = vld [vmem:[%s26998_s13 + $0x78] sm:$0xff] }
0x13aa   : > { %19515 = vmatpush3.bf16.msra.mxu1 %v10261_v2  ;;  %v21966_v2 = vld [vmem:[%s26997_s12 + $0x1b0] sm:$0xff]  }
0x13ad   : > { %19517 = vmatmul.mubr.msk.bf16.vlgmr.msra.gmra.mrb[60].mxu1 %vm10084_vm11, %v25537_v55 }
0x13ae   : > { %19524 = vmatprep.mubr.msk.f32.mxu1 %vm571_vm0, %v18306_v3  ;;  %v21967_v3 = vld [vmem:[%s26997_s12 + $0x1b8] sm:$0xff]  }
0x146c   : > { %v10212_v0 = vpop.f32.mrb[56].mxu1 }
0x146d   : > { %v19504_v56 = vpop.f32.mrb[57].mxu1 }
0x146e   : > { %v10215_v4 = vpop.f32.mrb[58].mxu1  ;;  %v21969_v56 = vld [vmem:[%s26997_s12 + $0x1c8] sm:$0xff]  }
0x146f   : > { %v20264_v5 = vpack.c.bf16 %v10215_v4, %v10212_v0  ;;  %v19505_v6 = vpop.f32.mrb[59].mxu1  ;;  %v21968_v0 = vld [vmem:[%s26997_s12 + $0x1c0] sm:$0xff]   ;;  %v21970_v4 = vld [vmem:[%s26997_s12 + $0x1d0] ss:$0 sps:$4 sm:$0x33]  }
0x1470   : > { %v21971_v6 = vld [vmem:[%s26997_s12 + $0x1d4] sm:$0xff]  }
0x1471   : > { %20265 = vmatprep.subr.bf16.mxu0 %v20264_v5 }
0x1472   : > { %20267 = vmatpush3.bf16.msra.mxu0 %v20264_v5  ;;  %v12411_v5 = vsel %vm10174_vm12, %v21970_v4, 0  ;;  %v22005_v4 = vld [vmem:[%s26997_s12 + $0x314] ss:$0 sps:$4 sm:$0x33]  }
0x1475   : > { %19535 = vmatmul.mubr.msk.f32.vlgmr.msra.gmra.mrb[52].mxu0 %vm571_vm0, %v10220_v63 }
0x1476   : > { %19537 = vmatprep.mubr.msk.f32.mxu0 %vm571_vm0, %v10221_v51  ;;  %v18357_v51 = vld [vmem:[%s26998_s13 + $0x68] sm:$0xff] }
0x1479   : > { %19538 = vmatmul.mubr.msk.f32.gmra.mrb[54].mxu0 %vm571_vm0, %v10222_v52  ;;  %v21996_v52 = vld [vmem:[%s26997_s12 + $0x90] sm:$0xff]  }
0x147a   : > { %19558 = vmatprep.mubr.msk.f32.mxu0 %vm571_vm0, %v18333_v54  ;;  %v18358_v54 = vld [vmem:[%s26998_s13 + $0x70] sm:$0xff] }
0x1480   : > { %v10297_v7 = vpop.f32.mrb[60].mxu1 }
0x1481   : > { %v19518_v8 = vpop.f32.mrb[61].mxu1 }
0x1482   : > { %v10300_v11 = vpop.f32.mrb[62].mxu1  ;;  %v21973_v8 = vld [vmem:[%s26997_s12 + $0x1e4] sm:$0xff]  }
0x1483   : > { %v20260_v12 = vpack.c.bf16 %v10300_v11, %v10297_v7  ;;  %v19519_v9 = vpop.f32.mrb[63].mxu1  ;;  %v21972_v7 = vld [vmem:[%s26997_s12 + $0x1dc] sm:$0xff]   ;;  %v21974_v11 = vld [vmem:[%s26997_s12 + $0x1ec] sm:$0xff]  }
0x1485   : > { %20261 = vmatprep.subr.bf16.mxu1 %v20260_v12 }
0x1486   : > { %20263 = vmatpush3.bf16.msra.mxu1 %v20260_v12  ;;  %v21975_v12 = vld [vmem:[%s26997_s12 + $0x1f4] ss:$0 sps:$4 sm:$0x33]  }
0x1487   : > { %19540 = vmatprep.subr.bf16.mxu1 %v22102_v26  ;;  %v12598_v9 = vsel %vm10174_vm12, %v21975_v12, 0 }
0x1489   : > { %19525 = vmatmul.mubr.msk.f32.vlgmr.msra.gmra.mrb[64].mxu1 %vm571_vm0, %v18307_v10  ;;  %v21976_v10 = vld [vmem:[%s26997_s12 + $0x21c] sm:$0xff]  }
0x148a   : > { %19541 = vmatpush3.bf16.msra.mxu1 %v21931_v13  ;;  %19527 = vmatprep.mubr.msk.f32.mxu1 %vm571_vm0, %v18308_v14  ;;  %v21977_v13 = vld [vmem:[%s26997_s12 + $0x224] sm:$0xff]   ;;  %v21978_v14 = vld [vmem:[%s26997_s12 + $0x22c] sm:$0xff]  }
0x148b   : > { %19542 = vmatprep.subr.bf16.mxu1 %v22102_v26 }
0x148d   : > { %19528 = vmatmul.mubr.msk.f32.gmra.mrb[66].mxu1 %vm571_vm0, %v18309_v37  ;;  %v21980_v37 = vld [vmem:[%s26997_s12 + $0x23c] ss:$0 sps:$4 sm:$0x33]  }
0x148e   : > { %19543 = vmatpush3.bf16.msra.mxu1 %v21932_v29  ;;  %19550 = vmatprep.mubr.msk.bf16.mxu1 %vm22103_vm13, %v22102_v26  ;;  %v21979_v29 = vld [vmem:[%s26997_s12 + $0x234] sm:$0xff]  }
0x148f   : > { %19544 = vmatprep.subr.bf16.mxu1 %v22102_v26 }
0x1492   : > { %19545 = vmatpush3.bf16.msra.mxu1 %v21933_v15  ;;  %v12972_v15 = vsel %vm10174_vm12, %v21980_v37, 0  ;;  %v22010_v37 = vld [vmem:[%s26997_s12 + $0x338] ss:$0 sps:$4 sm:$0x33]  }
0x1493   : > { %19546 = vmatprep.subr.bf16.mxu1 %v22102_v26 }
0x1496   : > { %19547 = vmatpush3.bf16.msra.mxu1 %v21934_v16  ;;  %v21981_v16 = vld [vmem:[%s26997_s12 + $0x240] sm:$0xff]  }
0x1497   : > { %19548 = vmatprep.subr.bf16.mxu1 %v22102_v26 }
0x149a   : > { %19549 = vmatpush3.bf16.msra.mxu1 %v10541_v18  ;;  %v21983_v18 = vld [vmem:[%s26997_s12 + $0x250] sm:$0xff]  }
0x149b   : > { %19564 = vmatprep.subr.bf16.mxu1 %v22102_v26 }
0x149d   : > { %19551 = vmatmul.mubr.msk.bf16.vlgmr.msra.gmra.mrb[68].mxu1 %vm10084_vm11, %v25537_v55 }
0x149e   : > { %19565 = vmatpush3.bf16.msra.mxu1 %v21936_v19  ;;  %19574 = vmatprep.mubr.msk.bf16.mxu1 %vm22103_vm13, %v22102_v26  ;;  %v21984_v19 = vld [vmem:[%s26997_s12 + $0x258] sm:$0xff]  }
0x149f   : > { %19566 = vmatprep.subr.bf16.mxu1 %v22102_v26 }
0x14a2   : > { %19567 = vmatpush3.bf16.msra.mxu1 %v21937_v31  ;;  %v21985_v31 = vld [vmem:[%s26997_s12 + $0x260] ss:$0 sps:$4 sm:$0x33]  }
0x14a3   : > { %19568 = vmatprep.subr.bf16.mxu1 %v22102_v26  ;;  %v13159_v22 = vsel %vm10174_vm12, %v21985_v31, 0  ;;  %v14281_v31 = vsel %vm10174_vm12, %v22010_v37, 0 }
0x14a6   : > { %19569 = vmatpush3.bf16.msra.mxu1 %v21938_v32 }
0x14a7   : > { %19570 = vmatprep.subr.bf16.mxu1 %v22102_v26 }
0x14aa   : > { %19571 = vmatpush3.bf16.msra.mxu1 %v21939_v21 }
0x14ab   : > { %19572 = vmatprep.subr.bf16.mxu1 %v22102_v26 }
0x14ae   : > { %19573 = vmatpush3.bf16.msra.mxu1 %v10728_v23 }
0x14af   : > { %19612 = vmatprep.subr.bf16.mxu1 %v22102_v26 }
0x14b1   : > { %19575 = vmatmul.mubr.msk.bf16.vlgmr.msra.gmra.mrb[72].mxu1 %vm10084_vm11, %v25537_v55 }
0x14b2   : > { %19613 = vmatpush3.bf16.msra.mxu1 %v21941_v61  ;;  %19622 = vmatprep.mubr.msk.bf16.mxu1 %vm22103_vm13, %v22102_v26 }
0x14b3   : > { %19614 = vmatprep.subr.bf16.mxu1 %v22102_v26 }
0x14b6   : > { %19615 = vmatpush3.bf16.msra.mxu1 %v21942_v27  ;;  %v21986_v27 = vld [vmem:[%s26997_s12 + $0x288] sm:$0xff]  }
0x14b7   : > { %19616 = vmatprep.subr.bf16.mxu1 %v22102_v26 }
0x14ba   : > { %19617 = vmatpush3.bf16.msra.mxu1 %v21943_v24  ;;  %v21987_v24 = vld [vmem:[%s26997_s12 + $0x290] sm:$0xff]  }
0x14bb   : > { %19618 = vmatprep.subr.bf16.mxu1 %v22102_v26 }
0x14be   : > { %19619 = vmatpush3.bf16.msra.mxu1 %v21944_v25  ;;  %v21988_v25 = vld [vmem:[%s26997_s12 + $0x298] sm:$0xff]  }
0x14bf   : > { %19620 = vmatprep.subr.bf16.mxu1 %v22102_v26 }
0x14c2   : > { %19621 = vmatpush3.bf16.msra.mxu1 %v11102_v33  ;;  %v21990_v33 = vld [vmem:[%s26997_s12 + $0x2a8] ss:$0 sps:$4 sm:$0x33]  }
0x14c3   : > { %19636 = vmatprep.subr.bf16.mxu1 %v22102_v26 }
0x14c5   : > { %19623 = vmatmul.mubr.msk.bf16.vlgmr.msra.gmra.mrb[76].mxu1 %vm10084_vm11, %v25537_v55 }
0x14c6   : > { %19637 = vmatpush3.bf16.msra.mxu1 %v21946_v34  ;;  %19646 = vmatprep.mubr.msk.bf16.mxu1 %vm22103_vm13, %v22102_v26 }
0x14c7   : > { %19638 = vmatprep.subr.bf16.mxu1 %v22102_v26 }
0x14ca   : > { %19639 = vmatpush3.bf16.msra.mxu1 %v21947_v36 }
0x14cb   : > { %19640 = vmatprep.subr.bf16.mxu1 %v22102_v26 }
0x14ce   : > { %19641 = vmatpush3.bf16.msra.mxu1 %v21948_v38 }
0x14cf   : > { %19642 = vmatprep.subr.bf16.mxu1 %v22102_v26 }
0x14d2   : > { %19643 = vmatpush3.bf16.msra.mxu1 %v21949_v40 }
0x14d3   : > { %19644 = vmatprep.subr.bf16.mxu1 %v22102_v26 }
0x14d6   : > { %19645 = vmatpush3.bf16.msra.mxu1 %v11289_v41  ;;  %v13533_v41 = vsel %vm10174_vm12, %v21990_v33, 0 }
0x14d7   : > { %19684 = vmatprep.subr.bf16.mxu1 %v22102_v26 }
0x14d9   : > { %19647 = vmatmul.mubr.msk.bf16.vlgmr.msra.gmra.mrb[80].mxu1 %vm10084_vm11, %v25537_v55 }
0x14da   : > { %19685 = vmatpush3.bf16.msra.mxu1 %v21951_v42  ;;  %19694 = vmatprep.mubr.msk.bf16.mxu1 %vm22103_vm13, %v22102_v26  ;;  %v21991_v42 = vld [vmem:[%s26997_s12 + $0x2ac] sm:$0xff]  }
0x14db   : > { %19686 = vmatprep.subr.bf16.mxu1 %v22102_v26 }
0x14de   : > { %19687 = vmatpush3.bf16.msra.mxu1 %v21952_v43  ;;  %v18334_v43 = vld [vmem:[%s26998_s13 + $0x48] sm:$0xff] }
0x14df   : > { %19688 = vmatprep.subr.bf16.mxu1 %v22102_v26 }
0x14e2   : > { %19689 = vmatpush3.bf16.msra.mxu1 %v21953_v44  ;;  %v18335_v44 = vld [vmem:[%s26998_s13 + $0x50] sm:$0xff] }
0x14e3   : > { %19690 = vmatprep.subr.bf16.mxu1 %v22102_v26 }
0x14e6   : > { %19691 = vmatpush3.bf16.msra.mxu1 %v21954_v30  ;;  %v21992_v30 = vld [vmem:[%s26997_s12 + $0x2b4] sm:$0xff]  }
0x14e7   : > { %19692 = vmatprep.subr.bf16.mxu1 %v22102_v26 }
0x14ea   : > { %19693 = vmatpush3.bf16.msra.mxu1 %v11663_v45  ;;  %v18356_v45 = vld [vmem:[%s26998_s13 + $0x60] sm:$0xff] }
0x14eb   : > { %19708 = vmatprep.subr.bf16.mxu1 %v22102_v26 }
0x14ed   : > { %19695 = vmatmul.mubr.msk.bf16.vlgmr.msra.gmra.mrb[84].mxu1 %vm10084_vm11, %v25537_v55 }
0x14ee   : > { %19709 = vmatpush3.bf16.msra.mxu1 %v21956_v46  ;;  %19718 = vmatprep.mubr.msk.bf16.mxu1 %vm22103_vm13, %v22102_v26  ;;  %v21993_v46 = vld [vmem:[%s26997_s12 + $0x2bc] sm:$0xff]  }
0x14ef   : > { %19710 = vmatprep.subr.bf16.mxu1 %v22102_v26 }
0x14f2   : > { %19711 = vmatpush3.bf16.msra.mxu1 %v21957_v47  ;;  %v21994_v47 = vld [vmem:[%s26997_s12 + $0x2c4] sm:$0xff]  }
0x14f3   : > { %19712 = vmatprep.subr.bf16.mxu1 %v22102_v26 }
0x14f6   : > { %19713 = vmatpush3.bf16.msra.mxu1 %v21958_v48  ;;  %v21995_v48 = vld [vmem:[%s26997_s12 + $0x2cc] ss:$0 sps:$4 sm:$0x33]  }
0x14f7   : > { %19714 = vmatprep.subr.bf16.mxu1 %v22102_v26 }
0x14fa   : > { %19715 = vmatpush3.bf16.msra.mxu1 %v21959_v1 }
0x14fb   : > { %19716 = vmatprep.subr.bf16.mxu1 %v22102_v26 }
0x14fe   : > { %19717 = vmatpush3.bf16.msra.mxu1 %v11850_v49 }
0x14ff   : > { %19756 = vmatprep.subr.bf16.mxu1 %v22102_v26 }
0x1501   : > { %19719 = vmatmul.mubr.msk.bf16.vlgmr.msra.gmra.mrb[88].mxu1 %vm10084_vm11, %v25537_v55 }
0x1502   : > { %19757 = vmatpush3.bf16.msra.mxu1 %v21961_v50  ;;  %19766 = vmatprep.mubr.msk.bf16.mxu1 %vm22103_vm13, %v22102_v26  ;;  %v13720_v50 = vsel %vm10174_vm12, %v21995_v48, 0 }
0x1503   : > { %19758 = vmatprep.subr.bf16.mxu1 %v22102_v26 }
0x1506   : > { %19759 = vmatpush3.bf16.msra.mxu1 %v21962_v53  ;;  %v21997_v53 = vld [vmem:[%s26997_s12 + $0x2f4] sm:$0xff]  }
0x1507   : > { %19760 = vmatprep.subr.bf16.mxu1 %v22102_v26 }
0x150a   : > { %19761 = vmatpush3.bf16.msra.mxu1 %v21963_v58  ;;  %v21998_v58 = vld [vmem:[%s26997_s12 + $0x98] sm:$0xff]  }
0x150b   : > { %19762 = vmatprep.subr.bf16.mxu1 %v22102_v26 }
0x150e   : > { %19763 = vmatpush3.bf16.msra.mxu1 %v21964_v59  ;;  %v21999_v59 = vld [vmem:[%s26997_s12 + $0x2fc] sm:$0xff]  }
0x150f   : > { %19764 = vmatprep.subr.bf16.mxu1 %v22102_v26 }
0x1512   : > { %19765 = vmatpush3.bf16.msra.mxu1 %v12224_v62  ;;  %v22000_v62 = vld [vmem:[%s26997_s12 + $0xa0] sm:$0xff]  }
0x1513   : > { %19780 = vmatprep.subr.bf16.mxu1 %v22102_v26 }
0x1515   : > { %19767 = vmatmul.mubr.msk.bf16.vlgmr.msra.gmra.mrb[92].mxu1 %vm10084_vm11, %v25537_v55 }
0x1516   : > { %19781 = vmatpush3.bf16.msra.mxu1 %v21966_v2  ;;  %19790 = vmatprep.mubr.msk.bf16.mxu1 %vm22103_vm13, %v22102_v26  ;;  %v22001_v2 = vld [vmem:[%s26997_s12 + $0x304] sm:$0xff]  }
0x1517   : > { %19782 = vmatprep.subr.bf16.mxu1 %v22102_v26 }
0x151a   : > { %19783 = vmatpush3.bf16.msra.mxu1 %v21967_v3  ;;  %v22002_v3 = vld [vmem:[%s26997_s12 + $0xa8] sm:$0xff]  }
0x151b   : > { %19784 = vmatprep.subr.bf16.mxu1 %v22102_v26 }
0x151e   : > { %19785 = vmatpush3.bf16.msra.mxu1 %v21968_v0  ;;  %v22003_v0 = vld [vmem:[%s26997_s12 + $0x30c] sm:$0xff]  }
0x151f   : > { %19786 = vmatprep.subr.bf16.mxu1 %v22102_v26 }
0x1522   : > { %19787 = vmatpush3.bf16.msra.mxu1 %v21969_v56  ;;  %v22004_v56 = vld [vmem:[%s26997_s12 + $0xb0] ss:$0 sps:$4 sm:$0x33]  }
0x1523   : > { %19788 = vmatprep.subr.bf16.mxu1 %v22102_v26  ;;  %v10915_v12 = vsel %vm10174_vm12, %v22004_v56, 0  ;;  %v18379_v56 = vld [vmem:[%s26998_s13 + $0x80] sm:$0xff] }
0x1526   : > { %19789 = vmatpush3.bf16.msra.mxu1 %v12411_v5 }
0x1527   : > { %19804 = vmatprep.subr.bf16.mxu1 %v22102_v26 }
0x1529   : > { %19791 = vmatmul.mubr.msk.bf16.vlgmr.msra.gmra.mrb[96].mxu1 %vm10084_vm11, %v25537_v55 }
0x152a   : > { %19805 = vmatpush3.bf16.msra.mxu1 %v21971_v6  ;;  %19814 = vmatprep.mubr.msk.bf16.mxu1 %vm22103_vm13, %v22102_v26 }
0x152b   : > { %19806 = vmatprep.subr.bf16.mxu1 %v22102_v26 }
0x152e   : > { %19807 = vmatpush3.bf16.msra.mxu1 %v21972_v7 }
0x152f   : > { %19808 = vmatprep.subr.bf16.mxu1 %v22102_v26 }
0x1532   : > { %19809 = vmatpush3.bf16.msra.mxu1 %v21973_v8 }
0x1533   : > { %19810 = vmatprep.subr.bf16.mxu1 %v22102_v26 }
0x1536   : > { %19811 = vmatpush3.bf16.msra.mxu1 %v21974_v11 }
0x1537   : > { %19812 = vmatprep.subr.bf16.mxu1 %v22102_v26 }
0x153a   : > { %19813 = vmatpush3.bf16.msra.mxu1 %v12598_v9  ;;  %v14094_v9 = vsel %vm10174_vm12, %v22005_v4, 0 }
0x153b   : > { %19852 = vmatprep.subr.bf16.mxu1 %v22102_v26 }
0x153d   : > { %19815 = vmatmul.mubr.msk.bf16.vlgmr.msra.gmra.mrb[100].mxu1 %vm10084_vm11, %v25537_v55 }
0x153e   : > { %19853 = vmatpush3.bf16.msra.mxu1 %v21976_v10  ;;  %19862 = vmatprep.mubr.msk.bf16.mxu1 %vm22103_vm13, %v22102_v26  ;;  %v22006_v10 = vld [vmem:[%s26997_s12 + $0x318] sm:$0xff]  }
0x153f   : > { %19854 = vmatprep.subr.bf16.mxu1 %v22102_v26 }
0x1542   : > { %19855 = vmatpush3.bf16.msra.mxu1 %v21977_v13  ;;  %v22007_v13 = vld [vmem:[%s26997_s12 + $0x320] sm:$0xff]  }
0x1543   : > { %19856 = vmatprep.subr.bf16.mxu1 %v22102_v26 }
0x1546   : > { %19857 = vmatpush3.bf16.msra.mxu1 %v21978_v14  ;;  %v22008_v14 = vld [vmem:[%s26997_s12 + $0x328] sm:$0xff]  }
0x1547   : > { %19858 = vmatprep.subr.bf16.mxu1 %v22102_v26 }
0x154a   : > { %19859 = vmatpush3.bf16.msra.mxu1 %v21979_v29  ;;  %v22009_v29 = vld [vmem:[%s26997_s12 + $0x330] sm:$0xff]  }
0x154b   : > { %19860 = vmatprep.subr.bf16.mxu1 %v22102_v26 }
0x154e   : > { %19861 = vmatpush3.bf16.msra.mxu1 %v12972_v15 }
0x154f   : > { %19876 = vmatprep.subr.bf16.mxu1 %v22102_v26 }
0x1551   : > { %19863 = vmatmul.mubr.msk.bf16.vlgmr.msra.gmra.mrb[104].mxu1 %vm10084_vm11, %v25537_v55 }
0x1552   : > { %19877 = vmatpush3.bf16.msra.mxu1 %v21981_v16  ;;  %19886 = vmatprep.mubr.msk.bf16.mxu1 %vm22103_vm13, %v22102_v26 }
0x1553   : > { %19878 = vmatprep.subr.bf16.mxu1 %v22102_v26 }
0x1556   : > { %19879 = vmatpush3.bf16.msra.mxu1 %v21982_v17 }
0x1557   : > { %19880 = vmatprep.subr.bf16.mxu1 %v22102_v26 }
0x155a   : > { %19881 = vmatpush3.bf16.msra.mxu1 %v21983_v18 }
0x155b   : > { %19882 = vmatprep.subr.bf16.mxu1 %v22102_v26 }
0x155c   : > { %v25869_v32 = vpop.f32.mrb[64].mxu1 }
0x155d   : > { %v25871_v21 = vpop.f32.mrb[65].mxu1 }
0x155e   : > { %19883 = vmatpush3.bf16.msra.mxu1 %v21984_v19 }
0x155f   : > { %19884 = vmatprep.subr.bf16.mxu1 %v22102_v26 }
0x1560   : > { %v25875_v23 = vpop.f32.mrb[66].mxu1 }
0x1561   : > { %v25877_v61 = vpop.f32.mrb[67].mxu1 }
0x1562   : > { %19885 = vmatpush3.bf16.msra.mxu1 %v13159_v22  ;;  %v22011_v22 = vld [vmem:[%s26997_s12 + $0x33c] sm:$0xff]  }
0x1563   : > { %19924 = vmatprep.subr.bf16.mxu1 %v22102_v26 }
0x1565   : > { %19887 = vmatmul.mubr.msk.bf16.vlgmr.msra.gmra.mrb[108].mxu1 %vm10084_vm11, %v25537_v55 }
0x1566   : > { %19925 = vmatpush3.bf16.msra.mxu1 %v21986_v27  ;;  %19934 = vmatprep.mubr.msk.bf16.mxu1 %vm22103_vm13, %v22102_v26  ;;  %v22012_v27 = vld [vmem:[%s26997_s12 + $0x344] sm:$0xff]  }
0x1567   : > { %19926 = vmatprep.subr.bf16.mxu1 %v22102_v26 }
0x156a   : > { %19927 = vmatpush3.bf16.msra.mxu1 %v21987_v24  ;;  %v22013_v24 = vld [vmem:[%s26997_s12 + $0x34c] sm:$0xff]  }
0x156b   : > { %19928 = vmatprep.subr.bf16.mxu1 %v22102_v26 }
0x156e   : > { %19929 = vmatpush3.bf16.msra.mxu1 %v21988_v25  ;;  %v22014_v25 = vld [vmem:[%s26997_s12 + $0x354] sm:$0xff]  }
0x156f   : > { %19930 = vmatprep.subr.bf16.mxu1 %v22102_v26 }
0x1570   : > { %v10577_v34 = vpop.f32.mrb[68].mxu1 }
0x1571   : > { %v19552_v36 = vpop.f32.mrb[69].mxu1 }
0x1572   : > { %v10580_v38 = vpop.f32.mrb[70].mxu1  ;;  %19931 = vmatpush3.bf16.msra.mxu1 %v21989_v28  ;;  %v22015_v28 = vld [vmem:[%s26997_s12 + $0x35c] ss:$0 sps:$4 sm:$0x33]  }
0x1573   : > { %v20268_v40 = vpack.c.bf16 %v10580_v38, %v10577_v34  ;;  %v19553_v20 = vpop.f32.mrb[71].mxu1  ;;  %19932 = vmatprep.subr.bf16.mxu1 %v22102_v26 }
0x1574   : > { %v14468_v20 = vsel %vm10174_vm12, %v22015_v28, 0  ;;  %v22040_v28 = vld [vmem:[%s26997_s12 + $0x47c] ss:$0 sps:$4 sm:$0x33]  }
0x1575   : > { %20269 = vmatprep.subr.bf16.mxu0 %v20268_v40 }
0x1576   : > { %20271 = vmatpush3.bf16.msra.mxu0 %v20268_v40  ;;  %19933 = vmatpush3.bf16.msra.mxu1 %v13533_v41  ;;  %v22016_v41 = vld [vmem:[%s26997_s12 + $0x384] sm:$0xff]  }
0x1577   : > { %19948 = vmatprep.subr.bf16.mxu1 %v22102_v26 }
0x1579   : > { %19935 = vmatmul.mubr.msk.bf16.vlgmr.msra.gmra.mrb[112].mxu1 %vm10084_vm11, %v25537_v55  ;;  %19559 = vmatmul.mubr.msk.f32.vlgmr.msra.gmra.mrb[52].mxu0 %vm571_vm0, %v18334_v43  ;;  %v22018_v43 = vld [vmem:[%s26997_s12 + $0x394] sm:$0xff]  }
0x157a   : > { %19949 = vmatpush3.bf16.msra.mxu1 %v21991_v42  ;;  %19561 = vmatprep.mubr.msk.f32.mxu0 %vm571_vm0, %v18335_v44  ;;  %v22017_v42 = vld [vmem:[%s26997_s12 + $0x38c] sm:$0xff]   ;;  %v22019_v44 = vld [vmem:[%s26997_s12 + $0x39c] sm:$0xff]  }
0x157b   : > { %19950 = vmatprep.subr.bf16.mxu1 %v22102_v26  ;;  %19958 = vmatprep.mubr.msk.bf16.mxu1 %vm22103_vm13, %v22102_v26 }
0x157d   : > { %19562 = vmatmul.mubr.msk.f32.gmra.mrb[54].mxu0 %vm571_vm0, %v18336_v39 }
0x157e   : > { %19951 = vmatpush3.bf16.msra.mxu1 %v21992_v30  ;;  %19582 = vmatprep.mubr.msk.f32.mxu0 %vm571_vm0, %v18356_v45  ;;  %v22020_v30 = vld [vmem:[%s26997_s12 + $0x3a4] ss:$0 sps:$4 sm:$0x33]  }
0x157f   : > { %19952 = vmatprep.subr.bf16.mxu1 %v22102_v26 }
0x1582   : > { %19953 = vmatpush3.bf16.msra.mxu1 %v21993_v46 }
0x1583   : > { %19954 = vmatprep.subr.bf16.mxu1 %v22102_v26 }
0x1584   : > { %v10764_v35 = vpop.f32.mrb[72].mxu1 }
0x1585   : > { %v19576_v63 = vpop.f32.mrb[73].mxu1 }
0x1586   : > { %v10767_v1 = vpop.f32.mrb[74].mxu1  ;;  %19955 = vmatpush3.bf16.msra.mxu1 %v21994_v47  ;;  %v22021_v63 = vld [vmem:[%s26997_s12 + $0x3a8] sm:$0xff]  }
0x1587   : > { %v20272_v57 = vpack.c.bf16 %v10767_v1, %v10764_v35  ;;  %v19577_v49 = vpop.f32.mrb[75].mxu1  ;;  %19956 = vmatprep.subr.bf16.mxu1 %v22102_v26  ;;  %v14842_v35 = vsel %vm10174_vm12, %v22020_v30, 0  ;;  %v22022_v1 = vld [vmem:[%s26997_s12 + $0x3b0] sm:$0xff]  }
0x1588   : > { %v22024_v49 = vld [vmem:[%s26997_s12 + $0x3c0] sm:$0xff]  }
0x1589   : > { %20273 = vmatprep.subr.bf16.mxu0 %v20272_v57 }
0x158a   : > { %20275 = vmatpush3.bf16.msra.mxu0 %v20272_v57  ;;  %19957 = vmatpush3.bf16.msra.mxu1 %v13720_v50  ;;  %v22023_v57 = vld [vmem:[%s26997_s12 + $0x3b8] sm:$0xff]   ;;  %v22025_v50 = vld [vmem:[%s26997_s12 + $0x3c8] ss:$0 sps:$4 sm:$0x33]  }
0x158b   : > { %19588 = vmatprep.subr.bf16.mxu0 %v22102_v26  ;;  %19996 = vmatprep.subr.bf16.mxu1 %v22102_v26 }
0x158d   : > { %19959 = vmatmul.mubr.msk.bf16.vlgmr.msra.gmra.mrb[116].mxu1 %vm10084_vm11, %v25537_v55  ;;  %19583 = vmatmul.mubr.msk.f32.vlgmr.msra.gmra.mrb[52].mxu0 %vm571_vm0, %v18357_v51 }
0x158e   : > { %19589 = vmatpush3.bf16.msra.mxu0 %v21996_v52  ;;  %19997 = vmatpush3.bf16.msra.mxu1 %v21997_v53 }
0x158f   : > { %19590 = vmatprep.subr.bf16.mxu0 %v22102_v26  ;;  %19998 = vmatprep.subr.bf16.mxu1 %v22102_v26 }
0x1590   : > { %19585 = vmatprep.mubr.msk.f32.mxu0 %vm571_vm0, %v18358_v54  ;;  %20006 = vmatprep.mubr.msk.bf16.mxu1 %vm22103_vm13, %v22102_v26 }
0x1591   : > { %19586 = vmatmul.mubr.msk.f32.gmra.mrb[54].mxu0 %vm571_vm0, %v18359_v60  ;;  %v22026_v60 = vld [vmem:[%s26997_s12 + $0x3f0] sm:$0xff]  }
0x1592   : > { %19591 = vmatpush3.bf16.msra.mxu0 %v21998_v58  ;;  %19999 = vmatpush3.bf16.msra.mxu1 %v21999_v59  ;;  %v15029_v59 = vsel %vm10174_vm12, %v22025_v50, 0 }
0x1593   : > { %19592 = vmatprep.subr.bf16.mxu0 %v22102_v26  ;;  %20000 = vmatprep.subr.bf16.mxu1 %v22102_v26 }
0x1594   : > { %19598 = vmatprep.mubr.msk.bf16.mxu0 %vm22103_vm13, %v22102_v26 }
0x1596   : > { %19593 = vmatpush3.bf16.msra.mxu0 %v22000_v62  ;;  %20001 = vmatpush3.bf16.msra.mxu1 %v22001_v2  ;;  %v22027_v62 = vld [vmem:[%s26997_s12 + $0x3f8] sm:$0xff]   ;;  %v22028_v2 = vld [vmem:[%s26997_s12 + $0x400] sm:$0xff]  }
0x1597   : > { %19594 = vmatprep.subr.bf16.mxu0 %v22102_v26  ;;  %20002 = vmatprep.subr.bf16.mxu1 %v22102_v26 }
0x1598   : > { %v11138_v5 = vpop.f32.mrb[76].mxu1 }
0x1599   : > { %v19624_v6 = vpop.f32.mrb[77].mxu1 }
0x159a   : > { %19595 = vmatpush3.bf16.msra.mxu0 %v22002_v3  ;;  %v11141_v7 = vpop.f32.mrb[78].mxu1  ;;  %20003 = vmatpush3.bf16.msra.mxu1 %v22003_v0  ;;  %v22029_v3 = vld [vmem:[%s26997_s12 + $0x408] sm:$0xff]   ;;  %v22030_v0 = vld [vmem:[%s26997_s12 + $0x410] ss:$0 sps:$4 sm:$0x33]  }
0x159b   : > { %v26001_v8 = vpack.c.bf16 %v11141_v7, %v11138_v5  ;;  %v19625_v11 = vpop.f32.mrb[79].mxu1  ;;  %19596 = vmatprep.subr.bf16.mxu0 %v22102_v26  ;;  %20004 = vmatprep.subr.bf16.mxu1 %v22102_v26 }
0x159e   : > { %19597 = vmatpush3.bf16.msra.mxu0 %v10915_v12  ;;  %20005 = vmatpush3.bf16.msra.mxu1 %v14094_v9  ;;  %v15403_v12 = vsel %vm10174_vm12, %v22030_v0, 0  ;;  %v22031_v9 = vld [vmem:[%s26997_s12 + $0x414] sm:$0xff]  }
0x159f   : > { %20020 = vmatprep.subr.bf16.mxu1 %v22102_v26 }
0x15a1   : > { %19599 = vmatmul.mubr.msk.bf16.vlgmr.msra.gmra.mrb[56].mxu0 %vm10084_vm11, %v25537_v55  ;;  %20007 = vmatmul.mubr.msk.bf16.vlgmr.msra.gmra.mrb[120].mxu1 %vm10084_vm11, %v25537_v55 }
0x15a2   : > { %20021 = vmatpush3.bf16.msra.mxu1 %v22006_v10  ;;  %20030 = vmatprep.mubr.msk.bf16.mxu1 %vm22103_vm13, %v22102_v26  ;;  %v22032_v10 = vld [vmem:[%s26997_s12 + $0x41c] sm:$0xff]  }
0x15a3   : > { %20022 = vmatprep.subr.bf16.mxu1 %v22102_v26  ;;  %19606 = vmatprep.mubr.msk.f32.mxu0 %vm571_vm0, %v18379_v56 }
0x15a6   : > { %20023 = vmatpush3.bf16.msra.mxu1 %v22007_v13  ;;  %v22033_v13 = vld [vmem:[%s26997_s12 + $0x424] sm:$0xff]  }
0x15a7   : > { %20024 = vmatprep.subr.bf16.mxu1 %v22102_v26 }
0x15aa   : > { %20025 = vmatpush3.bf16.msra.mxu1 %v22008_v14  ;;  %v22034_v14 = vld [vmem:[%s26997_s12 + $0x42c] sm:$0xff]  }
0x15ab   : > { %20026 = vmatprep.subr.bf16.mxu1 %v22102_v26 }
0x15ac   : > { %v11325_v15 = vpop.f32.mrb[80].mxu1 }
0x15ad   : > { %v19648_v16 = vpop.f32.mrb[81].mxu1 }
0x15ae   : > { %v11328_v17 = vpop.f32.mrb[82].mxu1  ;;  %20027 = vmatpush3.bf16.msra.mxu1 %v22009_v29  ;;  %v22035_v29 = vld [vmem:[%s26997_s12 + $0x434] ss:$0 sps:$4 sm:$0x33]  }
0x15af   : > { %v26032_v18 = vpack.c.bf16 %v11328_v17, %v11325_v15  ;;  %v19649_v19 = vpop.f32.mrb[83].mxu1  ;;  %20028 = vmatprep.subr.bf16.mxu1 %v22102_v26 }
0x15b2   : > { %20029 = vmatpush3.bf16.msra.mxu1 %v14281_v31  ;;  %v15590_v31 = vsel %vm10174_vm12, %v22035_v29, 0 }
0x15b3   : > { %20044 = vmatprep.subr.bf16.mxu1 %v22102_v26 }
0x15b5   : > { %20031 = vmatmul.mubr.msk.bf16.vlgmr.msra.gmra.mrb[124].mxu1 %vm10084_vm11, %v25537_v55 }
0x15b6   : > { %20045 = vmatpush3.bf16.msra.mxu1 %v22011_v22  ;;  %20054 = vmatprep.mubr.msk.bf16.mxu1 %vm22103_vm13, %v22102_v26  ;;  %v22036_v22 = vld [vmem:[%s26997_s12 + $0x45c] sm:$0xff]  }
0x15b7   : > { %20046 = vmatprep.subr.bf16.mxu1 %v22102_v26 }
0x15ba   : > { %20047 = vmatpush3.bf16.msra.mxu1 %v22012_v27  ;;  %v22037_v27 = vld [vmem:[%s26997_s12 + $0x464] sm:$0xff]  }
0x15bb   : > { %20048 = vmatprep.subr.bf16.mxu1 %v22102_v26 }
0x15be   : > { %20049 = vmatpush3.bf16.msra.mxu1 %v22013_v24  ;;  %v22038_v24 = vld [vmem:[%s26997_s12 + $0x46c] sm:$0xff]  }
0x15bf   : > { %20050 = vmatprep.subr.bf16.mxu1 %v22102_v26 }
0x15c0   : > { %v11699_v33 = vpop.f32.mrb[84].mxu1 }
0x15c1   : > { %v19696_v34 = vpop.f32.mrb[85].mxu1 }
0x15c2   : > { %v11702_v36 = vpop.f32.mrb[86].mxu1  ;;  %20051 = vmatpush3.bf16.msra.mxu1 %v22014_v25  ;;  %v22039_v25 = vld [vmem:[%s26997_s12 + $0x474] sm:$0xff]  }
0x15c3   : > { %v26059_v38 = vpack.c.bf16 %v11702_v36, %v11699_v33  ;;  %v19697_v40 = vpop.f32.mrb[87].mxu1  ;;  %20052 = vmatprep.subr.bf16.mxu1 %v22102_v26 }
0x15c6   : > { %20053 = vmatpush3.bf16.msra.mxu1 %v14468_v20 }
0x15c7   : > { %20092 = vmatprep.subr.bf16.mxu1 %v22102_v26 }
0x15c9   : > { %20055 = vmatmul.mubr.msk.bf16.vlgmr.msra.gmra.mrb[128].mxu1 %vm10084_vm11, %v25537_v55 }
0x15ca   : > { %20093 = vmatpush3.bf16.msra.mxu1 %v22016_v41  ;;  %20102 = vmatprep.mubr.msk.bf16.mxu1 %vm22103_vm13, %v22102_v26  ;;  %v15964_v41 = vsel %vm10174_vm12, %v22040_v28, 0 }
0x15cb   : > { %20094 = vmatprep.subr.bf16.mxu1 %v22102_v26 }
0x15ce   : > { %20095 = vmatpush3.bf16.msra.mxu1 %v22017_v42 }
0x15cf   : > { %20096 = vmatprep.subr.bf16.mxu1 %v22102_v26 }
0x15d2   : > { %20097 = vmatpush3.bf16.msra.mxu1 %v22018_v43 }
0x15d3   : > { %20098 = vmatprep.subr.bf16.mxu1 %v22102_v26 }
0x15d4   : > { %v11886_v39 = vpop.f32.mrb[88].mxu1 }
0x15d5   : > { %v19720_v45 = vpop.f32.mrb[89].mxu1 }
0x15d6   : > { %v11889_v46 = vpop.f32.mrb[90].mxu1  ;;  %20099 = vmatpush3.bf16.msra.mxu1 %v22019_v44 }
0x15d7   : > { %v26086_v47 = vpack.c.bf16 %v11889_v46, %v11886_v39  ;;  %v19721_v48 = vpop.f32.mrb[91].mxu1  ;;  %20100 = vmatprep.subr.bf16.mxu1 %v22102_v26 }
0x15da   : > { %20101 = vmatpush3.bf16.msra.mxu1 %v14842_v35 }
0x15db   : > { %20116 = vmatprep.subr.bf16.mxu1 %v22102_v26 }
0x15dd   : > { %20103 = vmatmul.mubr.msk.bf16.vlgmr.msra.gmra.mrb[132].mxu1 %vm10084_vm11, %v25537_v55 }
0x15de   : > { %20117 = vmatpush3.bf16.msra.mxu1 %v22021_v63  ;;  %20126 = vmatprep.mubr.msk.bf16.mxu1 %vm22103_vm13, %v22102_v26 }
0x15df   : > { %20118 = vmatprep.subr.bf16.mxu1 %v22102_v26 }
0x15e2   : > { %20119 = vmatpush3.bf16.msra.mxu1 %v22022_v1 }
0x15e3   : > { %20120 = vmatprep.subr.bf16.mxu1 %v22102_v26 }
0x15e6   : > { %20121 = vmatpush3.bf16.msra.mxu1 %v22023_v57 }
0x15e7   : > { %20122 = vmatprep.subr.bf16.mxu1 %v22102_v26 }
0x15e8   : > { %v12260_v51 = vpop.f32.mrb[92].mxu1 }
0x15e9   : > { %v19768_v52 = vpop.f32.mrb[93].mxu1 }
0x15ea   : > { %v12263_v53 = vpop.f32.mrb[94].mxu1  ;;  %20123 = vmatpush3.bf16.msra.mxu1 %v22024_v49 }
0x15eb   : > { %v26113_v54 = vpack.c.bf16 %v12263_v53, %v12260_v51  ;;  %v19769_v58 = vpop.f32.mrb[95].mxu1  ;;  %20124 = vmatprep.subr.bf16.mxu1 %v22102_v26 }
0x15ee   : > { %20125 = vmatpush3.bf16.msra.mxu1 %v15029_v59 }
0x15ef   : > { %20164 = vmatprep.subr.bf16.mxu1 %v22102_v26 }
0x15f1   : > { %20127 = vmatmul.mubr.msk.bf16.vlgmr.msra.gmra.mrb[136].mxu1 %vm10084_vm11, %v25537_v55 }
0x15f2   : > { %20165 = vmatpush3.bf16.msra.mxu1 %v22026_v60  ;;  %20174 = vmatprep.mubr.msk.bf16.mxu1 %vm22103_vm13, %v22102_v26 }
0x15f3   : > { %20166 = vmatprep.subr.bf16.mxu1 %v22102_v26 }
0x15f6   : > { %20167 = vmatpush3.bf16.msra.mxu1 %v22027_v62 }
0x15f7   : > { %20168 = vmatprep.subr.bf16.mxu1 %v22102_v26 }
0x15fa   : > { %20169 = vmatpush3.bf16.msra.mxu1 %v22028_v2 }
0x15fb   : > { %20170 = vmatprep.subr.bf16.mxu1 %v22102_v26 }
0x15fc   : > { %v12447_v4 = vpop.f32.mrb[96].mxu1 }
0x15fd   : > { %v19792_v5 = vpop.f32.mrb[97].mxu1 }
0x15fe   : > { %v12450_v6 = vpop.f32.mrb[98].mxu1  ;;  %20171 = vmatpush3.bf16.msra.mxu1 %v22029_v3  ;;  %v18381_v5 = vld [vmem:[%s26998_s13 + $0x90] sm:$0xff] }
0x15ff   : > { %v26144_v7 = vpack.c.bf16 %v12450_v6, %v12447_v4  ;;  %v19793_v11 = vpop.f32.mrb[99].mxu1  ;;  %20172 = vmatprep.subr.bf16.mxu1 %v22102_v26  ;;  %v18380_v4 = vld [vmem:[%s26998_s13 + $0x88] sm:$0xff]  ;;  %v18382_v6 = vld [vmem:[%s26998_s13 + $0x98] sm:$0xff] }
0x1600   : > { %v18402_v11 = vld [vmem:[%s26998_s13 + $0xa0] sm:$0xff] }
0x1602   : > { %20173 = vmatpush3.bf16.msra.mxu1 %v15403_v12  ;;  %v18404_v12 = vld [vmem:[%s26998_s13 + $0xb0] sm:$0xff] }
0x1603   : > { %20188 = vmatprep.subr.bf16.mxu1 %v22102_v26 }
0x1605   : > { %20175 = vmatmul.mubr.msk.bf16.vlgmr.msra.gmra.mrb[140].mxu1 %vm10084_vm11, %v25537_v55 }
0x1606   : > { %20189 = vmatpush3.bf16.msra.mxu1 %v22031_v9  ;;  %20198 = vmatprep.mubr.msk.bf16.mxu1 %vm22103_vm13, %v22102_v26  ;;  %v18405_v9 = vld [vmem:[%s26998_s13 + $0xb8] sm:$0xff] }
0x1607   : > { %20190 = vmatprep.subr.bf16.mxu1 %v22102_v26 }
0x160a   : > { %20191 = vmatpush3.bf16.msra.mxu1 %v22032_v10  ;;  %v18425_v10 = vld [vmem:[%s26998_s13 + $0xc0] sm:$0xff] }
0x160b   : > { %20192 = vmatprep.subr.bf16.mxu1 %v22102_v26 }
0x160e   : > { %20193 = vmatpush3.bf16.msra.mxu1 %v22033_v13 }
0x160f   : > { %20194 = vmatprep.subr.bf16.mxu1 %v22102_v26 }
0x1610   : > { %v12634_v37 = vpop.f32.mrb[100].mxu1 }
0x1611   : > { %v19816_v15 = vpop.f32.mrb[101].mxu1 }
0x1612   : > { %v12637_v16 = vpop.f32.mrb[102].mxu1  ;;  %20195 = vmatpush3.bf16.msra.mxu1 %v22034_v14 }
0x1613   : > { %v26171_v17 = vpack.c.bf16 %v12637_v16, %v12634_v37  ;;  %v19817_v19 = vpop.f32.mrb[103].mxu1  ;;  %20196 = vmatprep.subr.bf16.mxu1 %v22102_v26  ;;  %v22041_v37 = vld [vmem:[%s26997_s12 + $0xfc] sm:$0xff]  }
0x1614   : > { %v18427_v19 = vld [vmem:[%s26998_s13 + $0xd0] sm:$0xff] }
0x1616   : > { %20197 = vmatpush3.bf16.msra.mxu1 %v15590_v31  ;;  %v22042_v31 = vld [vmem:[%s26997_s12 + $0x104] sm:$0xff]  }
0x1617   : > { %20236 = vmatprep.subr.bf16.mxu1 %v22102_v26 }
0x1619   : > { %20199 = vmatmul.mubr.msk.bf16.vlgmr.msra.gmra.mrb[144].mxu1 %vm10084_vm11, %v25537_v55 }
0x161a   : > { %20237 = vmatpush3.bf16.msra.mxu1 %v22036_v22  ;;  %20246 = vmatprep.mubr.msk.bf16.mxu1 %vm22103_vm13, %v22102_v26  ;;  %v18428_v22 = vld [vmem:[%s26998_s13 + $0xd8] sm:$0xff] }
0x161b   : > { %20238 = vmatprep.subr.bf16.mxu1 %v22102_v26 }
0x161e   : > { %20239 = vmatpush3.bf16.msra.mxu1 %v22037_v27  ;;  %v22043_v27 = vld [vmem:[%s26997_s12 + $0x10c] sm:$0xff]  }
0x161f   : > { %20240 = vmatprep.subr.bf16.mxu1 %v22102_v26 }
0x1622   : > { %20241 = vmatpush3.bf16.msra.mxu1 %v22038_v24  ;;  %v22044_v24 = vld [vmem:[%s26997_s12 + $0x114] sm:$0xff]  }
0x1623   : > { %20242 = vmatprep.subr.bf16.mxu1 %v22102_v26 }
0x1624   : > { %v13008_v33 = vpop.f32.mrb[104].mxu1 }
0x1625   : > { %v19864_v34 = vpop.f32.mrb[105].mxu1 }
0x1626   : > { %v13011_v36 = vpop.f32.mrb[106].mxu1  ;;  %20243 = vmatpush3.bf16.msra.mxu1 %v22039_v25  ;;  %v22045_v25 = vld [vmem:[%s26997_s12 + $0x11c] ss:$0 sps:$4 sm:$0x33]  }
0x1627   : > { %v26198_v40 = vpack.c.bf16 %v13011_v36, %v13008_v33  ;;  %v19865_v20 = vpop.f32.mrb[107].mxu1  ;;  %20244 = vmatprep.subr.bf16.mxu1 %v22102_v26  ;;  %v11476_v28 = vsel %vm10174_vm12, %v22045_v25, 0  ;;  %v22047_v25 = vld [vmem:[%s26997_s12 + $0x170] sm:$0xff]  }
0x162a   : > { %20245 = vmatpush3.bf16.msra.mxu1 %v15964_v41 }
0x162d   : > { %20247 = vmatmul.mubr.msk.bf16.vlgmr.msra.gmra.mrb[148].mxu1 %vm10084_vm11, %v25537_v55 }
0x1638   : > { %v13195_v42 = vpop.f32.mrb[108].mxu1 }
0x1639   : > { %v19888_v43 = vpop.f32.mrb[109].mxu1 }
0x163a   : > { %v13198_v44 = vpop.f32.mrb[110].mxu1 }
0x163b   : > { %v26204_v30 = vpack.c.bf16 %v13198_v44, %v13195_v42  ;;  %v19889_v39 = vpop.f32.mrb[111].mxu1 }
0x164c   : > { %v13569_v45 = vpop.f32.mrb[112].mxu1 }
0x164d   : > { %v19936_v46 = vpop.f32.mrb[113].mxu1 }
0x164e   : > { %v13572_v48 = vpop.f32.mrb[114].mxu1 }
0x164f   : > { %v26206_v35 = vpack.c.bf16 %v13572_v48, %v13569_v45  ;;  %v19937_v63 = vpop.f32.mrb[115].mxu1 }
0x1660   : > { %v13756_v1 = vpop.f32.mrb[116].mxu1 }
0x1661   : > { %v19960_v57 = vpop.f32.mrb[117].mxu1 }
0x1662   : > { %v13759_v49 = vpop.f32.mrb[118].mxu1 }
0x1663   : > { %v26208_v50 = vpack.c.bf16 %v13759_v49, %v13756_v1  ;;  %v19961_v51 = vpop.f32.mrb[119].mxu1 }
0x1674   : > { %v10951_v52 = vpop.f32.mrb[56].mxu0  ;;  %v14130_v53 = vpop.f32.mrb[120].mxu1 }
0x1675   : > { %v19600_v58 = vpop.f32.mrb[57].mxu0  ;;  %v20008_v59 = vpop.f32.mrb[121].mxu1 }
0x1676   : > { %v10954_v60 = vpop.f32.mrb[58].mxu0  ;;  %v14133_v62 = vpop.f32.mrb[122].mxu1 }
0x1677   : > { %v20276_v2 = vpack.c.bf16 %v10954_v60, %v10951_v52  ;;  %v26210_v3 = vpack.c.bf16 %v14133_v62, %v14130_v53  ;;  %v19601_v0 = vpop.f32.mrb[59].mxu0  ;;  %v20009_v56 = vpop.f32.mrb[123].mxu1 }
0x1678   : > { %v18448_v56 = vld [vmem:[%s26998_s13 + $0xe0] sm:$0xff] }
0x1679   : > { %20277 = vmatprep.subr.bf16.mxu0 %v20276_v2 }
0x167a   : > { %20279 = vmatpush3.bf16.msra.mxu0 %v20276_v2 }
0x167b   : > { %20281 = vmatprep.subr.bf16.mxu0 %v26001_v8 }
0x167d   : > { %19607 = vmatmul.mubr.msk.f32.vlgmr.msra.gmra.mrb[52].mxu0 %vm571_vm0, %v18380_v4 }
0x167e   : > { %20283 = vmatpush3.bf16.msra.mxu0 %v26001_v8  ;;  %19609 = vmatprep.mubr.msk.f32.mxu0 %vm571_vm0, %v18381_v5  ;;  %v18403_v8 = vld [vmem:[%s26998_s13 + $0xa8] sm:$0xff] }
0x167f   : > { %20285 = vmatprep.subr.bf16.mxu0 %v26032_v18 }
0x1681   : > { %19610 = vmatmul.mubr.msk.f32.gmra.mrb[54].mxu0 %vm571_vm0, %v18382_v6 }
0x1682   : > { %19630 = vmatprep.mubr.msk.f32.mxu0 %vm571_vm0, %v18402_v11 }
0x1685   : > { %19631 = vmatmul.mubr.msk.f32.vlgmr.msra.gmra.mrb[52].mxu0 %vm571_vm0, %v18403_v8 }
0x1686   : > { %20287 = vmatpush3.bf16.msra.mxu0 %v26032_v18  ;;  %19633 = vmatprep.mubr.msk.f32.mxu0 %vm571_vm0, %v18404_v12  ;;  %v18426_v18 = vld [vmem:[%s26998_s13 + $0xc8] sm:$0xff] }
0x1687   : > { %19660 = vmatprep.subr.bf16.mxu0 %v22102_v26 }
0x1688   : > { %v14317_v13 = vpop.f32.mrb[124].mxu1 }
0x1689   : > { %19634 = vmatmul.mubr.msk.f32.gmra.mrb[54].mxu0 %vm571_vm0, %v18405_v9  ;;  %v20032_v14 = vpop.f32.mrb[125].mxu1 }
0x168a   : > { %v14320_v29 = vpop.f32.mrb[126].mxu1  ;;  %19654 = vmatprep.mubr.msk.f32.mxu0 %vm571_vm0, %v18425_v10 }
0x168b   : > { %v26255_v15 = vpack.c.bf16 %v14320_v29, %v14317_v13  ;;  %v20033_v16 = vpop.f32.mrb[127].mxu1  ;;  %v18449_v29 = vld [vmem:[%s26998_s13 + $0xe8] sm:$0xff] }
0x168c   : > { %v18471_v16 = vld [vmem:[%s26998_s13 + $0x100] sm:$0xff] }
0x168d   : > { %19655 = vmatmul.mubr.msk.f32.vlgmr.msra.gmra.mrb[52].mxu0 %vm571_vm0, %v18426_v18  ;;  %v18450_v18 = vld [vmem:[%s26998_s13 + $0xf0] sm:$0xff] }
0x168e   : > { %19661 = vmatpush3.bf16.msra.mxu0 %v22041_v37  ;;  %19657 = vmatprep.mubr.msk.f32.mxu0 %vm571_vm0, %v18427_v19  ;;  %v18451_v37 = vld [vmem:[%s26998_s13 + $0xf8] sm:$0xff]  ;;  %v18473_v19 = vld [vmem:[%s26998_s13 + $0x110] sm:$0xff] }
0x168f   : > { %19662 = vmatprep.subr.bf16.mxu0 %v22102_v26 }
0x1691   : > { %19658 = vmatmul.mubr.msk.f32.gmra.mrb[54].mxu0 %vm571_vm0, %v18428_v22  ;;  %v18494_v22 = vld [vmem:[%s26998_s13 + $0x120] sm:$0xff] }
0x1692   : > { %19663 = vmatpush3.bf16.msra.mxu0 %v22042_v31  ;;  %19670 = vmatprep.mubr.msk.bf16.mxu0 %vm22103_vm13, %v22102_v26  ;;  %v18474_v31 = vld [vmem:[%s26998_s13 + $0x118] sm:$0xff] }
0x1693   : > { %19664 = vmatprep.subr.bf16.mxu0 %v22102_v26 }
0x1696   : > { %19665 = vmatpush3.bf16.msra.mxu0 %v22043_v27  ;;  %v22046_v27 = vld [vmem:[%s26997_s12 + $0x168] sm:$0xff]  }
0x1697   : > { %19666 = vmatprep.subr.bf16.mxu0 %v22102_v26 }
0x169a   : > { %19667 = vmatpush3.bf16.msra.mxu0 %v22044_v24  ;;  %v18496_v24 = vld [vmem:[%s26998_s13 + $0x130] sm:$0xff] }
0x169b   : > { %19668 = vmatprep.subr.bf16.mxu0 %v22102_v26 }
0x169c   : > { %v14504_v33 = vpop.f32.mrb[128].mxu1 }
0x169d   : > { %v20056_v34 = vpop.f32.mrb[129].mxu1 }
0x169e   : > { %19669 = vmatpush3.bf16.msra.mxu0 %v11476_v28  ;;  %v14507_v36 = vpop.f32.mrb[130].mxu1  ;;  %v18497_v28 = vld [vmem:[%s26998_s13 + $0x138] sm:$0xff]  ;;  %v22049_v34 = vld [vmem:[%s26997_s12 + $0x180] sm:$0xff]  }
0x169f   : > { %v26285_v20 = vpack.c.bf16 %v14507_v36, %v14504_v33  ;;  %v20057_v41 = vpop.f32.mrb[131].mxu1  ;;  %v22048_v33 = vld [vmem:[%s26997_s12 + $0x178] sm:$0xff]   ;;  %v22050_v36 = vld [vmem:[%s26997_s12 + $0x188] ss:$0 sps:$4 sm:$0x33]  }
0x16a0   : > { %v12037_v41 = vsel %vm10174_vm12, %v22050_v36, 0  ;;  %v22058_v36 = vld [vmem:[%s26997_s12 + $0x274] sm:$0xff]  }
0x16a1   : > { %19671 = vmatmul.mubr.msk.bf16.vlgmr.msra.gmra.mrb[60].mxu0 %vm10084_vm11, %v25537_v55 }
0x16a2   : > { %19678 = vmatprep.mubr.msk.f32.mxu0 %vm571_vm0, %v18448_v56  ;;  %v22051_v56 = vld [vmem:[%s26997_s12 + $0x1f8] sm:$0xff]  }
0x16b0   : > { %v14878_v42 = vpop.f32.mrb[132].mxu1 }
0x16b1   : > { %v20104_v43 = vpop.f32.mrb[133].mxu1 }
0x16b2   : > { %v14881_v44 = vpop.f32.mrb[134].mxu1 }
0x16b3   : > { %v26289_v39 = vpack.c.bf16 %v14881_v44, %v14878_v42  ;;  %v20105_v45 = vpop.f32.mrb[135].mxu1  ;;  %v18517_v42 = vld [vmem:[%s26998_s13 + $0x140] sm:$0xff] }
0x16c4   : > { %v15065_v46 = vpop.f32.mrb[136].mxu1 }
0x16c5   : > { %v20128_v48 = vpop.f32.mrb[137].mxu1 }
0x16c6   : > { %v15068_v63 = vpop.f32.mrb[138].mxu1 }
0x16c7   : > { %v26291_v1 = vpack.c.bf16 %v15068_v63, %v15065_v46  ;;  %v20129_v57 = vpop.f32.mrb[139].mxu1  ;;  %v18518_v63 = vld [vmem:[%s26998_s13 + $0x148] sm:$0xff] }
0x16c8   : > { %v18519_v57 = vld [vmem:[%s26998_s13 + $0x150] sm:$0xff] }
0x16d8   : > { %v15439_v49 = vpop.f32.mrb[140].mxu1 }
0x16d9   : > { %v20176_v51 = vpop.f32.mrb[141].mxu1 }
0x16da   : > { %v15442_v52 = vpop.f32.mrb[142].mxu1  ;;  %v18540_v51 = vld [vmem:[%s26998_s13 + $0x160] sm:$0xff] }
0x16db   : > { %v26293_v53 = vpack.c.bf16 %v15442_v52, %v15439_v49  ;;  %v20177_v58 = vpop.f32.mrb[143].mxu1  ;;  %v18520_v49 = vld [vmem:[%s26998_s13 + $0x158] sm:$0xff]  ;;  %v18542_v52 = vld [vmem:[%s26998_s13 + $0x170] sm:$0xff] }
0x16dc   : > { %v18543_v58 = vld [vmem:[%s26998_s13 + $0x178] sm:$0xff] }
0x16ec   : > { %v15626_v59 = vpop.f32.mrb[144].mxu1 }
0x16ed   : > { %v20200_v60 = vpop.f32.mrb[145].mxu1 }
0x16ee   : > { %v15629_v62 = vpop.f32.mrb[146].mxu1  ;;  %v18565_v60 = vld [vmem:[%s26998_s13 + $0x190] sm:$0xff] }
0x16ef   : > { %v26295_v2 = vpack.c.bf16 %v15629_v62, %v15626_v59  ;;  %v20201_v0 = vpop.f32.mrb[147].mxu1  ;;  %v18563_v59 = vld [vmem:[%s26998_s13 + $0x180] sm:$0xff]  ;;  %v18566_v62 = vld [vmem:[%s26998_s13 + $0x198] sm:$0xff] }
0x16f0   : > { %v18586_v0 = vld [vmem:[%s26998_s13 + $0x1a0] sm:$0xff] }
0x1700   : > { %v16000_v4 = vpop.f32.mrb[148].mxu1 }
0x1701   : > { %v20248_v5 = vpop.f32.mrb[149].mxu1 }
0x1702   : > { %v16003_v6 = vpop.f32.mrb[150].mxu1  ;;  %v22052_v5 = vld [vmem:[%s26997_s12 + $0x200] sm:$0xff]  }
0x1703   : > { %v26301_v11 = vpack.c.bf16 %v16003_v6, %v16000_v4  ;;  %v20249_v8 = vpop.f32.mrb[151].mxu1  ;;  %v18588_v4 = vld [vmem:[%s26998_s13 + $0x1b0] sm:$0xff]  ;;  %v18589_v6 = vld [vmem:[%s26998_s13 + $0x1b8] sm:$0xff] }
0x1704   : > { %v22053_v8 = vld [vmem:[%s26997_s12 + $0x208] sm:$0xff]  }
0x1774   : > { %v11512_v12 = vpop.f32.mrb[60].mxu0 }
0x1775   : > { %v19672_v9 = vpop.f32.mrb[61].mxu0 }
0x1776   : > { %v11515_v10 = vpop.f32.mrb[62].mxu0  ;;  %v22055_v9 = vld [vmem:[%s26997_s12 + $0x218] ss:$0 sps:$4 sm:$0x33]  }
0x1777   : > { %v20288_v13 = vpack.c.bf16 %v11515_v10, %v11512_v12  ;;  %v19673_v14 = vpop.f32.mrb[63].mxu0  ;;  %v22054_v12 = vld [vmem:[%s26997_s12 + $0x210] sm:$0xff]   ;;  %v12785_v10 = vsel %vm10174_vm12, %v22055_v9, 0 }
0x1779   : > { %20289 = vmatprep.subr.bf16.mxu0 %v20288_v13 }
0x177a   : > { %20291 = vmatpush3.bf16.msra.mxu0 %v20288_v13  ;;  %v18609_v13 = vld [vmem:[%s26998_s13 + $0x1c0] sm:$0xff] }
0x177b   : > { %20293 = vmatprep.subr.bf16.mxu0 %v26059_v38 }
0x177d   : > { %19679 = vmatmul.mubr.msk.f32.vlgmr.msra.gmra.mrb[52].mxu0 %vm571_vm0, %v18449_v29 }
0x177e   : > { %20295 = vmatpush3.bf16.msra.mxu0 %v26059_v38  ;;  %19681 = vmatprep.mubr.msk.f32.mxu0 %vm571_vm0, %v18450_v18  ;;  %v18472_v38 = vld [vmem:[%s26998_s13 + $0x108] sm:$0xff] }
0x177f   : > { %20297 = vmatprep.subr.bf16.mxu0 %v26086_v47 }
0x1781   : > { %19682 = vmatmul.mubr.msk.f32.gmra.mrb[54].mxu0 %vm571_vm0, %v18451_v37 }
0x1782   : > { %19702 = vmatprep.mubr.msk.f32.mxu0 %vm571_vm0, %v18471_v16 }
0x1785   : > { %19703 = vmatmul.mubr.msk.f32.vlgmr.msra.gmra.mrb[52].mxu0 %vm571_vm0, %v18472_v38  ;;  %v18610_v38 = vld [vmem:[%s26998_s13 + $0x1c8] sm:$0xff] }
0x1786   : > { %20299 = vmatpush3.bf16.msra.mxu0 %v26086_v47  ;;  %19705 = vmatprep.mubr.msk.f32.mxu0 %vm571_vm0, %v18473_v19  ;;  %v18495_v47 = vld [vmem:[%s26998_s13 + $0x128] sm:$0xff]  ;;  %v18611_v19 = vld [vmem:[%s26998_s13 + $0x1d0] sm:$0xff] }
0x1787   : > { %19732 = vmatprep.subr.bf16.mxu0 %v22102_v26 }
0x1789   : > { %19706 = vmatmul.mubr.msk.f32.gmra.mrb[54].mxu0 %vm571_vm0, %v18474_v31  ;;  %v18612_v31 = vld [vmem:[%s26998_s13 + $0x1d8] sm:$0xff] }
0x178a   : > { %19726 = vmatprep.mubr.msk.f32.mxu0 %vm571_vm0, %v18494_v22  ;;  %v18632_v22 = vld [vmem:[%s26998_s13 + $0x1e0] sm:$0xff] }
0x178d   : > { %19727 = vmatmul.mubr.msk.f32.vlgmr.msra.gmra.mrb[52].mxu0 %vm571_vm0, %v18495_v47  ;;  %v18634_v47 = vld [vmem:[%s26998_s13 + $0x1f0] sm:$0xff] }
0x178e   : > { %19733 = vmatpush3.bf16.msra.mxu0 %v22046_v27  ;;  %19729 = vmatprep.mubr.msk.f32.mxu0 %vm571_vm0, %v18496_v24  ;;  %v18635_v27 = vld [vmem:[%s26998_s13 + $0x1f8] sm:$0xff]  ;;  %v18655_v24 = vld [vmem:[%s26998_s13 + $0x200] sm:$0xff] }
0x178f   : > { %19734 = vmatprep.subr.bf16.mxu0 %v22102_v26 }
0x1791   : > { %19730 = vmatmul.mubr.msk.f32.gmra.mrb[54].mxu0 %vm571_vm0, %v18497_v28  ;;  %v18657_v28 = vld [vmem:[%s26998_s13 + $0x210] sm:$0xff] }
0x1792   : > { %19735 = vmatpush3.bf16.msra.mxu0 %v22047_v25  ;;  %19742 = vmatprep.mubr.msk.bf16.mxu0 %vm22103_vm13, %v22102_v26  ;;  %v22056_v25 = vld [vmem:[%s26997_s12 + $0x264] sm:$0xff]  }
0x1793   : > { %19736 = vmatprep.subr.bf16.mxu0 %v22102_v26 }
0x1796   : > { %19737 = vmatpush3.bf16.msra.mxu0 %v22048_v33  ;;  %v22057_v33 = vld [vmem:[%s26997_s12 + $0x26c] sm:$0xff]  }
0x1797   : > { %19738 = vmatprep.subr.bf16.mxu0 %v22102_v26 }
0x179a   : > { %19739 = vmatpush3.bf16.msra.mxu0 %v22049_v34  ;;  %v18658_v34 = vld [vmem:[%s26998_s13 + $0x218] sm:$0xff] }
0x179b   : > { %19740 = vmatprep.subr.bf16.mxu0 %v22102_v26 }
0x179e   : > { %19741 = vmatpush3.bf16.msra.mxu0 %v12037_v41  ;;  %v22059_v41 = vld [vmem:[%s26997_s12 + $0x27c] sm:$0xff]  }
0x17a1   : > { %19743 = vmatmul.mubr.msk.bf16.vlgmr.msra.gmra.mrb[64].mxu0 %vm10084_vm11, %v25537_v55 }
0x17a2   : > { %19750 = vmatprep.mubr.msk.f32.mxu0 %vm571_vm0, %v18517_v42  ;;  %v22060_v42 = vld [vmem:[%s26997_s12 + $0x284] ss:$0 sps:$4 sm:$0x33]  }
0x1874   : > { %v12073_v43 = vpop.f32.mrb[64].mxu0 }
0x1875   : > { %v19744_v44 = vpop.f32.mrb[65].mxu0 }
0x1876   : > { %v12076_v45 = vpop.f32.mrb[66].mxu0  ;;  %v18678_v44 = vld [vmem:[%s26998_s13 + $0x220] sm:$0xff] }
0x1877   : > { %v20300_v46 = vpack.c.bf16 %v12076_v45, %v12073_v43  ;;  %v19745_v48 = vpop.f32.mrb[67].mxu0  ;;  %v13346_v43 = vsel %vm10174_vm12, %v22060_v42, 0 }
0x1879   : > { %20301 = vmatprep.subr.bf16.mxu0 %v20300_v46 }
0x187a   : > { %20303 = vmatpush3.bf16.msra.mxu0 %v20300_v46 }
0x187b   : > { %20305 = vmatprep.subr.bf16.mxu0 %v26113_v54 }
0x187d   : > { %19751 = vmatmul.mubr.msk.f32.vlgmr.msra.gmra.mrb[52].mxu0 %vm571_vm0, %v18518_v63 }
0x187e   : > { %20307 = vmatpush3.bf16.msra.mxu0 %v26113_v54  ;;  %19753 = vmatprep.mubr.msk.f32.mxu0 %vm571_vm0, %v18519_v57  ;;  %v18541_v54 = vld [vmem:[%s26998_s13 + $0x168] sm:$0xff] }
0x187f   : > { %20309 = vmatprep.subr.bf16.mxu0 %v26144_v7 }
0x1881   : > { %19754 = vmatmul.mubr.msk.f32.gmra.mrb[54].mxu0 %vm571_vm0, %v18520_v49  ;;  %v18679_v49 = vld [vmem:[%s26998_s13 + $0x228] sm:$0xff] }
0x1882   : > { %19774 = vmatprep.mubr.msk.f32.mxu0 %vm571_vm0, %v18540_v51  ;;  %v18680_v51 = vld [vmem:[%s26998_s13 + $0x230] sm:$0xff] }
0x1885   : > { %19775 = vmatmul.mubr.msk.f32.vlgmr.msra.gmra.mrb[52].mxu0 %vm571_vm0, %v18541_v54  ;;  %v18681_v54 = vld [vmem:[%s26998_s13 + $0x238] sm:$0xff] }
0x1886   : > { %20311 = vmatpush3.bf16.msra.mxu0 %v26144_v7  ;;  %19777 = vmatprep.mubr.msk.f32.mxu0 %vm571_vm0, %v18542_v52  ;;  %v18564_v7 = vld [vmem:[%s26998_s13 + $0x188] sm:$0xff]  ;;  %v18701_v52 = vld [vmem:[%s26998_s13 + $0x240] sm:$0xff] }
0x1887   : > { %20313 = vmatprep.subr.bf16.mxu0 %v26171_v17 }
0x1889   : > { %19778 = vmatmul.mubr.msk.f32.gmra.mrb[54].mxu0 %vm571_vm0, %v18543_v58  ;;  %v18703_v58 = vld [vmem:[%s26998_s13 + $0x250] sm:$0xff] }
0x188a   : > { %19798 = vmatprep.mubr.msk.f32.mxu0 %vm571_vm0, %v18563_v59  ;;  %v18704_v59 = vld [vmem:[%s26998_s13 + $0x258] sm:$0xff] }
0x188d   : > { %19799 = vmatmul.mubr.msk.f32.vlgmr.msra.gmra.mrb[52].mxu0 %vm571_vm0, %v18564_v7  ;;  %v18724_v7 = vld [vmem:[%s26998_s13 + $0x260] sm:$0xff] }
0x188e   : > { %20315 = vmatpush3.bf16.msra.mxu0 %v26171_v17  ;;  %19801 = vmatprep.mubr.msk.f32.mxu0 %vm571_vm0, %v18565_v60  ;;  %v18587_v17 = vld [vmem:[%s26998_s13 + $0x1a8] sm:$0xff]  ;;  %v22061_v60 = vld [vmem:[%s26997_s12 + $0x2d0] sm:$0xff]  }
0x188f   : > { %19828 = vmatprep.subr.bf16.mxu0 %v22102_v26 }
0x1891   : > { %19802 = vmatmul.mubr.msk.f32.gmra.mrb[54].mxu0 %vm571_vm0, %v18566_v62  ;;  %v18726_v62 = vld [vmem:[%s26998_s13 + $0x270] sm:$0xff] }
0x1892   : > { %19822 = vmatprep.mubr.msk.f32.mxu0 %vm571_vm0, %v18586_v0  ;;  %v22062_v0 = vld [vmem:[%s26997_s12 + $0x2d8] sm:$0xff]  }
0x1895   : > { %19823 = vmatmul.mubr.msk.f32.vlgmr.msra.gmra.mrb[52].mxu0 %vm571_vm0, %v18587_v17  ;;  %v18727_v17 = vld [vmem:[%s26998_s13 + $0x278] sm:$0xff] }
0x1896   : > { %19829 = vmatpush3.bf16.msra.mxu0 %v22051_v56  ;;  %19825 = vmatprep.mubr.msk.f32.mxu0 %vm571_vm0, %v18588_v4  ;;  %v22063_v56 = vld [vmem:[%s26997_s12 + $0x2e0] sm:$0xff]   ;;  %v22064_v4 = vld [vmem:[%s26997_s12 + $0x2e8] sm:$0xff]  }
0x1897   : > { %19830 = vmatprep.subr.bf16.mxu0 %v22102_v26 }
0x1899   : > { %19826 = vmatmul.mubr.msk.f32.gmra.mrb[54].mxu0 %vm571_vm0, %v18589_v6 }
0x189a   : > { %19831 = vmatpush3.bf16.msra.mxu0 %v22052_v5  ;;  %19838 = vmatprep.mubr.msk.bf16.mxu0 %vm22103_vm13, %v22102_v26  ;;  %v22065_v5 = vld [vmem:[%s26997_s12 + $0x2f0] ss:$0 sps:$4 sm:$0x33]  }
0x189b   : > { %19832 = vmatprep.subr.bf16.mxu0 %v22102_v26  ;;  %v13907_v6 = vsel %vm10174_vm12, %v22065_v5, 0 }
0x189e   : > { %19833 = vmatpush3.bf16.msra.mxu0 %v22053_v8  ;;  %v18747_v8 = vld [vmem:[%s26998_s13 + $0x280] sm:$0xff] }
0x189f   : > { %19834 = vmatprep.subr.bf16.mxu0 %v22102_v26 }
0x18a2   : > { %19835 = vmatpush3.bf16.msra.mxu0 %v22054_v12 }
0x18a3   : > { %19836 = vmatprep.subr.bf16.mxu0 %v22102_v26 }
0x18a6   : > { %19837 = vmatpush3.bf16.msra.mxu0 %v12785_v10 }
0x18a9   : > { %19839 = vmatmul.mubr.msk.bf16.vlgmr.msra.gmra.mrb[68].mxu0 %vm10084_vm11, %v25537_v55 }
0x18aa   : > { %19846 = vmatprep.mubr.msk.f32.mxu0 %vm571_vm0, %v18609_v13 }
0x197c   : > { %v12821_v14 = vpop.f32.mrb[68].mxu0 }
0x197d   : > { %v19840_v29 = vpop.f32.mrb[69].mxu0 }
0x197e   : > { %v12824_v18 = vpop.f32.mrb[70].mxu0  ;;  %v18748_v29 = vld [vmem:[%s26998_s13 + $0x288] sm:$0xff] }
0x197f   : > { %v20316_v37 = vpack.c.bf16 %v12824_v18, %v12821_v14  ;;  %v19841_v16 = vpop.f32.mrb[71].mxu0  ;;  %v18749_v18 = vld [vmem:[%s26998_s13 + $0x290] sm:$0xff] }
0x1980   : > { %v18770_v16 = vld [vmem:[%s26998_s13 + $0x2a0] sm:$0xff] }
0x1981   : > { %20317 = vmatprep.subr.bf16.mxu0 %v20316_v37 }
0x1982   : > { %20319 = vmatpush3.bf16.msra.mxu0 %v20316_v37  ;;  %v18750_v37 = vld [vmem:[%s26998_s13 + $0x298] sm:$0xff] }
0x1983   : > { %20321 = vmatprep.subr.bf16.mxu0 %v26198_v40 }
0x1985   : > { %19847 = vmatmul.mubr.msk.f32.vlgmr.msra.gmra.mrb[52].mxu0 %vm571_vm0, %v18610_v38  ;;  %v18772_v38 = vld [vmem:[%s26998_s13 + $0x2b0] sm:$0xff] }
0x1986   : > { %20323 = vmatpush3.bf16.msra.mxu0 %v26198_v40  ;;  %19849 = vmatprep.mubr.msk.f32.mxu0 %vm571_vm0, %v18611_v19  ;;  %v18633_v40 = vld [vmem:[%s26998_s13 + $0x1e8] sm:$0xff]  ;;  %v18773_v19 = vld [vmem:[%s26998_s13 + $0x2b8] sm:$0xff] }
0x1987   : > { %20325 = vmatprep.subr.bf16.mxu0 %v26204_v30 }
0x1989   : > { %19850 = vmatmul.mubr.msk.f32.gmra.mrb[54].mxu0 %vm571_vm0, %v18612_v31  ;;  %v18793_v31 = vld [vmem:[%s26998_s13 + $0x2c0] sm:$0xff] }
0x198a   : > { %19870 = vmatprep.mubr.msk.f32.mxu0 %vm571_vm0, %v18632_v22  ;;  %v18795_v22 = vld [vmem:[%s26998_s13 + $0x2d0] sm:$0xff] }
0x198d   : > { %19871 = vmatmul.mubr.msk.f32.vlgmr.msra.gmra.mrb[52].mxu0 %vm571_vm0, %v18633_v40  ;;  %v18796_v40 = vld [vmem:[%s26998_s13 + $0x2d8] sm:$0xff] }
0x198e   : > { %20327 = vmatpush3.bf16.msra.mxu0 %v26204_v30  ;;  %19873 = vmatprep.mubr.msk.f32.mxu0 %vm571_vm0, %v18634_v47  ;;  %v18656_v30 = vld [vmem:[%s26998_s13 + $0x208] sm:$0xff]  ;;  %v18816_v47 = vld [vmem:[%s26998_s13 + $0x2e0] sm:$0xff] }
0x198f   : > { %19900 = vmatprep.subr.bf16.mxu0 %v22102_v26 }
0x1991   : > { %19874 = vmatmul.mubr.msk.f32.gmra.mrb[54].mxu0 %vm571_vm0, %v18635_v27  ;;  %v22066_v27 = vld [vmem:[%s26997_s12 + $0x360] sm:$0xff]  }
0x1992   : > { %19894 = vmatprep.mubr.msk.f32.mxu0 %vm571_vm0, %v18655_v24  ;;  %v18818_v24 = vld [vmem:[%s26998_s13 + $0x2f0] sm:$0xff] }
0x1995   : > { %19895 = vmatmul.mubr.msk.f32.vlgmr.msra.gmra.mrb[52].mxu0 %vm571_vm0, %v18656_v30  ;;  %v22067_v30 = vld [vmem:[%s26997_s12 + $0x368] sm:$0xff]  }
0x1996   : > { %19901 = vmatpush3.bf16.msra.mxu0 %v22056_v25  ;;  %19897 = vmatprep.mubr.msk.f32.mxu0 %vm571_vm0, %v18657_v28  ;;  %v18819_v25 = vld [vmem:[%s26998_s13 + $0x2f8] sm:$0xff]  ;;  %v22068_v28 = vld [vmem:[%s26997_s12 + $0x370] sm:$0xff]  }
0x1997   : > { %19902 = vmatprep.subr.bf16.mxu0 %v22102_v26 }
0x1999   : > { %19898 = vmatmul.mubr.msk.f32.gmra.mrb[54].mxu0 %vm571_vm0, %v18658_v34  ;;  %v22070_v34 = vld [vmem:[%s26997_s12 + $0x380] ss:$0 sps:$4 sm:$0x33]  }
0x199a   : > { %19903 = vmatpush3.bf16.msra.mxu0 %v22057_v33  ;;  %19910 = vmatprep.mubr.msk.bf16.mxu0 %vm22103_vm13, %v22102_v26  ;;  %v22069_v33 = vld [vmem:[%s26997_s12 + $0x378] sm:$0xff]  }
0x199b   : > { %19904 = vmatprep.subr.bf16.mxu0 %v22102_v26 }
0x199e   : > { %19905 = vmatpush3.bf16.msra.mxu0 %v22058_v36  ;;  %v14655_v36 = vsel %vm10174_vm12, %v22070_v34, 0  ;;  %v19003_v34 = vld [vmem:[%s26998_s13 + $0x3f8] sm:$0xff] }
0x199f   : > { %19906 = vmatprep.subr.bf16.mxu0 %v22102_v26 }
0x19a2   : > { %19907 = vmatpush3.bf16.msra.mxu0 %v22059_v41  ;;  %v18839_v41 = vld [vmem:[%s26998_s13 + $0x300] sm:$0xff] }
0x19a3   : > { %19908 = vmatprep.subr.bf16.mxu0 %v22102_v26 }
0x19a6   : > { %19909 = vmatpush3.bf16.msra.mxu0 %v13346_v43 }
0x19a9   : > { %19911 = vmatmul.mubr.msk.bf16.vlgmr.msra.gmra.mrb[72].mxu0 %vm10084_vm11, %v25537_v55 }
0x19aa   : > { %19918 = vmatprep.mubr.msk.f32.mxu0 %vm571_vm0, %v18678_v44 }
0x1a7c   : > { %v13382_v45 = vpop.f32.mrb[72].mxu0 }
0x1a7d   : > { %v19912_v46 = vpop.f32.mrb[73].mxu0 }
0x1a7e   : > { %v13385_v48 = vpop.f32.mrb[74].mxu0 }
0x1a7f   : > { %v20328_v63 = vpack.c.bf16 %v13385_v48, %v13382_v45  ;;  %v19913_v57 = vpop.f32.mrb[75].mxu0  ;;  %v18840_v48 = vld [vmem:[%s26998_s13 + $0x308] sm:$0xff] }
0x1a80   : > { %v18842_v57 = vld [vmem:[%s26998_s13 + $0x318] sm:$0xff] }
0x1a81   : > { %20329 = vmatprep.subr.bf16.mxu0 %v20328_v63 }
0x1a82   : > { %20331 = vmatpush3.bf16.msra.mxu0 %v20328_v63  ;;  %v18841_v63 = vld [vmem:[%s26998_s13 + $0x310] sm:$0xff] }
0x1a83   : > { %20333 = vmatprep.subr.bf16.mxu0 %v26206_v35 }
0x1a85   : > { %19919 = vmatmul.mubr.msk.f32.vlgmr.msra.gmra.mrb[52].mxu0 %vm571_vm0, %v18679_v49  ;;  %v18862_v49 = vld [vmem:[%s26998_s13 + $0x320] sm:$0xff] }
0x1a86   : > { %20335 = vmatpush3.bf16.msra.mxu0 %v26206_v35  ;;  %19921 = vmatprep.mubr.msk.f32.mxu0 %vm571_vm0, %v18680_v51  ;;  %v18702_v35 = vld [vmem:[%s26998_s13 + $0x248] sm:$0xff]  ;;  %v18864_v51 = vld [vmem:[%s26998_s13 + $0x330] sm:$0xff] }
0x1a87   : > { %20337 = vmatprep.subr.bf16.mxu0 %v26208_v50 }
0x1a89   : > { %19922 = vmatmul.mubr.msk.f32.gmra.mrb[54].mxu0 %vm571_vm0, %v18681_v54  ;;  %v18865_v54 = vld [vmem:[%s26998_s13 + $0x338] sm:$0xff] }
0x1a8a   : > { %19942 = vmatprep.mubr.msk.f32.mxu0 %vm571_vm0, %v18701_v52  ;;  %v18885_v52 = vld [vmem:[%s26998_s13 + $0x340] sm:$0xff] }
0x1a8d   : > { %19943 = vmatmul.mubr.msk.f32.vlgmr.msra.gmra.mrb[52].mxu0 %vm571_vm0, %v18702_v35  ;;  %v22071_v35 = vld [vmem:[%s26997_s12 + $0x3cc] sm:$0xff]  }
0x1a8e   : > { %20339 = vmatpush3.bf16.msra.mxu0 %v26208_v50  ;;  %19945 = vmatprep.mubr.msk.f32.mxu0 %vm571_vm0, %v18703_v58  ;;  %v18725_v50 = vld [vmem:[%s26998_s13 + $0x268] sm:$0xff]  ;;  %v18887_v58 = vld [vmem:[%s26998_s13 + $0x350] sm:$0xff] }
0x1a8f   : > { %19972 = vmatprep.subr.bf16.mxu0 %v22102_v26 }
0x1a91   : > { %19946 = vmatmul.mubr.msk.f32.gmra.mrb[54].mxu0 %vm571_vm0, %v18704_v59  ;;  %v22072_v59 = vld [vmem:[%s26997_s12 + $0x3d4] sm:$0xff]  }
0x1a92   : > { %19966 = vmatprep.mubr.msk.f32.mxu0 %vm571_vm0, %v18724_v7  ;;  %v18888_v7 = vld [vmem:[%s26998_s13 + $0x358] sm:$0xff] }
0x1a95   : > { %19967 = vmatmul.mubr.msk.f32.vlgmr.msra.gmra.mrb[52].mxu0 %vm571_vm0, %v18725_v50  ;;  %v22073_v50 = vld [vmem:[%s26997_s12 + $0x3dc] sm:$0xff]  }
0x1a96   : > { %19973 = vmatpush3.bf16.msra.mxu0 %v22061_v60  ;;  %19969 = vmatprep.mubr.msk.f32.mxu0 %vm571_vm0, %v18726_v62  ;;  %v22074_v60 = vld [vmem:[%s26997_s12 + $0x3e4] sm:$0xff]   ;;  %v22075_v62 = vld [vmem:[%s26997_s12 + $0x3ec] ss:$0 sps:$4 sm:$0x33]  }
0x1a97   : > { %19974 = vmatprep.subr.bf16.mxu0 %v22102_v26 }
0x1a99   : > { %19970 = vmatmul.mubr.msk.f32.gmra.mrb[54].mxu0 %vm571_vm0, %v18727_v17  ;;  %v18908_v17 = vld [vmem:[%s26998_s13 + $0x360] sm:$0xff] }
0x1a9a   : > { %19975 = vmatpush3.bf16.msra.mxu0 %v22062_v0  ;;  %19982 = vmatprep.mubr.msk.bf16.mxu0 %vm22103_vm13, %v22102_v26  ;;  %v15216_v0 = vsel %vm10174_vm12, %v22075_v62, 0 }
0x1a9b   : > { %19976 = vmatprep.subr.bf16.mxu0 %v22102_v26 }
0x1a9e   : > { %19977 = vmatpush3.bf16.msra.mxu0 %v22063_v56 }
0x1a9f   : > { %19978 = vmatprep.subr.bf16.mxu0 %v22102_v26 }
0x1aa2   : > { %19979 = vmatpush3.bf16.msra.mxu0 %v22064_v4 }
0x1aa3   : > { %19980 = vmatprep.subr.bf16.mxu0 %v22102_v26 }
0x1aa6   : > { %19981 = vmatpush3.bf16.msra.mxu0 %v13907_v6 }
0x1aa9   : > { %19983 = vmatmul.mubr.msk.bf16.vlgmr.msra.gmra.mrb[76].mxu0 %vm10084_vm11, %v25537_v55 }
0x1aaa   : > { %19990 = vmatprep.mubr.msk.f32.mxu0 %vm571_vm0, %v18747_v8 }
0x1b7c   : > { %v13943_v12 = vpop.f32.mrb[76].mxu0 }
0x1b7d   : > { %v19984_v9 = vpop.f32.mrb[77].mxu0 }
0x1b7e   : > { %v13946_v10 = vpop.f32.mrb[78].mxu0  ;;  %v18910_v9 = vld [vmem:[%s26998_s13 + $0x370] sm:$0xff] }
0x1b7f   : > { %v20340_v13 = vpack.c.bf16 %v13946_v10, %v13943_v12  ;;  %v19985_v14 = vpop.f32.mrb[79].mxu0  ;;  %v18909_v12 = vld [vmem:[%s26998_s13 + $0x368] sm:$0xff]  ;;  %v18911_v10 = vld [vmem:[%s26998_s13 + $0x378] sm:$0xff] }
0x1b80   : > { %v18933_v14 = vld [vmem:[%s26998_s13 + $0x390] sm:$0xff] }
0x1b81   : > { %20341 = vmatprep.subr.bf16.mxu0 %v20340_v13 }
0x1b82   : > { %20343 = vmatpush3.bf16.msra.mxu0 %v20340_v13  ;;  %v18931_v13 = vld [vmem:[%s26998_s13 + $0x380] sm:$0xff] }
0x1b83   : > { %20345 = vmatprep.subr.bf16.mxu0 %v26210_v3 }
0x1b85   : > { %19991 = vmatmul.mubr.msk.f32.vlgmr.msra.gmra.mrb[52].mxu0 %vm571_vm0, %v18748_v29  ;;  %v18934_v29 = vld [vmem:[%s26998_s13 + $0x398] sm:$0xff] }
0x1b86   : > { %20347 = vmatpush3.bf16.msra.mxu0 %v26210_v3  ;;  %19993 = vmatprep.mubr.msk.f32.mxu0 %vm571_vm0, %v18749_v18  ;;  %v18771_v3 = vld [vmem:[%s26998_s13 + $0x2a8] sm:$0xff]  ;;  %v18954_v18 = vld [vmem:[%s26998_s13 + $0x3a0] sm:$0xff] }
0x1b87   : > { %20349 = vmatprep.subr.bf16.mxu0 %v26255_v15 }
0x1b89   : > { %19994 = vmatmul.mubr.msk.f32.gmra.mrb[54].mxu0 %vm571_vm0, %v18750_v37  ;;  %v22076_v37 = vld [vmem:[%s26997_s12 + $0x438] sm:$0xff]  }
0x1b8a   : > { %20014 = vmatprep.mubr.msk.f32.mxu0 %vm571_vm0, %v18770_v16  ;;  %v18956_v16 = vld [vmem:[%s26998_s13 + $0x3b0] sm:$0xff] }
0x1b8d   : > { %20015 = vmatmul.mubr.msk.f32.vlgmr.msra.gmra.mrb[52].mxu0 %vm571_vm0, %v18771_v3  ;;  %v22077_v3 = vld [vmem:[%s26997_s12 + $0x440] sm:$0xff]  }
0x1b8e   : > { %20351 = vmatpush3.bf16.msra.mxu0 %v26255_v15  ;;  %20017 = vmatprep.mubr.msk.f32.mxu0 %vm571_vm0, %v18772_v38  ;;  %v18794_v15 = vld [vmem:[%s26998_s13 + $0x2c8] sm:$0xff]  ;;  %v18957_v38 = vld [vmem:[%s26998_s13 + $0x3b8] sm:$0xff] }
0x1b8f   : > { %20353 = vmatprep.subr.bf16.mxu0 %v26285_v20 }
0x1b91   : > { %20018 = vmatmul.mubr.msk.f32.gmra.mrb[54].mxu0 %vm571_vm0, %v18773_v19  ;;  %v22078_v19 = vld [vmem:[%s26997_s12 + $0x448] sm:$0xff]  }
0x1b92   : > { %20038 = vmatprep.mubr.msk.f32.mxu0 %vm571_vm0, %v18793_v31  ;;  %v22079_v31 = vld [vmem:[%s26997_s12 + $0x450] sm:$0xff]  }
0x1b95   : > { %20039 = vmatmul.mubr.msk.f32.vlgmr.msra.gmra.mrb[52].mxu0 %vm571_vm0, %v18794_v15  ;;  %v22080_v15 = vld [vmem:[%s26997_s12 + $0x458] ss:$0 sps:$4 sm:$0x33]  }
0x1b96   : > { %20355 = vmatpush3.bf16.msra.mxu0 %v26285_v20  ;;  %20041 = vmatprep.mubr.msk.f32.mxu0 %vm571_vm0, %v18795_v22  ;;  %v18817_v20 = vld [vmem:[%s26998_s13 + $0x2e8] sm:$0xff]  ;;  %v15777_v22 = vsel %vm10174_vm12, %v22080_v15, 0 }
0x1b97   : > { %20068 = vmatprep.subr.bf16.mxu0 %v22102_v26 }
0x1b99   : > { %20042 = vmatmul.mubr.msk.f32.gmra.mrb[54].mxu0 %vm571_vm0, %v18796_v40  ;;  %v18977_v40 = vld [vmem:[%s26998_s13 + $0x3c0] sm:$0xff] }
0x1b9a   : > { %20062 = vmatprep.mubr.msk.f32.mxu0 %vm571_vm0, %v18816_v47 }
0x1b9d   : > { %20063 = vmatmul.mubr.msk.f32.vlgmr.msra.gmra.mrb[52].mxu0 %vm571_vm0, %v18817_v20 }
0x1b9e   : > { %20069 = vmatpush3.bf16.msra.mxu0 %v22066_v27  ;;  %20065 = vmatprep.mubr.msk.f32.mxu0 %vm571_vm0, %v18818_v24 }
0x1b9f   : > { %20070 = vmatprep.subr.bf16.mxu0 %v22102_v26 }
0x1ba1   : > { %20066 = vmatmul.mubr.msk.f32.gmra.mrb[54].mxu0 %vm571_vm0, %v18819_v25  ;;  %v18980_v25 = vld [vmem:[%s26998_s13 + $0x3d8] sm:$0xff] }
0x1ba2   : > { %20071 = vmatpush3.bf16.msra.mxu0 %v22067_v30  ;;  %20078 = vmatprep.mubr.msk.bf16.mxu0 %vm22103_vm13, %v22102_v26 }
0x1ba3   : > { %20072 = vmatprep.subr.bf16.mxu0 %v22102_v26 }
0x1ba6   : > { %20073 = vmatpush3.bf16.msra.mxu0 %v22068_v28  ;;  %v19000_v28 = vld [vmem:[%s26998_s13 + $0x3e0] sm:$0xff] }
0x1ba7   : > { %20074 = vmatprep.subr.bf16.mxu0 %v22102_v26 }
0x1baa   : > { %20075 = vmatpush3.bf16.msra.mxu0 %v22069_v33  ;;  %v19001_v33 = vld [vmem:[%s26998_s13 + $0x3e8] sm:$0xff] }
0x1bab   : > { %20076 = vmatprep.subr.bf16.mxu0 %v22102_v26 }
0x1bae   : > { %20077 = vmatpush3.bf16.msra.mxu0 %v14655_v36 }
0x1bb1   : > { %20079 = vmatmul.mubr.msk.bf16.vlgmr.msra.gmra.mrb[80].mxu0 %vm10084_vm11, %v25537_v55 }
0x1bb2   : > { %20086 = vmatprep.mubr.msk.f32.mxu0 %vm571_vm0, %v18839_v41 }
0x1c84   : > { %v14691_v42 = vpop.f32.mrb[80].mxu0 }
0x1c85   : > { %v20080_v43 = vpop.f32.mrb[81].mxu0 }
0x1c86   : > { %v14694_v44 = vpop.f32.mrb[82].mxu0 }
0x1c87   : > { %v20356_v45 = vpack.c.bf16 %v14694_v44, %v14691_v42  ;;  %v20081_v46 = vpop.f32.mrb[83].mxu0 }
0x1c89   : > { %20357 = vmatprep.subr.bf16.mxu0 %v20356_v45 }
0x1c8a   : > { %20359 = vmatpush3.bf16.msra.mxu0 %v20356_v45 }
0x1c8b   : > { %20361 = vmatprep.subr.bf16.mxu0 %v26289_v39 }
0x1c8d   : > { %20087 = vmatmul.mubr.msk.f32.vlgmr.msra.gmra.mrb[52].mxu0 %vm571_vm0, %v18840_v48 }
0x1c8e   : > { %20363 = vmatpush3.bf16.msra.mxu0 %v26289_v39  ;;  %20089 = vmatprep.mubr.msk.f32.mxu0 %vm571_vm0, %v18841_v63  ;;  %v18863_v39 = vld [vmem:[%s26998_s13 + $0x328] sm:$0xff] }
0x1c8f   : > { %20365 = vmatprep.subr.bf16.mxu0 %v26291_v1 }
0x1c91   : > { %20090 = vmatmul.mubr.msk.f32.gmra.mrb[54].mxu0 %vm571_vm0, %v18842_v57 }
0x1c92   : > { %20110 = vmatprep.mubr.msk.f32.mxu0 %vm571_vm0, %v18862_v49 }
0x1c95   : > { %20111 = vmatmul.mubr.msk.f32.vlgmr.msra.gmra.mrb[52].mxu0 %vm571_vm0, %v18863_v39 }
0x1c96   : > { %20367 = vmatpush3.bf16.msra.mxu0 %v26291_v1  ;;  %20113 = vmatprep.mubr.msk.f32.mxu0 %vm571_vm0, %v18864_v51  ;;  %v18886_v1 = vld [vmem:[%s26998_s13 + $0x348] sm:$0xff] }
0x1c97   : > { %20140 = vmatprep.subr.bf16.mxu0 %v22102_v26 }
0x1c99   : > { %20114 = vmatmul.mubr.msk.f32.gmra.mrb[54].mxu0 %vm571_vm0, %v18865_v54 }
0x1c9a   : > { %20134 = vmatprep.mubr.msk.f32.mxu0 %vm571_vm0, %v18885_v52 }
0x1c9d   : > { %20135 = vmatmul.mubr.msk.f32.vlgmr.msra.gmra.mrb[52].mxu0 %vm571_vm0, %v18886_v1 }
0x1c9e   : > { %20141 = vmatpush3.bf16.msra.mxu0 %v22071_v35  ;;  %20137 = vmatprep.mubr.msk.f32.mxu0 %vm571_vm0, %v18887_v58 }
0x1c9f   : > { %20142 = vmatprep.subr.bf16.mxu0 %v22102_v26 }
0x1ca1   : > { %20138 = vmatmul.mubr.msk.f32.gmra.mrb[54].mxu0 %vm571_vm0, %v18888_v7 }
0x1ca2   : > { %20143 = vmatpush3.bf16.msra.mxu0 %v22072_v59  ;;  %20150 = vmatprep.mubr.msk.bf16.mxu0 %vm22103_vm13, %v22102_v26 }
0x1ca3   : > { %20144 = vmatprep.subr.bf16.mxu0 %v22102_v26 }
0x1ca6   : > { %20145 = vmatpush3.bf16.msra.mxu0 %v22073_v50 }
0x1ca7   : > { %20146 = vmatprep.subr.bf16.mxu0 %v22102_v26 }
0x1caa   : > { %20147 = vmatpush3.bf16.msra.mxu0 %v22074_v60 }
0x1cab   : > { %20148 = vmatprep.subr.bf16.mxu0 %v22102_v26 }
0x1cae   : > { %20149 = vmatpush3.bf16.msra.mxu0 %v15216_v0 }
0x1cb1   : > { %20151 = vmatmul.mubr.msk.bf16.vlgmr.msra.gmra.mrb[84].mxu0 %vm10084_vm11, %v25537_v55 }
0x1cb2   : > { %20158 = vmatprep.mubr.msk.f32.mxu0 %vm571_vm0, %v18908_v17 }
0x1d84   : > { %v15252_v56 = vpop.f32.mrb[84].mxu0 }
0x1d85   : > { %v20152_v4 = vpop.f32.mrb[85].mxu0 }
0x1d86   : > { %v15255_v5 = vpop.f32.mrb[86].mxu0 }
0x1d87   : > { %v20368_v6 = vpack.c.bf16 %v15255_v5, %v15252_v56  ;;  %v20153_v8 = vpop.f32.mrb[87].mxu0 }
0x1d89   : > { %20369 = vmatprep.subr.bf16.mxu0 %v20368_v6 }
0x1d8a   : > { %20371 = vmatpush3.bf16.msra.mxu0 %v20368_v6 }
0x1d8b   : > { %20373 = vmatprep.subr.bf16.mxu0 %v26293_v53 }
0x1d8d   : > { %20159 = vmatmul.mubr.msk.f32.vlgmr.msra.gmra.mrb[52].mxu0 %vm571_vm0, %v18909_v12 }
0x1d8e   : > { %20375 = vmatpush3.bf16.msra.mxu0 %v26293_v53  ;;  %20161 = vmatprep.mubr.msk.f32.mxu0 %vm571_vm0, %v18910_v9  ;;  %v18932_v53 = vld [vmem:[%s26998_s13 + $0x388] sm:$0xff] }
0x1d8f   : > { %20377 = vmatprep.subr.bf16.mxu0 %v26295_v2 }
0x1d91   : > { %20162 = vmatmul.mubr.msk.f32.gmra.mrb[54].mxu0 %vm571_vm0, %v18911_v10 }
0x1d92   : > { %20182 = vmatprep.mubr.msk.f32.mxu0 %vm571_vm0, %v18931_v13 }
0x1d95   : > { %20183 = vmatmul.mubr.msk.f32.vlgmr.msra.gmra.mrb[52].mxu0 %vm571_vm0, %v18932_v53 }
0x1d96   : > { %20379 = vmatpush3.bf16.msra.mxu0 %v26295_v2  ;;  %20185 = vmatprep.mubr.msk.f32.mxu0 %vm571_vm0, %v18933_v14  ;;  %v18955_v2 = vld [vmem:[%s26998_s13 + $0x3a8] sm:$0xff] }
0x1d97   : > { %20212 = vmatprep.subr.bf16.mxu0 %v22102_v26 }
0x1d99   : > { %20186 = vmatmul.mubr.msk.f32.gmra.mrb[54].mxu0 %vm571_vm0, %v18934_v29 }
0x1d9a   : > { %20206 = vmatprep.mubr.msk.f32.mxu0 %vm571_vm0, %v18954_v18 }
0x1d9d   : > { %20207 = vmatmul.mubr.msk.f32.vlgmr.msra.gmra.mrb[52].mxu0 %vm571_vm0, %v18955_v2 }
0x1d9e   : > { %20213 = vmatpush3.bf16.msra.mxu0 %v22076_v37  ;;  %20209 = vmatprep.mubr.msk.f32.mxu0 %vm571_vm0, %v18956_v16 }
0x1d9f   : > { %20214 = vmatprep.subr.bf16.mxu0 %v22102_v26 }
0x1da1   : > { %20210 = vmatmul.mubr.msk.f32.gmra.mrb[54].mxu0 %vm571_vm0, %v18957_v38 }
0x1da2   : > { %20215 = vmatpush3.bf16.msra.mxu0 %v22077_v3  ;;  %20222 = vmatprep.mubr.msk.bf16.mxu0 %vm22103_vm13, %v22102_v26 }
0x1da3   : > { %20216 = vmatprep.subr.bf16.mxu0 %v22102_v26 }
0x1da6   : > { %20217 = vmatpush3.bf16.msra.mxu0 %v22078_v19 }
0x1da7   : > { %20218 = vmatprep.subr.bf16.mxu0 %v22102_v26 }
0x1daa   : > { %20219 = vmatpush3.bf16.msra.mxu0 %v22079_v31 }
0x1dab   : > { %20220 = vmatprep.subr.bf16.mxu0 %v22102_v26  ;;  %v18978_v26 = vld [vmem:[%s26998_s13 + $0x3c8] sm:$0xff] }
0x1dae   : > { %20221 = vmatpush3.bf16.msra.mxu0 %v15777_v22 }
0x1db1   : > { %20223 = vmatmul.mubr.msk.bf16.vlgmr.msra.gmra.mrb[88].mxu0 %vm10084_vm11, %v25537_v55  ;;  %v18979_v55 = vld [vmem:[%s26998_s13 + $0x3d0] sm:$0xff] }
0x1db2   : > { %20230 = vmatprep.mubr.msk.f32.mxu0 %vm571_vm0, %v18977_v40 }
0x1e84   : > { %v15813_v47 = vpop.f32.mrb[88].mxu0 }
0x1e85   : > { %v20224_v20 = vpop.f32.mrb[89].mxu0 }
0x1e86   : > { %v15816_v27 = vpop.f32.mrb[90].mxu0 }
0x1e87   : > { %v20380_v24 = vpack.c.bf16 %v15816_v27, %v15813_v47  ;;  %v20225_v30 = vpop.f32.mrb[91].mxu0  ;;  %v16114_v47 = vld [vmem:[%s26999_s14 + $0x8] sm:$0xff] }
0x1e89   : > { %20381 = vmatprep.subr.bf16.mxu0 %v20380_v24 }
0x1e8a   : > { %20383 = vmatpush3.bf16.msra.mxu0 %v20380_v24 }
0x1e8b   : > { %20385 = vmatprep.subr.bf16.mxu0 %v26301_v11 }
0x1e8d   : > { %20231 = vmatmul.mubr.msk.f32.vlgmr.msra.gmra.mrb[52].mxu0 %vm571_vm0, %v18978_v26 }
0x1e8e   : > { %20387 = vmatpush3.bf16.msra.mxu0 %v26301_v11  ;;  %20233 = vmatprep.mubr.msk.f32.mxu0 %vm571_vm0, %v18979_v55  ;;  %v19002_v11 = vld [vmem:[%s26998_s13 + $0x3f0] sm:$0xff]  ;;  %v16113_v55 = vld [vmem:[%s26999_s14] sm:$0xff] }
0x1e91   : > { %20234 = vmatmul.mubr.msk.f32.gmra.mrb[54].mxu0 %vm571_vm0, %v18980_v25  ;;  %v16116_v25 = vld [vmem:[%s26999_s14 + $0x18] sm:$0xff] }
0x1e92   : > { %20254 = vmatprep.mubr.msk.f32.mxu0 %vm571_vm0, %v19000_v28  ;;  %v16115_v28 = vld [vmem:[%s26999_s14 + $0x10] sm:$0xff] }
0x1e95   : > { %20255 = vmatmul.mubr.msk.f32.vlgmr.msra.gmra.mrb[52].mxu0 %vm571_vm0, %v19001_v33  ;;  %v16118_v33 = vld [vmem:[%s27000_s15 + $0x8] sm:$0xff] }
0x1e96   : > { %20257 = vmatprep.mubr.msk.f32.mxu0 %vm571_vm0, %v19002_v11 }
0x1e99   : > { %20258 = vmatmul.mubr.msk.f32.gmra.mrb[54].mxu0 %vm571_vm0, %v19003_v34 }
0x1f68   : > { %v20256_v36 = vpop.f32.mrb[52].mxu0 }
0x1f69   : > { %v26909_v41 = vadd.f32 %v20256_v36, %v25869_v32  ;;  %v16090_v42 = vpop.f32.mrb[53].mxu0 }
0x1f6a   : > { %v26912_v43 = vadd.f32 %v16090_v42, %v25871_v21  ;;  %v16117_v42 = vld [vmem:[%s27000_s15] sm:$0xff] }
0x1f6b   : > { %v16125_v44 = vsel %vm16121_vm1, %v26909_v41, 0.0  ;;  %v16144_v63 = vmul.f32 %v26909_v41, %v26909_v41 }
0x1f6c   : > { %16126 = vadd.xlane.f32.xlu1 %v16125_v44  ;;  %v20259_v45 = vpop.f32.mrb[54].mxu0  ;;  %v16122_v46 = vsel %vm16121_vm1, %v26912_v43, 0.0  ;;  %v16143_v48 = vmul.f32 %v26912_v43, %v26912_v43  ;;  %v16119_v44 = vld [vmem:[%s27000_s15 + $0x10] sm:$0xff] }
0x1f6d   : > { %v26923_v32 = vadd.f32 %v20259_v45, %v25875_v23  ;;  %16123 = vadd.xlane.f32.xlu0 %v16122_v46  ;;  %v16100_v21 = vpop.f32.mrb[55].mxu0  ;;  %v16150_v39 = vsel %vm16121_vm1, %v16144_v63, 0.0 }
0x1f6e   : > { %v20391_v57 = vadd.f32 %v16100_v21, %v25877_v61  ;;  %v16147_v49 = vsel %vm16121_vm1, %v16143_v48, 0.0 }
0x1f6f   : > { %v16131_v51 = vsel %vm16121_vm1, %v26923_v32, 0.0  ;;  %v16146_v54 = vmul.f32 %v26923_v32, %v26923_v32 }
0x1f70   : > { %16148 = vadd.xlane.f32.xlu1 %v16147_v49  ;;  %v16128_v23 = vsel %vm16121_vm1, %v20391_v57, 0.0  ;;  %v16145_v52 = vmul.f32 %v20391_v57, %v20391_v57 }
0x1f71   : > { %16151 = vadd.xlane.f32.xlu0 %v16150_v39  ;;  %v16156_v1 = vsel %vm16121_vm1, %v16146_v54, 0.0  ;;  %v16204_v39 = vld [vmem:[%s27001_s16 + $0x8] sm:$0xff] }
0x1f72   : > { %v16153_v61 = vsel %vm16121_vm1, %v16145_v52, 0.0 }
0x1f74   : > { %16132 = vadd.xlane.f32.xlu1 %v16131_v51  ;;  %v16203_v51 = vld [vmem:[%s27001_s16] sm:$0xff] }
0x1f75   : > { %16129 = vadd.xlane.f32.xlu0 %v16128_v23 }
0x1f78   : > { %16157 = vadd.xlane.f32.xlu1 %v16156_v1 }
0x1f79   : > { %16154 = vadd.xlane.f32.xlu0 %v16153_v61 }
0x1ff9   : > { %v16127_v35 = vpop.xlane.xlu1 %16126 }
0x1ffa   : > { %v16124_v58 = vpop.xlane.xlu0 %16123 }
0x1ffb   : > { %v16134_v50 = vadd.f32 %v16127_v35, %v16124_v58  ;;  %v16206_v58 = vld [vmem:[%s27001_s16 + $0x18] sm:$0xff] }
0x1ffd   : > { %v16149_v59 = vpop.xlane.xlu1 %16148 }
0x1ffe   : > { %v16152_v7 = vpop.xlane.xlu0 %16151 }
0x1fff   : > { %v16159_v17 = vadd.f32 %v16152_v7, %v16149_v59  ;;  %v16205_v59 = vld [vmem:[%s27001_s16 + $0x10] sm:$0xff] }
0x2001   : > { %v16133_v60 = vpop.xlane.xlu1 %16132 }
0x2002   : > { %v16130_v62 = vpop.xlane.xlu0 %16129 }
0x2003   : > { %v16135_v0 = vadd.f32 %v16134_v50, %v16130_v62 }
0x2005   : > { %v16136_v56 = vadd.f32 %v16135_v0, %v16133_v60  ;;  %v16158_v8 = vpop.xlane.xlu1 %16157 }
0x2006   : > { %v16155_v4 = vpop.xlane.xlu0 %16154 }
0x2007   : > { %v16137_v5 = vrot.slane %v16136_v56, 4  ;;  %v16160_v6 = vadd.f32 %v16159_v17, %v16155_v4 }
0x2009   : > { %v16138_v12 = vadd.f32 %v16137_v5, %v16136_v56  ;;  %v16161_v9 = vadd.f32 %v16160_v6, %v16158_v8 }
0x200b   : > { %v16139_v10 = vrot.slane %v16138_v12, 2  ;;  %v16162_v13 = vrot.slane %v16161_v9, 4 }
0x200d   : > { %v16140_v53 = vadd.f32 %v16139_v10, %v16138_v12  ;;  %v16163_v14 = vadd.f32 %v16162_v13, %v16161_v9 }
0x200f   : > { %v16141_v29 = vrot.slane %v16140_v53, 1  ;;  %v16164_v18 = vrot.slane %v16163_v14, 2 }
0x2011   : > { %v16142_v2 = vadd.f32 %v16141_v29, %v16140_v53  ;;  %v16165_v37 = vadd.f32 %v16164_v18, %v16163_v14 }
0x2013   : > { %v16168_v16 = vmul.f32 0.0017361111, %v16142_v2  ;;  %v16166_v3 = vrot.slane %v16165_v37, 1 }
0x2015   : > { %v16167_v38 = vadd.f32 %v16166_v3, %v16165_v37  ;;  %v16170_v19 = vmul.f32 %v16168_v16, %v16168_v16  ;;  %v16174_v20 = vsub.f32 %v26909_v41, %v16168_v16  ;;  %v16173_v27 = vsub.f32 %v26912_v43, %v16168_v16  ;;  %v16120_v43 = vld [vmem:[%s27000_s15 + $0x18] sm:$0xff] }
0x2016   : > { %v16176_v24 = vsub.f32 %v26923_v32, %v16168_v16  ;;  %v16175_v30 = vsub.f32 %v20391_v57, %v16168_v16 }
0x2017   : > { %v16169_v31 = vmul.f32 0.0017361111, %v16167_v38 }
0x2019   : > { %v16171_v15 = vsub.f32 %v16169_v31, %v16170_v19 }
0x201b   : > { %v16172_v22 = vmax.f32 %v16171_v15, 0.0 }
0x201d   : > { %v16177_v40 = vadd.f32 1e-05, %v16172_v22 }
0x201f   : > { %22087 = vrsqrt.f32 %v16177_v40 }
0x2029   : > { %v22088_v26 = vpop.eup %22087 }
0x202a   : > { %v16180_v11 = vmul.f32 %v22088_v26, %v16174_v20  ;;  %v16179_v34 = vmul.f32 %v22088_v26, %v16173_v27  ;;  %v16182_v36 = vmul.f32 %v22088_v26, %v16176_v24  ;;  %v16181_v41 = vmul.f32 %v22088_v26, %v16175_v30 }
0x202c   : > { %v16184_v45 = vmul.f32 %v16180_v11, %v16114_v47  ;;  %v16183_v46 = vmul.f32 %v16179_v34, %v16113_v55  ;;  %v16186_v48 = vmul.f32 %v16182_v36, %v16116_v25  ;;  %v16185_v63 = vmul.f32 %v16181_v41, %v16115_v28 }
0x202e   : > { %v16188_v32 = vadd.f32 %v16184_v45, %v16118_v33  ;;  %v16187_v21 = vadd.f32 %v16183_v46, %v16117_v42  ;;  %v16190_v57 = vadd.f32 %v16186_v48, %v16120_v43  ;;  %v16189_v49 = vadd.f32 %v16185_v63, %v16119_v44 }
0x2030   : > { %vm16192_vm0 = vcmp.ge.f32.partialorder %v16188_v32, 0.0  ;;  %v16196_v54 = vmul.f32 0.2, %v16188_v32  ;;  %vm16191_vm2 = vcmp.ge.f32.partialorder %v16187_v21, 0.0  ;;  %v16195_v23 = vmul.f32 0.2, %v16187_v21 }
0x2031   : > { %vm16194_vm3 = vcmp.ge.f32.partialorder %v16190_v57, 0.0  ;;  %v16198_v52 = vmul.f32 0.2, %v16190_v57  ;;  %vm16193_vm4 = vcmp.ge.f32.partialorder %v16189_v49, 0.0  ;;  %v16197_v1 = vmul.f32 0.2, %v16189_v49 }
0x2032   : > { %v16200_v61 = vsel %vm16192_vm0, %v16188_v32, %v16196_v54  ;;  %v16199_v35 = vsel %vm16191_vm2, %v16187_v21, %v16195_v23 }
0x2033   : > { %v16208_v7 = vmul.f32 %v16204_v39, %v16200_v61  ;;  %v16207_v50 = vmul.f32 %v16203_v51, %v16199_v35  ;;  %v16202_v60 = vsel %vm16194_vm3, %v16190_v57, %v16198_v52  ;;  %v16201_v62 = vsel %vm16193_vm4, %v16189_v49, %v16197_v1 }
0x2034   : > { %v16210_v56 = vmul.f32 %v16206_v58, %v16202_v60  ;;  %v16209_v4 = vmul.f32 %v16205_v59, %v16201_v62 }
0x2035   : > { %v16214_v0 = vsel %vm16121_vm1, %v16208_v7, 0.0  ;;  %v16211_v17 = vsel %vm16121_vm1, %v16207_v50, 0.0 }
0x2036   : > { %16215 = vadd.xlane.f32.xlu1 %v16214_v0  ;;  %16212 = vadd.xlane.f32.xlu0 %v16211_v17  ;;  %v16220_v5 = vsel %vm16121_vm1, %v16210_v56, 0.0  ;;  %v16217_v6 = vsel %vm16121_vm1, %v16209_v4, 0.0 }
0x203a   : > { %16221 = vadd.xlane.f32.xlu1 %v16220_v5  ;;  %16218 = vadd.xlane.f32.xlu0 %v16217_v6 }
0x20c3   : > { %v16216_v8 = vpop.xlane.xlu1 %16215  ;;  %v16213_v12 = vpop.xlane.xlu0 %16212 }
0x20c4   : > { %v16223_v9 = vadd.f32 %v16216_v8, %v16213_v12 }
0x20c7   : > { %v16219_v10 = vpop.xlane.xlu0 %16218  ;;  %v16222_v53 = vpop.xlane.xlu1 %16221 }
0x20c8   : > { %v16224_v13 = vadd.f32 %v16223_v9, %v16219_v10 }
0x20ca   : > { %v16225_v14 = vadd.f32 %v16224_v13, %v16222_v53 }
0x20cc   : > { %v16226_v29 = vrot.slane %v16225_v14, 4 }
0x20ce   : > { %v16227_v18 = vadd.f32 %v16226_v29, %v16225_v14 }
0x20d0   : > { %v16228_v2 = vrot.slane %v16227_v18, 2 }
0x20d2   : > { %v16229_v37 = vadd.f32 %v16228_v2, %v16227_v18 }
0x20d4   : > { %v16230_v16 = vrot.slane %v16229_v37, 1 }
0x20d6   : > { %v16231_v3 = vadd.f32 %v16230_v16, %v16229_v37 }
0x20d8   : > { %v19008_v38 = vmul.f32 -1.442695, %v16231_v3 }
0x20da   : > { %22089 = vpow2.f32 %v19008_v38 }
0x20e4   : > { %v22090_v19 = vpop.eup %22089 }
0x20e5   : > { %v16235_v31 = vadd.f32 1.0, %v22090_v19 }
0x20e7   : > { %22091 = vrcp.f32 %v16235_v31 }
0x20f1   : > { %v22092_v15 = vpop.eup %22091 }
0x20f2   : > { %16239 = vst.msk [vmem:[%s544_s1] sm:$0x1] %vm16238_vm5, %v22092_v15 }
0x20f3 PF: > { %s27_s24 = sadd.s32 1, %s22099_s24  }
0x20f4   : > { %p24_p4 = scmp.ge.s32.totalorder %s27_s24, 4  }
0x20f6   :  { %26 = sbr.rel (!%p24_p4) target bundleno = 3 (0x3), region = 224 }

</bundles_post_ra>
